<compile_context>
chip_gen: v7x
topology: tpu7x:2x2x1
jax: 0.10.0
libtpu: 0.0.40
codegen_flags: <defaults>
</compile_context>

<pallas_src>
import functools

import jax
import jax.numpy as jnp
from jax.experimental import pallas as pl
from jax.experimental.pallas import tpu as pltpu


def pointnet_kernel(x_ref,
                    w1_ref, b1_ref,
                    w2_ref, b2_ref,
                    w3_ref, b3_ref,
                    w4_ref, b4_ref,
                    w5_ref, b5_ref,
                    out_ref,
                    gmax_ref,
                    *, tile_b, chunk_n):
    """Grid = (batch tiles, point chunks).

    x_ref:    (TILE_B, CHUNK_N, 3)  point chunk (f32)
    w1/b1:    f32 (mlp1 runs on the VPU)
    w2..w5:   BN-folded weights in compute dtype; b2..b4 in compute dtype
    b5_ref:   (1, KP) f32, padded classes biased by -1e30
    out_ref:  (1, TILE_B, KP) log-softmax scores, class dim padded to 128
    gmax_ref: (TILE_B, 256) running max accumulator (compute dtype)
    """
    cd = w2_ref.dtype          # compute dtype for MXU operands / activations
    j = pl.program_id(1)

    @pl.when(j == 0)
    def _():
        gmax_ref[...] = jnp.full(gmax_ref.shape, -jnp.inf, gmax_ref.dtype)

    rows = tile_b * chunk_n
    x = x_ref[...].reshape(rows, 3)                      # (rows, 3) f32

    # mlp1 on the VPU: 3 broadcast MACs, no MXU pushes for the K=3 layer.
    h = (x[:, 0:1] * w1_ref[0:1, :] +
         x[:, 1:2] * w1_ref[1:2, :] +
         x[:, 2:3] * w1_ref[2:3, :])
    h = jnp.maximum(h + b1_ref[...], 0.0).astype(cd)     # (rows, 64)

    # mlp2 / mlp3 on the MXU; f32 accumulate, bias+ReLU in compute dtype.
    h = jnp.dot(h, w2_ref[...], preferred_element_type=jnp.float32)
    h = jnp.maximum(h.astype(cd) + b2_ref[...], 0.0)     # (rows, 128)
    h = jnp.dot(h, w3_ref[...], preferred_element_type=jnp.float32)
    h = jnp.maximum(h.astype(cd) + b3_ref[...], 0.0)     # (rows, 256)

    # Running global max-pool over the points axis (torch.max(x, dim=2)).
    # (rows,256) -> (TILE_B, CHUNK_N, 256): layout-preserving since
    # CHUNK_N % 8 == 0 and 256 % 128 == 0.
    chunk_max = jnp.max(h.reshape(tile_b, chunk_n, h.shape[-1]), axis=1)
    gmax_ref[...] = jnp.maximum(gmax_ref[...], chunk_max)

    @pl.when(j == pl.num_programs(1) - 1)
    def _():
        g = gmax_ref[...]                                 # (TILE_B, 256)
        # mlp4: Linear(256,128) + folded BN + ReLU
        h4 = jnp.dot(g, w4_ref[...], preferred_element_type=jnp.float32)
        h4 = jnp.maximum(h4.astype(cd) + b4_ref[...], 0.0)
        # mlp5: Linear(128, K); padded-class bias is -1e30 and stays f32.
        logits = jnp.dot(h4, w5_ref[...],
                         preferred_element_type=jnp.float32) + b5_ref[...]
        # log_softmax along the class axis (padded lanes -> exp(.) == 0).
        m = jnp.max(logits, axis=-1, keepdims=True)
        lse = jnp.log(jnp.sum(jnp.exp(logits - m), axis=-1, keepdims=True)) + m
        out_ref[...] = (logits - lse)[None]               # (1, TILE_B, KP)


def _const_spec(shape):
    nd = len(shape)
    return pl.BlockSpec(shape, lambda i, j, _nd=nd: (0,) * _nd)


def _pick_tiles(batch, n_points, target_rows):
    """Pick (tile_b, chunk_n) so each grid step processes ~target_rows points.

    tile_b is a multiple of 8 when the batch allows (full-sublane head matmuls,
    unmasked output stores) and capped at 16 so larger batches still yield >= 2
    'parallel' grid steps (both v7x TensorCores get work; on v5e/v6e the extra
    ~0.35us step is negligible at these row counts)."""
    tile_b = min(batch, 16)
    if tile_b >= 8:
        tile_b = (tile_b // 8) * 8
    chunk_n = max(8, target_rows // tile_b)
    chunk_n = (chunk_n // 8) * 8                      # (8,128) block constraint
    chunk_n = min(chunk_n, ((n_points + 7) // 8) * 8)
    return tile_b, chunk_n


def pointnet_cls_256d(x, params, *, compute_dtype=jnp.bfloat16,
                      target_rows=4096, vmem_limit_bytes=32 * 1024 * 1024):
    """x: (B, N, 3) float32.  Returns (log_probs (B, K), None)."""
    B, N, C = x.shape
    assert C == 3
    w1, b1, w2, b2, w3, b3, w4, b4, w5, b5 = params
    K = w5.shape[1]

    tile_b, chunk_n = _pick_tiles(B, N, target_rows)

    # Pad the points axis only if needed, by repeating the last point
    # (max-pool invariant through the per-point MLP).
    n_chunks = pl.cdiv(N, chunk_n)
    n_pad = n_chunks * chunk_n
    if n_pad != N:
        x = jnp.concatenate(
            [x, jnp.broadcast_to(x[:, -1:, :], (B, n_pad - N, C))], axis=1)

    # Pad the batch axis only if needed (zero rows, sliced off afterwards).
    n_tiles = pl.cdiv(B, tile_b)
    b_pad = n_tiles * tile_b
    if b_pad != B:
        x = jnp.concatenate(
            [x, jnp.zeros((b_pad - B, n_pad, C), x.dtype)], axis=0)

    # Pad the class dim to a lane-dense multiple of 128.
    kp = pl.cdiv(K, 128) * 128
    w5p = jnp.pad(w5, ((0, 0), (0, kp - K)))
    b5p = jnp.pad(b5, ((0, 0), (0, kp - K)), constant_values=-1e30)

    cd = compute_dtype
    flat_params = [
        w1.astype(jnp.float32), b1.astype(jnp.float32),   # mlp1 on the VPU (f32)
        w2.astype(cd), b2.astype(cd),
        w3.astype(cd), b3.astype(cd),
        w4.astype(cd), b4.astype(cd),
        w5p.astype(cd), b5p.astype(jnp.float32),          # keep -1e30 pads in f32
    ]

    in_specs = [pl.BlockSpec((tile_b, chunk_n, C), lambda i, j: (i, j, 0))]
    in_specs += [_const_spec(p.shape) for p in flat_params]

    kernel = functools.partial(pointnet_kernel, tile_b=tile_b, chunk_n=chunk_n)

    out = pl.pallas_call(
        kernel,
        out_shape=jax.ShapeDtypeStruct((n_tiles, tile_b, kp), jnp.float32),
        grid_spec=pltpu.PrefetchScalarGridSpec(
            num_scalar_prefetch=0,
            grid=(n_tiles, n_chunks),
            in_specs=in_specs,
            out_specs=pl.BlockSpec((1, tile_b, kp), lambda i, j: (i, 0, 0)),
            scratch_shapes=[pltpu.VMEM((tile_b, 256), cd)],
        ),
        compiler_params=pltpu.CompilerParams(
            dimension_semantics=("parallel", "arbitrary"),
            vmem_limit_bytes=vmem_limit_bytes),
    )(x, *flat_params)

    log_probs = out.reshape(b_pad, kp)[:B, :K]
    return log_probs, None


def make_params(key, k=2, eps=1e-5):
    """Deterministic params mirroring the module's shapes, with eval-mode
    BatchNorm folded into the weights:
        scale = gamma / sqrt(running_var + eps)
        w_folded = w * scale ;  shift = (conv_bias - running_mean)*scale + beta
    Returns (w1, b1, w2, b2, w3, b3, w4, b4, w5, b5)."""
    dims = [(3, 64), (64, 128), (128, 256), (256, 128)]
    params = []
    keys = jax.random.split(key, 2 * len(dims) + 2)
    ki = 0
    for cin, cout in dims:
        bound = 1.0 / jnp.sqrt(jnp.float32(cin))
        w = jax.random.uniform(keys[ki], (cin, cout), jnp.float32, -bound, bound)
        ki += 1
        bias = jax.random.uniform(keys[ki], (cout,), jnp.float32, -bound, bound)
        ki += 1
        gamma = 1.0 + 0.01 * jnp.arange(cout, dtype=jnp.float32) / cout
        beta = 0.02 * jnp.sin(jnp.arange(cout, dtype=jnp.float32))
        run_mean = 0.01 * jnp.cos(jnp.arange(cout, dtype=jnp.float32))
        run_var = 1.0 + 0.05 * (jnp.arange(cout, dtype=jnp.float32) % 7) / 7.0
        scale = gamma / jnp.sqrt(run_var + eps)
        params += [w * scale[None, :],
                   ((bias - run_mean) * scale + beta).reshape(1, cout)]
    bound = 1.0 / jnp.sqrt(jnp.float32(128))
    w5 = jax.random.uniform(keys[ki], (128, k), jnp.float32, -bound, bound)
    ki += 1
    b5 = jax.random.uniform(keys[ki], (k,), jnp.float32, -bound, bound)
    params += [w5, b5.reshape(1, k)]
    return tuple(params)


def reference_forward(x, params):
    """Plain-JAX reference (same folded-BN math) for a sanity check."""
    w1, b1, w2, b2, w3, b3, w4, b4, w5, b5 = params
    h = jnp.maximum(jnp.einsum('bnc,cd->bnd', x, w1) + b1, 0.0)
    h = jnp.maximum(jnp.einsum('bnc,cd->bnd', h, w2) + b2, 0.0)
    h = jnp.maximum(jnp.einsum('bnc,cd->bnd', h, w3) + b3, 0.0)
    g = jnp.max(h, axis=1)                      # (B, 256)
    h4 = jnp.maximum(g @ w4 + b4, 0.0)          # (B, 128)
    logits = h4 @ w5 + b5                       # (B, K)
    return jax.nn.log_softmax(logits, axis=1)


if __name__ == "__main__":
    key = jax.random.PRNGKey(0)
    kx, kparam = jax.random.split(key)

    # Small shapes that still exercise the full machinery: 2 batch tiles
    # (tile_b=16, batch padded 24->32), 4 point chunks (chunk_n=64, points
    # padded 200->256 by repeating the last point), running-max accumulator.
    B, N, K = 24, 200, 2
    x = jax.random.normal(kx, (B, N, 3), dtype=jnp.float32)
    params = make_params(kparam, k=K)

    ref = reference_forward(x, params)

    # f32 matmul operands: tight numerical check against the JAX reference.
    # target_rows=1024 forces a multi-step grid even at these small shapes.
    out_f32, aux = pointnet_cls_256d(x, params, compute_dtype=jnp.float32,
                                     target_rows=1024)
    out_f32 = jax.block_until_ready(out_f32)
    assert out_f32.shape == (B, K)
    assert aux is None
    assert jnp.allclose(out_f32, ref, atol=5e-4, rtol=5e-4), (out_f32, ref)

    # bf16 operands + bf16 intermediate activations (v6e/v7x fast path),
    # f32 MXU accumulate and f32 logits / log-softmax.
    out_bf16, _ = pointnet_cls_256d(x, params, compute_dtype=jnp.bfloat16,
                                    target_rows=1024)
    out_bf16 = jax.block_until_ready(out_bf16)
    assert out_bf16.shape == (B, K)
    assert float(jnp.max(jnp.abs(out_bf16 - ref))) < 2e-1, (out_bf16, ref)

    print("KERNEL_OK")
</pallas_src>

<mosaic_0001>
module attributes {stable_mosaic.version = 11 : i64} {
  func.func @pointnet_kernel(%arg0: i32, %arg1: i32, %arg2: memref<16x64x3xf32, #tpu.memory_space<vmem>>, %arg3: memref<3x64xf32, #tpu.memory_space<vmem>>, %arg4: memref<1x64xf32, #tpu.memory_space<vmem>>, %arg5: memref<64x128xf32, #tpu.memory_space<vmem>>, %arg6: memref<1x128xf32, #tpu.memory_space<vmem>>, %arg7: memref<128x256xf32, #tpu.memory_space<vmem>>, %arg8: memref<1x256xf32, #tpu.memory_space<vmem>>, %arg9: memref<256x128xf32, #tpu.memory_space<vmem>>, %arg10: memref<1x128xf32, #tpu.memory_space<vmem>>, %arg11: memref<128x128xf32, #tpu.memory_space<vmem>>, %arg12: memref<1x128xf32, #tpu.memory_space<vmem>>, %arg13: memref<1x16x128xf32, #tpu.memory_space<vmem>>, %arg14: memref<16x256xf32, #tpu.memory_space<vmem>>) attributes {dimension_semantics = [#tpu.dimension_semantics<parallel>, #tpu.dimension_semantics<arbitrary>], iteration_bounds = array<i64: 2, 4>, scalar_prefetch = 0 : i64, scratch_operands = 1 : i64, tpu.core_type = #tpu.core_type<tc>, window_params = [{transform_indices = @transform_0, window_bounds = array<i64: 16, 64, 3>}, {pipeline_mode = #tpu.pipeline_mode<synchronous>, transform_indices = @transform_1, window_bounds = array<i64: 3, 64>}, {pipeline_mode = #tpu.pipeline_mode<synchronous>, transform_indices = @transform_2, window_bounds = array<i64: 1, 64>}, {pipeline_mode = #tpu.pipeline_mode<synchronous>, transform_indices = @transform_3, window_bounds = array<i64: 64, 128>}, {pipeline_mode = #tpu.pipeline_mode<synchronous>, transform_indices = @transform_4, window_bounds = array<i64: 1, 128>}, {pipeline_mode = #tpu.pipeline_mode<synchronous>, transform_indices = @transform_5, window_bounds = array<i64: 128, 256>}, {pipeline_mode = #tpu.pipeline_mode<synchronous>, transform_indices = @transform_6, window_bounds = array<i64: 1, 256>}, {pipeline_mode = #tpu.pipeline_mode<synchronous>, transform_indices = @transform_7, window_bounds = array<i64: 256, 128>}, {pipeline_mode = #tpu.pipeline_mode<synchronous>, transform_indices = @transform_8, window_bounds = array<i64: 1, 128>}, {pipeline_mode = #tpu.pipeline_mode<synchronous>, transform_indices = @transform_9, window_bounds = array<i64: 128, 128>}, {pipeline_mode = #tpu.pipeline_mode<synchronous>, transform_indices = @transform_10, window_bounds = array<i64: 1, 128>}, {transform_indices = @transform_11, window_bounds = array<i64: 1, 16, 128>}]} {
    %c0_i32 = arith.constant 0 : i32
    %0 = arith.cmpi eq, %arg1, %c0_i32 : i32
    %1 = arith.extui %0 : i1 to i32
    %c0_i32_0 = arith.constant 0 : i32
    %2 = arith.cmpi ne, %1, %c0_i32_0 : i32
    scf.if %2 {
      %cst_27 = arith.constant 0xFF800000 : f32
      %49 = vector.broadcast %cst_27 : f32 to vector<16x256xf32>
      %c0_28 = arith.constant 0 : index
      %c0_29 = arith.constant 0 : index
      %50 = vector.load %arg14[%c0_28, %c0_29] : memref<16x256xf32, #tpu.memory_space<vmem>>, vector<16x256xf32>
      tpu.vector_store %arg14[%c0_28, %c0_29], %49 {strides = array<i32>} : memref<16x256xf32, #tpu.memory_space<vmem>>, vector<16x256xf32>,
    } else {
    }
    %c0 = arith.constant 0 : index
    %c0_1 = arith.constant 0 : index
    %c0_2 = arith.constant 0 : index
    %3 = vector.load %arg2[%c0, %c0_1, %c0_2] : memref<16x64x3xf32, #tpu.memory_space<vmem>>, vector<16x64x3xf32>
    %4 = vector.shape_cast %3 : vector<16x64x3xf32> to vector<1024x3xf32>
    %5 = vector.extract_strided_slice %4 {offsets = [0, 0], sizes = [1024, 1], strides = [1, 1]} : vector<1024x3xf32> to vector<1024x1xf32>
    %c0_3 = arith.constant 0 : index
    %c0_4 = arith.constant 0 : index
    %6 = vector.load %arg3[%c0_3, %c0_4] : memref<3x64xf32, #tpu.memory_space<vmem>>, vector<1x64xf32>
    %7 = vector.broadcast %5 : vector<1024x1xf32> to vector<1024x64xf32>
    %8 = vector.broadcast %6 : vector<1x64xf32> to vector<1024x64xf32>
    %9 = arith.mulf %7, %8 : vector<1024x64xf32>
    %10 = vector.extract_strided_slice %4 {offsets = [0, 1], sizes = [1024, 1], strides = [1, 1]} : vector<1024x3xf32> to vector<1024x1xf32>
    %c1 = arith.constant 1 : index
    %c0_5 = arith.constant 0 : index
    %11 = vector.load %arg3[%c1, %c0_5] : memref<3x64xf32, #tpu.memory_space<vmem>>, vector<1x64xf32>
    %12 = vector.broadcast %10 : vector<1024x1xf32> to vector<1024x64xf32>
    %13 = vector.broadcast %11 : vector<1x64xf32> to vector<1024x64xf32>
    %14 = arith.mulf %12, %13 : vector<1024x64xf32>
    %15 = arith.addf %9, %14 : vector<1024x64xf32>
    %16 = vector.extract_strided_slice %4 {offsets = [0, 2], sizes = [1024, 1], strides = [1, 1]} : vector<1024x3xf32> to vector<1024x1xf32>
    %c2 = arith.constant 2 : index
    %c0_6 = arith.constant 0 : index
    %17 = vector.load %arg3[%c2, %c0_6] : memref<3x64xf32, #tpu.memory_space<vmem>>, vector<1x64xf32>
    %18 = vector.broadcast %16 : vector<1024x1xf32> to vector<1024x64xf32>
    %19 = vector.broadcast %17 : vector<1x64xf32> to vector<1024x64xf32>
    %20 = arith.mulf %18, %19 : vector<1024x64xf32>
    %21 = arith.addf %15, %20 : vector<1024x64xf32>
    %c0_7 = arith.constant 0 : index
    %c0_8 = arith.constant 0 : index
    %22 = vector.load %arg4[%c0_7, %c0_8] : memref<1x64xf32, #tpu.memory_space<vmem>>, vector<1x64xf32>
    %23 = vector.broadcast %22 : vector<1x64xf32> to vector<1024x64xf32>
    %24 = arith.addf %21, %23 : vector<1024x64xf32>
    %cst = arith.constant 0.000000e+00 : f32
    %25 = vector.broadcast %cst : f32 to vector<1024x64xf32>
    %26 = arith.maximumf %24, %25 : vector<1024x64xf32>
    %c0_9 = arith.constant 0 : index
    %c0_10 = arith.constant 0 : index
    %27 = vector.load %arg5[%c0_9, %c0_10] : memref<64x128xf32, #tpu.memory_space<vmem>>, vector<64x128xf32>
    %cst_11 = arith.constant dense<0.000000e+00> : vector<1024x128xf32>
    %28 = tpu.matmul %26, %27, %cst_11 {dimension_numbers = #tpu.dot_dimension_numbers<[1], [0], [0], [1], [0, 0, 1, 1], [], []>} : vector<1024x64xf32>, vector<64x128xf32>, vector<1024x128xf32> -> vector<1024x128xf32>
    %c0_12 = arith.constant 0 : index
    %c0_13 = arith.constant 0 : index
    %29 = vector.load %arg6[%c0_12, %c0_13] : memref<1x128xf32, #tpu.memory_space<vmem>>, vector<1x128xf32>
    %30 = vector.broadcast %29 : vector<1x128xf32> to vector<1024x128xf32>
    %31 = arith.addf %28, %30 : vector<1024x128xf32>
    %cst_14 = arith.constant 0.000000e+00 : f32
    %32 = vector.broadcast %cst_14 : f32 to vector<1024x128xf32>
    %33 = arith.maximumf %31, %32 : vector<1024x128xf32>
    %c0_15 = arith.constant 0 : index
    %c0_16 = arith.constant 0 : index
    %34 = vector.load %arg7[%c0_15, %c0_16] : memref<128x256xf32, #tpu.memory_space<vmem>>, vector<128x256xf32>
    %cst_17 = arith.constant dense<0.000000e+00> : vector<1024x256xf32>
    %35 = tpu.matmul %33, %34, %cst_17 {dimension_numbers = #tpu.dot_dimension_numbers<[1], [0], [0], [1], [0, 0, 1, 1], [], []>} : vector<1024x128xf32>, vector<128x256xf32>, vector<1024x256xf32> -> vector<1024x256xf32>
    %c0_18 = arith.constant 0 : index
    %c0_19 = arith.constant 0 : index
    %36 = vector.load %arg8[%c0_18, %c0_19] : memref<1x256xf32, #tpu.memory_space<vmem>>, vector<1x256xf32>
    %37 = vector.broadcast %36 : vector<1x256xf32> to vector<1024x256xf32>
    %38 = arith.addf %35, %37 : vector<1024x256xf32>
    %cst_20 = arith.constant 0.000000e+00 : f32
    %39 = vector.broadcast %cst_20 : f32 to vector<1024x256xf32>
    %40 = arith.maximumf %38, %39 : vector<1024x256xf32>
    %41 = vector.shape_cast %40 : vector<1024x256xf32> to vector<16x64x256xf32>
    %cst_21 = arith.constant dense<0xFF800000> : vector<16x256xf32>
    %42 = vector.multi_reduction <maximumf>, %41, %cst_21 [1] : vector<16x64x256xf32> to vector<16x256xf32>
    %c0_22 = arith.constant 0 : index
    %c0_23 = arith.constant 0 : index
    %43 = vector.load %arg14[%c0_22, %c0_23] : memref<16x256xf32, #tpu.memory_space<vmem>>, vector<16x256xf32>
    %44 = arith.maximumf %43, %42 : vector<16x256xf32>
    %c0_24 = arith.constant 0 : index
    %c0_25 = arith.constant 0 : index
    %45 = vector.load %arg14[%c0_24, %c0_25] : memref<16x256xf32, #tpu.memory_space<vmem>>, vector<16x256xf32>
    tpu.vector_store %arg14[%c0_24, %c0_25], %44 {strides = array<i32>} : memref<16x256xf32, #tpu.memory_space<vmem>>, vector<16x256xf32>,
    %c3_i32 = arith.constant 3 : i32
    %46 = arith.cmpi eq, %arg1, %c3_i32 : i32
    %47 = arith.extui %46 : i1 to i32
    %c0_i32_26 = arith.constant 0 : i32
    %48 = arith.cmpi ne, %47, %c0_i32_26 : i32
    scf.if %48 {
      %c0_27 = arith.constant 0 : index
      %c0_28 = arith.constant 0 : index
      %49 = vector.load %arg14[%c0_27, %c0_28] : memref<16x256xf32, #tpu.memory_space<vmem>>, vector<16x256xf32>
      %c0_29 = arith.constant 0 : index
      %c0_30 = arith.constant 0 : index
      %50 = vector.load %arg9[%c0_29, %c0_30] : memref<256x128xf32, #tpu.memory_space<vmem>>, vector<256x128xf32>
      %cst_31 = arith.constant dense<0.000000e+00> : vector<16x128xf32>
      %51 = tpu.matmul %49, %50, %cst_31 {dimension_numbers = #tpu.dot_dimension_numbers<[1], [0], [0], [1], [0, 0, 1, 1], [], []>} : vector<16x256xf32>, vector<256x128xf32>, vector<16x128xf32> -> vector<16x128xf32>
      %c0_32 = arith.constant 0 : index
      %c0_33 = arith.constant 0 : index
      %52 = vector.load %arg10[%c0_32, %c0_33] : memref<1x128xf32, #tpu.memory_space<vmem>>, vector<1x128xf32>
      %53 = vector.broadcast %52 : vector<1x128xf32> to vector<16x128xf32>
      %54 = arith.addf %51, %53 : vector<16x128xf32>
      %cst_34 = arith.constant 0.000000e+00 : f32
      %55 = vector.broadcast %cst_34 : f32 to vector<16x128xf32>
      %56 = arith.maximumf %54, %55 : vector<16x128xf32>
      %c0_35 = arith.constant 0 : index
      %c0_36 = arith.constant 0 : index
      %57 = vector.load %arg11[%c0_35, %c0_36] : memref<128x128xf32, #tpu.memory_space<vmem>>, vector<128x128xf32>
      %cst_37 = arith.constant dense<0.000000e+00> : vector<16x128xf32>
      %58 = tpu.matmul %56, %57, %cst_37 {dimension_numbers = #tpu.dot_dimension_numbers<[1], [0], [0], [1], [0, 0, 1, 1], [], []>} : vector<16x128xf32>, vector<128x128xf32>, vector<16x128xf32> -> vector<16x128xf32>
      %c0_38 = arith.constant 0 : index
      %c0_39 = arith.constant 0 : index
      %59 = vector.load %arg12[%c0_38, %c0_39] : memref<1x128xf32, #tpu.memory_space<vmem>>, vector<1x128xf32>
      %60 = vector.broadcast %59 : vector<1x128xf32> to vector<16x128xf32>
      %61 = arith.addf %58, %60 : vector<16x128xf32>
      %cst_40 = arith.constant dense<0xFF800000> : vector<16xf32>
      %62 = vector.multi_reduction <maximumf>, %61, %cst_40 [1] : vector<16x128xf32> to vector<16xf32>
      %63 = vector.shape_cast %62 : vector<16xf32> to vector<16x1xf32>
      %64 = vector.broadcast %63 : vector<16x1xf32> to vector<16x128xf32>
      %65 = arith.subf %61, %64 : vector<16x128xf32>
      %66 = math.exp %65 : vector<16x128xf32>
      %cst_41 = arith.constant dense<0.000000e+00> : vector<16xf32>
      %67 = vector.multi_reduction <add>, %66, %cst_41 [1] : vector<16x128xf32> to vector<16xf32>
      %68 = vector.shape_cast %67 : vector<16xf32> to vector<16x1xf32>
      %69 = math.log %68 : vector<16x1xf32>
      %70 = arith.addf %69, %63 : vector<16x1xf32>
      %71 = vector.broadcast %70 : vector<16x1xf32> to vector<16x128xf32>
      %72 = arith.subf %61, %71 : vector<16x128xf32>
      %73 = vector.shape_cast %72 : vector<16x128xf32> to vector<1x16x128xf32>
      %c0_42 = arith.constant 0 : index
      %c0_43 = arith.constant 0 : index
      %c0_44 = arith.constant 0 : index
      %74 = vector.load %arg13[%c0_42, %c0_43, %c0_44] : memref<1x16x128xf32, #tpu.memory_space<vmem>>, vector<1x16x128xf32>
      tpu.vector_store %arg13[%c0_42, %c0_43, %c0_44], %73 {strides = array<i32>} : memref<1x16x128xf32, #tpu.memory_space<vmem>>, vector<1x16x128xf32>,
    } else {
    }
    return
  }
  func.func @transform_0(%arg0: i32, %arg1: i32) -> (i32, i32, i32) {
    %c0_i32 = arith.constant 0 : i32
    %c0_i32_0 = arith.constant 0 : i32
    return %arg0, %arg1, %c0_i32 : i32, i32, i32
  }
  func.func @transform_1(%arg0: i32, %arg1: i32) -> (i32, i32) {
    %c0_i32 = arith.constant 0 : i32
    %c0_i32_0 = arith.constant 0 : i32
    %c0_i32_1 = arith.constant 0 : i32
    return %c0_i32, %c0_i32_0 : i32, i32
  }
  func.func @transform_2(%arg0: i32, %arg1: i32) -> (i32, i32) {
    %c0_i32 = arith.constant 0 : i32
    %c0_i32_0 = arith.constant 0 : i32
    %c0_i32_1 = arith.constant 0 : i32
    return %c0_i32, %c0_i32_0 : i32, i32
  }
  func.func @transform_3(%arg0: i32, %arg1: i32) -> (i32, i32) {
    %c0_i32 = arith.constant 0 : i32
    %c0_i32_0 = arith.constant 0 : i32
    %c0_i32_1 = arith.constant 0 : i32
    return %c0_i32, %c0_i32_0 : i32, i32
  }
  func.func @transform_4(%arg0: i32, %arg1: i32) -> (i32, i32) {
    %c0_i32 = arith.constant 0 : i32
    %c0_i32_0 = arith.constant 0 : i32
    %c0_i32_1 = arith.constant 0 : i32
    return %c0_i32, %c0_i32_0 : i32, i32
  }
  func.func @transform_5(%arg0: i32, %arg1: i32) -> (i32, i32) {
    %c0_i32 = arith.constant 0 : i32
    %c0_i32_0 = arith.constant 0 : i32
    %c0_i32_1 = arith.constant 0 : i32
    return %c0_i32, %c0_i32_0 : i32, i32
  }
  func.func @transform_6(%arg0: i32, %arg1: i32) -> (i32, i32) {
    %c0_i32 = arith.constant 0 : i32
    %c0_i32_0 = arith.constant 0 : i32
    %c0_i32_1 = arith.constant 0 : i32
    return %c0_i32, %c0_i32_0 : i32, i32
  }
  func.func @transform_7(%arg0: i32, %arg1: i32) -> (i32, i32) {
    %c0_i32 = arith.constant 0 : i32
    %c0_i32_0 = arith.constant 0 : i32
    %c0_i32_1 = arith.constant 0 : i32
    return %c0_i32, %c0_i32_0 : i32, i32
  }
  func.func @transform_8(%arg0: i32, %arg1: i32) -> (i32, i32) {
    %c0_i32 = arith.constant 0 : i32
    %c0_i32_0 = arith.constant 0 : i32
    %c0_i32_1 = arith.constant 0 : i32
    return %c0_i32, %c0_i32_0 : i32, i32
  }
  func.func @transform_9(%arg0: i32, %arg1: i32) -> (i32, i32) {
    %c0_i32 = arith.constant 0 : i32
    %c0_i32_0 = arith.constant 0 : i32
    %c0_i32_1 = arith.constant 0 : i32
    return %c0_i32, %c0_i32_0 : i32, i32
  }
  func.func @transform_10(%arg0: i32, %arg1: i32) -> (i32, i32) {
    %c0_i32 = arith.constant 0 : i32
    %c0_i32_0 = arith.constant 0 : i32
    %c0_i32_1 = arith.constant 0 : i32
    return %c0_i32, %c0_i32_0 : i32, i32
  }
  func.func @transform_11(%arg0: i32, %arg1: i32) -> (i32, i32, i32) {
    %c0_i32 = arith.constant 0 : i32
    %c0_i32_0 = arith.constant 0 : i32
    %c0_i32_1 = arith.constant 0 : i32
    return %arg0, %c0_i32, %c0_i32_0 : i32, i32, i32
  }
}

</mosaic_0001>

<bundles_post_ra>
// kernel: tpu_custom_call.1
= control target key start
LH: loop header
LB: loop body
LE: loop exit
PB: predicated region body
PF: predicated region fallthrough
CT: control target
= control target key end

     0   :  { %s11658_s0 = inlined_call_operand.vmem [shape: f32[32,256,3], index: 0, kind: input, shape index: {}]   ;;  %s11659_s1 = inlined_call_operand.vmem [shape: f32[3,64], index: 1, kind: input, shape index: {}]   ;;  %s11660_s2 = inlined_call_operand.vmem [shape: f32[1,64], index: 2, kind: input, shape index: {}]   ;;  %s11661_s3 = inlined_call_operand.vmem [shape: f32[64,128], index: 3, kind: input, shape index: {}]   ;;  %s11662_s4 = inlined_call_operand.vmem [shape: f32[1,128], index: 4, kind: input, shape index: {}]   ;;  %s11663_s5 = inlined_call_operand.vmem [shape: f32[128,256], index: 5, kind: input, shape index: {}]   ;;  %s11664_s6 = inlined_call_operand.vmem [shape: f32[1,256], index: 6, kind: input, shape index: {}]   ;;  %s11665_s7 = inlined_call_operand.vmem [shape: f32[256,128], index: 7, kind: input, shape index: {}]   ;;  %s11666_s8 = inlined_call_operand.vmem [shape: f32[1,128], index: 8, kind: input, shape index: {}]   ;;  %s11667_s9 = inlined_call_operand.vmem [shape: f32[128,128], index: 9, kind: input, shape index: {}]   ;;  %s11668_s10 = inlined_call_operand.vmem [shape: f32[1,128], index: 10, kind: input, shape index: {}]   ;;  %s11669_s11 = inlined_call_operand.hbm [shape: f32[2,16,128], index: 11, kind: output, shape index: {}]  }
   0x1   :  { %11688 = sst [smem:[#allocation124_spill]] %s11668_s10 }
   0x2   :  { %11689 = sst [smem:[#allocation125_spill]] %s11669_s11 }
   0x3   :  { %16 = vsyncpa [#allocation5], 0 }
   0x4   :  { %18 = vsyncpa [#allocation5 + $0x1], 0  ;;  %s8164_s17 = smov 0   ;;  %s8166_s18 = smov 0  }
   0x5   :  { %s8168_s19 = smov 0   ;;  %s8170_s20 = smov 0  }
   0x6   :  { %s8172_s21 = smov 0   ;;  %s8174_s22 = smov 0  }
   0x7   :  { %s8176_s23 = smov 0   ;;  %s8178_s24 = smov 0  }
   0x8   :  { %s8180_s25 = smov 0   ;;  %s8182_s26 = smov 0  }
   0x9 LB: > { %11690 = sst [smem:[#allocation7_spill]] %s8058_s17  ;;  %s6872_s27 = sadd.s32 4294967295, %s8094_s26   ;;  %s8094_s26 = sphi %s8182_s26, %s24_s26   ;;  %s8090_s25 = sphi %s8180_s25, %s11977_s25   ;;  %s8086_s24 = sphi %s8178_s24, %s11976_s24   ;;  %s8082_s23 = sphi %s8176_s23, %s11975_s23   ;;  %s8078_s22 = sphi %s8174_s22, %s11974_s22   ;;  %s8074_s21 = sphi %s8172_s21, %s11973_s21   ;;  %s8070_s20 = sphi %s8170_s20, %s11972_s20   ;;  %s8066_s19 = sphi %s8168_s19, %s11971_s19   ;;  %s8062_s18 = sphi %s8166_s18, %s11970_s18   ;;  %s8058_s17 = sphi %s8164_s17, %s11969_s17  }
   0xa   : > { %11691 = sst [smem:[#allocation8_spill]] %s8082_s23  ;;  %s6873_s28 = sadd.s32 4294967294, %s8094_s26  }
   0xb   : > { %s33_s29 = sadd.s32 1, %s8086_s24  ;;  %s36_s30 = sadd.s32 1, %s8090_s25 }
   0xc   : > { %p34_p0 = scmp.ge.s32.totalorder %s33_s29, 4  ;;  %s45_s12 = sadd.s32 1, %s8074_s21 }
   0xd   : > { %p52_p1 = scmp.ne.s32.totalorder %s8074_s21, %s8070_s20  ;;  %p53_p2 = scmp.eq.s32.totalorder %s8094_s26, 0 }
   0xe   : > { %s11979_s29 = smov (%p34_p0, %s33_s29), 0  ;;  %s11981_s30 = smov (!%p34_p0, %s36_s30), %s8090_s25 }
   0xf   : > { %11692 = sst [smem:[#allocation9_spill]] %s11979_s29  ;;  %s41_s13 = ssub.s32 %s8086_s24, %s11979_s29 }
  0x10   : > { %p8227_p3 = por %p53_p2, %p52_p1  ;;  %p38_p4 = scmp.ge.s32.totalorder %s11981_s30, 2 }
  0x11   : > { %s281_s15 = sadd.s32 1, %s8066_s19  ;;  %p291_p5 = scmp.ne.s32.totalorder %s8066_s19, %s8062_s18 }
  0x12   : > { %p292_p6 = scmp.eq.s32.totalorder %s6872_s27, 7  ;;  %s11983_s30 = smov (%p38_p4, %s11981_s30), 0 }
  0x13   : > { %11694 = sst [smem:[#allocation10_spill]] %s11983_s30  ;;  %p297_p8 = scmp.ne.s32.totalorder %s8062_s18, %s8058_s17 }
  0x14   : > { %p8236_p7 = por %p292_p6, %p291_p5  ;;  %s40_s11 = ssub.s32 %s8090_s25, %s11983_s30 }
  0x15   : > { %p298_p9 = scmp.eq.s32.totalorder %s6873_s28, 7  ;;  %s42_s29 = sor.u32 %s41_s13, %s40_s11 }
  0x16   : > { %p279_p10 = scmp.eq.s32.totalorder %s40_s11, 0  ;;  %p43_p11 = scmp.eq.s32.totalorder %s42_s29, 0 }
  0x17   : > { %p8244_p12 = por %p298_p9, %p297_p8  ;;  %p6875_p13 = scmp.ge.s32.totalorder %s8094_s26, 8 }
  0x18   : > { %s8249_s10 = scalar_select %p279_p10, %s8066_s19, %s281_s15  }
  0x19   : > { %s11696_s23 = scalar_select %p8244_p12, 1, 0 }
  0x1a   : > { %s8252_s27 = scalar_select %p43_p11, %s8074_s21, %s45_s12  }
  0x1b   : > { %11697 = sst [smem:[#allocation11_spill]] %s11696_s23  ;;  %344 = sbr.rel (%p6875_p13) target bundleno = 105 (0x69), region = 56 }
  0x22   : > { %347 = sbr.rel (!%p8227_p3) target bundleno = 105 (0x69), region = 60  ;;  %s349_s28 = sand.u32 (%p8227_p3), 1, %s8074_s21  }
  0x23   : > { %s6878_s11 = sshll.u32 (%p8227_p3), %s8086_s24, 3  ;;  %s6876_s29 = sshll.u32 (%p8227_p3), %s349_s28, 10 }
  0x24   : > { %s7026_s13 = sshll.u32 (%p8227_p3), %s8090_s25, 9  ;;  %s8268_s14 = scalar_lea.vmem (%p8227_p3), [#allocation3], %s6876_s29 }
  0x25   : > { %s355_s30 = sadd.s32 (%p8227_p3), %s7026_s13, %s6878_s11 }
  0x26   : > { %s6880_s17 = sshll.u32 (%p8227_p3), %s355_s30, 3 }
  0x27   : > { %s8263_s12 = scalar_lea.vmem (%p8227_p3), %s11658_s0, %s6880_s17 }
  0x28   : > { %v639_v0 = vld [vmem:[%s8263_s12] sm:$0xff] (%p8227_p3)  ;;  %v641_v1 = vld [vmem:[%s8263_s12 + $0x8] sm:$0xff] (%p8227_p3)  ;;  %v643_v2 = vld [vmem:[%s8263_s12 + $0x10] sm:$0xff] (%p8227_p3) }
  0x29   : > { %640 = vst [vmem:[%s8268_s14] sm:$0xff] %v639_v0  ;;  %642 = vst [vmem:[%s8268_s14 + $0x8] sm:$0xff] %v641_v1  ;;  %v645_v3 = vld [vmem:[%s8263_s12 + $0x18] sm:$0xff]  ;;  %v647_v4 = vld [vmem:[%s8263_s12 + $0x20] sm:$0xff] }
  0x2a   : > { %644 = vst [vmem:[%s8268_s14 + $0x10] sm:$0xff] %v643_v2  ;;  %v649_v5 = vld [vmem:[%s8263_s12 + $0x28] sm:$0xff]  ;;  %646 = vst [vmem:[%s8268_s14 + $0x18] sm:$0xff] %v645_v3  ;;  %v651_v6 = vld [vmem:[%s8263_s12 + $0x30] sm:$0xff] }
  0x2b   : > { %648 = vst [vmem:[%s8268_s14 + $0x20] sm:$0xff] %v647_v4  ;;  %650 = vst [vmem:[%s8268_s14 + $0x28] sm:$0xff] %v649_v5  ;;  %v653_v7 = vld [vmem:[%s8263_s12 + $0x38] sm:$0xff]  ;;  %v655_v8 = vld [vmem:[%s8263_s12 + $0x100] sm:$0xff] }
  0x2c   : > { %652 = vst [vmem:[%s8268_s14 + $0x30] sm:$0xff] %v651_v6  ;;  %654 = vst [vmem:[%s8268_s14 + $0x38] sm:$0xff] %v653_v7  ;;  %v657_v9 = vld [vmem:[%s8263_s12 + $0x108] sm:$0xff]  ;;  %v659_v10 = vld [vmem:[%s8263_s12 + $0x110] sm:$0xff] }
  0x2d   : > { %656 = vst [vmem:[%s8268_s14 + $0x40] sm:$0xff] %v655_v8  ;;  %v661_v11 = vld [vmem:[%s8263_s12 + $0x118] sm:$0xff]  ;;  %658 = vst [vmem:[%s8268_s14 + $0x48] sm:$0xff] %v657_v9  ;;  %v663_v12 = vld [vmem:[%s8263_s12 + $0x120] sm:$0xff] }
  0x2e   : > { %660 = vst [vmem:[%s8268_s14 + $0x50] sm:$0xff] %v659_v10  ;;  %662 = vst [vmem:[%s8268_s14 + $0x58] sm:$0xff] %v661_v11  ;;  %v665_v13 = vld [vmem:[%s8263_s12 + $0x128] sm:$0xff]  ;;  %v667_v14 = vld [vmem:[%s8263_s12 + $0x130] sm:$0xff] }
  0x2f   : > { %664 = vst [vmem:[%s8268_s14 + $0x60] sm:$0xff] %v663_v12  ;;  %666 = vst [vmem:[%s8268_s14 + $0x68] sm:$0xff] %v665_v13  ;;  %v669_v15 = vld [vmem:[%s8263_s12 + $0x138] sm:$0xff]  ;;  %v671_v16 = vld [vmem:[%s8263_s12 + $0x200] sm:$0xff] }
  0x30   : > { %668 = vst [vmem:[%s8268_s14 + $0x70] sm:$0xff] %v667_v14  ;;  %v673_v17 = vld [vmem:[%s8263_s12 + $0x208] sm:$0xff]  ;;  %670 = vst [vmem:[%s8268_s14 + $0x78] sm:$0xff] %v669_v15  ;;  %v675_v18 = vld [vmem:[%s8263_s12 + $0x210] sm:$0xff] }
  0x31   : > { %672 = vst [vmem:[%s8268_s14 + $0x80] sm:$0xff] %v671_v16  ;;  %674 = vst [vmem:[%s8268_s14 + $0x88] sm:$0xff] %v673_v17  ;;  %v677_v19 = vld [vmem:[%s8263_s12 + $0x218] sm:$0xff]  ;;  %v679_v20 = vld [vmem:[%s8263_s12 + $0x220] sm:$0xff] }
  0x32   : > { %676 = vst [vmem:[%s8268_s14 + $0x90] sm:$0xff] %v675_v18  ;;  %678 = vst [vmem:[%s8268_s14 + $0x98] sm:$0xff] %v677_v19  ;;  %v681_v21 = vld [vmem:[%s8263_s12 + $0x228] sm:$0xff]  ;;  %v683_v22 = vld [vmem:[%s8263_s12 + $0x230] sm:$0xff] }
  0x33   : > { %680 = vst [vmem:[%s8268_s14 + $0xa0] sm:$0xff] %v679_v20  ;;  %v685_v23 = vld [vmem:[%s8263_s12 + $0x238] sm:$0xff]  ;;  %682 = vst [vmem:[%s8268_s14 + $0xa8] sm:$0xff] %v681_v21  ;;  %v687_v24 = vld [vmem:[%s8263_s12 + $0x300] sm:$0xff] }
  0x34   : > { %684 = vst [vmem:[%s8268_s14 + $0xb0] sm:$0xff] %v683_v22  ;;  %686 = vst [vmem:[%s8268_s14 + $0xb8] sm:$0xff] %v685_v23  ;;  %v689_v25 = vld [vmem:[%s8263_s12 + $0x308] sm:$0xff]  ;;  %v691_v26 = vld [vmem:[%s8263_s12 + $0x310] sm:$0xff] }
  0x35   : > { %688 = vst [vmem:[%s8268_s14 + $0xc0] sm:$0xff] %v687_v24  ;;  %690 = vst [vmem:[%s8268_s14 + $0xc8] sm:$0xff] %v689_v25  ;;  %v693_v27 = vld [vmem:[%s8263_s12 + $0x318] sm:$0xff]  ;;  %v695_v28 = vld [vmem:[%s8263_s12 + $0x320] sm:$0xff] }
  0x36   : > { %692 = vst [vmem:[%s8268_s14 + $0xd0] sm:$0xff] %v691_v26  ;;  %v697_v29 = vld [vmem:[%s8263_s12 + $0x328] sm:$0xff]  ;;  %694 = vst [vmem:[%s8268_s14 + $0xd8] sm:$0xff] %v693_v27  ;;  %v699_v30 = vld [vmem:[%s8263_s12 + $0x330] sm:$0xff] }
  0x37   : > { %696 = vst [vmem:[%s8268_s14 + $0xe0] sm:$0xff] %v695_v28  ;;  %698 = vst [vmem:[%s8268_s14 + $0xe8] sm:$0xff] %v697_v29  ;;  %v701_v31 = vld [vmem:[%s8263_s12 + $0x338] sm:$0xff]  ;;  %v703_v32 = vld [vmem:[%s8263_s12 + $0x400] sm:$0xff] }
  0x38   : > { %700 = vst [vmem:[%s8268_s14 + $0xf0] sm:$0xff] %v699_v30  ;;  %702 = vst [vmem:[%s8268_s14 + $0xf8] sm:$0xff] %v701_v31  ;;  %v705_v33 = vld [vmem:[%s8263_s12 + $0x408] sm:$0xff]  ;;  %v707_v34 = vld [vmem:[%s8263_s12 + $0x410] sm:$0xff] }
  0x39   : > { %704 = vst [vmem:[%s8268_s14 + $0x100] sm:$0xff] %v703_v32  ;;  %v709_v35 = vld [vmem:[%s8263_s12 + $0x418] sm:$0xff]  ;;  %706 = vst [vmem:[%s8268_s14 + $0x108] sm:$0xff] %v705_v33  ;;  %v711_v36 = vld [vmem:[%s8263_s12 + $0x420] sm:$0xff] }
  0x3a   : > { %708 = vst [vmem:[%s8268_s14 + $0x110] sm:$0xff] %v707_v34  ;;  %710 = vst [vmem:[%s8268_s14 + $0x118] sm:$0xff] %v709_v35  ;;  %v713_v37 = vld [vmem:[%s8263_s12 + $0x428] sm:$0xff]  ;;  %v715_v38 = vld [vmem:[%s8263_s12 + $0x430] sm:$0xff] }
  0x3b   : > { %712 = vst [vmem:[%s8268_s14 + $0x120] sm:$0xff] %v711_v36  ;;  %714 = vst [vmem:[%s8268_s14 + $0x128] sm:$0xff] %v713_v37  ;;  %v717_v39 = vld [vmem:[%s8263_s12 + $0x438] sm:$0xff]  ;;  %v719_v40 = vld [vmem:[%s8263_s12 + $0x500] sm:$0xff] }
  0x3c   : > { %716 = vst [vmem:[%s8268_s14 + $0x130] sm:$0xff] %v715_v38  ;;  %v721_v41 = vld [vmem:[%s8263_s12 + $0x508] sm:$0xff]  ;;  %718 = vst [vmem:[%s8268_s14 + $0x138] sm:$0xff] %v717_v39  ;;  %v723_v42 = vld [vmem:[%s8263_s12 + $0x510] sm:$0xff] }
  0x3d   : > { %720 = vst [vmem:[%s8268_s14 + $0x140] sm:$0xff] %v719_v40  ;;  %722 = vst [vmem:[%s8268_s14 + $0x148] sm:$0xff] %v721_v41  ;;  %v725_v43 = vld [vmem:[%s8263_s12 + $0x518] sm:$0xff]  ;;  %v727_v44 = vld [vmem:[%s8263_s12 + $0x520] sm:$0xff] }
  0x3e   : > { %724 = vst [vmem:[%s8268_s14 + $0x150] sm:$0xff] %v723_v42  ;;  %726 = vst [vmem:[%s8268_s14 + $0x158] sm:$0xff] %v725_v43  ;;  %v729_v45 = vld [vmem:[%s8263_s12 + $0x528] sm:$0xff]  ;;  %v731_v46 = vld [vmem:[%s8263_s12 + $0x530] sm:$0xff] }
  0x3f   : > { %728 = vst [vmem:[%s8268_s14 + $0x160] sm:$0xff] %v727_v44  ;;  %v733_v47 = vld [vmem:[%s8263_s12 + $0x538] sm:$0xff]  ;;  %730 = vst [vmem:[%s8268_s14 + $0x168] sm:$0xff] %v729_v45  ;;  %v735_v48 = vld [vmem:[%s8263_s12 + $0x600] sm:$0xff] }
  0x40   : > { %732 = vst [vmem:[%s8268_s14 + $0x170] sm:$0xff] %v731_v46  ;;  %734 = vst [vmem:[%s8268_s14 + $0x178] sm:$0xff] %v733_v47  ;;  %v737_v49 = vld [vmem:[%s8263_s12 + $0x608] sm:$0xff]  ;;  %v739_v50 = vld [vmem:[%s8263_s12 + $0x610] sm:$0xff] }
  0x41   : > { %736 = vst [vmem:[%s8268_s14 + $0x180] sm:$0xff] %v735_v48  ;;  %738 = vst [vmem:[%s8268_s14 + $0x188] sm:$0xff] %v737_v49  ;;  %v741_v51 = vld [vmem:[%s8263_s12 + $0x618] sm:$0xff]  ;;  %v743_v52 = vld [vmem:[%s8263_s12 + $0x620] sm:$0xff] }
  0x42   : > { %740 = vst [vmem:[%s8268_s14 + $0x190] sm:$0xff] %v739_v50  ;;  %v745_v53 = vld [vmem:[%s8263_s12 + $0x628] sm:$0xff]  ;;  %742 = vst [vmem:[%s8268_s14 + $0x198] sm:$0xff] %v741_v51  ;;  %v747_v54 = vld [vmem:[%s8263_s12 + $0x630] sm:$0xff] }
  0x43   : > { %744 = vst [vmem:[%s8268_s14 + $0x1a0] sm:$0xff] %v743_v52  ;;  %746 = vst [vmem:[%s8268_s14 + $0x1a8] sm:$0xff] %v745_v53  ;;  %v749_v55 = vld [vmem:[%s8263_s12 + $0x638] sm:$0xff]  ;;  %v751_v56 = vld [vmem:[%s8263_s12 + $0x700] sm:$0xff] }
  0x44   : > { %748 = vst [vmem:[%s8268_s14 + $0x1b0] sm:$0xff] %v747_v54  ;;  %750 = vst [vmem:[%s8268_s14 + $0x1b8] sm:$0xff] %v749_v55  ;;  %v753_v57 = vld [vmem:[%s8263_s12 + $0x708] sm:$0xff]  ;;  %v755_v58 = vld [vmem:[%s8263_s12 + $0x710] sm:$0xff] }
  0x45   : > { %752 = vst [vmem:[%s8268_s14 + $0x1c0] sm:$0xff] %v751_v56  ;;  %v757_v59 = vld [vmem:[%s8263_s12 + $0x718] sm:$0xff]  ;;  %754 = vst [vmem:[%s8268_s14 + $0x1c8] sm:$0xff] %v753_v57  ;;  %v759_v60 = vld [vmem:[%s8263_s12 + $0x720] sm:$0xff] }
  0x46   : > { %756 = vst [vmem:[%s8268_s14 + $0x1d0] sm:$0xff] %v755_v58  ;;  %758 = vst [vmem:[%s8268_s14 + $0x1d8] sm:$0xff] %v757_v59  ;;  %v761_v61 = vld [vmem:[%s8263_s12 + $0x728] sm:$0xff]  ;;  %v763_v62 = vld [vmem:[%s8263_s12 + $0x730] sm:$0xff] }
  0x47   : > { %760 = vst [vmem:[%s8268_s14 + $0x1e0] sm:$0xff] %v759_v60  ;;  %762 = vst [vmem:[%s8268_s14 + $0x1e8] sm:$0xff] %v761_v61  ;;  %v765_v63 = vld [vmem:[%s8263_s12 + $0x738] sm:$0xff]  ;;  %v767_v0 = vld [vmem:[%s8263_s12 + $0x800] sm:$0xff] }
  0x48   : > { %764 = vst [vmem:[%s8268_s14 + $0x1f0] sm:$0xff] %v763_v62  ;;  %v769_v1 = vld [vmem:[%s8263_s12 + $0x808] sm:$0xff]  ;;  %766 = vst [vmem:[%s8268_s14 + $0x1f8] sm:$0xff] %v765_v63  ;;  %v771_v2 = vld [vmem:[%s8263_s12 + $0x810] sm:$0xff] }
  0x49   : > { %768 = vst [vmem:[%s8268_s14 + $0x200] sm:$0xff] %v767_v0  ;;  %770 = vst [vmem:[%s8268_s14 + $0x208] sm:$0xff] %v769_v1  ;;  %v773_v3 = vld [vmem:[%s8263_s12 + $0x818] sm:$0xff]  ;;  %v775_v4 = vld [vmem:[%s8263_s12 + $0x820] sm:$0xff] }
  0x4a   : > { %772 = vst [vmem:[%s8268_s14 + $0x210] sm:$0xff] %v771_v2  ;;  %774 = vst [vmem:[%s8268_s14 + $0x218] sm:$0xff] %v773_v3  ;;  %v777_v5 = vld [vmem:[%s8263_s12 + $0x828] sm:$0xff]  ;;  %v779_v6 = vld [vmem:[%s8263_s12 + $0x830] sm:$0xff] }
  0x4b   : > { %776 = vst [vmem:[%s8268_s14 + $0x220] sm:$0xff] %v775_v4  ;;  %v781_v7 = vld [vmem:[%s8263_s12 + $0x838] sm:$0xff]  ;;  %778 = vst [vmem:[%s8268_s14 + $0x228] sm:$0xff] %v777_v5  ;;  %v783_v8 = vld [vmem:[%s8263_s12 + $0x900] sm:$0xff] }
  0x4c   : > { %780 = vst [vmem:[%s8268_s14 + $0x230] sm:$0xff] %v779_v6  ;;  %782 = vst [vmem:[%s8268_s14 + $0x238] sm:$0xff] %v781_v7  ;;  %v785_v9 = vld [vmem:[%s8263_s12 + $0x908] sm:$0xff]  ;;  %v787_v10 = vld [vmem:[%s8263_s12 + $0x910] sm:$0xff] }
  0x4d   : > { %784 = vst [vmem:[%s8268_s14 + $0x240] sm:$0xff] %v783_v8  ;;  %786 = vst [vmem:[%s8268_s14 + $0x248] sm:$0xff] %v785_v9  ;;  %v789_v11 = vld [vmem:[%s8263_s12 + $0x918] sm:$0xff]  ;;  %v791_v12 = vld [vmem:[%s8263_s12 + $0x920] sm:$0xff] }
  0x4e   : > { %788 = vst [vmem:[%s8268_s14 + $0x250] sm:$0xff] %v787_v10  ;;  %v793_v13 = vld [vmem:[%s8263_s12 + $0x928] sm:$0xff]  ;;  %790 = vst [vmem:[%s8268_s14 + $0x258] sm:$0xff] %v789_v11  ;;  %v795_v14 = vld [vmem:[%s8263_s12 + $0x930] sm:$0xff] }
  0x4f   : > { %792 = vst [vmem:[%s8268_s14 + $0x260] sm:$0xff] %v791_v12  ;;  %794 = vst [vmem:[%s8268_s14 + $0x268] sm:$0xff] %v793_v13  ;;  %v797_v15 = vld [vmem:[%s8263_s12 + $0x938] sm:$0xff]  ;;  %v799_v16 = vld [vmem:[%s8263_s12 + $0xa00] sm:$0xff] }
  0x50   : > { %796 = vst [vmem:[%s8268_s14 + $0x270] sm:$0xff] %v795_v14  ;;  %798 = vst [vmem:[%s8268_s14 + $0x278] sm:$0xff] %v797_v15  ;;  %v801_v17 = vld [vmem:[%s8263_s12 + $0xa08] sm:$0xff]  ;;  %v803_v18 = vld [vmem:[%s8263_s12 + $0xa10] sm:$0xff] }
  0x51   : > { %800 = vst [vmem:[%s8268_s14 + $0x280] sm:$0xff] %v799_v16  ;;  %v805_v19 = vld [vmem:[%s8263_s12 + $0xa18] sm:$0xff]  ;;  %802 = vst [vmem:[%s8268_s14 + $0x288] sm:$0xff] %v801_v17  ;;  %v807_v20 = vld [vmem:[%s8263_s12 + $0xa20] sm:$0xff] }
  0x52   : > { %804 = vst [vmem:[%s8268_s14 + $0x290] sm:$0xff] %v803_v18  ;;  %806 = vst [vmem:[%s8268_s14 + $0x298] sm:$0xff] %v805_v19  ;;  %v809_v21 = vld [vmem:[%s8263_s12 + $0xa28] sm:$0xff]  ;;  %v811_v22 = vld [vmem:[%s8263_s12 + $0xa30] sm:$0xff] }
  0x53   : > { %808 = vst [vmem:[%s8268_s14 + $0x2a0] sm:$0xff] %v807_v20  ;;  %810 = vst [vmem:[%s8268_s14 + $0x2a8] sm:$0xff] %v809_v21  ;;  %v813_v23 = vld [vmem:[%s8263_s12 + $0xa38] sm:$0xff]  ;;  %v815_v24 = vld [vmem:[%s8263_s12 + $0xb00] sm:$0xff] }
  0x54   : > { %812 = vst [vmem:[%s8268_s14 + $0x2b0] sm:$0xff] %v811_v22  ;;  %v817_v25 = vld [vmem:[%s8263_s12 + $0xb08] sm:$0xff]  ;;  %814 = vst [vmem:[%s8268_s14 + $0x2b8] sm:$0xff] %v813_v23  ;;  %v819_v26 = vld [vmem:[%s8263_s12 + $0xb10] sm:$0xff] }
  0x55   : > { %816 = vst [vmem:[%s8268_s14 + $0x2c0] sm:$0xff] %v815_v24  ;;  %818 = vst [vmem:[%s8268_s14 + $0x2c8] sm:$0xff] %v817_v25  ;;  %v821_v27 = vld [vmem:[%s8263_s12 + $0xb18] sm:$0xff]  ;;  %v823_v28 = vld [vmem:[%s8263_s12 + $0xb20] sm:$0xff] }
  0x56   : > { %820 = vst [vmem:[%s8268_s14 + $0x2d0] sm:$0xff] %v819_v26  ;;  %822 = vst [vmem:[%s8268_s14 + $0x2d8] sm:$0xff] %v821_v27  ;;  %v825_v29 = vld [vmem:[%s8263_s12 + $0xb28] sm:$0xff]  ;;  %v827_v30 = vld [vmem:[%s8263_s12 + $0xb30] sm:$0xff] }
  0x57   : > { %824 = vst [vmem:[%s8268_s14 + $0x2e0] sm:$0xff] %v823_v28  ;;  %v829_v31 = vld [vmem:[%s8263_s12 + $0xb38] sm:$0xff]  ;;  %826 = vst [vmem:[%s8268_s14 + $0x2e8] sm:$0xff] %v825_v29  ;;  %v831_v32 = vld [vmem:[%s8263_s12 + $0xc00] sm:$0xff] }
  0x58   : > { %828 = vst [vmem:[%s8268_s14 + $0x2f0] sm:$0xff] %v827_v30  ;;  %830 = vst [vmem:[%s8268_s14 + $0x2f8] sm:$0xff] %v829_v31  ;;  %v833_v33 = vld [vmem:[%s8263_s12 + $0xc08] sm:$0xff]  ;;  %v835_v34 = vld [vmem:[%s8263_s12 + $0xc10] sm:$0xff] }
  0x59   : > { %832 = vst [vmem:[%s8268_s14 + $0x300] sm:$0xff] %v831_v32  ;;  %834 = vst [vmem:[%s8268_s14 + $0x308] sm:$0xff] %v833_v33  ;;  %v837_v35 = vld [vmem:[%s8263_s12 + $0xc18] sm:$0xff]  ;;  %v839_v36 = vld [vmem:[%s8263_s12 + $0xc20] sm:$0xff] }
  0x5a   : > { %836 = vst [vmem:[%s8268_s14 + $0x310] sm:$0xff] %v835_v34  ;;  %v841_v37 = vld [vmem:[%s8263_s12 + $0xc28] sm:$0xff]  ;;  %838 = vst [vmem:[%s8268_s14 + $0x318] sm:$0xff] %v837_v35  ;;  %v843_v38 = vld [vmem:[%s8263_s12 + $0xc30] sm:$0xff] }
  0x5b   : > { %840 = vst [vmem:[%s8268_s14 + $0x320] sm:$0xff] %v839_v36  ;;  %842 = vst [vmem:[%s8268_s14 + $0x328] sm:$0xff] %v841_v37  ;;  %v845_v39 = vld [vmem:[%s8263_s12 + $0xc38] sm:$0xff]  ;;  %v847_v40 = vld [vmem:[%s8263_s12 + $0xd00] sm:$0xff] }
  0x5c   : > { %844 = vst [vmem:[%s8268_s14 + $0x330] sm:$0xff] %v843_v38  ;;  %846 = vst [vmem:[%s8268_s14 + $0x338] sm:$0xff] %v845_v39  ;;  %v849_v41 = vld [vmem:[%s8263_s12 + $0xd08] sm:$0xff]  ;;  %v851_v42 = vld [vmem:[%s8263_s12 + $0xd10] sm:$0xff] }
  0x5d   : > { %848 = vst [vmem:[%s8268_s14 + $0x340] sm:$0xff] %v847_v40  ;;  %v853_v43 = vld [vmem:[%s8263_s12 + $0xd18] sm:$0xff]  ;;  %850 = vst [vmem:[%s8268_s14 + $0x348] sm:$0xff] %v849_v41  ;;  %v855_v44 = vld [vmem:[%s8263_s12 + $0xd20] sm:$0xff] }
  0x5e   : > { %852 = vst [vmem:[%s8268_s14 + $0x350] sm:$0xff] %v851_v42  ;;  %854 = vst [vmem:[%s8268_s14 + $0x358] sm:$0xff] %v853_v43  ;;  %v857_v45 = vld [vmem:[%s8263_s12 + $0xd28] sm:$0xff]  ;;  %v859_v46 = vld [vmem:[%s8263_s12 + $0xd30] sm:$0xff] }
  0x5f   : > { %856 = vst [vmem:[%s8268_s14 + $0x360] sm:$0xff] %v855_v44  ;;  %858 = vst [vmem:[%s8268_s14 + $0x368] sm:$0xff] %v857_v45  ;;  %v861_v47 = vld [vmem:[%s8263_s12 + $0xd38] sm:$0xff]  ;;  %v863_v48 = vld [vmem:[%s8263_s12 + $0xe00] sm:$0xff] }
  0x60   : > { %860 = vst [vmem:[%s8268_s14 + $0x370] sm:$0xff] %v859_v46  ;;  %v865_v49 = vld [vmem:[%s8263_s12 + $0xe08] sm:$0xff]  ;;  %862 = vst [vmem:[%s8268_s14 + $0x378] sm:$0xff] %v861_v47  ;;  %v867_v50 = vld [vmem:[%s8263_s12 + $0xe10] sm:$0xff] }
  0x61   : > { %864 = vst [vmem:[%s8268_s14 + $0x380] sm:$0xff] %v863_v48  ;;  %866 = vst [vmem:[%s8268_s14 + $0x388] sm:$0xff] %v865_v49  ;;  %v869_v51 = vld [vmem:[%s8263_s12 + $0xe18] sm:$0xff]  ;;  %v871_v52 = vld [vmem:[%s8263_s12 + $0xe20] sm:$0xff] }
  0x62   : > { %868 = vst [vmem:[%s8268_s14 + $0x390] sm:$0xff] %v867_v50  ;;  %870 = vst [vmem:[%s8268_s14 + $0x398] sm:$0xff] %v869_v51  ;;  %v873_v53 = vld [vmem:[%s8263_s12 + $0xe28] sm:$0xff]  ;;  %v875_v54 = vld [vmem:[%s8263_s12 + $0xe30] sm:$0xff] }
  0x63   : > { %872 = vst [vmem:[%s8268_s14 + $0x3a0] sm:$0xff] %v871_v52  ;;  %v877_v55 = vld [vmem:[%s8263_s12 + $0xe38] sm:$0xff]  ;;  %874 = vst [vmem:[%s8268_s14 + $0x3a8] sm:$0xff] %v873_v53  ;;  %v879_v56 = vld [vmem:[%s8263_s12 + $0xf00] sm:$0xff] }
  0x64   : > { %876 = vst [vmem:[%s8268_s14 + $0x3b0] sm:$0xff] %v875_v54  ;;  %878 = vst [vmem:[%s8268_s14 + $0x3b8] sm:$0xff] %v877_v55  ;;  %v881_v57 = vld [vmem:[%s8263_s12 + $0xf08] sm:$0xff]  ;;  %v883_v58 = vld [vmem:[%s8263_s12 + $0xf10] sm:$0xff] }
  0x65   : > { %880 = vst [vmem:[%s8268_s14 + $0x3c0] sm:$0xff] %v879_v56  ;;  %882 = vst [vmem:[%s8268_s14 + $0x3c8] sm:$0xff] %v881_v57  ;;  %v885_v59 = vld [vmem:[%s8263_s12 + $0xf18] sm:$0xff]  ;;  %v887_v60 = vld [vmem:[%s8263_s12 + $0xf20] sm:$0xff] }
  0x66   : > { %884 = vst [vmem:[%s8268_s14 + $0x3d0] sm:$0xff] %v883_v58  ;;  %v889_v61 = vld [vmem:[%s8263_s12 + $0xf28] sm:$0xff]  ;;  %886 = vst [vmem:[%s8268_s14 + $0x3d8] sm:$0xff] %v885_v59  ;;  %v891_v62 = vld [vmem:[%s8263_s12 + $0xf30] sm:$0xff] }
  0x67   : > { %888 = vst [vmem:[%s8268_s14 + $0x3e0] sm:$0xff] %v887_v60  ;;  %890 = vst [vmem:[%s8268_s14 + $0x3e8] sm:$0xff] %v889_v61  ;;  %v893_v63 = vld [vmem:[%s8263_s12 + $0xf38] sm:$0xff] }
  0x68   : > { %892 = vst [vmem:[%s8268_s14 + $0x3f0] sm:$0xff] %v891_v62  ;;  %894 = vst [vmem:[%s8268_s14 + $0x3f8] sm:$0xff] %v893_v63 }
  0x69 PF: > { %p6881_p0 = scmp.ge.s32.totalorder %s8094_s26, 1  ;;  %p899_p1 = scmp.lt.s32.totalorder %s8094_s26, 9 }
  0x6b   : > { %p900_p2 = pnand %p6881_p0, %p899_p1 }
  0x6d   : > { %903 = sbr.rel (%p900_p2) target bundleno = 2536 (0x9e8), region = 98 }
  0x74   : > { %s906_s17 = sand.u32 1, %s8070_s20   ;;  %s11687_s23 = sand.u32 1, %s8062_s18  }
  0x75   : > { %s6882_s30 = sshll.u32 %s906_s17, 10  ;;  %s6883_s28 = sshll.u32 %s11687_s23, 4 }
  0x76   : > { %s8529_s11 = scalar_lea.vmem [#allocation3], %s6882_s30  ;;  %s8531_s29 = scalar_lea.vmem [#allocation4], %s6883_s28 }
  0x77   : > { %p6884_p3 = scmp.ne.s32.totalorder %s8078_s22, 0 }
  0x78   : > { %v8096_v0 = vmov (!%p6884_p3), -inf  }
  0x79   : > { %950 = sbr.rel (%p6884_p3) target bundleno = 128 (0x80), region = 106  ;;  %951 = vst [vmem:[#allocation2] sm:$0xff] (!%p6884_p3), %v8096_v0  ;;  %952 = vst [vmem:[#allocation2 + $0x8] sm:$0xff] (!%p6884_p3), %v8096_v0 }
  0x7a   : > { %953 = vst [vmem:[#allocation2 + $0x10] sm:$0xff] (!%p6884_p3), %v8096_v0  ;;  %954 = vst [vmem:[#allocation2 + $0x18] sm:$0xff] (!%p6884_p3), %v8096_v0 }
  0x80 PF: > { %v8535_v1 = vld [vmem:[%s8529_s11 + $0x10] sm:$0xff]  ;;  %v8538_v2 = vld [vmem:[%s8529_s11] sm:$0xff]  ;;  %v8097_v3 = vmov 0   ;;  %v8543_v4 = vld [vmem:[%s8529_s11 + $0x18] sm:$0xff]  ;;  %vm3680_vm0 = vcmask 523264   ;;  %vm6483_vm1 = vcmask 1041409  }
  0x81   : > { %7686 = vset.pattern.permute.xlu1 %v8097_v3  ;;  %7685 = vset.pattern.permute.xlu0 %v8097_v3  ;;  %v8546_v5 = vld [vmem:[%s8529_s11 + $0x8] sm:$0xff]  ;;  %v8554_v7 = vld [vmem:[%s8529_s11 + $0x20] sm:$0xff]  ;;  %v8559_v8 = vld [vmem:[%s8529_s11 + $0x38] sm:$0xff]  ;;  %vm6485_vm2 = vcmask 1042434   ;;  %vm6487_vm3 = vcmask 1043459   ;;  %vm6489_vm4 = vcmask 1044484  }
  0x82   : > { %1096 = vperm.xlu1 %7686, %v8535_v1   ;;  %1086 = vperm.xlu0 %7685, %v8538_v2   ;;  %v8551_v6 = vld [vmem:[%s8529_s11 + $0x28] sm:$0xff]  ;;  %v8562_v9 = vld [vmem:[%s8529_s11 + $0x30] sm:$0xff]  ;;  %v8570_v11 = vld [vmem:[%s8529_s11 + $0x40] sm:$0xff]  ;;  %vm6491_vm5 = vcmask 1045509   ;;  %vm6493_vm6 = vcmask 1046534   ;;  %vm6495_vm7 = vcmask 1047559  }
  0x83   : > { %v8567_v10 = vld [vmem:[%s8529_s11 + $0x48] sm:$0xff]  ;;  %v8575_v12 = vld [vmem:[%s8529_s11 + $0x58] sm:$0xff]  ;;  %v8578_v13 = vld [vmem:[%s8529_s11 + $0x50] sm:$0xff]  ;;  %p7018_p4 = scmp.ne.s32.totalorder %s8078_s22, 3 }
  0x84   : > { %v8583_v14 = vld [vmem:[%s8529_s11 + $0x68] sm:$0xff]  ;;  %v8586_v15 = vld [vmem:[%s8529_s11 + $0x60] sm:$0xff]  ;;  %v8591_v16 = vld [vmem:[%s8529_s11 + $0x78] sm:$0xff]  ;;  %s11961_s15 = sld [smem:[#allocation124_spill]] (!%p7018_p4) }
  0x85   : > { %v8594_v17 = vld [vmem:[%s8529_s11 + $0x70] sm:$0xff]  ;;  %v8599_v18 = vld [vmem:[%s8529_s11 + $0x88] sm:$0xff]  ;;  %v8602_v19 = vld [vmem:[%s8529_s11 + $0x80] sm:$0xff] }
  0x86   : > { %1101 = vperm.xlu1 %7686, %v8543_v4   ;;  %1091 = vperm.xlu0 %7685, %v8546_v5   ;;  %v8607_v20 = vld [vmem:[%s8529_s11 + $0x98] sm:$0xff]  ;;  %v8610_v21 = vld [vmem:[%s8529_s11 + $0x90] sm:$0xff]  ;;  %v8615_v22 = vld [vmem:[%s8529_s11 + $0xa8] sm:$0xff] }
  0x87   : > { %v8618_v23 = vld [vmem:[%s8529_s11 + $0xa0] sm:$0xff]  ;;  %v8623_v24 = vld [vmem:[%s8529_s11 + $0xb8] sm:$0xff]  ;;  %v8626_v25 = vld [vmem:[%s8529_s11 + $0xb0] sm:$0xff] }
  0x88   : > { %v8631_v26 = vld [vmem:[%s8529_s11 + $0xc8] sm:$0xff]  ;;  %v8634_v27 = vld [vmem:[%s8529_s11 + $0xc0] sm:$0xff]  ;;  %v8639_v28 = vld [vmem:[%s8529_s11 + $0xd8] sm:$0xff] }
  0x89   : > { %v8642_v29 = vld [vmem:[%s8529_s11 + $0xd0] sm:$0xff]  ;;  %v8647_v30 = vld [vmem:[%s8529_s11 + $0xe8] sm:$0xff]  ;;  %v8650_v31 = vld [vmem:[%s8529_s11 + $0xe0] sm:$0xff] }
  0x8a   : > { %1111 = vperm.xlu1 %7686, %v8551_v6   ;;  %1106 = vperm.xlu0 %7685, %v8554_v7   ;;  %v8655_v32 = vld [vmem:[%s8529_s11 + $0xf8] sm:$0xff]  ;;  %v8658_v33 = vld [vmem:[%s8529_s11 + $0xf0] sm:$0xff]  ;;  %v8663_v34 = vld [vmem:[%s8529_s11 + $0x108] sm:$0xff] }
  0x8b   : > { %v8666_v35 = vld [vmem:[%s8529_s11 + $0x100] sm:$0xff]  ;;  %v8671_v36 = vld [vmem:[%s8529_s11 + $0x118] sm:$0xff]  ;;  %v8674_v37 = vld [vmem:[%s8529_s11 + $0x110] sm:$0xff] }
  0x8c   : > { %11698 = vst [vmem:[#allocation12_spill] sm:$0xff] %v8671_v36  ;;  %v8679_v38 = vld [vmem:[%s8529_s11 + $0x128] sm:$0xff]  ;;  %v8682_v39 = vld [vmem:[%s8529_s11 + $0x120] sm:$0xff]  ;;  %v994_v40 = vld [vmem:[%s8529_s11 + $0x138] sm:$0xff] }
  0x8d   : > { %v8688_v41 = vld [vmem:[%s8529_s11 + $0x130] sm:$0xff]  ;;  %v8692_v42 = vld [vmem:[%s8529_s11 + $0x148] sm:$0xff]  ;;  %v8695_v43 = vld [vmem:[%s8529_s11 + $0x140] sm:$0xff] }
  0x8e   : > { %1121 = vperm.xlu1 %7686, %v8559_v8   ;;  %1116 = vperm.xlu0 %7685, %v8562_v9   ;;  %v998_v44 = vld [vmem:[%s8529_s11 + $0x158] sm:$0xff]  ;;  %v8701_v45 = vld [vmem:[%s8529_s11 + $0x150] sm:$0xff]  ;;  %v8705_v46 = vld [vmem:[%s8529_s11 + $0x168] sm:$0xff] }
  0x8f   : > { %v8708_v47 = vld [vmem:[%s8529_s11 + $0x160] sm:$0xff]  ;;  %v1002_v48 = vld [vmem:[%s8529_s11 + $0x178] sm:$0xff]  ;;  %v8714_v49 = vld [vmem:[%s8529_s11 + $0x170] sm:$0xff] }
  0x90   : > { %v8718_v50 = vld [vmem:[%s8529_s11 + $0x188] sm:$0xff]  ;;  %v8721_v51 = vld [vmem:[%s8529_s11 + $0x180] sm:$0xff]  ;;  %v1006_v52 = vld [vmem:[%s8529_s11 + $0x198] sm:$0xff] }
  0x91   : > { %v8727_v53 = vld [vmem:[%s8529_s11 + $0x190] sm:$0xff]  ;;  %v8731_v54 = vld [vmem:[%s8529_s11 + $0x1a8] sm:$0xff]  ;;  %v8734_v55 = vld [vmem:[%s8529_s11 + $0x1a0] sm:$0xff] }
  0x92   : > { %1131 = vperm.xlu1 %7686, %v8567_v10   ;;  %1126 = vperm.xlu0 %7685, %v8570_v11   ;;  %v1010_v56 = vld [vmem:[%s8529_s11 + $0x1b8] sm:$0xff]  ;;  %v8740_v57 = vld [vmem:[%s8529_s11 + $0x1b0] sm:$0xff]  ;;  %v1012_v58 = vld [vmem:[%s8529_s11 + $0x1c8] sm:$0xff] }
  0x93   : > { %11699 = vst [vmem:[#allocation13_spill] sm:$0xff] %v8740_v57  ;;  %v8745_v59 = vld [vmem:[%s8529_s11 + $0x1c0] sm:$0xff]  ;;  %v1014_v60 = vld [vmem:[%s8529_s11 + $0x1d8] sm:$0xff]  ;;  %v1013_v61 = vld [vmem:[%s8529_s11 + $0x1d0] sm:$0xff] }
  0x94   : > { %11700 = vst [vmem:[#allocation14_spill] sm:$0xff] %v8745_v59  ;;  %v1016_v62 = vld [vmem:[%s8529_s11 + $0x1e8] sm:$0xff]  ;;  %v8752_v63 = vld [vmem:[%s8529_s11 + $0x1e0] sm:$0xff]  ;;  %v1018_v0 = vld [vmem:[%s8529_s11 + $0x1f8] sm:$0xff] }
  0x95   : > { %11701 = vst [vmem:[#allocation15_spill] sm:$0xff] %v8752_v63  ;;  %v1017_v3 = vld [vmem:[%s8529_s11 + $0x1f0] sm:$0xff] }
  0x96   : > { %1141 = vperm.xlu1 %7686, %v8575_v12   ;;  %1136 = vperm.xlu0 %7685, %v8578_v13  }
  0x9a   : > { %1151 = vperm.xlu1 %7686, %v8583_v14   ;;  %1146 = vperm.xlu0 %7685, %v8586_v15  }
  0x9e   : > { %1161 = vperm.xlu1 %7686, %v8591_v16   ;;  %1156 = vperm.xlu0 %7685, %v8594_v17  }
  0xa2   : > { %1171 = vperm.xlu1 %7686, %v8599_v18   ;;  %1166 = vperm.xlu0 %7685, %v8602_v19  }
  0xa6   : > { %1181 = vperm.xlu1 %7686, %v8607_v20   ;;  %1176 = vperm.xlu0 %7685, %v8610_v21  }
  0xaa   : > { %1191 = vperm.xlu1 %7686, %v8615_v22   ;;  %1186 = vperm.xlu0 %7685, %v8618_v23  }
  0xae   : > { %1201 = vperm.xlu1 %7686, %v8623_v24   ;;  %1196 = vperm.xlu0 %7685, %v8626_v25  }
  0xb2   : > { %1211 = vperm.xlu1 %7686, %v8631_v26   ;;  %1206 = vperm.xlu0 %7685, %v8634_v27  }
  0xb6   : > { %1221 = vperm.xlu1 %7686, %v8639_v28   ;;  %1216 = vperm.xlu0 %7685, %v8642_v29  }
  0xba   : > { %1231 = vperm.xlu1 %7686, %v8647_v30   ;;  %1226 = vperm.xlu0 %7685, %v8650_v31  }
  0xbe   : > { %1241 = vperm.xlu1 %7686, %v8655_v32   ;;  %1236 = vperm.xlu0 %7685, %v8658_v33  }
  0xc2   : > { %1251 = vperm.xlu1 %7686, %v8663_v34   ;;  %1246 = vperm.xlu0 %7685, %v8666_v35  }
  0xc6   : > { %1261 = vperm.xlu1 %7686, %v8671_v36   ;;  %1256 = vperm.xlu0 %7685, %v8674_v37  }
  0xca   : > { %1271 = vperm.xlu1 %7686, %v8679_v38   ;;  %1266 = vperm.xlu0 %7685, %v8682_v39  }
  0xce   : > { %1281 = vperm.xlu1 %7686, %v994_v40   ;;  %1276 = vperm.xlu0 %7685, %v8688_v41   ;;  %v1020_v40 = vld [vmem:[%s8529_s11 + $0x208] sm:$0xff] }
  0xd2   : > { %1291 = vperm.xlu1 %7686, %v8692_v42   ;;  %1286 = vperm.xlu0 %7685, %v8695_v43  }
  0xd6   : > { %1301 = vperm.xlu1 %7686, %v998_v44   ;;  %1296 = vperm.xlu0 %7685, %v8701_v45   ;;  %v1019_v44 = vld [vmem:[%s8529_s11 + $0x200] sm:$0xff] }
  0xda   : > { %1311 = vperm.xlu1 %7686, %v8705_v46   ;;  %1306 = vperm.xlu0 %7685, %v8708_v47  }
  0xde   : > { %1321 = vperm.xlu1 %7686, %v1002_v48   ;;  %1316 = vperm.xlu0 %7685, %v8714_v49  }
  0xe2   : > { %1331 = vperm.xlu1 %7686, %v8718_v50   ;;  %1326 = vperm.xlu0 %7685, %v8721_v51  }
  0xe6   : > { %1341 = vperm.xlu1 %7686, %v1006_v52   ;;  %1336 = vperm.xlu0 %7685, %v8727_v53  }
  0xea   : > { %1351 = vperm.xlu1 %7686, %v8731_v54   ;;  %1346 = vperm.xlu0 %7685, %v8734_v55  }
  0xee   : > { %1361 = vperm.xlu1 %7686, %v1010_v56   ;;  %1356 = vperm.xlu0 %7685, %v8740_v57   ;;  %v1022_v56 = vld [vmem:[%s8529_s11 + $0x218] sm:$0xff] }
  0xf2   : > { %1371 = vperm.xlu1 %7686, %v1012_v58   ;;  %1366 = vperm.xlu0 %7685, %v8745_v59   ;;  %v1021_v58 = vld [vmem:[%s8529_s11 + $0x210] sm:$0xff] }
  0xf6   : > { %1381 = vperm.xlu1 %7686, %v1014_v60   ;;  %1376 = vperm.xlu0 %7685, %v1013_v61  }
  0xfa   : > { %1391 = vperm.xlu1 %7686, %v1016_v62   ;;  %1386 = vperm.xlu0 %7685, %v8752_v63   ;;  %v1024_v62 = vld [vmem:[%s8529_s11 + $0x228] sm:$0xff] }
  0xfe   : > { %1401 = vperm.xlu1 %7686, %v1018_v0   ;;  %1396 = vperm.xlu0 %7685, %v1017_v3   ;;  %v1023_v0 = vld [vmem:[%s8529_s11 + $0x220] sm:$0xff] }
 0x101   : > { %v8759_v48 = vpop.permute.xlu1 %1096  ;;  %v8761_v52 = vpop.permute.xlu0 %1086 }
 0x102   : > { %1411 = vperm.xlu1 %7686, %v1020_v40   ;;  %1406 = vperm.xlu0 %7685, %v1019_v44   ;;  %v1026_v40 = vld [vmem:[%s8529_s11 + $0x238] sm:$0xff]  ;;  %v1025_v44 = vld [vmem:[%s8529_s11 + $0x230] sm:$0xff] }
 0x105   : > { %v8765_v60 = vpop.permute.xlu1 %1101  ;;  %v8767_v61 = vpop.permute.xlu0 %1091 }
 0x106   : > { %11702 = vst [vmem:[#allocation16_spill] sm:$0xff] %v8765_v60  ;;  %1421 = vperm.xlu1 %7686, %v1022_v56   ;;  %1416 = vperm.xlu0 %7685, %v1021_v58   ;;  %v1028_v56 = vld [vmem:[%s8529_s11 + $0x248] sm:$0xff]  ;;  %v1027_v58 = vld [vmem:[%s8529_s11 + $0x240] sm:$0xff] }
 0x109   : > { %v8771_v3 = vpop.permute.xlu1 %1111  ;;  %v8773_v63 = vpop.permute.xlu0 %1106 }
 0x10a   : > { %11703 = vst [vmem:[#allocation17_spill] sm:$0xff] %v8771_v3  ;;  %11704 = vst [vmem:[#allocation18_spill] sm:$0xff] %v8773_v63  ;;  %1431 = vperm.xlu1 %7686, %v1024_v62   ;;  %1426 = vperm.xlu0 %7685, %v1023_v0   ;;  %v1030_v62 = vld [vmem:[%s8529_s11 + $0x258] sm:$0xff]  ;;  %v1029_v0 = vld [vmem:[%s8529_s11 + $0x250] sm:$0xff] }
 0x10d   : > { %v8777_v59 = vpop.permute.xlu1 %1121  ;;  %v8779_v60 = vpop.permute.xlu0 %1116 }
 0x10e   : > { %11705 = vst [vmem:[#allocation19_spill] sm:$0xff] %v8777_v59  ;;  %11706 = vst [vmem:[#allocation20_spill] sm:$0xff] %v8779_v60  ;;  %1441 = vperm.xlu1 %7686, %v1026_v40   ;;  %1436 = vperm.xlu0 %7685, %v1025_v44   ;;  %v1032_v40 = vld [vmem:[%s8529_s11 + $0x268] sm:$0xff]  ;;  %v1031_v44 = vld [vmem:[%s8529_s11 + $0x260] sm:$0xff] }
 0x111   : > { %v8783_v36 = vpop.permute.xlu1 %1131  ;;  %v8785_v3 = vpop.permute.xlu0 %1126 }
 0x112   : > { %11707 = vst [vmem:[#allocation21_spill] sm:$0xff] %v8783_v36  ;;  %11708 = vst [vmem:[#allocation22_spill] sm:$0xff] %v8785_v3  ;;  %1451 = vperm.xlu1 %7686, %v1028_v56   ;;  %1446 = vperm.xlu0 %7685, %v1027_v58   ;;  %v1034_v56 = vld [vmem:[%s8529_s11 + $0x278] sm:$0xff]  ;;  %v1033_v58 = vld [vmem:[%s8529_s11 + $0x270] sm:$0xff] }
 0x115   : > { %v8789_v57 = vpop.permute.xlu1 %1141  ;;  %v8791_v59 = vpop.permute.xlu0 %1136 }
 0x116   : > { %11709 = vst [vmem:[#allocation23_spill] sm:$0xff] %v8789_v57  ;;  %11710 = vst [vmem:[#allocation24_spill] sm:$0xff] %v8791_v59  ;;  %1461 = vperm.xlu1 %7686, %v1030_v62   ;;  %1456 = vperm.xlu0 %7685, %v1029_v0   ;;  %v1036_v62 = vld [vmem:[%s8529_s11 + $0x288] sm:$0xff]  ;;  %v1035_v0 = vld [vmem:[%s8529_s11 + $0x280] sm:$0xff] }
 0x119   : > { %v8795_v60 = vpop.permute.xlu1 %1151  ;;  %v8797_v36 = vpop.permute.xlu0 %1146 }
 0x11a   : > { %11711 = vst [vmem:[#allocation25_spill] sm:$0xff] %v8795_v60  ;;  %11712 = vst [vmem:[#allocation26_spill] sm:$0xff] %v8797_v36  ;;  %1471 = vperm.xlu1 %7686, %v1032_v40   ;;  %1466 = vperm.xlu0 %7685, %v1031_v44   ;;  %v1038_v40 = vld [vmem:[%s8529_s11 + $0x298] sm:$0xff]  ;;  %v1037_v44 = vld [vmem:[%s8529_s11 + $0x290] sm:$0xff] }
 0x11d   : > { %v8801_v3 = vpop.permute.xlu1 %1161  ;;  %v8803_v57 = vpop.permute.xlu0 %1156 }
 0x11e   : > { %11713 = vst [vmem:[#allocation27_spill] sm:$0xff] %v8801_v3  ;;  %11714 = vst [vmem:[#allocation28_spill] sm:$0xff] %v8803_v57  ;;  %1481 = vperm.xlu1 %7686, %v1034_v56   ;;  %1476 = vperm.xlu0 %7685, %v1033_v58   ;;  %v1040_v56 = vld [vmem:[%s8529_s11 + $0x2a8] sm:$0xff]  ;;  %v1039_v58 = vld [vmem:[%s8529_s11 + $0x2a0] sm:$0xff] }
 0x121   : > { %v8807_v59 = vpop.permute.xlu1 %1171  ;;  %v8809_v60 = vpop.permute.xlu0 %1166 }
 0x122   : > { %11715 = vst [vmem:[#allocation29_spill] sm:$0xff] %v8807_v59  ;;  %11716 = vst [vmem:[#allocation30_spill] sm:$0xff] %v8809_v60  ;;  %1491 = vperm.xlu1 %7686, %v1036_v62   ;;  %1486 = vperm.xlu0 %7685, %v1035_v0   ;;  %v1042_v62 = vld [vmem:[%s8529_s11 + $0x2b8] sm:$0xff]  ;;  %v1041_v0 = vld [vmem:[%s8529_s11 + $0x2b0] sm:$0xff] }
 0x125   : > { %v8813_v36 = vpop.permute.xlu1 %1181  ;;  %v8815_v3 = vpop.permute.xlu0 %1176 }
 0x126   : > { %11717 = vst [vmem:[#allocation31_spill] sm:$0xff] %v8813_v36  ;;  %11718 = vst [vmem:[#allocation32_spill] sm:$0xff] %v8815_v3  ;;  %1501 = vperm.xlu1 %7686, %v1038_v40   ;;  %1496 = vperm.xlu0 %7685, %v1037_v44   ;;  %v1044_v40 = vld [vmem:[%s8529_s11 + $0x2c8] sm:$0xff]  ;;  %v1043_v44 = vld [vmem:[%s8529_s11 + $0x2c0] sm:$0xff] }
 0x129   : > { %v8819_v57 = vpop.permute.xlu1 %1191  ;;  %v8821_v59 = vpop.permute.xlu0 %1186 }
 0x12a   : > { %11719 = vst [vmem:[#allocation33_spill] sm:$0xff] %v8819_v57  ;;  %11720 = vst [vmem:[#allocation34_spill] sm:$0xff] %v8821_v59  ;;  %1511 = vperm.xlu1 %7686, %v1040_v56   ;;  %1506 = vperm.xlu0 %7685, %v1039_v58   ;;  %v1046_v56 = vld [vmem:[%s8529_s11 + $0x2d8] sm:$0xff]  ;;  %v1045_v58 = vld [vmem:[%s8529_s11 + $0x2d0] sm:$0xff] }
 0x12d   : > { %v8825_v60 = vpop.permute.xlu1 %1201  ;;  %v8827_v36 = vpop.permute.xlu0 %1196 }
 0x12e   : > { %11721 = vst [vmem:[#allocation35_spill] sm:$0xff] %v8825_v60  ;;  %11722 = vst [vmem:[#allocation36_spill] sm:$0xff] %v8827_v36  ;;  %1521 = vperm.xlu1 %7686, %v1042_v62   ;;  %1516 = vperm.xlu0 %7685, %v1041_v0   ;;  %v1048_v62 = vld [vmem:[%s8529_s11 + $0x2e8] sm:$0xff]  ;;  %v1047_v0 = vld [vmem:[%s8529_s11 + $0x2e0] sm:$0xff] }
 0x131   : > { %v8831_v3 = vpop.permute.xlu1 %1211  ;;  %v8833_v57 = vpop.permute.xlu0 %1206 }
 0x132   : > { %11723 = vst [vmem:[#allocation37_spill] sm:$0xff] %v8831_v3  ;;  %11724 = vst [vmem:[#allocation38_spill] sm:$0xff] %v8833_v57  ;;  %1531 = vperm.xlu1 %7686, %v1044_v40   ;;  %1526 = vperm.xlu0 %7685, %v1043_v44   ;;  %v1050_v40 = vld [vmem:[%s8529_s11 + $0x2f8] sm:$0xff]  ;;  %v1049_v44 = vld [vmem:[%s8529_s11 + $0x2f0] sm:$0xff] }
 0x135   : > { %v8837_v59 = vpop.permute.xlu1 %1221  ;;  %v8839_v60 = vpop.permute.xlu0 %1216 }
 0x136   : > { %11725 = vst [vmem:[#allocation39_spill] sm:$0xff] %v8837_v59  ;;  %11726 = vst [vmem:[#allocation40_spill] sm:$0xff] %v8839_v60  ;;  %1541 = vperm.xlu1 %7686, %v1046_v56   ;;  %1536 = vperm.xlu0 %7685, %v1045_v58   ;;  %v1052_v56 = vld [vmem:[%s8529_s11 + $0x308] sm:$0xff]  ;;  %v1051_v58 = vld [vmem:[%s8529_s11 + $0x300] sm:$0xff] }
 0x139   : > { %v8843_v36 = vpop.permute.xlu1 %1231  ;;  %v8845_v3 = vpop.permute.xlu0 %1226 }
 0x13a   : > { %11727 = vst [vmem:[#allocation41_spill] sm:$0xff] %v8843_v36  ;;  %11728 = vst [vmem:[#allocation42_spill] sm:$0xff] %v8845_v3  ;;  %1551 = vperm.xlu1 %7686, %v1048_v62   ;;  %1546 = vperm.xlu0 %7685, %v1047_v0   ;;  %v1054_v62 = vld [vmem:[%s8529_s11 + $0x318] sm:$0xff]  ;;  %v1053_v0 = vld [vmem:[%s8529_s11 + $0x310] sm:$0xff] }
 0x13d   : > { %v8849_v57 = vpop.permute.xlu1 %1241  ;;  %v8851_v59 = vpop.permute.xlu0 %1236 }
 0x13e   : > { %11729 = vst [vmem:[#allocation43_spill] sm:$0xff] %v8849_v57  ;;  %11730 = vst [vmem:[#allocation44_spill] sm:$0xff] %v8851_v59  ;;  %1561 = vperm.xlu1 %7686, %v1050_v40   ;;  %1556 = vperm.xlu0 %7685, %v1049_v44   ;;  %v1056_v40 = vld [vmem:[%s8529_s11 + $0x328] sm:$0xff]  ;;  %v1055_v44 = vld [vmem:[%s8529_s11 + $0x320] sm:$0xff] }
 0x141   : > { %v8855_v60 = vpop.permute.xlu1 %1251  ;;  %v8857_v36 = vpop.permute.xlu0 %1246 }
 0x142   : > { %11731 = vst [vmem:[#allocation45_spill] sm:$0xff] %v8855_v60  ;;  %11732 = vst [vmem:[#allocation46_spill] sm:$0xff] %v8857_v36  ;;  %1571 = vperm.xlu1 %7686, %v1052_v56   ;;  %1566 = vperm.xlu0 %7685, %v1051_v58   ;;  %v1058_v56 = vld [vmem:[%s8529_s11 + $0x338] sm:$0xff]  ;;  %v1057_v58 = vld [vmem:[%s8529_s11 + $0x330] sm:$0xff] }
 0x145   : > { %v8861_v3 = vpop.permute.xlu1 %1261  ;;  %v8863_v57 = vpop.permute.xlu0 %1256 }
 0x146   : > { %11733 = vst [vmem:[#allocation47_spill] sm:$0xff] %v8861_v3  ;;  %11734 = vst [vmem:[#allocation48_spill] sm:$0xff] %v8863_v57  ;;  %1581 = vperm.xlu1 %7686, %v1054_v62   ;;  %1576 = vperm.xlu0 %7685, %v1053_v0   ;;  %v1060_v62 = vld [vmem:[%s8529_s11 + $0x348] sm:$0xff]  ;;  %v1059_v0 = vld [vmem:[%s8529_s11 + $0x340] sm:$0xff] }
 0x149   : > { %v8867_v59 = vpop.permute.xlu1 %1271  ;;  %v8869_v60 = vpop.permute.xlu0 %1266 }
 0x14a   : > { %11735 = vst [vmem:[#allocation49_spill] sm:$0xff] %v8867_v59  ;;  %11736 = vst [vmem:[#allocation50_spill] sm:$0xff] %v8869_v60  ;;  %1591 = vperm.xlu1 %7686, %v1056_v40   ;;  %1586 = vperm.xlu0 %7685, %v1055_v44   ;;  %v1062_v40 = vld [vmem:[%s8529_s11 + $0x358] sm:$0xff]  ;;  %v1061_v44 = vld [vmem:[%s8529_s11 + $0x350] sm:$0xff] }
 0x14d   : > { %v8873_v36 = vpop.permute.xlu1 %1281  ;;  %v8875_v3 = vpop.permute.xlu0 %1276 }
 0x14e   : > { %11737 = vst [vmem:[#allocation51_spill] sm:$0xff] %v8873_v36  ;;  %11738 = vst [vmem:[#allocation52_spill] sm:$0xff] %v8875_v3  ;;  %1601 = vperm.xlu1 %7686, %v1058_v56   ;;  %1596 = vperm.xlu0 %7685, %v1057_v58   ;;  %v1064_v56 = vld [vmem:[%s8529_s11 + $0x368] sm:$0xff]  ;;  %v1063_v58 = vld [vmem:[%s8529_s11 + $0x360] sm:$0xff] }
 0x151   : > { %v8879_v57 = vpop.permute.xlu1 %1291  ;;  %v8881_v59 = vpop.permute.xlu0 %1286 }
 0x152   : > { %11739 = vst [vmem:[#allocation53_spill] sm:$0xff] %v8879_v57  ;;  %11740 = vst [vmem:[#allocation54_spill] sm:$0xff] %v8881_v59  ;;  %1611 = vperm.xlu1 %7686, %v1060_v62   ;;  %1606 = vperm.xlu0 %7685, %v1059_v0   ;;  %v1066_v62 = vld [vmem:[%s8529_s11 + $0x378] sm:$0xff]  ;;  %v1065_v0 = vld [vmem:[%s8529_s11 + $0x370] sm:$0xff] }
 0x155   : > { %v8885_v60 = vpop.permute.xlu1 %1301  ;;  %v8887_v36 = vpop.permute.xlu0 %1296 }
 0x156   : > { %11741 = vst [vmem:[#allocation55_spill] sm:$0xff] %v8885_v60  ;;  %11742 = vst [vmem:[#allocation56_spill] sm:$0xff] %v8887_v36  ;;  %1621 = vperm.xlu1 %7686, %v1062_v40   ;;  %1616 = vperm.xlu0 %7685, %v1061_v44   ;;  %v1068_v40 = vld [vmem:[%s8529_s11 + $0x388] sm:$0xff]  ;;  %v1067_v44 = vld [vmem:[%s8529_s11 + $0x380] sm:$0xff] }
 0x159   : > { %v8891_v3 = vpop.permute.xlu1 %1311  ;;  %v8893_v57 = vpop.permute.xlu0 %1306 }
 0x15a   : > { %11743 = vst [vmem:[#allocation57_spill] sm:$0xff] %v8891_v3  ;;  %11744 = vst [vmem:[#allocation58_spill] sm:$0xff] %v8893_v57  ;;  %1631 = vperm.xlu1 %7686, %v1064_v56   ;;  %1626 = vperm.xlu0 %7685, %v1063_v58   ;;  %v1070_v56 = vld [vmem:[%s8529_s11 + $0x398] sm:$0xff]  ;;  %v1069_v58 = vld [vmem:[%s8529_s11 + $0x390] sm:$0xff] }
 0x15d   : > { %v8897_v59 = vpop.permute.xlu1 %1321  ;;  %v8899_v60 = vpop.permute.xlu0 %1316 }
 0x15e   : > { %11745 = vst [vmem:[#allocation59_spill] sm:$0xff] %v8897_v59  ;;  %11746 = vst [vmem:[#allocation60_spill] sm:$0xff] %v8899_v60  ;;  %1641 = vperm.xlu1 %7686, %v1066_v62   ;;  %1636 = vperm.xlu0 %7685, %v1065_v0   ;;  %v1072_v62 = vld [vmem:[%s8529_s11 + $0x3a8] sm:$0xff]  ;;  %v1071_v0 = vld [vmem:[%s8529_s11 + $0x3a0] sm:$0xff] }
 0x161   : > { %v8903_v36 = vpop.permute.xlu1 %1331  ;;  %v8905_v3 = vpop.permute.xlu0 %1326 }
 0x162   : > { %11747 = vst [vmem:[#allocation61_spill] sm:$0xff] %v8903_v36  ;;  %11748 = vst [vmem:[#allocation62_spill] sm:$0xff] %v8905_v3  ;;  %1651 = vperm.xlu1 %7686, %v1068_v40   ;;  %1646 = vperm.xlu0 %7685, %v1067_v44   ;;  %v1074_v40 = vld [vmem:[%s8529_s11 + $0x3b8] sm:$0xff]  ;;  %v1073_v44 = vld [vmem:[%s8529_s11 + $0x3b0] sm:$0xff] }
 0x165   : > { %v8909_v57 = vpop.permute.xlu1 %1341  ;;  %v8911_v59 = vpop.permute.xlu0 %1336 }
 0x166   : > { %11749 = vst [vmem:[#allocation63_spill] sm:$0xff] %v8909_v57  ;;  %11750 = vst [vmem:[#allocation64_spill] sm:$0xff] %v8911_v59  ;;  %1661 = vperm.xlu1 %7686, %v1070_v56   ;;  %1656 = vperm.xlu0 %7685, %v1069_v58   ;;  %v1076_v56 = vld [vmem:[%s8529_s11 + $0x3c8] sm:$0xff]  ;;  %v1075_v58 = vld [vmem:[%s8529_s11 + $0x3c0] sm:$0xff] }
 0x169   : > { %v8915_v60 = vpop.permute.xlu1 %1351  ;;  %v8917_v36 = vpop.permute.xlu0 %1346 }
 0x16a   : > { %11751 = vst [vmem:[#allocation65_spill] sm:$0xff] %v8915_v60  ;;  %11752 = vst [vmem:[#allocation66_spill] sm:$0xff] %v8917_v36  ;;  %1671 = vperm.xlu1 %7686, %v1072_v62   ;;  %1666 = vperm.xlu0 %7685, %v1071_v0   ;;  %v1078_v62 = vld [vmem:[%s8529_s11 + $0x3d8] sm:$0xff]  ;;  %v1077_v0 = vld [vmem:[%s8529_s11 + $0x3d0] sm:$0xff] }
 0x16d   : > { %v8921_v3 = vpop.permute.xlu1 %1361  ;;  %v8923_v57 = vpop.permute.xlu0 %1356 }
 0x16e   : > { %11753 = vst [vmem:[#allocation67_spill] sm:$0xff] %v8921_v3  ;;  %11754 = vst [vmem:[#allocation68_spill] sm:$0xff] %v8923_v57  ;;  %1681 = vperm.xlu1 %7686, %v1074_v40   ;;  %1676 = vperm.xlu0 %7685, %v1073_v44   ;;  %v1080_v40 = vld [vmem:[%s8529_s11 + $0x3e8] sm:$0xff]  ;;  %v1079_v44 = vld [vmem:[%s8529_s11 + $0x3e0] sm:$0xff] }
 0x171   : > { %v8927_v59 = vpop.permute.xlu1 %1371  ;;  %v8929_v60 = vpop.permute.xlu0 %1366 }
 0x172   : > { %11755 = vst [vmem:[#allocation69_spill] sm:$0xff] %v8927_v59  ;;  %11756 = vst [vmem:[#allocation70_spill] sm:$0xff] %v8929_v60  ;;  %1691 = vperm.xlu1 %7686, %v1076_v56   ;;  %1686 = vperm.xlu0 %7685, %v1075_v58   ;;  %v1082_v60 = vld [vmem:[%s8529_s11 + $0x3f8] sm:$0xff]  ;;  %v1081_v59 = vld [vmem:[%s8529_s11 + $0x3f0] sm:$0xff] }
 0x175   : > { %v8933_v36 = vpop.permute.xlu1 %1381  ;;  %v8935_v3 = vpop.permute.xlu0 %1376 }
 0x176   : > { %11757 = vst [vmem:[#allocation71_spill] sm:$0xff] %v8933_v36  ;;  %1701 = vperm.xlu1 %7686, %v1078_v62   ;;  %1696 = vperm.xlu0 %7685, %v1077_v0   ;;  %v11679_v0 = vmov 1  }
 0x179   : > { %v8939_v57 = vpop.permute.xlu1 %1391  ;;  %v8941_v63 = vpop.permute.xlu0 %1386 }
 0x17a   : > { %1711 = vperm.xlu1 %7686, %v1080_v40   ;;  %1706 = vperm.xlu0 %7685, %v1079_v44  }
 0x17d   : > { %v8945_v56 = vpop.permute.xlu1 %1401  ;;  %v8947_v58 = vpop.permute.xlu0 %1396 }
 0x17e   : > { %1721 = vperm.xlu1 %7686, %v1082_v60   ;;  %1716 = vperm.xlu0 %7685, %v1081_v59  }
 0x181   : > { %v8949_v36 = vpop.permute.xlu1 %1411  ;;  %v8951_v62 = vpop.permute.xlu0 %1406 }
 0x182   : > { %11758 = vst [vmem:[#allocation72_spill] sm:$0xff] %v8949_v36  ;;  %11759 = vst [vmem:[#allocation73_spill] sm:$0xff] %v8951_v62  ;;  %7688 = vset.pattern.permute.xlu1 %v11679_v0  ;;  %7687 = vset.pattern.permute.xlu0 %v11679_v0  ;;  %v11681_v36 = vmov 2  }
 0x183   : > { %1862 = vperm.xlu1 %7688, %v8546_v5   ;;  %1858 = vperm.xlu0 %7687, %v8538_v2  }
 0x185   : > { %v8957_v40 = vpop.permute.xlu1 %1421  ;;  %v8959_v44 = vpop.permute.xlu0 %1416 }
 0x186   : > { %11760 = vst [vmem:[#allocation74_spill] sm:$0xff] %v8957_v40  ;;  %11761 = vst [vmem:[#allocation75_spill] sm:$0xff] %v8959_v44 }
 0x187   : > { %1866 = vperm.xlu1 %7688, %v8535_v1   ;;  %1870 = vperm.xlu0 %7687, %v8543_v4  }
 0x189   : > { %v8963_v59 = vpop.permute.xlu1 %1431  ;;  %v8965_v60 = vpop.permute.xlu0 %1426 }
 0x18a   : > { %11762 = vst [vmem:[#allocation76_spill] sm:$0xff] %v8963_v59  ;;  %11763 = vst [vmem:[#allocation77_spill] sm:$0xff] %v8965_v60 }
 0x18b   : > { %1874 = vperm.xlu1 %7688, %v8554_v7   ;;  %1878 = vperm.xlu0 %7687, %v8551_v6  }
 0x18d   : > { %v8969_v0 = vpop.permute.xlu1 %1441  ;;  %v8971_v62 = vpop.permute.xlu0 %1436 }
 0x18e   : > { %11764 = vst [vmem:[#allocation78_spill] sm:$0xff] %v8969_v0  ;;  %11765 = vst [vmem:[#allocation79_spill] sm:$0xff] %v8971_v62 }
 0x18f   : > { %1882 = vperm.xlu1 %7688, %v8562_v9   ;;  %1886 = vperm.xlu0 %7687, %v8559_v8  }
 0x191   : > { %v8975_v40 = vpop.permute.xlu1 %1451  ;;  %v8977_v44 = vpop.permute.xlu0 %1446 }
 0x192   : > { %11766 = vst [vmem:[#allocation80_spill] sm:$0xff] %v8975_v40  ;;  %11767 = vst [vmem:[#allocation81_spill] sm:$0xff] %v8977_v44 }
 0x193   : > { %1890 = vperm.xlu1 %7688, %v8570_v11   ;;  %1894 = vperm.xlu0 %7687, %v8567_v10  }
 0x195   : > { %v8981_v60 = vpop.permute.xlu1 %1461  ;;  %v8983_v59 = vpop.permute.xlu0 %1456 }
 0x196   : > { %11768 = vst [vmem:[#allocation82_spill] sm:$0xff] %v8981_v60  ;;  %11769 = vst [vmem:[#allocation83_spill] sm:$0xff] %v8983_v59 }
 0x197   : > { %1898 = vperm.xlu1 %7688, %v8578_v13   ;;  %1902 = vperm.xlu0 %7687, %v8575_v12  }
 0x199   : > { %v8987_v0 = vpop.permute.xlu1 %1471  ;;  %v8989_v62 = vpop.permute.xlu0 %1466 }
 0x19a   : > { %11770 = vst [vmem:[#allocation84_spill] sm:$0xff] %v8989_v62 }
 0x19b   : > { %1906 = vperm.xlu1 %7688, %v8586_v15   ;;  %1910 = vperm.xlu0 %7687, %v8583_v14  }
 0x19d   : > { %v8993_v44 = vpop.permute.xlu1 %1481  ;;  %v8995_v40 = vpop.permute.xlu0 %1476 }
 0x19e   : > { %11771 = vst [vmem:[#allocation85_spill] sm:$0xff] %v8993_v44  ;;  %11772 = vst [vmem:[#allocation86_spill] sm:$0xff] %v8995_v40 }
 0x19f   : > { %1914 = vperm.xlu1 %7688, %v8594_v17   ;;  %1922 = vperm.xlu0 %7687, %v8602_v19  }
 0x1a1   : > { %v8999_v60 = vpop.permute.xlu1 %1491  ;;  %v9001_v59 = vpop.permute.xlu0 %1486 }
 0x1a2   : > { %11773 = vst [vmem:[#allocation87_spill] sm:$0xff] %v8999_v60  ;;  %11774 = vst [vmem:[#allocation88_spill] sm:$0xff] %v9001_v59 }
 0x1a3   : > { %7689 = vset.pattern.permute.xlu1 %v11681_v36  ;;  %1938 = vperm.xlu0 %7687, %v8618_v23  }
 0x1a4   : > { %2635 = vperm.xlu1 %7689, %v8546_v5   ;;  %v3665_v5 = vld [vmem:[%s11661_s3] sm:$0xff] }
 0x1a5   : > { %v9006_v62 = vpop.permute.xlu1 %1501  ;;  %v9008_v44 = vpop.permute.xlu0 %1496 }
 0x1a6   : > { %11775 = vst [vmem:[#allocation89_spill] sm:$0xff] %v9006_v62 }
 0x1a7   : > { %1954 = vperm.xlu0 %7687, %v8634_v27  }
 0x1a8   : > { %2639 = vperm.xlu1 %7689, %v8535_v1   ;;  %v3666_v1 = vld [vmem:[%s11661_s3 + $0x8] sm:$0xff] }
 0x1a9   : > { %v9012_v40 = vpop.permute.xlu1 %1511  ;;  %v9014_v60 = vpop.permute.xlu0 %1506 }
 0x1aa   : > { %11776 = vst [vmem:[#allocation90_spill] sm:$0xff] %v9012_v40  ;;  %11777 = vst [vmem:[#allocation91_spill] sm:$0xff] %v9014_v60  ;;  %v7463_v40 = vpack.c.bf16 %v3666_v1, %v3665_v5  ;;  %v3670_v1 = vld [vmem:[%s11661_s3 + $0x28] sm:$0xff] }
 0x1ab   : > { %1970 = vperm.xlu0 %7687, %v8650_v31  }
 0x1ac   : > { %2647 = vperm.xlu1 %7689, %v8554_v7   ;;  %7464 = vmatprep.subr.bf16.mxu0 %v7463_v40 }
 0x1ad   : > { %v9018_v36 = vpop.permute.xlu1 %1521  ;;  %v9020_v59 = vpop.permute.xlu0 %1516  ;;  %7466 = vmatpush3.bf16.msra.mxu0 %v7463_v40  ;;  %v3669_v40 = vld [vmem:[%s11661_s3 + $0x20] sm:$0xff] }
 0x1ae   : > { %11778 = vst [vmem:[#allocation92_spill] sm:$0xff] %v9018_v36  ;;  %11779 = vst [vmem:[#allocation93_spill] sm:$0xff] %v9020_v59  ;;  %v3667_v36 = vld [vmem:[%s11661_s3 + $0x10] sm:$0xff]  ;;  %v3668_v59 = vld [vmem:[%s11661_s3 + $0x18] sm:$0xff] }
 0x1af   : > { %1986 = vperm.xlu0 %7687, %v8666_v35   ;;  %v7467_v62 = vpack.c.bf16 %v3668_v59, %v3667_v36  ;;  %v3672_v59 = vld [vmem:[%s11661_s3 + $0x38] sm:$0xff] }
 0x1b0   : > { %2655 = vperm.xlu1 %7689, %v8562_v9  }
 0x1b1   : > { %v9030_v60 = vpop.permute.xlu1 %1531  ;;  %v9032_v7 = vpop.permute.xlu0 %1526  ;;  %7468 = vmatprep.subr.bf16.mxu0 %v7467_v62 }
 0x1b2   : > { %11780 = vst [vmem:[#allocation94_spill] sm:$0xff] %v9032_v7  ;;  %7470 = vmatpush3.bf16.msra.mxu0 %v7467_v62  ;;  %v11782_v7 = vmov 2   ;;  %v3671_v62 = vld [vmem:[%s11661_s3 + $0x30] sm:$0xff] }
 0x1b3   : > { %2002 = vperm.xlu0 %7687, %v8682_v39   ;;  %v7471_v39 = vpack.c.bf16 %v3670_v1, %v3669_v40  ;;  %v11783_v40 = vmov 1  }
 0x1b4   : > { %2663 = vperm.xlu1 %7689, %v8570_v11  }
 0x1b5   : > { %v9042_v9 = vpop.permute.xlu1 %1541  ;;  %v9044_v5 = vpop.permute.xlu0 %1536  ;;  %7472 = vmatprep.subr.bf16.mxu0 %v7471_v39 }
 0x1b6   : > { %11781 = vst [vmem:[#allocation95_spill] sm:$0xff] %v9042_v9  ;;  %7474 = vmatpush3.bf16.msra.mxu0 %v7471_v39  ;;  %v7475_v9 = vpack.c.bf16 %v3672_v59, %v3671_v62 }
 0x1b7   : > { %7712 = vset.pattern.permute.xlu0 %v11782_v7 }
 0x1b8   : > { %2671 = vperm.xlu1 %7689, %v8578_v13   ;;  %2631 = vperm.xlu0 %7712, %v8538_v2  }
 0x1b9   : > { %v9055_v11 = vpop.permute.xlu1 %1551  ;;  %v9057_v36 = vpop.permute.xlu0 %1546  ;;  %7476 = vmatprep.subr.bf16.mxu0 %v7475_v9 }
 0x1ba   : > { %7478 = vmatpush3.bf16.msra.mxu0 %v7475_v9 }
 0x1bc   : > { %2679 = vperm.xlu1 %7689, %v8586_v15   ;;  %2643 = vperm.xlu0 %7712, %v8543_v4  }
 0x1bd   : > { %v9067_v2 = vpop.permute.xlu1 %1561  ;;  %v9069_v13 = vpop.permute.xlu0 %1556 }
 0x1c0   : > { %7690 = vset.pattern.permute.xlu1 %v11783_v40  ;;  %2651 = vperm.xlu0 %7712, %v8551_v6  }
 0x1c1   : > { %v9073_v1 = vpop.permute.xlu1 %1571  ;;  %1918 = vperm.xlu1 %7690, %v8591_v16   ;;  %v9076_v39 = vpop.permute.xlu0 %1566 }
 0x1c4   : > { %2659 = vperm.xlu0 %7712, %v8559_v8  }
 0x1c5   : > { %v9079_v15 = vpop.permute.xlu1 %1581  ;;  %7691 = vset.pattern.permute.xlu1 %v11782_v7  ;;  %v9082_v4 = vpop.permute.xlu0 %1576 }
 0x1c6   : > { %2691 = vperm.xlu1 %7691, %v8591_v16  }
 0x1c8   : > { %2667 = vperm.xlu0 %7712, %v8567_v10  }
 0x1c9   : > { %v9086_v9 = vpop.permute.xlu1 %1591  ;;  %v9088_v6 = vpop.permute.xlu0 %1586 }
 0x1ca   : > { %11784 = vst [vmem:[#allocation96_spill] sm:$0xff] %v9086_v9  ;;  %11785 = vst [vmem:[#allocation97_spill] sm:$0xff] %v9088_v6  ;;  %7692 = vset.pattern.permute.xlu1 %v11783_v40 }
 0x1cb   : > { %1926 = vperm.xlu1 %7692, %v8599_v18  }
 0x1cc   : > { %2675 = vperm.xlu0 %7712, %v8575_v12  }
 0x1cd   : > { %v9093_v8 = vpop.permute.xlu1 %1601  ;;  %v9095_v62 = vpop.permute.xlu0 %1596 }
 0x1ce   : > { %11786 = vst [vmem:[#allocation98_spill] sm:$0xff] %v9093_v8  ;;  %11787 = vst [vmem:[#allocation99_spill] sm:$0xff] %v9095_v62 }
 0x1cf   : > { %7693 = vset.pattern.permute.xlu1 %v11782_v7 }
 0x1d0   : > { %2695 = vperm.xlu1 %7693, %v8602_v19   ;;  %2683 = vperm.xlu0 %7712, %v8583_v14  }
 0x1d1   : > { %v9100_v10 = vpop.permute.xlu1 %1611  ;;  %v9102_v16 = vpop.permute.xlu0 %1606 }
 0x1d2   : > { %11788 = vst [vmem:[#allocation100_spill] sm:$0xff] %v9100_v10  ;;  %11789 = vst [vmem:[#allocation101_spill] sm:$0xff] %v9102_v16  ;;  %v11812_v10 = vld [vmem:[#allocation18_spill] sm:$0xff] }
 0x1d4   : > { %7694 = vset.pattern.permute.xlu1 %v11783_v40  ;;  %2687 = vperm.xlu0 %7712, %v8594_v17  }
 0x1d5   : > { %v9106_v59 = vpop.permute.xlu1 %1621  ;;  %1930 = vperm.xlu1 %7694, %v8610_v21   ;;  %v9109_v12 = vpop.permute.xlu0 %1616 }
 0x1d6   : > { %11790 = vst [vmem:[#allocation102_spill] sm:$0xff] %v9106_v59  ;;  %11791 = vst [vmem:[#allocation103_spill] sm:$0xff] %v9109_v12 }
 0x1d8   : > { %2699 = vperm.xlu0 %7712, %v8599_v18  }
 0x1d9   : > { %v9112_v8 = vpop.permute.xlu1 %1631  ;;  %1934 = vperm.xlu1 %7694, %v8607_v20   ;;  %v9115_v14 = vpop.permute.xlu0 %1626 }
 0x1da   : > { %11792 = vst [vmem:[#allocation104_spill] sm:$0xff] %v9112_v8  ;;  %11793 = vst [vmem:[#allocation105_spill] sm:$0xff] %v9115_v14 }
 0x1dc   : > { %2703 = vperm.xlu0 %7712, %v8610_v21  }
 0x1dd   : > { %v9118_v19 = vpop.permute.xlu1 %1641  ;;  %7695 = vset.pattern.permute.xlu1 %v11782_v7  ;;  %v9121_v17 = vpop.permute.xlu0 %1636 }
 0x1de   : > { %11794 = vst [vmem:[#allocation106_spill] sm:$0xff] %v9118_v19  ;;  %11795 = vst [vmem:[#allocation107_spill] sm:$0xff] %v9121_v17  ;;  %2707 = vperm.xlu1 %7695, %v8607_v20  }
 0x1e0   : > { %2715 = vperm.xlu0 %7712, %v8615_v22  }
 0x1e1   : > { %v9125_v59 = vpop.permute.xlu1 %1651  ;;  %v9127_v18 = vpop.permute.xlu0 %1646 }
 0x1e2   : > { %11796 = vst [vmem:[#allocation108_spill] sm:$0xff] %v9125_v59  ;;  %11797 = vst [vmem:[#allocation109_spill] sm:$0xff] %v9127_v18  ;;  %7696 = vset.pattern.permute.xlu1 %v11783_v40 }
 0x1e3   : > { %1942 = vperm.xlu1 %7696, %v8615_v22  }
 0x1e4   : > { %2719 = vperm.xlu0 %7712, %v8626_v25  }
 0x1e5   : > { %v9132_v21 = vpop.permute.xlu1 %1661  ;;  %v9134_v19 = vpop.permute.xlu0 %1656 }
 0x1e6   : > { %11798 = vst [vmem:[#allocation110_spill] sm:$0xff] %v9132_v21  ;;  %11799 = vst [vmem:[#allocation111_spill] sm:$0xff] %v9134_v19 }
 0x1e7   : > { %7697 = vset.pattern.permute.xlu1 %v11782_v7 }
 0x1e8   : > { %2711 = vperm.xlu1 %7697, %v8618_v23   ;;  %2731 = vperm.xlu0 %7712, %v8631_v26  }
 0x1e9   : > { %v9139_v20 = vpop.permute.xlu1 %1671  ;;  %v9141_v59 = vpop.permute.xlu0 %1666 }
 0x1ea   : > { %11800 = vst [vmem:[#allocation112_spill] sm:$0xff] %v9139_v20  ;;  %11801 = vst [vmem:[#allocation113_spill] sm:$0xff] %v9141_v59 }
 0x1ec   : > { %7698 = vset.pattern.permute.xlu1 %v11783_v40  ;;  %2735 = vperm.xlu0 %7712, %v8642_v29  }
 0x1ed   : > { %v9145_v22 = vpop.permute.xlu1 %1681  ;;  %1946 = vperm.xlu1 %7698, %v8626_v25   ;;  %v9148_v21 = vpop.permute.xlu0 %1676 }
 0x1ee   : > { %11802 = vst [vmem:[#allocation114_spill] sm:$0xff] %v9145_v22  ;;  %11803 = vst [vmem:[#allocation115_spill] sm:$0xff] %v9148_v21  ;;  %v9251_v21 = vld [vmem:[%s11659_s1 + $0x2] ss:$0 sm:$0xff] }
 0x1f0   : > { %2747 = vperm.xlu0 %7712, %v8647_v30  }
 0x1f1   : > { %v9151_v19 = vpop.permute.xlu1 %1691  ;;  %1950 = vperm.xlu1 %7698, %v8623_v24   ;;  %v9154_v23 = vpop.permute.xlu0 %1686 }
 0x1f2   : > { %11804 = vst [vmem:[#allocation116_spill] sm:$0xff] %v9151_v19  ;;  %11805 = vst [vmem:[#allocation117_spill] sm:$0xff] %v9154_v23 }
 0x1f4   : > { %2751 = vperm.xlu0 %7712, %v8658_v33  }
 0x1f5   : > { %v9157_v59 = vpop.permute.xlu1 %1701  ;;  %7699 = vset.pattern.permute.xlu1 %v11782_v7  ;;  %v9160_v20 = vpop.permute.xlu0 %1696 }
 0x1f6   : > { %11806 = vst [vmem:[#allocation118_spill] sm:$0xff] %v9157_v59  ;;  %11807 = vst [vmem:[#allocation119_spill] sm:$0xff] %v9160_v20  ;;  %2723 = vperm.xlu1 %7699, %v8623_v24  }
 0x1f8   : > { %2763 = vperm.xlu0 %7712, %v8663_v34  }
 0x1f9   : > { %v9164_v25 = vpop.permute.xlu1 %1711  ;;  %v9166_v22 = vpop.permute.xlu0 %1706 }
 0x1fa   : > { %11808 = vst [vmem:[#allocation120_spill] sm:$0xff] %v9164_v25  ;;  %11809 = vst [vmem:[#allocation121_spill] sm:$0xff] %v9166_v22  ;;  %7700 = vset.pattern.permute.xlu1 %v11783_v40 }
 0x1fb   : > { %1958 = vperm.xlu1 %7700, %v8631_v26  }
 0x1fc   : > { %2767 = vperm.xlu0 %7712, %v8674_v37  }
 0x1fd   : > { %v9171_v23 = vpop.permute.xlu1 %1721  ;;  %v9173_v59 = vpop.permute.xlu0 %1716 }
 0x1fe   : > { %11810 = vst [vmem:[#allocation122_spill] sm:$0xff] %v9171_v23  ;;  %11811 = vst [vmem:[#allocation123_spill] sm:$0xff] %v9173_v59 }
 0x1ff   : > { %7701 = vset.pattern.permute.xlu1 %v11782_v7 }
 0x200   : > { %2727 = vperm.xlu1 %7701, %v8634_v27   ;;  %2779 = vperm.xlu0 %7712, %v8679_v38  }
 0x202   : > { %v1863_v24 = vpop.permute.xlu1 %1862  ;;  %v9178_v25 = vpop.permute.xlu0 %1858 }
 0x204   : > { %7702 = vset.pattern.permute.xlu1 %v11783_v40  ;;  %2783 = vperm.xlu0 %7712, %v8688_v41  }
 0x205   : > { %1962 = vperm.xlu1 %7702, %v8642_v29  }
 0x206   : > { %v1867_v26 = vpop.permute.xlu1 %1866  ;;  %v9183_v22 = vpop.permute.xlu0 %1870 }
 0x208   : > { %7717 = vset.pattern.permute.xlu0 %v11783_v40 }
 0x209   : > { %1966 = vperm.xlu1 %7702, %v8639_v28   ;;  %2018 = vperm.xlu0 %7717, %v8695_v43  }
 0x20a   : > { %v1875_v27 = vpop.permute.xlu1 %1874  ;;  %v9188_v38 = vpop.permute.xlu0 %1878 }
 0x20d   : > { %7703 = vset.pattern.permute.xlu1 %v11782_v7  ;;  %2034 = vperm.xlu0 %7717, %v8708_v47  }
 0x20e   : > { %2739 = vperm.xlu1 %7703, %v8639_v28   ;;  %v9193_v41 = vpop.permute.xlu1 %1882  ;;  %v9195_v29 = vpop.permute.xlu0 %1886 }
 0x211   : > { %7722 = vset.pattern.permute.xlu0 %v11782_v7 }
 0x212   : > { %7704 = vset.pattern.permute.xlu1 %v11783_v40  ;;  %v9199_v23 = vpop.permute.xlu1 %1890  ;;  %2795 = vperm.xlu0 %7722, %v8692_v42   ;;  %v9202_v43 = vpop.permute.xlu0 %1894 }
 0x213   : > { %1974 = vperm.xlu1 %7704, %v8647_v30  }
 0x216   : > { %v9205_v59 = vpop.permute.xlu1 %1898  ;;  %2799 = vperm.xlu0 %7722, %v8701_v45   ;;  %v9208_v28 = vpop.permute.xlu0 %1902 }
 0x217   : > { %7705 = vset.pattern.permute.xlu1 %v11782_v7 }
 0x218   : > { %2743 = vperm.xlu1 %7705, %v8650_v31  }
 0x21a   : > { %v9212_v47 = vpop.permute.xlu1 %1906  ;;  %2811 = vperm.xlu0 %7722, %v8705_v46   ;;  %v9215_v20 = vpop.permute.xlu0 %1910 }
 0x21c   : > { %7706 = vset.pattern.permute.xlu1 %v11783_v40 }
 0x21d   : > { %1978 = vperm.xlu1 %7706, %v8658_v33  }
 0x21e   : > { %v9219_v30 = vpop.permute.xlu1 %1914  ;;  %2815 = vperm.xlu0 %7722, %v8714_v49   ;;  %v9222_v42 = vpop.permute.xlu0 %1922 }
 0x221   : > { %1982 = vperm.xlu1 %7706, %v8655_v32  }
 0x222   : > { %7727 = vset.pattern.permute.xlu0 %v11783_v40  ;;  %v9226_v31 = vpop.permute.xlu0 %1938 }
 0x223   : > { %v2636_v45 = vpop.permute.xlu1 %2635  ;;  %2050 = vperm.xlu0 %7727, %v8721_v51  }
 0x224   : > { %v3147_v8 = vmul.f32 %v9251_v21, %v2636_v45 }
 0x225   : > { %7707 = vset.pattern.permute.xlu1 %v11782_v7 }
 0x226   : > { %2755 = vperm.xlu1 %7707, %v8655_v32   ;;  %v9231_v33 = vpop.permute.xlu0 %1954  ;;  %v9243_v32 = vld [vmem:[%s11659_s1 + $0x1] ss:$0 sm:$0xff] }
 0x227   : > { %v2640_v46 = vpop.permute.xlu1 %2639  ;;  %2066 = vperm.xlu0 %7727, %v8734_v55   ;;  %v2375_v18 = vmul.f32 %v9243_v32, %v1867_v26  ;;  %v2377_v26 = vmul.f32 %v9243_v32, %v1875_v27  ;;  %v11815_v27 = vld [vmem:[#allocation16_spill] sm:$0xff] }
 0x228   : > { %v3148_v16 = vmul.f32 %v9251_v21, %v2640_v46 }
 0x22a   : > { %7708 = vset.pattern.permute.xlu1 %v11783_v40  ;;  %v9235_v49 = vpop.permute.xlu0 %1970 }
 0x22b   : > { %1990 = vperm.xlu1 %7708, %v8663_v34   ;;  %v2648_v19 = vpop.permute.xlu1 %2647  ;;  %7732 = vset.pattern.permute.xlu0 %v11782_v7  ;;  %v9258_v34 = vld [vmem:[%s11659_s1] ss:$0 sm:$0xff] }
 0x22c   : > { %2827 = vperm.xlu0 %7732, %v8718_v50   ;;  %v2374_v50 = vmul.f32 %v9243_v32, %v1863_v24  ;;  %v1729_v14 = vmul.f32 %v9258_v34, %v8767_v61  ;;  %v1728_v61 = vmul.f32 %v9258_v34, %v8761_v52 }
 0x22e   : > { %v9245_v51 = vpop.permute.xlu0 %1986  ;;  %v2502_v24 = vadd.f32 %v2374_v50, %v1729_v14  ;;  %v1731_v50 = vmul.f32 %v9258_v34, %v11815_v27 }
 0x22f   : > { %7709 = vset.pattern.permute.xlu1 %v11782_v7  ;;  %v2656_v55 = vpop.permute.xlu1 %2655 }
 0x230   : > { %2759 = vperm.xlu1 %7709, %v8666_v35   ;;  %2831 = vperm.xlu0 %7732, %v8727_v53   ;;  %v1730_v35 = vmul.f32 %v9258_v34, %v8759_v48  ;;  %v2373_v53 = vmul.f32 %v9243_v32, %v9178_v25  ;;  %v1732_v48 = vmul.f32 %v9258_v34, %v11812_v10 }
 0x231   : > { %v3275_v62 = vadd.f32 %v3147_v8, %v2502_v24  ;;  %v3150_v25 = vmul.f32 %v9251_v21, %v2648_v19  ;;  %v2379_v10 = vmul.f32 %v9243_v32, %v9193_v41  ;;  %v11814_v19 = vld [vmem:[#allocation12_spill] sm:$0xff]  ;;  %v3152_v41 = vmul.f32 %v9251_v21, %v2656_v55  ;;  %v11819_v55 = vld [vmem:[#allocation14_spill] sm:$0xff] }
 0x232   : > { %v9262_v17 = vpop.permute.xlu0 %2002  ;;  %v2503_v45 = vadd.f32 %v2375_v18, %v1730_v35  ;;  %v2501_v9 = vadd.f32 %v2373_v53, %v1728_v61  ;;  %v11813_v18 = vld [vmem:[#allocation13_spill] sm:$0xff]  ;;  %v2505_v8 = vadd.f32 %v2377_v26, %v1732_v48  ;;  %v2378_v53 = vmul.f32 %v9243_v32, %v9188_v38  ;;  %v11817_v24 = vld [vmem:[#allocation20_spill] sm:$0xff]  ;;  %v11818_v38 = vld [vmem:[#allocation22_spill] sm:$0xff] }
 0x233   : > { %v2664_v12 = vpop.permute.xlu1 %2663 }
 0x234   : > { %7710 = vset.pattern.permute.xlu1 %v11783_v40  ;;  %2843 = vperm.xlu0 %7732, %v8731_v54   ;;  %v2376_v54 = vmul.f32 %v9243_v32, %v9183_v22  ;;  %v3276_v52 = vadd.f32 %v3148_v16, %v2503_v45  ;;  %v11816_v22 = vld [vmem:[#allocation17_spill] sm:$0xff]  ;;  %v3278_v61 = vadd.f32 %v3150_v25, %v2505_v8  ;;  %v7829_v8 = vld [vmem:[%s8529_s11 + $0x118] sm:$0xff] }
 0x235   : > { %1994 = vperm.xlu1 %7710, %v8674_v37   ;;  %v9288_v37 = vld [vmem:[%s11660_s2] ss:$0 sm:$0xff]  ;;  %v1733_v35 = vmul.f32 %v9258_v34, %v11816_v22  ;;  %v2380_v22 = vmul.f32 %v9243_v32, %v9195_v29 }
 0x236   : > { %v3410_v26 = vadd.f32 %v9288_v37, %v3275_v62 }
 0x237   : > { %v9281_v46 = vpop.permute.xlu1 %2671  ;;  %v2632_v6 = vpop.permute.xlu0 %2631  ;;  %v2506_v25 = vadd.f32 %v2378_v53, %v1733_v35 }
 0x238   : > { %v3146_v14 = vmul.f32 %v9251_v21, %v2632_v6  ;;  %2847 = vperm.xlu0 %7732, %v11813_v18   ;;  %v1734_v6 = vmul.f32 %v9258_v34, %v11817_v24  ;;  %v2504_v18 = vadd.f32 %v2376_v54, %v1731_v50  ;;  %v2381_v54 = vmul.f32 %v9243_v32, %v9199_v23 }
 0x239   : > { %1998 = vperm.xlu1 %7710, %v11814_v19   ;;  %v3411_v19 = vadd.f32 %v9288_v37, %v3276_v52  ;;  %v3413_v24 = vadd.f32 %v9288_v37, %v3278_v61 }
 0x23a   : > { %v3274_v16 = vadd.f32 %v3146_v14, %v2501_v9  ;;  %v1736_v14 = vmul.f32 %v9258_v34, %v11818_v38  ;;  %v2507_v62 = vadd.f32 %v2379_v10, %v1734_v6  ;;  %v3154_v38 = vmul.f32 %v9251_v21, %v2664_v12 }
 0x23b   : > { %v9305_v45 = vpop.permute.xlu1 %2679  ;;  %v2644_v48 = vpop.permute.xlu0 %2643 }
 0x23c   : > { %v3149_v27 = vmul.f32 %v9251_v21, %v2644_v48  ;;  %7737 = vset.pattern.permute.xlu0 %v11783_v40  ;;  %v3409_v9 = vadd.f32 %v9288_v37, %v3274_v16  ;;  %v3538_v16 = vmax.f32 %v3410_v26, 0.0  ;;  %v3280_v10 = vadd.f32 %v3152_v41, %v2507_v62  ;;  %v11821_v26 = vld [vmem:[#allocation24_spill] sm:$0xff]  ;;  %v11822_v41 = vld [vmem:[#allocation15_spill] sm:$0xff] }
 0x23d   : > { %7711 = vset.pattern.permute.xlu1 %v11782_v7  ;;  %2082 = vperm.xlu0 %7737, %v11819_v55   ;;  %v3539_v48 = vmax.f32 %v3411_v19, 0.0  ;;  %v1738_v61 = vmul.f32 %v9258_v34, %v11821_v26  ;;  %v2509_v12 = vadd.f32 %v2381_v54, %v1736_v14  ;;  %v2383_v19 = vmul.f32 %v9243_v32, %v9205_v59 }
 0x23e   : > { %v3277_v52 = vadd.f32 %v3149_v27, %v2504_v18  ;;  %2771 = vperm.xlu1 %7711, %v7829_v8   ;;  %v3537_v50 = vmax.f32 %v3409_v9, 0.0  ;;  %v11820_v18 = vld [vmem:[#allocation19_spill] sm:$0xff]  ;;  %v2382_v55 = vmul.f32 %v9243_v32, %v9202_v43  ;;  %v3415_v8 = vadd.f32 %v9288_v37, %v3280_v10 }
 0x23f   : > { %v2652_v6 = vpop.permute.xlu0 %2651  ;;  %v1735_v29 = vmul.f32 %v9258_v34, %v11820_v18  ;;  %v3282_v54 = vadd.f32 %v3154_v38, %v2509_v12  ;;  %v3156_v59 = vmul.f32 %v9251_v21, %v9281_v46  ;;  %v2511_v43 = vadd.f32 %v2383_v19, %v1738_v61  ;;  %v9350_v38 = vld [vmem:[%s8529_s11 + $0x1c8] sm:$0xff]  ;;  %v7832_v19 = vld [vmem:[%s8529_s11 + $0x120] sm:$0xff] }
 0x240   : > { %v3412_v35 = vadd.f32 %v9288_v37, %v3277_v52  ;;  %v3151_v53 = vmul.f32 %v9251_v21, %v2652_v6  ;;  %v9324_v23 = vpop.permute.xlu1 %1918  ;;  %7236 = vmatprep.mubr.msk.f32.mxu0 %vm3680_vm0, %v3537_v50  ;;  %v3541_v52 = vmax.f32 %v3413_v24, 0.0  ;;  %v7830_v50 = vld [vmem:[%s8529_s11 + $0x128] sm:$0xff]  ;;  %v3543_v18 = vmax.f32 %v3415_v8, 0.0 }
 0x241   : > { %2098 = vperm.xlu0 %7737, %v11822_v41   ;;  %7237 = vmatmul.mubr.msk.f32.vlgmr.msra.gmra.mrb[0].mxu0 %vm3680_vm0, %v3538_v16  ;;  %v2508_v62 = vadd.f32 %v2380_v22, %v1735_v29  ;;  %v11823_v6 = vld [vmem:[#allocation21_spill] sm:$0xff]  ;;  %v3417_v26 = vadd.f32 %v9288_v37, %v3282_v54  ;;  %v3284_v61 = vadd.f32 %v3156_v59, %v2511_v43 }
 0x242   : > { %v3540_v27 = vmax.f32 %v3412_v35, 0.0  ;;  %v3279_v9 = vadd.f32 %v3151_v53, %v2506_v25  ;;  %7713 = vset.pattern.permute.xlu1 %v11783_v40  ;;  %7239 = vmatprep.mubr.msk.f32.mxu0 %vm3680_vm0, %v3539_v48  ;;  %v1737_v22 = vmul.f32 %v9258_v34, %v11823_v6  ;;  %v2384_v35 = vmul.f32 %v9243_v32, %v9208_v28  ;;  %v11826_v43 = vld [vmem:[#allocation25_spill] sm:$0xff] }
 0x243   : > { %2006 = vperm.xlu1 %7713, %v7830_v50   ;;  %v2660_v14 = vpop.permute.xlu0 %2659  ;;  %v2385_v53 = vmul.f32 %v9243_v32, %v9212_v47  ;;  %v9371_v50 = vld [vmem:[%s8529_s11 + $0x1d0] sm:$0xff]  ;;  %v2386_v59 = vmul.f32 %v9243_v32, %v9215_v20  ;;  %v11827_v20 = vld [vmem:[#allocation27_spill] sm:$0xff] }
 0x244   : > { %v3414_v25 = vadd.f32 %v9288_v37, %v3279_v9  ;;  %v3153_v16 = vmul.f32 %v9251_v21, %v2660_v14  ;;  %v2510_v46 = vadd.f32 %v2382_v55, %v1737_v22  ;;  %v11825_v9 = vld [vmem:[#allocation26_spill] sm:$0xff] }
 0x245   : > { %v2692_v48 = vpop.permute.xlu1 %2691  ;;  %7742 = vset.pattern.permute.xlu0 %v11782_v7  ;;  %7240 = vmatmul.mubr.msk.f32.gmra.mrb[2].mxu0 %vm3680_vm0, %v3540_v27  ;;  %v11824_v27 = vld [vmem:[#allocation23_spill] sm:$0xff]  ;;  %v1740_v47 = vmul.f32 %v9258_v34, %v11825_v9 }
 0x246   : > { %v3542_v24 = vmax.f32 %v3414_v25, 0.0  ;;  %v3281_v10 = vadd.f32 %v3153_v16, %v2508_v62  ;;  %2859 = vperm.xlu0 %7742, %v9350_v38   ;;  %7242 = vmatprep.mubr.msk.f32.mxu0 %vm3680_vm0, %v3541_v52  ;;  %v1739_v28 = vmul.f32 %v9258_v34, %v11824_v27  ;;  %v3158_v62 = vmul.f32 %v9251_v21, %v9305_v45 }
 0x247   : > { %7714 = vset.pattern.permute.xlu1 %v11782_v7  ;;  %v2668_v29 = vpop.permute.xlu0 %2667  ;;  %v2513_v54 = vadd.f32 %v2385_v53, %v1740_v47  ;;  %v3545_v45 = vmax.f32 %v3417_v26, 0.0  ;;  %v3419_v16 = vadd.f32 %v9288_v37, %v3284_v61  ;;  %v1743_v53 = vmul.f32 %v9258_v34, %v11827_v20  ;;  %v9392_v61 = vld [vmem:[%s8529_s11 + $0x1e8] sm:$0xff] }
 0x248   : > { %v3416_v41 = vadd.f32 %v9288_v37, %v3281_v10  ;;  %v3155_v12 = vmul.f32 %v9251_v21, %v2668_v29  ;;  %2775 = vperm.xlu1 %7714, %v7832_v19   ;;  %v2512_v14 = vadd.f32 %v2384_v35, %v1739_v28  ;;  %v7834_v35 = vld [vmem:[%s8529_s11 + $0x130] sm:$0xff]  ;;  %v2387_v19 = vmul.f32 %v9243_v32, %v9219_v30  ;;  %v11829_v30 = vld [vmem:[#allocation28_spill] sm:$0xff] }
 0x249   : > { %7243 = vmatmul.mubr.msk.f32.gmra.mrb[4].mxu0 %vm3680_vm0, %v3542_v24  ;;  %v1741_v24 = vmul.f32 %v9258_v34, %v11826_v43  ;;  %v3286_v10 = vadd.f32 %v3158_v62, %v2513_v54  ;;  %v3161_v27 = vmul.f32 %v9251_v21, %v2692_v48  ;;  %v3547_v9 = vmax.f32 %v3419_v16, 0.0  ;;  %v7836_v54 = vld [vmem:[%s8529_s11 + $0x138] sm:$0xff]  ;;  %v9410_v16 = vld [vmem:[%s8529_s11 + $0x1f0] sm:$0xff] }
 0x24a   : > { %v3544_v55 = vmax.f32 %v3416_v41, 0.0  ;;  %v3283_v52 = vadd.f32 %v3155_v12, %v2510_v46  ;;  %v1927_v8 = vpop.permute.xlu1 %1926  ;;  %2863 = vperm.xlu0 %7742, %v9371_v50   ;;  %7245 = vmatprep.mubr.msk.f32.mxu0 %vm3680_vm0, %v3543_v18  ;;  %v2388_v46 = vmul.f32 %v9243_v32, %v9324_v23  ;;  %v2389_v18 = vmul.f32 %v9243_v32, %v9222_v42  ;;  %v11828_v23 = vld [vmem:[#allocation30_spill] sm:$0xff] }
 0x24b   : > { %v2676_v25 = vpop.permute.xlu0 %2675  ;;  %v1744_v41 = vmul.f32 %v9258_v34, %v11828_v23  ;;  %v2514_v12 = vadd.f32 %v2386_v59, %v1741_v24  ;;  %v1742_v48 = vmul.f32 %v9258_v34, %v11829_v30  ;;  %v11832_v30 = vld [vmem:[#allocation31_spill] sm:$0xff] }
 0x24c   : > { %v3418_v6 = vadd.f32 %v9288_v37, %v3283_v52  ;;  %v3157_v22 = vmul.f32 %v9251_v21, %v2676_v25  ;;  %7715 = vset.pattern.permute.xlu1 %v11783_v40  ;;  %v3421_v52 = vadd.f32 %v9288_v37, %v3286_v10 }
 0x24d   : > { %2010 = vperm.xlu1 %7715, %v7834_v35   ;;  %7246 = vmatmul.mubr.msk.f32.gmra.mrb[6].mxu0 %vm3680_vm0, %v3544_v55  ;;  %v2517_v59 = vadd.f32 %v2389_v18, %v1744_v41  ;;  %v2515_v24 = vadd.f32 %v2387_v19, %v1742_v48  ;;  %v1747_v48 = vmul.f32 %v9258_v34, %v11832_v30  ;;  %v7844_v30 = vld [vmem:[%s8529_s11 + $0x150] sm:$0xff] }
 0x24e   : > { %v3546_v29 = vmax.f32 %v3418_v6, 0.0  ;;  %v3285_v26 = vadd.f32 %v3157_v22, %v2512_v14  ;;  %2875 = vperm.xlu0 %7742, %v9392_v61   ;;  %7248 = vmatprep.mubr.msk.f32.mxu0 %vm3680_vm0, %v3545_v45  ;;  %v2516_v14 = vadd.f32 %v2388_v46, %v1743_v53  ;;  %v2390_v22 = vmul.f32 %v9243_v32, %v1927_v8  ;;  %v11830_v53 = vld [vmem:[#allocation29_spill] sm:$0xff] }
 0x24f   : > { %v2696_v42 = vpop.permute.xlu1 %2695  ;;  %v2684_v28 = vpop.permute.xlu0 %2683  ;;  %v1745_v18 = vmul.f32 %v9258_v34, %v11830_v53 }
 0x250   : > { %v3420_v47 = vadd.f32 %v9288_v37, %v3285_v26  ;;  %v3162_v62 = vmul.f32 %v9251_v21, %v2696_v42  ;;  %v3159_v55 = vmul.f32 %v9251_v21, %v2684_v28  ;;  %v3289_v6 = vadd.f32 %v3161_v27, %v2516_v14 }
 0x251   : > { %2014 = vperm.xlu1 %7715, %v7836_v54   ;;  %7249 = vmatmul.mubr.msk.f32.gmra.mrb[8].mxu0 %vm3680_vm0, %v3546_v29  ;;  %v3549_v29 = vmax.f32 %v3421_v52, 0.0  ;;  %v2518_v41 = vadd.f32 %v2390_v22, %v1745_v18 }
 0x252   : > { %v3548_v25 = vmax.f32 %v3420_v47, 0.0  ;;  %v3287_v45 = vadd.f32 %v3159_v55, %v2514_v12  ;;  %2879 = vperm.xlu0 %7742, %v9410_v16   ;;  %7251 = vmatprep.mubr.msk.f32.mxu0 %vm3680_vm0, %v3547_v9  ;;  %v3290_v10 = vadd.f32 %v3162_v62, %v2517_v59  ;;  %v3424_v8 = vadd.f32 %v9288_v37, %v3289_v6  ;;  %v9425_v12 = vld [vmem:[%s8529_s11 + $0x200] sm:$0xff] }
 0x253   : > { %v2688_v43 = vpop.permute.xlu0 %2687  ;;  %v11831_v62 = vld [vmem:[#allocation32_spill] sm:$0xff] }
 0x254   : > { %v3422_v46 = vadd.f32 %v9288_v37, %v3287_v45  ;;  %v3160_v35 = vmul.f32 %v9251_v21, %v2688_v43  ;;  %v1931_v20 = vpop.permute.xlu1 %1930  ;;  %v3425_v27 = vadd.f32 %v9288_v37, %v3290_v10  ;;  %v1746_v55 = vmul.f32 %v9258_v34, %v11831_v62  ;;  %v9441_v45 = vld [vmem:[%s8529_s11 + $0x220] sm:$0xff] }
 0x255   : > { %7716 = vset.pattern.permute.xlu1 %v11782_v7  ;;  %7252 = vmatmul.mubr.msk.f32.gmra.mrb[10].mxu0 %vm3680_vm0, %v3548_v25  ;;  %v2391_v28 = vmul.f32 %v9243_v32, %v1931_v20  ;;  %v3552_v59 = vmax.f32 %v3424_v8, 0.0  ;;  %v7839_v25 = vld [vmem:[%s8529_s11 + $0x148] sm:$0xff] }
 0x256   : > { %v3550_v26 = vmax.f32 %v3422_v46, 0.0  ;;  %v3288_v23 = vadd.f32 %v3160_v35, %v2515_v24  ;;  %2787 = vperm.xlu1 %7716, %v7836_v54   ;;  %7747 = vset.pattern.permute.xlu0 %v11783_v40  ;;  %v3553_v22 = vmax.f32 %v3425_v27, 0.0  ;;  %v9455_v8 = vld [vmem:[%s8529_s11 + $0x208] sm:$0xff] }
 0x257   : > { %7254 = vmatprep.mubr.msk.f32.mxu0 %vm3680_vm0, %v3549_v29  ;;  %2114 = vperm.xlu0 %7747, %v9425_v12   ;;  %v2700_v19 = vpop.permute.xlu0 %2699  ;;  %v2519_v43 = vadd.f32 %v2391_v28, %v1746_v55  ;;  %v11833_v28 = vld [vmem:[#allocation33_spill] sm:$0xff]  ;;  %v2393_v55 = vmul.f32 %v9243_v32, %v9226_v31 }
 0x258   : > { %v3423_v42 = vadd.f32 %v9288_v37, %v3288_v23  ;;  %v3163_v9 = vmul.f32 %v9251_v21, %v2700_v19  ;;  %v1935_v47 = vpop.permute.xlu1 %1934  ;;  %v7841_v23 = vld [vmem:[%s8529_s11 + $0x140] sm:$0xff] }
 0x259   : > { %7255 = vmatmul.mubr.msk.f32.gmra.mrb[12].mxu0 %vm3680_vm0, %v3550_v26  ;;  %v2392_v54 = vmul.f32 %v9243_v32, %v1935_v47 }
 0x25a   : > { %v3551_v52 = vmax.f32 %v3423_v42, 0.0  ;;  %v3291_v14 = vadd.f32 %v3163_v9, %v2518_v41  ;;  %7718 = vset.pattern.permute.xlu1 %v11783_v40  ;;  %v1749_v9 = vmul.f32 %v9258_v34, %v11833_v28 }
 0x25b   : > { %2022 = vperm.xlu1 %7718, %v7839_v25   ;;  %2130 = vperm.xlu0 %7747, %v9441_v45   ;;  %v2704_v6 = vpop.permute.xlu0 %2703  ;;  %v2520_v20 = vadd.f32 %v2392_v54, %v1747_v48  ;;  %v11834_v48 = vld [vmem:[#allocation34_spill] sm:$0xff] }
 0x25c   : > { %v3426_v24 = vadd.f32 %v9288_v37, %v3291_v14  ;;  %v3164_v10 = vmul.f32 %v9251_v21, %v2704_v6  ;;  %7257 = vmatprep.mubr.msk.f32.mxu0 %vm3680_vm0, %v3551_v52  ;;  %v9468_v14 = vld [vmem:[%s8529_s11 + $0x210] sm:$0xff] }
 0x25d   : > { %v2708_v46 = vpop.permute.xlu1 %2707  ;;  %7258 = vmatmul.mubr.msk.f32.gmra.mrb[14].mxu0 %vm3680_vm0, %v3552_v59  ;;  %v1748_v59 = vmul.f32 %v9258_v34, %v11834_v48 }
 0x25e   : > { %v3554_v35 = vmax.f32 %v3426_v24, 0.0  ;;  %v3292_v53 = vadd.f32 %v3164_v10, %v2519_v43  ;;  %v3165_v18 = vmul.f32 %v9251_v21, %v2708_v46  ;;  %7260 = vmatprep.mubr.msk.f32.mxu0 %vm3680_vm0, %v3553_v22  ;;  %v9478_v43 = vld [vmem:[%s8529_s11 + $0x228] sm:$0xff]  ;;  %v7846_v24 = vld [vmem:[%s8529_s11 + $0x158] sm:$0xff] }
 0x25f   : > { %7719 = vset.pattern.permute.xlu1 %v11782_v7  ;;  %7752 = vset.pattern.permute.xlu0 %v11782_v7  ;;  %v2716_v27 = vpop.permute.xlu0 %2715  ;;  %v2521_v6 = vadd.f32 %v2393_v55, %v1748_v59  ;;  %v7850_v59 = vld [vmem:[%s8529_s11 + $0x260] sm:$0xff] }
 0x260   : > { %v3427_v29 = vadd.f32 %v9288_v37, %v3292_v53  ;;  %v3293_v26 = vadd.f32 %v3165_v18, %v2520_v20  ;;  %2791 = vperm.xlu1 %7719, %v7841_v23   ;;  %2891 = vperm.xlu0 %7752, %v9455_v8   ;;  %v3167_v47 = vmul.f32 %v9251_v21, %v2716_v27  ;;  %v9485_v18 = vld [vmem:[%s8529_s11 + $0x230] sm:$0xff] }
 0x261   : > { %7261 = vmatmul.mubr.msk.f32.gmra.mrb[16].mxu0 %vm3680_vm0, %v3554_v35 }
 0x262   : > { %v3555_v41 = vmax.f32 %v3427_v29, 0.0  ;;  %v3428_v19 = vadd.f32 %v9288_v37, %v3293_v26  ;;  %v1943_v42 = vpop.permute.xlu1 %1942  ;;  %v11835_v29 = vld [vmem:[#allocation36_spill] sm:$0xff] }
 0x263   : > { %v2394_v62 = vmul.f32 %v9243_v32, %v1943_v42  ;;  %v2720_v35 = vpop.permute.xlu0 %2719  ;;  %v1750_v26 = vmul.f32 %v9258_v34, %v11835_v29 }
 0x264   : > { %v3556_v52 = vmax.f32 %v3428_v19, 0.0  ;;  %7720 = vset.pattern.permute.xlu1 %v11783_v40  ;;  %2895 = vperm.xlu0 %7752, %v9468_v14   ;;  %v3168_v23 = vmul.f32 %v9251_v21, %v2720_v35 }
 0x265   : > { %v2522_v54 = vadd.f32 %v2394_v62, %v1749_v9  ;;  %7263 = vmatprep.mubr.msk.f32.mxu0 %vm3680_vm0, %v3555_v41  ;;  %2026 = vperm.xlu1 %7720, %v7844_v30  }
 0x266   : > { %7264 = vmatmul.mubr.msk.f32.gmra.mrb[18].mxu0 %vm3680_vm0, %v3556_v52  ;;  %v7849_v52 = vld [vmem:[%s8529_s11 + $0x168] sm:$0xff] }
 0x267   : > { %v3295_v31 = vadd.f32 %v3167_v47, %v2522_v54  ;;  %v2712_v25 = vpop.permute.xlu1 %2711  ;;  %v9496_v47 = vld [vmem:[%s8529_s11 + $0x240] sm:$0xff]  ;;  %v11836_v54 = vld [vmem:[#allocation35_spill] sm:$0xff] }
 0x268   : > { %v3166_v22 = vmul.f32 %v9251_v21, %v2712_v25  ;;  %2907 = vperm.xlu0 %7752, %v9478_v43   ;;  %v1751_v30 = vmul.f32 %v9258_v34, %v11836_v54 }
 0x269   : > { %2030 = vperm.xlu1 %7720, %v7846_v24   ;;  %v3430_v46 = vadd.f32 %v9288_v37, %v3295_v31 }
 0x26a   : > { %v3294_v10 = vadd.f32 %v3166_v22, %v2521_v6 }
 0x26b   : > { %v3558_v42 = vmax.f32 %v3430_v46, 0.0 }
 0x26c   : > { %v3429_v20 = vadd.f32 %v9288_v37, %v3294_v10  ;;  %v1947_v53 = vpop.permute.xlu1 %1946  ;;  %2911 = vperm.xlu0 %7752, %v9485_v18   ;;  %v2732_v10 = vpop.permute.xlu0 %2731 }
 0x26d   : > { %v2395_v41 = vmul.f32 %v9243_v32, %v1947_v53  ;;  %7721 = vset.pattern.permute.xlu1 %v11782_v7  ;;  %v11837_v53 = vld [vmem:[#allocation37_spill] sm:$0xff] }
 0x26e   : > { %v3557_v19 = vmax.f32 %v3429_v20, 0.0  ;;  %2803 = vperm.xlu1 %7721, %v7846_v24   ;;  %v7851_v24 = vld [vmem:[%s8529_s11 + $0x160] sm:$0xff]  ;;  %v9514_v20 = vld [vmem:[%s8529_s11 + $0x248] sm:$0xff]  ;;  %v1753_v29 = vmul.f32 %v9258_v34, %v11837_v53 }
 0x26f   : > { %v2523_v27 = vadd.f32 %v2395_v41, %v1750_v26  ;;  %v3171_v26 = vmul.f32 %v9251_v21, %v2732_v10  ;;  %v2397_v41 = vmul.f32 %v9243_v32, %v9231_v33 }
 0x270   : > { %v1951_v28 = vpop.permute.xlu1 %1950  ;;  %7757 = vset.pattern.permute.xlu0 %v11783_v40  ;;  %7266 = vmatprep.mubr.msk.f32.mxu0 %vm3680_vm0, %v3557_v19 }
 0x271   : > { %v3296_v9 = vadd.f32 %v3168_v23, %v2523_v27  ;;  %2146 = vperm.xlu0 %7757, %v9496_v47   ;;  %7267 = vmatmul.mubr.msk.f32.gmra.mrb[20].mxu0 %vm3680_vm0, %v3558_v42  ;;  %v2396_v62 = vmul.f32 %v9243_v32, %v1951_v28  ;;  %v7853_v42 = vld [vmem:[%s8529_s11 + $0x170] sm:$0xff] }
 0x272   : > { %7723 = vset.pattern.permute.xlu1 %v11783_v40  ;;  %v11838_v28 = vld [vmem:[#allocation38_spill] sm:$0xff] }
 0x273   : > { %v3431_v55 = vadd.f32 %v9288_v37, %v3296_v9  ;;  %2038 = vperm.xlu1 %7723, %v7849_v52   ;;  %v2524_v25 = vadd.f32 %v2396_v62, %v1751_v30  ;;  %v1752_v9 = vmul.f32 %v9258_v34, %v11838_v28  ;;  %v9528_v62 = vld [vmem:[%s8529_s11 + $0x250] sm:$0xff]  ;;  %v7855_v30 = vld [vmem:[%s8529_s11 + $0x178] sm:$0xff]  ;;  %v7858_v28 = vld [vmem:[%s8529_s11 + $0x188] sm:$0xff] }
 0x275   : > { %v2724_v48 = vpop.permute.xlu1 %2723  ;;  %2162 = vperm.xlu0 %7757, %v7850_v59   ;;  %v3559_v31 = vmax.f32 %v3431_v55, 0.0  ;;  %v2525_v54 = vadd.f32 %v2397_v41, %v1752_v9  ;;  %v7856_v59 = vld [vmem:[%s8529_s11 + $0x268] sm:$0xff]  ;;  %v7859_v9 = vld [vmem:[%s8529_s11 + $0x280] sm:$0xff] }
 0x276   : > { %v3169_v6 = vmul.f32 %v9251_v21, %v2724_v48 }
 0x277   : > { %7724 = vset.pattern.permute.xlu1 %v11782_v7  ;;  %7269 = vmatprep.mubr.msk.f32.mxu0 %vm3680_vm0, %v3559_v31 }
 0x278   : > { %v3297_v22 = vadd.f32 %v3169_v6, %v2524_v25  ;;  %2807 = vperm.xlu1 %7724, %v7851_v24   ;;  %v2736_v25 = vpop.permute.xlu0 %2735  ;;  %v11839_v24 = vld [vmem:[#allocation40_spill] sm:$0xff] }
 0x279   : > { %7762 = vset.pattern.permute.xlu0 %v11782_v7  ;;  %v1754_v10 = vmul.f32 %v9258_v34, %v11839_v24 }
 0x27a   : > { %v3432_v46 = vadd.f32 %v9288_v37, %v3297_v22  ;;  %v1959_v35 = vpop.permute.xlu1 %1958  ;;  %2923 = vperm.xlu0 %7762, %v9514_v20  }
 0x27b   : > { %v2398_v23 = vmul.f32 %v9243_v32, %v1959_v35 }
 0x27c   : > { %v3560_v19 = vmax.f32 %v3432_v46, 0.0  ;;  %7725 = vset.pattern.permute.xlu1 %v11783_v40  ;;  %v3172_v46 = vmul.f32 %v9251_v21, %v2736_v25  ;;  %v7861_v25 = vld [vmem:[%s8529_s11 + $0x180] sm:$0xff] }
 0x27d   : > { %v2526_v27 = vadd.f32 %v2398_v23, %v1753_v29  ;;  %2042 = vperm.xlu1 %7725, %v7853_v42   ;;  %v7857_v29 = vld [vmem:[%s8529_s11 + $0x270] sm:$0xff] }
 0x27e   : > { %2927 = vperm.xlu0 %7762, %v9528_v62   ;;  %7270 = vmatmul.mubr.msk.f32.gmra.mrb[22].mxu0 %vm3680_vm0, %v3560_v19 }
 0x27f   : > { %v3299_v55 = vadd.f32 %v3171_v26, %v2526_v27  ;;  %v2728_v52 = vpop.permute.xlu1 %2727 }
 0x280   : > { %v3170_v33 = vmul.f32 %v9251_v21, %v2728_v52 }
 0x281   : > { %2046 = vperm.xlu1 %7725, %v7855_v30   ;;  %v3434_v31 = vadd.f32 %v9288_v37, %v3299_v55  ;;  %v11840_v55 = vld [vmem:[#allocation39_spill] sm:$0xff] }
 0x282   : > { %v3298_v48 = vadd.f32 %v3170_v33, %v2525_v54  ;;  %2939 = vperm.xlu0 %7762, %v7856_v59   ;;  %v1755_v52 = vmul.f32 %v9258_v34, %v11840_v55  ;;  %v7860_v59 = vld [vmem:[%s8529_s11 + $0x2a0] sm:$0xff] }
 0x283   : > { %v3562_v23 = vmax.f32 %v3434_v31, 0.0 }
 0x284   : > { %v3433_v6 = vadd.f32 %v9288_v37, %v3298_v48  ;;  %v1963_v22 = vpop.permute.xlu1 %1962 }
 0x285   : > { %v2399_v35 = vmul.f32 %v9243_v32, %v1963_v22  ;;  %7726 = vset.pattern.permute.xlu1 %v11782_v7 }
 0x286   : > { %v3561_v53 = vmax.f32 %v3433_v6, 0.0  ;;  %2819 = vperm.xlu1 %7726, %v7855_v30   ;;  %2943 = vperm.xlu0 %7762, %v7857_v29   ;;  %v2748_v6 = vpop.permute.xlu0 %2747  ;;  %v2401_v29 = vmul.f32 %v9243_v32, %v9235_v49 }
 0x287   : > { %v2527_v26 = vadd.f32 %v2399_v35, %v1754_v10  ;;  %v11841_v10 = vld [vmem:[#allocation41_spill] sm:$0xff]  ;;  %v3175_v35 = vmul.f32 %v9251_v21, %v2748_v6  ;;  %v11843_v6 = vld [vmem:[#allocation44_spill] sm:$0xff] }
 0x288   : > { %v1967_v41 = vpop.permute.xlu1 %1966  ;;  %7272 = vmatprep.mubr.msk.f32.mxu0 %vm3680_vm0, %v3561_v53 }
 0x289   : > { %v3300_v19 = vadd.f32 %v3172_v46, %v2527_v26  ;;  %7273 = vmatmul.mubr.msk.f32.gmra.mrb[24].mxu0 %vm3680_vm0, %v3562_v23  ;;  %v2400_v27 = vmul.f32 %v9243_v32, %v1967_v41  ;;  %v1757_v46 = vmul.f32 %v9258_v34, %v11841_v10  ;;  %v7862_v23 = vld [vmem:[%s8529_s11 + $0x288] sm:$0xff] }
 0x28a   : > { %7728 = vset.pattern.permute.xlu1 %v11783_v40  ;;  %7767 = vset.pattern.permute.xlu0 %v11783_v40 }
 0x28b   : > { %v3435_v42 = vadd.f32 %v9288_v37, %v3300_v19  ;;  %2054 = vperm.xlu1 %7728, %v7858_v28   ;;  %2178 = vperm.xlu0 %7767, %v7859_v9   ;;  %v2528_v30 = vadd.f32 %v2400_v27, %v1755_v52  ;;  %v7863_v19 = vld [vmem:[%s8529_s11 + $0x190] sm:$0xff] }
 0x28c   : > { %v11842_v27 = vld [vmem:[#allocation42_spill] sm:$0xff] }
 0x28d   : > { %v2740_v54 = vpop.permute.xlu1 %2739  ;;  %v3563_v33 = vmax.f32 %v3435_v42, 0.0  ;;  %v1756_v42 = vmul.f32 %v9258_v34, %v11842_v27  ;;  %v7864_v52 = vld [vmem:[%s8529_s11 + $0x290] sm:$0xff]  ;;  %v7868_v27 = vld [vmem:[%s8529_s11 + $0x1a8] sm:$0xff] }
 0x28e   : > { %v3173_v48 = vmul.f32 %v9251_v21, %v2740_v54  ;;  %v7865_v54 = vld [vmem:[%s8529_s11 + $0x198] sm:$0xff] }
 0x28f   : > { %7729 = vset.pattern.permute.xlu1 %v11782_v7  ;;  %2194 = vperm.xlu0 %7767, %v7860_v59   ;;  %v2529_v55 = vadd.f32 %v2401_v29, %v1756_v42  ;;  %v11844_v42 = vld [vmem:[#allocation43_spill] sm:$0xff] }
 0x290   : > { %v3301_v31 = vadd.f32 %v3173_v48, %v2528_v30  ;;  %7275 = vmatprep.mubr.msk.f32.mxu0 %vm3680_vm0, %v3563_v33  ;;  %2823 = vperm.xlu1 %7729, %v7861_v25   ;;  %v2752_v48 = vpop.permute.xlu0 %2751  ;;  %v7866_v25 = vld [vmem:[%s8529_s11 + $0x2a8] sm:$0xff] }
 0x292   : > { %v3436_v22 = vadd.f32 %v9288_v37, %v3301_v31  ;;  %v1975_v24 = vpop.permute.xlu1 %1974 }
 0x293   : > { %v2402_v53 = vmul.f32 %v9243_v32, %v1975_v24  ;;  %7772 = vset.pattern.permute.xlu0 %v11782_v7  ;;  %v3176_v24 = vmul.f32 %v9251_v21, %v2752_v48  ;;  %v7871_v48 = vld [vmem:[%s8529_s11 + $0x2e0] sm:$0xff] }
 0x294   : > { %v3564_v26 = vmax.f32 %v3436_v22, 0.0  ;;  %7730 = vset.pattern.permute.xlu1 %v11783_v40  ;;  %2955 = vperm.xlu0 %7772, %v7862_v23   ;;  %v1758_v22 = vmul.f32 %v9258_v34, %v11843_v6  ;;  %v11845_v6 = vld [vmem:[#allocation45_spill] sm:$0xff] }
 0x295   : > { %v2530_v41 = vadd.f32 %v2402_v53, %v1757_v46  ;;  %2058 = vperm.xlu1 %7730, %v7863_v19  }
 0x296   : > { %7276 = vmatmul.mubr.msk.f32.gmra.mrb[26].mxu0 %vm3680_vm0, %v3564_v26  ;;  %v7867_v26 = vld [vmem:[%s8529_s11 + $0x2b0] sm:$0xff] }
 0x297   : > { %v3303_v28 = vadd.f32 %v3175_v35, %v2530_v41  ;;  %v2744_v9 = vpop.permute.xlu1 %2743 }
 0x298   : > { %v3174_v49 = vmul.f32 %v9251_v21, %v2744_v9  ;;  %2959 = vperm.xlu0 %7772, %v7864_v52  }
 0x299   : > { %2062 = vperm.xlu1 %7730, %v7865_v54   ;;  %v3438_v30 = vadd.f32 %v9288_v37, %v3303_v28  ;;  %v1759_v28 = vmul.f32 %v9258_v34, %v11844_v42 }
 0x29a   : > { %v3302_v33 = vadd.f32 %v3174_v49, %v2529_v55  ;;  %v7869_v55 = vld [vmem:[%s8529_s11 + $0x2c0] sm:$0xff] }
 0x29b   : > { %v3566_v53 = vmax.f32 %v3438_v30, 0.0  ;;  %v7870_v30 = vld [vmem:[%s8529_s11 + $0x1a0] sm:$0xff] }
 0x29c   : > { %v3437_v59 = vadd.f32 %v9288_v37, %v3302_v33  ;;  %v1979_v31 = vpop.permute.xlu1 %1978  ;;  %2971 = vperm.xlu0 %7772, %v7866_v25  }
 0x29d   : > { %v2403_v10 = vmul.f32 %v9243_v32, %v1979_v31  ;;  %7731 = vset.pattern.permute.xlu1 %v11782_v7 }
 0x29e   : > { %v3565_v46 = vmax.f32 %v3437_v59, 0.0  ;;  %2835 = vperm.xlu1 %7731, %v7865_v54   ;;  %v2764_v59 = vpop.permute.xlu0 %2763 }
 0x29f   : > { %v2531_v35 = vadd.f32 %v2403_v10, %v1758_v22  ;;  %v1761_v22 = vmul.f32 %v9258_v34, %v11845_v6  ;;  %v7876_v6 = vld [vmem:[%s8529_s11 + $0x2e8] sm:$0xff] }
 0x2a0   : > { %v1983_v29 = vpop.permute.xlu1 %1982  ;;  %2975 = vperm.xlu0 %7772, %v7867_v26   ;;  %7278 = vmatprep.mubr.msk.f32.mxu0 %vm3680_vm0, %v3565_v46  ;;  %v2405_v46 = vmul.f32 %v9243_v32, %v9245_v51  ;;  %v11846_v26 = vld [vmem:[#allocation46_spill] sm:$0xff] }
 0x2a1   : > { %v3304_v23 = vadd.f32 %v3176_v24, %v2531_v35  ;;  %7279 = vmatmul.mubr.msk.f32.gmra.mrb[28].mxu0 %vm3680_vm0, %v3566_v53  ;;  %v2404_v41 = vmul.f32 %v9243_v32, %v1983_v29  ;;  %v3179_v24 = vmul.f32 %v9251_v21, %v2764_v59  ;;  %v7872_v29 = vld [vmem:[%s8529_s11 + $0x1b0] sm:$0xff] }
 0x2a2   : > { %7733 = vset.pattern.permute.xlu1 %v11783_v40 }
 0x2a3   : > { %v3439_v19 = vadd.f32 %v9288_v37, %v3304_v23  ;;  %2070 = vperm.xlu1 %7733, %v7868_v27   ;;  %v2532_v52 = vadd.f32 %v2404_v41, %v1759_v28  ;;  %v1760_v23 = vmul.f32 %v9258_v34, %v11846_v26  ;;  %v7873_v41 = vld [vmem:[%s8529_s11 + $0x2c8] sm:$0xff]  ;;  %v7874_v28 = vld [vmem:[%s8529_s11 + $0x1b8] sm:$0xff] }
 0x2a4   : > { %7777 = vset.pattern.permute.xlu0 %v11783_v40  ;;  %v11848_v26 = vld [vmem:[#allocation47_spill] sm:$0xff] }
 0x2a5   : > { %v2756_v9 = vpop.permute.xlu1 %2755  ;;  %2210 = vperm.xlu0 %7777, %v7869_v55   ;;  %v3567_v49 = vmax.f32 %v3439_v19, 0.0  ;;  %v2533_v42 = vadd.f32 %v2405_v46, %v1760_v23  ;;  %v7875_v55 = vld [vmem:[%s8529_s11 + $0x2d0] sm:$0xff]  ;;  %v1763_v23 = vmul.f32 %v9258_v34, %v11848_v26 }
 0x2a6   : > { %v3177_v54 = vmul.f32 %v9251_v21, %v2756_v9 }
 0x2a7   : > { %7734 = vset.pattern.permute.xlu1 %v11782_v7  ;;  %7281 = vmatprep.mubr.msk.f32.mxu0 %vm3680_vm0, %v3567_v49 }
 0x2a8   : > { %v3305_v33 = vadd.f32 %v3177_v54, %v2532_v52  ;;  %2839 = vperm.xlu1 %7734, %v7870_v30   ;;  %v2768_v52 = vpop.permute.xlu0 %2767  ;;  %v11847_v30 = vld [vmem:[#allocation48_spill] sm:$0xff] }
 0x2a9   : > { %2226 = vperm.xlu0 %7777, %v7871_v48   ;;  %v1762_v48 = vmul.f32 %v9258_v34, %v11847_v30  ;;  %v3180_v59 = vmul.f32 %v9251_v21, %v2768_v52  ;;  %v11849_v52 = vld [vmem:[#allocation49_spill] sm:$0xff] }
 0x2aa   : > { %v3440_v31 = vadd.f32 %v9288_v37, %v3305_v33  ;;  %v1991_v25 = vpop.permute.xlu1 %1990 }
 0x2ab   : > { %v2406_v10 = vmul.f32 %v9243_v32, %v1991_v25 }
 0x2ac   : > { %v3568_v35 = vmax.f32 %v3440_v31, 0.0  ;;  %7735 = vset.pattern.permute.xlu1 %v11783_v40 }
 0x2ad   : > { %v2534_v53 = vadd.f32 %v2406_v10, %v1761_v22  ;;  %2074 = vperm.xlu1 %7735, %v7872_v29   ;;  %7782 = vset.pattern.permute.xlu0 %v11782_v7 }
 0x2ae   : > { %2987 = vperm.xlu0 %7782, %v7873_v41   ;;  %7282 = vmatmul.mubr.msk.f32.gmra.mrb[30].mxu0 %vm3680_vm0, %v3568_v35 }
 0x2af   : > { %v3307_v19 = vadd.f32 %v3179_v24, %v2534_v53  ;;  %v2760_v27 = vpop.permute.xlu1 %2759  ;;  %v7877_v53 = vld [vmem:[%s8529_s11 + $0x2f0] sm:$0xff] }
 0x2b0   : > { %v3178_v51 = vmul.f32 %v9251_v21, %v2760_v27 }
 0x2b1   : > { %2078 = vperm.xlu1 %7735, %v7874_v28   ;;  %v3442_v49 = vadd.f32 %v9288_v37, %v3307_v19 }
 0x2b2   : > { %v3306_v9 = vadd.f32 %v3178_v51, %v2533_v42  ;;  %2991 = vperm.xlu0 %7782, %v7875_v55   ;;  %v7878_v51 = vld [vmem:[%s8529_s11 + $0x300] sm:$0xff] }
 0x2b3   : > { %v3570_v24 = vmax.f32 %v3442_v49, 0.0 }
 0x2b4   : > { %v3441_v54 = vadd.f32 %v9288_v37, %v3306_v9  ;;  %v1995_v33 = vpop.permute.xlu1 %1994 }
 0x2b5   : > { %v2407_v31 = vmul.f32 %v9243_v32, %v1995_v33  ;;  %7736 = vset.pattern.permute.xlu1 %v11782_v7 }
 0x2b6   : > { %v3569_v25 = vmax.f32 %v3441_v54, 0.0  ;;  %2851 = vperm.xlu1 %7736, %v7874_v28   ;;  %3003 = vperm.xlu0 %7782, %v7876_v6   ;;  %v2780_v28 = vpop.permute.xlu0 %2779  ;;  %v1765_v54 = vmul.f32 %v9258_v34, %v11849_v52  ;;  %v11850_v6 = vld [vmem:[#allocation50_spill] sm:$0xff] }
 0x2b7   : > { %v2535_v22 = vadd.f32 %v2407_v31, %v1762_v48  ;;  %v3183_v33 = vmul.f32 %v9251_v21, %v2780_v28  ;;  %v7880_v48 = vld [vmem:[%s8529_s11 + $0x320] sm:$0xff] }
 0x2b8   : > { %v1999_v10 = vpop.permute.xlu1 %1998  ;;  %7284 = vmatprep.mubr.msk.f32.mxu0 %vm3680_vm0, %v3569_v25 }
 0x2b9   : > { %v3308_v46 = vadd.f32 %v3180_v59, %v2535_v22  ;;  %7285 = vmatmul.mubr.msk.f32.gmra.mrb[32].mxu0 %vm3680_vm0, %v3570_v24  ;;  %v2408_v35 = vmul.f32 %v9243_v32, %v1999_v10  ;;  %v2409_v59 = vmul.f32 %v9243_v32, %v9262_v17  ;;  %v1764_v22 = vmul.f32 %v9258_v34, %v11850_v6  ;;  %v7885_v6 = vld [vmem:[%s8529_s11 + $0x330] sm:$0xff] }
 0x2ba   : > { %7738 = vset.pattern.permute.xlu1 %v11783_v40  ;;  %3007 = vperm.xlu0 %7782, %v7877_v53   ;;  %v2784_v24 = vpop.permute.xlu0 %2783  ;;  %v7881_v53 = vld [vmem:[%s8529_s11 + $0x308] sm:$0xff] }
 0x2bb   : > { %v3443_v29 = vadd.f32 %v9288_v37, %v3308_v46  ;;  %2086 = vperm.xlu1 %7738, %v9350_v38   ;;  %v2536_v27 = vadd.f32 %v2408_v35, %v1763_v23  ;;  %v7879_v38 = vld [vmem:[%s8529_s11 + $0x1c0] sm:$0xff]  ;;  %v2537_v35 = vadd.f32 %v2409_v59, %v1764_v22  ;;  %v3184_v28 = vmul.f32 %v9251_v21, %v2784_v24 }
 0x2bd   : > { %v2772_v41 = vpop.permute.xlu1 %2771  ;;  %v3571_v19 = vmax.f32 %v3443_v29, 0.0  ;;  %v7882_v29 = vld [vmem:[%s8529_s11 + $0x1d8] sm:$0xff] }
 0x2be   : > { %v3181_v42 = vmul.f32 %v9251_v21, %v2772_v41  ;;  %7787 = vset.pattern.permute.xlu0 %v11783_v40  ;;  %v2019_v23 = vpop.permute.xlu0 %2018 }
 0x2bf   : > { %7739 = vset.pattern.permute.xlu1 %v11782_v7  ;;  %2242 = vperm.xlu0 %7787, %v7878_v51  }
 0x2c0   : > { %v3309_v9 = vadd.f32 %v3181_v42, %v2536_v27  ;;  %7287 = vmatprep.mubr.msk.f32.mxu0 %vm3680_vm0, %v3571_v19  ;;  %2855 = vperm.xlu1 %7739, %v7879_v38   ;;  %v7883_v27 = vld [vmem:[%s8529_s11 + $0x310] sm:$0xff]  ;;  %v11851_v42 = vld [vmem:[#allocation52_spill] sm:$0xff] }
 0x2c1   : > { %v1766_v51 = vmul.f32 %v9258_v34, %v11851_v42  ;;  %v2413_v42 = vmul.f32 %v9243_v32, %v2019_v23 }
 0x2c2   : > { %v3444_v55 = vadd.f32 %v9288_v37, %v3309_v9  ;;  %v2007_v49 = vpop.permute.xlu1 %2006 }
 0x2c3   : > { %v2410_v30 = vmul.f32 %v9243_v32, %v2007_v49  ;;  %2258 = vperm.xlu0 %7787, %v7880_v48  }
 0x2c4   : > { %v3572_v31 = vmax.f32 %v3444_v55, 0.0  ;;  %7740 = vset.pattern.permute.xlu1 %v11783_v40 }
 0x2c5   : > { %v2538_v25 = vadd.f32 %v2410_v30, %v1765_v54  ;;  %2090 = vperm.xlu1 %7740, %v9371_v50   ;;  %v7884_v54 = vld [vmem:[%s8529_s11 + $0x328] sm:$0xff]  ;;  %v9667_v30 = vpop.permute.xlu0 %2034 }
 0x2c6   : > { %7288 = vmatmul.mubr.msk.f32.gmra.mrb[34].mxu0 %vm3680_vm0, %v3572_v31  ;;  %v11852_v31 = vld [vmem:[#allocation51_spill] sm:$0xff] }
 0x2c7   : > { %v3311_v10 = vadd.f32 %v3183_v33, %v2538_v25  ;;  %v2776_v46 = vpop.permute.xlu1 %2775  ;;  %7792 = vset.pattern.permute.xlu0 %v11782_v7  ;;  %v1767_v25 = vmul.f32 %v9258_v34, %v11852_v31 }
 0x2c8   : > { %v3182_v17 = vmul.f32 %v9251_v21, %v2776_v46  ;;  %3019 = vperm.xlu0 %7792, %v7881_v53   ;;  %v7886_v53 = vld [vmem:[%s8529_s11 + $0x1e0] sm:$0xff] }
 0x2c9   : > { %2094 = vperm.xlu1 %7740, %v7882_v29   ;;  %v3446_v50 = vadd.f32 %v9288_v37, %v3311_v10  ;;  %v2796_v10 = vpop.permute.xlu0 %2795 }
 0x2ca   : > { %v3310_v26 = vadd.f32 %v3182_v17, %v2537_v35 }
 0x2cb   : > { %v3574_v49 = vmax.f32 %v3446_v50, 0.0  ;;  %v11853_v50 = vld [vmem:[#allocation53_spill] sm:$0xff] }
 0x2cc   : > { %v3445_v41 = vadd.f32 %v9288_v37, %v3310_v26  ;;  %v2011_v19 = vpop.permute.xlu1 %2010  ;;  %3023 = vperm.xlu0 %7792, %v7883_v27  }
 0x2cd   : > { %v2411_v9 = vmul.f32 %v9243_v32, %v2011_v19  ;;  %7741 = vset.pattern.permute.xlu1 %v11782_v7  ;;  %v3187_v19 = vmul.f32 %v9251_v21, %v2796_v10 }
 0x2ce   : > { %v3573_v38 = vmax.f32 %v3445_v41, 0.0  ;;  %2867 = vperm.xlu1 %7741, %v7882_v29   ;;  %v1769_v41 = vmul.f32 %v9258_v34, %v11853_v50 }
 0x2cf   : > { %v2539_v55 = vadd.f32 %v2411_v9, %v1766_v51  ;;  %v2800_v51 = vpop.permute.xlu0 %2799 }
 0x2d0   : > { %v2015_v52 = vpop.permute.xlu1 %2014  ;;  %7290 = vmatprep.mubr.msk.f32.mxu0 %vm3680_vm0, %v3573_v38  ;;  %3035 = vperm.xlu0 %7792, %v7884_v54   ;;  %v7888_v38 = vld [vmem:[%s8529_s11 + $0x360] sm:$0xff] }
 0x2d1   : > { %v3312_v33 = vadd.f32 %v3184_v28, %v2539_v55  ;;  %7291 = vmatmul.mubr.msk.f32.gmra.mrb[36].mxu0 %vm3680_vm0, %v3574_v49  ;;  %v2412_v48 = vmul.f32 %v9243_v32, %v2015_v52  ;;  %v11854_v55 = vld [vmem:[#allocation54_spill] sm:$0xff] }
 0x2d2   : > { %7743 = vset.pattern.permute.xlu1 %v11783_v40  ;;  %v1768_v49 = vmul.f32 %v9258_v34, %v11854_v55  ;;  %v7891_v34 = vld [vmem:[%s8529_s11 + $0x348] sm:$0xff] }
 0x2d3   : > { %v3447_v59 = vadd.f32 %v9288_v37, %v3312_v33  ;;  %2102 = vperm.xlu1 %7743, %v9392_v61   ;;  %v2540_v46 = vadd.f32 %v2412_v48, %v1767_v25  ;;  %v7887_v61 = vld [vmem:[%s8529_s11 + $0x340] sm:$0xff]  ;;  %v7890_v33 = vld [vmem:[%s8529_s11 + $0x1f8] sm:$0xff] }
 0x2d4   : > { %3039 = vperm.xlu0 %7792, %v7885_v6   ;;  %v2541_v54 = vadd.f32 %v2413_v42, %v1768_v49  ;;  %v9708_v6 = vld [vmem:[%s11659_s1] ss:$0 sm:$0xff] }
 0x2d5   : > { %v2788_v22 = vpop.permute.xlu1 %2787  ;;  %v3575_v24 = vmax.f32 %v3447_v59, 0.0 }
 0x2d6   : > { %v3185_v35 = vmul.f32 %v9251_v21, %v2788_v22  ;;  %v11855_v22 = vld [vmem:[#allocation56_spill] sm:$0xff] }
 0x2d7   : > { %7744 = vset.pattern.permute.xlu1 %v11782_v7  ;;  %7293 = vmatprep.mubr.msk.f32.mxu0 %vm3680_vm0, %v3575_v24  ;;  %v1770_v24 = vmul.f32 %v9708_v6, %v11855_v22 }
 0x2d8   : > { %v3313_v17 = vadd.f32 %v3185_v35, %v2540_v46  ;;  %2871 = vperm.xlu1 %7744, %v7886_v53   ;;  %7797 = vset.pattern.permute.xlu0 %v11783_v40  ;;  %v9716_v46 = vld [vmem:[%s11659_s1 + $0x1] ss:$0 sm:$0xff] }
 0x2d9   : > { %2274 = vperm.xlu0 %7797, %v7887_v61  }
 0x2da   : > { %v3448_v29 = vadd.f32 %v9288_v37, %v3313_v17  ;;  %v2023_v26 = vpop.permute.xlu1 %2022  ;;  %v7894_v17 = vld [vmem:[%s8529_s11 + $0x350] sm:$0xff] }
 0x2db   : > { %v2414_v27 = vmul.f32 %v9243_v32, %v2023_v26  ;;  %v9697_v32 = vld [vmem:[%s11659_s1 + $0x2] ss:$0 sm:$0xff] }
 0x2dc   : > { %v3576_v28 = vmax.f32 %v3448_v29, 0.0  ;;  %7745 = vset.pattern.permute.xlu1 %v11783_v40  ;;  %v3188_v10 = vmul.f32 %v9697_v32, %v2800_v51  ;;  %v11856_v51 = vld [vmem:[#allocation55_spill] sm:$0xff] }
 0x2dd   : > { %v2542_v9 = vadd.f32 %v2414_v27, %v1769_v41  ;;  %2106 = vperm.xlu1 %7745, %v9410_v16   ;;  %2290 = vperm.xlu0 %7797, %v7888_v38   ;;  %v2812_v16 = vpop.permute.xlu0 %2811  ;;  %v9729_v27 = vld [vmem:[%s11660_s2] ss:$0 sm:$0xff] }
 0x2de   : > { %7294 = vmatmul.mubr.msk.f32.gmra.mrb[38].mxu0 %vm3680_vm0, %v3576_v28  ;;  %v1771_v28 = vmul.f32 %v9708_v6, %v11856_v51  ;;  %v11859_v51 = vld [vmem:[#allocation60_spill] sm:$0xff] }
 0x2df   : > { %v3315_v21 = vadd.f32 %v3187_v19, %v2542_v9  ;;  %v2792_v52 = vpop.permute.xlu1 %2791  ;;  %v7895_v19 = vld [vmem:[%s8529_s11 + $0x368] sm:$0xff] }
 0x2e0   : > { %v3186_v23 = vmul.f32 %v9697_v32, %v2792_v52  ;;  %v7897_v52 = vld [vmem:[%s8529_s11 + $0x370] sm:$0xff] }
 0x2e1   : > { %2110 = vperm.xlu1 %7745, %v7890_v33   ;;  %7802 = vset.pattern.permute.xlu0 %v11782_v7  ;;  %v3450_v59 = vadd.f32 %v9288_v37, %v3315_v21  ;;  %v2816_v29 = vpop.permute.xlu0 %2815 }
 0x2e2   : > { %v3314_v48 = vadd.f32 %v3186_v23, %v2541_v54  ;;  %3051 = vperm.xlu0 %7802, %v7891_v34   ;;  %v3191_v34 = vmul.f32 %v9697_v32, %v2812_v16 }
 0x2e3   : > { %v3578_v61 = vmax.f32 %v3450_v59, 0.0 }
 0x2e4   : > { %v3449_v31 = vadd.f32 %v9288_v37, %v3314_v48  ;;  %v2027_v25 = vpop.permute.xlu1 %2026 }
 0x2e5   : > { %v2415_v35 = vmul.f32 %v9716_v46, %v2027_v25  ;;  %7746 = vset.pattern.permute.xlu1 %v11782_v7  ;;  %v9735_v55 = vpop.permute.xlu0 %2050  ;;  %v2417_v25 = vmul.f32 %v9716_v46, %v9667_v30 }
 0x2e6   : > { %v3577_v37 = vmax.f32 %v3449_v31, 0.0  ;;  %2883 = vperm.xlu1 %7746, %v7890_v33   ;;  %3055 = vperm.xlu0 %7802, %v7894_v17   ;;  %v11857_v33 = vld [vmem:[#allocation57_spill] sm:$0xff]  ;;  %v7898_v31 = vld [vmem:[%s8529_s11 + $0x380] sm:$0xff] }
 0x2e7   : > { %v2543_v53 = vadd.f32 %v2415_v35, %v1770_v24  ;;  %v1773_v48 = vmul.f32 %v9708_v6, %v11857_v33  ;;  %v7899_v17 = vld [vmem:[%s8529_s11 + $0x3a0] sm:$0xff] }
 0x2e8   : > { %v2031_v26 = vpop.permute.xlu1 %2030  ;;  %7296 = vmatprep.mubr.msk.f32.mxu0 %vm3680_vm0, %v3577_v37 }
 0x2e9   : > { %v3316_v50 = vadd.f32 %v3188_v10, %v2543_v53  ;;  %7297 = vmatmul.mubr.msk.f32.gmra.mrb[40].mxu0 %vm3680_vm0, %v3578_v61  ;;  %v2416_v41 = vmul.f32 %v9716_v46, %v2031_v26  ;;  %v11858_v10 = vld [vmem:[#allocation58_spill] sm:$0xff]  ;;  %v7900_v26 = vld [vmem:[%s8529_s11 + $0x218] sm:$0xff] }
 0x2ea   : > { %7748 = vset.pattern.permute.xlu1 %v11783_v40  ;;  %3067 = vperm.xlu0 %7802, %v7895_v19   ;;  %v1772_v35 = vmul.f32 %v9708_v6, %v11858_v10 }
 0x2eb   : > { %v3451_v42 = vadd.f32 %v9729_v27, %v3316_v50  ;;  %2118 = vperm.xlu1 %7748, %v9455_v8   ;;  %v2544_v49 = vadd.f32 %v2416_v41, %v1771_v28  ;;  %v1774_v28 = vmul.f32 %v9708_v6, %v11859_v51 }
 0x2ec   : > { %v2545_v53 = vadd.f32 %v2417_v25, %v1772_v35 }
 0x2ed   : > { %v2804_v9 = vpop.permute.xlu1 %2803  ;;  %v3579_v38 = vmax.f32 %v3451_v42, 0.0  ;;  %v7901_v42 = vld [vmem:[%s8529_s11 + $0x388] sm:$0xff] }
 0x2ee   : > { %v3189_v21 = vmul.f32 %v9697_v32, %v2804_v9  ;;  %3071 = vperm.xlu0 %7802, %v7897_v52   ;;  %v3192_v9 = vmul.f32 %v9697_v32, %v2816_v29  ;;  %v4898_v29 = vld [vmem:[%s11663_s5] sm:$0xff] }
 0x2ef   : > { %7749 = vset.pattern.permute.xlu1 %v11782_v7  ;;  %7299 = vmatprep.mubr.msk.f32.mxu0 %vm3680_vm0, %v3579_v38 }
 0x2f0   : > { %v3317_v54 = vadd.f32 %v3189_v21, %v2544_v49  ;;  %2887 = vperm.xlu1 %7749, %v9425_v12   ;;  %v9751_v12 = vpop.permute.xlu0 %2066  ;;  %v4899_v49 = vld [vmem:[%s11663_s5 + $0x8] sm:$0xff]  ;;  %v4901_v21 = vld [vmem:[%s11663_s5 + $0x18] sm:$0xff] }
 0x2f2   : > { %v3452_v8 = vadd.f32 %v9729_v27, %v3317_v54  ;;  %v2039_v23 = vpop.permute.xlu1 %2038  ;;  %7807 = vset.pattern.permute.xlu0 %v11783_v40 }
 0x2f3   : > { %v2418_v59 = vmul.f32 %v9716_v46, %v2039_v23  ;;  %2306 = vperm.xlu0 %7807, %v7898_v31   ;;  %v4900_v23 = vld [vmem:[%s11663_s5 + $0x10] sm:$0xff] }
 0x2f4   : > { %v3580_v22 = vmax.f32 %v3452_v8, 0.0  ;;  %7750 = vset.pattern.permute.xlu1 %v11783_v40  ;;  %v9759_v30 = vpop.permute.xlu0 %2827  ;;  %v7479_v8 = vpack.c.bf16 %v4901_v21, %v4899_v49  ;;  %v7902_v31 = vld [vmem:[%s8529_s11 + $0x390] sm:$0xff] }
 0x2f5   : > { %v2546_v24 = vadd.f32 %v2418_v59, %v1773_v48  ;;  %2122 = vperm.xlu1 %7750, %v9468_v14   ;;  %v4908_v49 = vld [vmem:[%s11663_s5 + $0x50] sm:$0xff] }
 0x2f6   : > { %7300 = vmatmul.mubr.msk.f32.gmra.mrb[42].mxu0 %vm3680_vm0, %v3580_v22  ;;  %7575 = vmatprep.subr.bf16.mxu1 %v7479_v8  ;;  %v4903_v22 = vld [vmem:[%s11663_s5 + $0x28] sm:$0xff] }
 0x2f7   : > { %v3319_v16 = vadd.f32 %v3191_v34, %v2546_v24  ;;  %v2808_v37 = vpop.permute.xlu1 %2807  ;;  %2322 = vperm.xlu0 %7807, %v7899_v17   ;;  %v7481_v34 = vpack.c.bf16 %v4900_v23, %v4898_v29  ;;  %v4905_v24 = vld [vmem:[%s11663_s5 + $0x38] sm:$0xff]  ;;  %7480 = vmatprep.subr.bf16.mxu0 %v7479_v8  ;;  %v7904_v8 = vld [vmem:[%s8529_s11 + $0x3b0] sm:$0xff]  ;;  %v4911_v29 = vld [vmem:[%s11663_s5 + $0x68] sm:$0xff] }
 0x2f8   : > { %v3190_v61 = vmul.f32 %v9697_v32, %v2808_v37  ;;  %v9778_v52 = vpop.permute.xlu0 %2831  ;;  %v7483_v35 = vpack.c.bf16 %v4905_v24, %v4903_v22  ;;  %v4904_v37 = vld [vmem:[%s11663_s5 + $0x30] sm:$0xff]  ;;  %v4913_v23 = vld [vmem:[%s11663_s5 + $0x78] sm:$0xff]  ;;  %v3195_v24 = vmul.f32 %v9697_v32, %v9759_v30  ;;  %v4915_v30 = vld [vmem:[%s11663_s5 + $0x88] sm:$0xff] }
 0x2f9   : > { %2126 = vperm.xlu1 %7750, %v7900_v26   ;;  %v3454_v14 = vadd.f32 %v9729_v27, %v3319_v16  ;;  %7583 = vmatpush1.bf16.msra.mxu1 %v7481_v34  ;;  %v4902_v16 = vld [vmem:[%s11663_s5 + $0x20] sm:$0xff] }
 0x2fa   : > { %v3318_v50 = vadd.f32 %v3190_v61, %v2545_v53  ;;  %v7485_v53 = vpack.c.bf16 %v4904_v37, %v4902_v16  ;;  %v11860_v61 = vld [vmem:[#allocation59_spill] sm:$0xff]  ;;  %7576 = vmatprep.subr.bf16.mxu1 %v7483_v35  ;;  %7482 = vmatpush1.bf16.msra.mxu0 %v7481_v34  ;;  %v2421_v16 = vmul.f32 %v9716_v46, %v9735_v55 }
 0x2fb   : > { %7812 = vset.pattern.permute.xlu0 %v11782_v7  ;;  %v3582_v48 = vmax.f32 %v3454_v14, 0.0  ;;  %v7903_v14 = vld [vmem:[%s8529_s11 + $0x3a8] sm:$0xff]  ;;  %7484 = vmatprep.subr.bf16.mxu0 %v7483_v35 }
 0x2fc   : > { %v3453_v41 = vadd.f32 %v9729_v27, %v3318_v50  ;;  %v2043_v19 = vpop.permute.xlu1 %2042  ;;  %3083 = vperm.xlu0 %7812, %v7901_v42   ;;  %v9807_v50 = vpop.permute.xlu0 %2843  ;;  %v4907_v42 = vld [vmem:[%s11663_s5 + $0x48] sm:$0xff] }
 0x2fd   : > { %v2419_v38 = vmul.f32 %v9716_v46, %v2043_v19  ;;  %7751 = vset.pattern.permute.xlu1 %v11782_v7  ;;  %7584 = vmatpush1.bf16.msra.mxu1 %v7485_v53 }
 0x2fe   : > { %v3581_v54 = vmax.f32 %v3453_v41, 0.0  ;;  %2899 = vperm.xlu1 %7751, %v7900_v26   ;;  %v1775_v26 = vmul.f32 %v9708_v6, %v11860_v61  ;;  %7486 = vmatpush1.bf16.msra.mxu0 %v7485_v53  ;;  %v7905_v53 = vld [vmem:[%s8529_s11 + $0x3c0] sm:$0xff]  ;;  %v4917_v61 = vld [vmem:[%s11663_s5 + $0x98] sm:$0xff] }
 0x2ff   : > { %v2547_v33 = vadd.f32 %v2419_v38, %v1774_v28  ;;  %v4906_v38 = vld [vmem:[%s11663_s5 + $0x40] sm:$0xff] }
 0x300   : > { %v2047_v59 = vpop.permute.xlu1 %2046  ;;  %7302 = vmatprep.mubr.msk.f32.mxu0 %vm3680_vm0, %v3581_v54  ;;  %3087 = vperm.xlu0 %7812, %v7902_v31   ;;  %v7489_v21 = vpack.c.bf16 %v4908_v49, %v4906_v38  ;;  %v4912_v31 = vld [vmem:[%s11663_s5 + $0x70] sm:$0xff]  ;;  %v7906_v38 = vld [vmem:[%s8529_s11 + $0x238] sm:$0xff]  ;;  %v4919_v49 = vld [vmem:[%s11663_s5 + $0xa8] sm:$0xff] }
 0x301   : > { %v3320_v25 = vadd.f32 %v3192_v9, %v2547_v33  ;;  %7303 = vmatmul.mubr.msk.f32.gmra.mrb[44].mxu0 %vm3680_vm0, %v3582_v48  ;;  %v2420_v10 = vmul.f32 %v9716_v46, %v2047_v59  ;;  %v9833_v33 = vpop.permute.xlu0 %2847  ;;  %v4910_v59 = vld [vmem:[%s11663_s5 + $0x60] sm:$0xff] }
 0x302   : > { %7753 = vset.pattern.permute.xlu1 %v11783_v40  ;;  %v7493_v35 = vpack.c.bf16 %v4912_v31, %v4910_v59 }
 0x303   : > { %v3455_v17 = vadd.f32 %v9729_v27, %v3320_v25  ;;  %2134 = vperm.xlu1 %7753, %v9478_v43   ;;  %v4909_v43 = vld [vmem:[%s11663_s5 + $0x58] sm:$0xff]  ;;  %v2548_v51 = vadd.f32 %v2420_v10, %v1775_v26  ;;  %v11861_v25 = vld [vmem:[#allocation61_spill] sm:$0xff]  ;;  %v11862_v26 = vld [vmem:[#allocation62_spill] sm:$0xff] }
 0x304   : > { %3099 = vperm.xlu0 %7812, %v7903_v14   ;;  %v7487_v9 = vpack.c.bf16 %v4909_v43, %v4907_v42  ;;  %v1777_v22 = vmul.f32 %v9708_v6, %v11861_v25  ;;  %v1776_v55 = vmul.f32 %v9708_v6, %v11862_v26  ;;  %v7495_v14 = vpack.c.bf16 %v4917_v61, %v4915_v30  ;;  %v7908_v61 = vld [vmem:[%s8529_s11 + $0x3d0] sm:$0xff]  ;;  %v4922_v26 = vld [vmem:[%s11663_s5 + $0xc0] sm:$0xff] }
 0x305   : > { %v2820_v41 = vpop.permute.xlu1 %2819  ;;  %v3583_v19 = vmax.f32 %v3455_v17, 0.0 }
 0x306   : > { %v3193_v28 = vmul.f32 %v9697_v32, %v2820_v41  ;;  %7577 = vmatprep.subr.bf16.mxu1 %v7487_v9  ;;  %7488 = vmatprep.subr.bf16.mxu0 %v7487_v9  ;;  %v4916_v41 = vld [vmem:[%s11663_s5 + $0x90] sm:$0xff] }
 0x307   : > { %7754 = vset.pattern.permute.xlu1 %v11782_v7  ;;  %7305 = vmatprep.mubr.msk.f32.mxu0 %vm3680_vm0, %v3583_v19 }
 0x308   : > { %v3321_v54 = vadd.f32 %v3193_v28, %v2548_v51  ;;  %2903 = vperm.xlu1 %7754, %v9441_v45   ;;  %3103 = vperm.xlu0 %7812, %v7904_v8   ;;  %v7491_v45 = vpack.c.bf16 %v4913_v23, %v4911_v29  ;;  %v2549_v51 = vadd.f32 %v2421_v16, %v1776_v55  ;;  %v9868_v28 = vpop.permute.xlu0 %2082  ;;  %v7907_v8 = vld [vmem:[%s8529_s11 + $0x3c8] sm:$0xff]  ;;  %v4918_v23 = vld [vmem:[%s11663_s5 + $0xa0] sm:$0xff]  ;;  %v4924_v55 = vld [vmem:[%s11663_s5 + $0xd0] sm:$0xff] }
 0x309   : > { %7585 = vmatpush1.bf16.msra.mxu1 %v7489_v21  ;;  %7490 = vmatpush1.bf16.msra.mxu0 %v7489_v21 }
 0x30a   : > { %v3456_v48 = vadd.f32 %v9729_v27, %v3321_v54  ;;  %v2055_v34 = vpop.permute.xlu1 %2054  ;;  %7578 = vmatprep.subr.bf16.mxu1 %v7491_v45  ;;  %7492 = vmatprep.subr.bf16.mxu0 %v7491_v45  ;;  %v4921_v54 = vld [vmem:[%s11663_s5 + $0xb8] sm:$0xff] }
 0x30b   : > { %v2422_v10 = vmul.f32 %v9716_v46, %v2055_v34  ;;  %v7499_v29 = vpack.c.bf16 %v4921_v54, %v4919_v49 }
 0x30c   : > { %v3584_v37 = vmax.f32 %v3456_v48, 0.0  ;;  %7755 = vset.pattern.permute.xlu1 %v11783_v40  ;;  %7817 = vset.pattern.permute.xlu0 %v11783_v40  ;;  %v4920_v48 = vld [vmem:[%s11663_s5 + $0xb0] sm:$0xff] }
 0x30d   : > { %v2550_v17 = vadd.f32 %v2422_v10, %v1777_v22  ;;  %2138 = vperm.xlu1 %7755, %v9485_v18   ;;  %2338 = vperm.xlu0 %7817, %v7905_v53   ;;  %v4914_v18 = vld [vmem:[%s11663_s5 + $0x80] sm:$0xff]  ;;  %v7501_v45 = vpack.c.bf16 %v4920_v48, %v4918_v23  ;;  %v3196_v10 = vmul.f32 %v9697_v32, %v9778_v52  ;;  %v9904_v53 = vpop.permute.xlu0 %2098  ;;  %v4928_v23 = vld [vmem:[%s11663_s5 + $0xf0] sm:$0xff] }
 0x30e   : > { %7306 = vmatmul.mubr.msk.f32.gmra.mrb[46].mxu0 %vm3680_vm0, %v3584_v37  ;;  %7586 = vmatpush1.bf16.msra.mxu1 %v7493_v35  ;;  %v7497_v43 = vpack.c.bf16 %v4916_v41, %v4914_v18  ;;  %v11863_v22 = vld [vmem:[#allocation64_spill] sm:$0xff] }
 0x30f   : > { %v3323_v19 = vadd.f32 %v3195_v24, %v2550_v17  ;;  %v2824_v42 = vpop.permute.xlu1 %2823  ;;  %7579 = vmatprep.subr.bf16.mxu1 %v7495_v14  ;;  %7494 = vmatpush1.bf16.msra.mxu0 %v7493_v35  ;;  %v1778_v24 = vmul.f32 %v9708_v6, %v11863_v22  ;;  %v4923_v35 = vld [vmem:[%s11663_s5 + $0xc8] sm:$0xff]  ;;  %v4925_v17 = vld [vmem:[%s11663_s5 + $0xd8] sm:$0xff] }
 0x310   : > { %v3194_v9 = vmul.f32 %v9697_v32, %v2824_v42  ;;  %7496 = vmatprep.subr.bf16.mxu0 %v7495_v14  ;;  %v7503_v52 = vpack.c.bf16 %v4925_v17, %v4923_v35  ;;  %v7505_v42 = vpack.c.bf16 %v4924_v55, %v4922_v26  ;;  %v11683_v26 = vmov 0.0  }
 0x311   : > { %2142 = vperm.xlu1 %7755, %v7906_v38   ;;  %7820 = vset.pattern.permute.xlu0 %v11782_v7  ;;  %v3458_v34 = vadd.f32 %v9729_v27, %v3323_v19  ;;  %v9925_v49 = vpop.permute.xlu0 %2859 }
 0x312   : > { %v3322_v21 = vadd.f32 %v3194_v9, %v2549_v51  ;;  %3115 = vperm.xlu0 %7820, %v7907_v8   ;;  %7587 = vmatpush1.bf16.msra.mxu1 %v7497_v43  ;;  %v4926_v8 = vld [vmem:[%s11663_s5 + $0xe0] sm:$0xff] }
 0x313   : > { %7580 = vmatprep.subr.bf16.mxu1 %v7499_v29  ;;  %v3586_v18 = vmax.f32 %v3458_v34, 0.0  ;;  %7498 = vmatpush1.bf16.msra.mxu0 %v7497_v43  ;;  %v4929_v43 = vld [vmem:[%s11663_s5 + $0xf8] sm:$0xff]  ;;  %v7509_v22 = vpack.c.bf16 %v4928_v23, %v4926_v8  ;;  %v11866_v23 = vld [vmem:[#allocation66_spill] sm:$0xff] }
 0x314   : > { %v3457_v59 = vadd.f32 %v9729_v27, %v3322_v21  ;;  %v2059_v31 = vpop.permute.xlu1 %2058  ;;  %v9888_v25 = vpop.f32.mrb[0].mxu0  ;;  %7500 = vmatprep.subr.bf16.mxu0 %v7499_v29  ;;  %v7909_v29 = vld [vmem:[%s8529_s11 + $0x3e0] sm:$0xff]  ;;  %v11864_v34 = vld [vmem:[#allocation63_spill] sm:$0xff]  ;;  %5210 = vmatprep.mubr.f32.mxu1 %v11683_v26 }
 0x315   : > { %v2423_v16 = vmul.f32 %v9716_v46, %v2059_v31  ;;  %7756 = vset.pattern.permute.xlu1 %v11782_v7  ;;  %v9896_v37 = vpop.f32.mrb[1].mxu0  ;;  %v9948_v17 = vpop.permute.xlu0 %2863  ;;  %v7924_v26 = vld [vmem:[%s8529_s11 + $0x2b8] sm:$0xff] }
 0x316   : > { %v3585_v30 = vmax.f32 %v3457_v59, 0.0  ;;  %2915 = vperm.xlu1 %7756, %v7906_v38   ;;  %3119 = vperm.xlu0 %7820, %v7908_v61   ;;  %v4927_v38 = vld [vmem:[%s11663_s5 + $0xe8] sm:$0xff]  ;;  %v1779_v59 = vmul.f32 %v9708_v6, %v11864_v34 }
 0x317   : > { %v2551_v14 = vadd.f32 %v2423_v16, %v1778_v24  ;;  %7588 = vmatpush1.bf16.msra.mxu1 %v7501_v45  ;;  %v7507_v21 = vpack.c.bf16 %v4929_v43, %v4927_v38  ;;  %7502 = vmatpush1.bf16.msra.mxu0 %v7501_v45  ;;  %v2425_v38 = vmul.f32 %v9716_v46, %v9751_v12 }
 0x318   : > { %v2063_v41 = vpop.permute.xlu1 %2062  ;;  %v9913_v19 = vpop.f32.mrb[2].mxu0  ;;  %7308 = vmatprep.mubr.msk.f32.mxu0 %vm3680_vm0, %v3585_v30  ;;  %7581 = vmatprep.subr.bf16.mxu1 %v7503_v52 }
 0x319   : > { %v3324_v51 = vadd.f32 %v3196_v10, %v2551_v14  ;;  %v9916_v9 = vpop.f32.mrb[3].mxu0  ;;  %7309 = vmatmul.mubr.msk.f32.gmra.mrb[48].mxu0 %vm3680_vm0, %v3586_v18  ;;  %v2424_v54 = vmul.f32 %v9716_v46, %v2063_v41  ;;  %7504 = vmatprep.subr.bf16.mxu0 %v7503_v52  ;;  %v7910_v14 = vld [vmem:[%s8529_s11 + $0x3e8] sm:$0xff]  ;;  %v3199_v41 = vmul.f32 %v9697_v32, %v9807_v50 }
 0x31a   : > { %7758 = vset.pattern.permute.xlu1 %v11783_v40  ;;  %7823 = vset.pattern.permute.xlu0 %v11783_v40  ;;  %v11865_v18 = vld [vmem:[#allocation65_spill] sm:$0xff]  ;;  %v1780_v50 = vmul.f32 %v9708_v6, %v11866_v23 }
 0x31b   : > { %v3459_v48 = vadd.f32 %v9729_v27, %v3324_v51  ;;  %2150 = vperm.xlu1 %7758, %v9514_v20   ;;  %2354 = vperm.xlu0 %7823, %v7909_v29   ;;  %v2552_v35 = vadd.f32 %v2424_v54, %v1779_v59 }
 0x31c   : > { %v9941_v31 = vpop.f32.mrb[4].mxu0  ;;  %7589 = vmatpush1.bf16.msra.mxu1 %v7505_v42  ;;  %7506 = vmatpush1.bf16.msra.mxu0 %v7505_v42  ;;  %v2553_v34 = vadd.f32 %v2425_v38, %v1780_v50 }
 0x31d   : > { %v2836_v24 = vpop.permute.xlu1 %2835  ;;  %v9943_v10 = vpop.f32.mrb[5].mxu0  ;;  %v3587_v16 = vmax.f32 %v3459_v48, 0.0  ;;  %7582 = vmatprep.subr.bf16.mxu1 %v7507_v21  ;;  %7508 = vmatprep.subr.bf16.mxu0 %v7507_v21  ;;  %v7911_v21 = vld [vmem:[%s8529_s11 + $0x3f0] sm:$0xff] }
 0x31e   : > { %v3197_v20 = vmul.f32 %v9697_v32, %v2836_v24  ;;  %v9974_v48 = vpop.permute.xlu0 %2875 }
 0x31f   : > { %7759 = vset.pattern.permute.xlu1 %v11782_v7  ;;  %7311 = vmatprep.mubr.msk.f32.mxu0 %vm3680_vm0, %v3587_v16 }
 0x320   : > { %v3325_v30 = vadd.f32 %v3197_v20, %v2552_v35  ;;  %2919 = vperm.xlu1 %7759, %v9496_v47   ;;  %v9951_v45 = vpop.f32.mrb[6].mxu0  ;;  %7590 = vmatpush1.bf16.msra.mxu1 %v7509_v22  ;;  %v1781_v47 = vmul.f32 %v9708_v6, %v11865_v18  ;;  %v3200_v18 = vmul.f32 %v9697_v32, %v9833_v33 }
 0x321   : > { %v9953_v61 = vpop.f32.mrb[7].mxu0  ;;  %7826 = vset.pattern.permute.xlu0 %v11782_v7  ;;  %7510 = vmatpush1.bf16.msra.mxu0 %v7509_v22 }
 0x322   : > { %v3460_v52 = vadd.f32 %v9729_v27, %v3325_v30  ;;  %v2071_v55 = vpop.permute.xlu1 %2070  ;;  %3131 = vperm.xlu0 %7826, %v7910_v14   ;;  %v11867_v14 = vld [vmem:[#allocation68_spill] sm:$0xff] }
 0x323   : > { %v2426_v51 = vmul.f32 %v9716_v46, %v2071_v55  ;;  %v1782_v22 = vmul.f32 %v9708_v6, %v11867_v14 }
 0x324   : > { %v3588_v43 = vmax.f32 %v3460_v52, 0.0  ;;  %7760 = vset.pattern.permute.xlu1 %v11783_v40  ;;  %v9967_v54 = vpop.f32.mrb[8].mxu0 }
 0x325   : > { %v2554_v8 = vadd.f32 %v2426_v51, %v1781_v47  ;;  %2154 = vperm.xlu1 %7760, %v9528_v62   ;;  %v9970_v42 = vpop.f32.mrb[9].mxu0  ;;  %v7912_v62 = vld [vmem:[%s8529_s11 + $0x258] sm:$0xff] }
 0x326   : > { %7312 = vmatmul.mubr.msk.f32.gmra.mrb[50].mxu0 %vm3680_vm0, %v3588_v43  ;;  %3135 = vperm.xlu0 %7826, %v7911_v21  }
 0x327   : > { %v3327_v12 = vadd.f32 %v3199_v41, %v2554_v8  ;;  %v2840_v29 = vpop.permute.xlu1 %2839 }
 0x328   : > { %v3198_v59 = vmul.f32 %v9697_v32, %v2840_v29  ;;  %v9979_v24 = vpop.f32.mrb[10].mxu0  ;;  %v7913_v29 = vld [vmem:[%s8529_s11 + $0x268] sm:$0xff] }
 0x329   : > { %2158 = vperm.xlu1 %7760, %v7912_v62   ;;  %v9982_v16 = vpop.f32.mrb[11].mxu0  ;;  %v3462_v20 = vadd.f32 %v9729_v27, %v3327_v12 }
 0x32a   : > { %v3326_v35 = vadd.f32 %v3198_v59, %v2553_v34  ;;  %v11868_v34 = vld [vmem:[#allocation67_spill] sm:$0xff] }
 0x32b   : > { %v3590_v43 = vmax.f32 %v3462_v20, 0.0  ;;  %v1783_v59 = vmul.f32 %v9708_v6, %v11868_v34 }
 0x32c   : > { %v3461_v30 = vadd.f32 %v9729_v27, %v3326_v35  ;;  %v2075_v52 = vpop.permute.xlu1 %2074  ;;  %v9986_v55 = vpop.f32.mrb[12].mxu0 }
 0x32d   : > { %v2427_v47 = vmul.f32 %v9716_v46, %v2075_v52  ;;  %7761 = vset.pattern.permute.xlu1 %v11782_v7  ;;  %v9994_v41 = vpop.f32.mrb[13].mxu0 }
 0x32e   : > { %v3589_v51 = vmax.f32 %v3461_v30, 0.0  ;;  %2931 = vperm.xlu1 %7761, %v7912_v62  }
 0x32f   : > { %v2555_v38 = vadd.f32 %v2427_v47, %v1782_v22 }
 0x330   : > { %v2079_v8 = vpop.permute.xlu1 %2078  ;;  %v9996_v23 = vpop.f32.mrb[14].mxu0  ;;  %7314 = vmatprep.mubr.msk.f32.mxu0 %vm3680_vm0, %v3589_v51 }
 0x331   : > { %v3328_v50 = vadd.f32 %v3200_v18, %v2555_v38  ;;  %v9999_v21 = vpop.f32.mrb[15].mxu0  ;;  %7315 = vmatmul.mubr.msk.f32.gmra.mrb[52].mxu0 %vm3680_vm0, %v3590_v43  ;;  %v2428_v33 = vmul.f32 %v9716_v46, %v2079_v8  ;;  %v7914_v18 = vld [vmem:[%s8529_s11 + $0x260] sm:$0xff]  ;;  %v11869_v8 = vld [vmem:[#allocation69_spill] sm:$0xff] }
 0x332   : > { %7763 = vset.pattern.permute.xlu1 %v11783_v40 }
 0x333   : > { %v3463_v12 = vadd.f32 %v9729_v27, %v3328_v50  ;;  %2166 = vperm.xlu1 %7763, %v7913_v29   ;;  %v2556_v52 = vadd.f32 %v2428_v33, %v1783_v59  ;;  %v1785_v50 = vmul.f32 %v9708_v6, %v11869_v8  ;;  %v3203_v33 = vmul.f32 %v9697_v32, %v9925_v49 }
 0x334   : > { %v10008_v62 = vpop.f32.mrb[16].mxu0  ;;  %v2429_v29 = vmul.f32 %v9716_v46, %v9868_v28 }
 0x335   : > { %v2852_v35 = vpop.permute.xlu1 %2851  ;;  %v10010_v20 = vpop.f32.mrb[17].mxu0  ;;  %v3591_v30 = vmax.f32 %v3463_v12, 0.0 }
 0x336   : > { %v3201_v14 = vmul.f32 %v9697_v32, %v2852_v35  ;;  %v7915_v35 = vld [vmem:[%s8529_s11 + $0x270] sm:$0xff] }
 0x337   : > { %7764 = vset.pattern.permute.xlu1 %v11782_v7  ;;  %7317 = vmatprep.mubr.msk.f32.mxu0 %vm3680_vm0, %v3591_v30  ;;  %v11870_v30 = vld [vmem:[#allocation70_spill] sm:$0xff] }
 0x338   : > { %v3329_v22 = vadd.f32 %v3201_v14, %v2556_v52  ;;  %2935 = vperm.xlu1 %7764, %v7914_v18   ;;  %v1784_v52 = vmul.f32 %v9708_v6, %v11870_v30 }
 0x339   : > { %v10016_v47 = vpop.f32.mrb[18].mxu0 }
 0x33a   : > { %v3464_v51 = vadd.f32 %v9729_v27, %v3329_v22  ;;  %v2087_v38 = vpop.permute.xlu1 %2086  ;;  %v10019_v43 = vpop.f32.mrb[19].mxu0  ;;  %v2557_v18 = vadd.f32 %v2429_v29, %v1784_v52 }
 0x33b   : > { %v2430_v12 = vmul.f32 %v9716_v46, %v2087_v38  ;;  %v7916_v38 = vld [vmem:[%s8529_s11 + $0x278] sm:$0xff] }
 0x33c   : > { %v3592_v34 = vmax.f32 %v3464_v51, 0.0  ;;  %7765 = vset.pattern.permute.xlu1 %v11783_v40 }
 0x33d   : > { %v2558_v59 = vadd.f32 %v2430_v12, %v1785_v50  ;;  %2170 = vperm.xlu1 %7765, %v7915_v35   ;;  %v1786_v35 = vmul.f32 %v9708_v6, %v8935_v3 }
 0x33e   : > { %7318 = vmatmul.mubr.msk.f32.gmra.mrb[54].mxu0 %vm3680_vm0, %v3592_v34 }
 0x33f   : > { %v3331_v14 = vadd.f32 %v3203_v33, %v2558_v59  ;;  %v2856_v22 = vpop.permute.xlu1 %2855  ;;  %v3204_v33 = vmul.f32 %v9697_v32, %v9948_v17 }
 0x340   : > { %v3202_v49 = vmul.f32 %v9697_v32, %v2856_v22 }
 0x341   : > { %2174 = vperm.xlu1 %7765, %v7916_v38   ;;  %v3466_v28 = vadd.f32 %v9729_v27, %v3331_v14 }
 0x342   : > { %v3330_v8 = vadd.f32 %v3202_v49, %v2557_v18  ;;  %v7917_v18 = vld [vmem:[%s8529_s11 + $0x288] sm:$0xff]  ;;  %v11871_v49 = vld [vmem:[#allocation71_spill] sm:$0xff] }
 0x343   : > { %v3594_v52 = vmax.f32 %v3466_v28, 0.0 }
 0x344   : > { %v3465_v51 = vadd.f32 %v9729_v27, %v3330_v8  ;;  %v2091_v50 = vpop.permute.xlu1 %2090  ;;  %v10037_v12 = vpop.f32.mrb[20].mxu0 }
 0x345   : > { %v2431_v29 = vmul.f32 %v9716_v46, %v2091_v50  ;;  %7766 = vset.pattern.permute.xlu1 %v11782_v7  ;;  %v10045_v34 = vpop.f32.mrb[21].mxu0 }
 0x346   : > { %v3593_v59 = vmax.f32 %v3465_v51, 0.0  ;;  %2947 = vperm.xlu1 %7766, %v7916_v38   ;;  %v1787_v38 = vmul.f32 %v9708_v6, %v11871_v49 }
 0x347   : > { %v2559_v30 = vadd.f32 %v2431_v29, %v1786_v35 }
 0x348   : > { %v2095_v14 = vpop.permute.xlu1 %2094  ;;  %7320 = vmatprep.mubr.msk.f32.mxu0 %vm3680_vm0, %v3593_v59 }
 0x349   : > { %v3332_v22 = vadd.f32 %v3204_v33, %v2559_v30  ;;  %7321 = vmatmul.mubr.msk.f32.gmra.mrb[56].mxu0 %vm3680_vm0, %v3594_v52  ;;  %v2432_v3 = vmul.f32 %v9716_v46, %v2095_v14  ;;  %v7918_v33 = vld [vmem:[%s8529_s11 + $0x280] sm:$0xff]  ;;  %v1789_v14 = vmul.f32 %v9708_v6, %v8939_v57 }
 0x34a   : > { %7768 = vset.pattern.permute.xlu1 %v11783_v40 }
 0x34b   : > { %v3467_v17 = vadd.f32 %v9729_v27, %v3332_v22  ;;  %2182 = vperm.xlu1 %7768, %v7917_v18   ;;  %v2560_v51 = vadd.f32 %v2432_v3, %v1787_v38  ;;  %v3207_v22 = vmul.f32 %v9697_v32, %v9974_v48  ;;  %v7919_v38 = vld [vmem:[%s8529_s11 + $0x290] sm:$0xff] }
 0x34d   : > { %v2868_v8 = vpop.permute.xlu1 %2867  ;;  %v3595_v28 = vmax.f32 %v3467_v17, 0.0  ;;  %v2433_v17 = vmul.f32 %v9716_v46, %v9904_v53 }
 0x34e   : > { %v3205_v50 = vmul.f32 %v9697_v32, %v2868_v8  ;;  %v1788_v8 = vmul.f32 %v9708_v6, %v8941_v63  ;;  %v1790_v63 = vmul.f32 %v9708_v6, %v8947_v58 }
 0x34f   : > { %7769 = vset.pattern.permute.xlu1 %v11782_v7  ;;  %7323 = vmatprep.mubr.msk.f32.mxu0 %vm3680_vm0, %v3595_v28 }
 0x350   : > { %v3333_v35 = vadd.f32 %v3205_v50, %v2560_v51  ;;  %2951 = vperm.xlu1 %7769, %v7918_v33   ;;  %v2561_v51 = vadd.f32 %v2433_v17, %v1788_v8  ;;  %v2880_v50 = vpop.permute.xlu0 %2879 }
 0x351   : > { %v10059_v29 = vpop.f32.mrb[22].mxu0 }
 0x352   : > { %v3468_v59 = vadd.f32 %v9729_v27, %v3333_v35  ;;  %v2103_v30 = vpop.permute.xlu1 %2102  ;;  %v10062_v52 = vpop.f32.mrb[23].mxu0  ;;  %v7920_v35 = vld [vmem:[%s8529_s11 + $0x298] sm:$0xff] }
 0x353   : > { %v2434_v3 = vmul.f32 %v9716_v46, %v2103_v30 }
 0x354   : > { %v3596_v18 = vmax.f32 %v3468_v59, 0.0  ;;  %7770 = vset.pattern.permute.xlu1 %v11783_v40 }
 0x355   : > { %v2562_v49 = vadd.f32 %v2434_v3, %v1789_v14  ;;  %2186 = vperm.xlu1 %7770, %v7919_v38  }
 0x356   : > { %7324 = vmatmul.mubr.msk.f32.gmra.mrb[58].mxu0 %vm3680_vm0, %v3596_v18 }
 0x357   : > { %v3335_v57 = vadd.f32 %v3207_v22, %v2562_v49  ;;  %v2872_v28 = vpop.permute.xlu1 %2871  ;;  %v3208_v22 = vmul.f32 %v9697_v32, %v2880_v50  ;;  %v2115_v49 = vpop.permute.xlu0 %2114  ;;  %v1791_v50 = vmul.f32 %v9708_v6, %v8945_v56 }
 0x358   : > { %v3206_v48 = vmul.f32 %v9697_v32, %v2872_v28 }
 0x359   : > { %2190 = vperm.xlu1 %7770, %v7920_v35   ;;  %v3470_v33 = vadd.f32 %v9729_v27, %v3335_v57 }
 0x35a   : > { %v3334_v53 = vadd.f32 %v3206_v48, %v2561_v51  ;;  %v7921_v48 = vld [vmem:[%s8529_s11 + $0x2a8] sm:$0xff] }
 0x35b   : > { %v3598_v8 = vmax.f32 %v3470_v33, 0.0 }
 0x35c   : > { %v3469_v59 = vadd.f32 %v9729_v27, %v3334_v53  ;;  %v2107_v30 = vpop.permute.xlu1 %2106  ;;  %v10080_v14 = vpop.f32.mrb[24].mxu0 }
 0x35d   : > { %11872 = vst [vmem:[#allocation18_spill] sm:$0xff] %v10080_v14  ;;  %v2435_v3 = vmul.f32 %v9716_v46, %v2107_v30  ;;  %7771 = vset.pattern.permute.xlu1 %v11782_v7  ;;  %v10087_v17 = vpop.f32.mrb[25].mxu0 }
 0x35e   : > { %v3597_v18 = vmax.f32 %v3469_v59, 0.0  ;;  %2963 = vperm.xlu1 %7771, %v7920_v35   ;;  %v10097_v35 = vpop.permute.xlu0 %2130 }
 0x35f   : > { %v2563_v38 = vadd.f32 %v2435_v3, %v1790_v63 }
 0x360   : > { %v2111_v57 = vpop.permute.xlu1 %2110  ;;  %7326 = vmatprep.mubr.msk.f32.mxu0 %vm3680_vm0, %v3597_v18 }
 0x361   : > { %v3336_v28 = vadd.f32 %v3208_v22, %v2563_v38  ;;  %7327 = vmatmul.mubr.msk.f32.gmra.mrb[60].mxu0 %vm3680_vm0, %v3598_v8  ;;  %v2436_v58 = vmul.f32 %v9716_v46, %v2111_v57  ;;  %v7922_v22 = vld [vmem:[%s8529_s11 + $0x2a0] sm:$0xff] }
 0x362   : > { %7773 = vset.pattern.permute.xlu1 %v11783_v40  ;;  %v2892_v3 = vpop.permute.xlu0 %2891  ;;  %v11875_v57 = vld [vmem:[#allocation72_spill] sm:$0xff] }
 0x363   : > { %v3471_v51 = vadd.f32 %v9729_v27, %v3336_v28  ;;  %2198 = vperm.xlu1 %7773, %v7921_v48   ;;  %v2564_v59 = vadd.f32 %v2436_v58, %v1791_v50  ;;  %v1793_v28 = vmul.f32 %v9708_v6, %v11875_v57  ;;  %v3211_v58 = vmul.f32 %v9697_v32, %v2892_v3 }
 0x364   : > { %v2437_v48 = vmul.f32 %v9716_v46, %v2115_v49 }
 0x365   : > { %v2884_v53 = vpop.permute.xlu1 %2883  ;;  %v3599_v33 = vmax.f32 %v3471_v51, 0.0 }
 0x366   : > { %v3209_v30 = vmul.f32 %v9697_v32, %v2884_v53  ;;  %v2896_v49 = vpop.permute.xlu0 %2895 }
 0x367   : > { %7774 = vset.pattern.permute.xlu1 %v11782_v7  ;;  %7329 = vmatprep.mubr.msk.f32.mxu0 %vm3680_vm0, %v3599_v33  ;;  %v7923_v33 = vld [vmem:[%s8529_s11 + $0x2b0] sm:$0xff] }
 0x368   : > { %v3337_v63 = vadd.f32 %v3209_v30, %v2564_v59  ;;  %2967 = vperm.xlu1 %7774, %v7922_v22   ;;  %v11876_v59 = vld [vmem:[#allocation73_spill] sm:$0xff] }
 0x369   : > { %v10103_v18 = vpop.f32.mrb[26].mxu0  ;;  %v1792_v30 = vmul.f32 %v9708_v6, %v11876_v59 }
 0x36a   : > { %11873 = vst [vmem:[#allocation13_spill] sm:$0xff] %v10103_v18  ;;  %v3472_v56 = vadd.f32 %v9729_v27, %v3337_v63  ;;  %v2119_v38 = vpop.permute.xlu1 %2118  ;;  %v10106_v8 = vpop.f32.mrb[27].mxu0  ;;  %v11878_v18 = vld [vmem:[#allocation75_spill] sm:$0xff] }
 0x36b   : > { %11874 = vst [vmem:[#allocation12_spill] sm:$0xff] %v10106_v8  ;;  %v2438_v51 = vmul.f32 %v9716_v46, %v2119_v38  ;;  %v2565_v57 = vadd.f32 %v2437_v48, %v1792_v30  ;;  %v1794_v59 = vmul.f32 %v9708_v6, %v11878_v18 }
 0x36c   : > { %v3600_v50 = vmax.f32 %v3472_v56, 0.0  ;;  %7775 = vset.pattern.permute.xlu1 %v11783_v40 }
 0x36d   : > { %v2566_v53 = vadd.f32 %v2438_v51, %v1793_v28  ;;  %2202 = vperm.xlu1 %7775, %v7923_v33  }
 0x36e   : > { %7330 = vmatmul.mubr.msk.f32.gmra.mrb[62].mxu0 %vm3680_vm0, %v3600_v50 }
 0x36f   : > { %v3339_v63 = vadd.f32 %v3211_v58, %v2566_v53  ;;  %v2888_v22 = vpop.permute.xlu1 %2887  ;;  %v3212_v58 = vmul.f32 %v9697_v32, %v2896_v49  ;;  %v11880_v49 = vld [vmem:[#allocation74_spill] sm:$0xff] }
 0x370   : > { %v3210_v3 = vmul.f32 %v9697_v32, %v2888_v22 }
 0x371   : > { %2206 = vperm.xlu1 %7775, %v7924_v26   ;;  %v3474_v56 = vadd.f32 %v9729_v27, %v3339_v63 }
 0x372   : > { %v3338_v38 = vadd.f32 %v3210_v3, %v2565_v57 }
 0x373   : > { %v3602_v63 = vmax.f32 %v3474_v56, 0.0 }
 0x374   : > { %v3473_v28 = vadd.f32 %v9729_v27, %v3338_v38  ;;  %v2123_v51 = vpop.permute.xlu1 %2122  ;;  %v10122_v33 = vpop.f32.mrb[28].mxu0  ;;  %v7925_v38 = vld [vmem:[%s8529_s11 + $0x2c8] sm:$0xff] }
 0x375   : > { %11877 = vst [vmem:[#allocation16_spill] sm:$0xff] %v10122_v33  ;;  %v2439_v48 = vmul.f32 %v9716_v46, %v2123_v51  ;;  %7776 = vset.pattern.permute.xlu1 %v11782_v7  ;;  %v10129_v50 = vpop.f32.mrb[29].mxu0  ;;  %v11886_v33 = vld [vmem:[#allocation79_spill] sm:$0xff] }
 0x376   : > { %11879 = vst [vmem:[#allocation17_spill] sm:$0xff] %v10129_v50  ;;  %v3601_v53 = vmax.f32 %v3473_v28, 0.0  ;;  %2979 = vperm.xlu1 %7776, %v7924_v26   ;;  %v1795_v26 = vmul.f32 %v9708_v6, %v11880_v49  ;;  %v10225_v50 = vld [vmem:[%s11660_s2] ss:$0 sm:$0xff] }
 0x377   : > { %v2567_v30 = vadd.f32 %v2439_v48, %v1794_v59  ;;  %v7926_v48 = vld [vmem:[%s8529_s11 + $0x2c0] sm:$0xff] }
 0x378   : > { %v2127_v22 = vpop.permute.xlu1 %2126  ;;  %7332 = vmatprep.mubr.msk.f32.mxu0 %vm3680_vm0, %v3601_v53  ;;  %v2908_v53 = vpop.permute.xlu0 %2907 }
 0x379   : > { %v3340_v57 = vadd.f32 %v3212_v58, %v2567_v30  ;;  %7333 = vmatmul.mubr.msk.f32.gmra.mrb[64].mxu0 %vm3680_vm0, %v3602_v63  ;;  %v2440_v18 = vmul.f32 %v9716_v46, %v2127_v22 }
 0x37a   : > { %7778 = vset.pattern.permute.xlu1 %v11783_v40 }
 0x37b   : > { %v3475_v3 = vadd.f32 %v9729_v27, %v3340_v57  ;;  %2214 = vperm.xlu1 %7778, %v7925_v38   ;;  %v2568_v51 = vadd.f32 %v2440_v18, %v1795_v26  ;;  %v3215_v38 = vmul.f32 %v9697_v32, %v2908_v53  ;;  %v2441_v26 = vmul.f32 %v9716_v46, %v10097_v35 }
 0x37d   : > { %v2900_v28 = vpop.permute.xlu1 %2899  ;;  %v3603_v56 = vmax.f32 %v3475_v3, 0.0  ;;  %v11883_v3 = vld [vmem:[#allocation76_spill] sm:$0xff] }
 0x37e   : > { %v3213_v59 = vmul.f32 %v9697_v32, %v2900_v28  ;;  %v1797_v18 = vmul.f32 %v9708_v6, %v11883_v3 }
 0x37f   : > { %7779 = vset.pattern.permute.xlu1 %v11782_v7  ;;  %7335 = vmatprep.mubr.msk.f32.mxu0 %vm3680_vm0, %v3603_v56 }
 0x380   : > { %v3341_v58 = vadd.f32 %v3213_v59, %v2568_v51  ;;  %2983 = vperm.xlu1 %7779, %v7926_v48   ;;  %v7927_v51 = vld [vmem:[%s8529_s11 + $0x2d0] sm:$0xff]  ;;  %v11884_v59 = vld [vmem:[#allocation77_spill] sm:$0xff] }
 0x381   : > { %v10143_v30 = vpop.f32.mrb[30].mxu0 }
 0x382   : > { %11881 = vst [vmem:[#allocation20_spill] sm:$0xff] %v10143_v30  ;;  %v3476_v63 = vadd.f32 %v9729_v27, %v3341_v58  ;;  %v2135_v22 = vpop.permute.xlu1 %2134  ;;  %v10146_v57 = vpop.f32.mrb[31].mxu0  ;;  %v1796_v58 = vmul.f32 %v9708_v6, %v11884_v59  ;;  %v1798_v59 = vmul.f32 %v9708_v6, %v11886_v33 }
 0x383   : > { %11882 = vst [vmem:[#allocation22_spill] sm:$0xff] %v10146_v57  ;;  %v2442_v49 = vmul.f32 %v9716_v46, %v2135_v22  ;;  %v2912_v22 = vpop.permute.xlu0 %2911  ;;  %v7928_v57 = vld [vmem:[%s8529_s11 + $0x2d8] sm:$0xff] }
 0x384   : > { %v3604_v28 = vmax.f32 %v3476_v63, 0.0  ;;  %7780 = vset.pattern.permute.xlu1 %v11783_v40  ;;  %v2569_v30 = vadd.f32 %v2441_v26, %v1796_v58 }
 0x385   : > { %v2570_v56 = vadd.f32 %v2442_v49, %v1797_v18  ;;  %2218 = vperm.xlu1 %7780, %v7927_v51  }
 0x386   : > { %7336 = vmatmul.mubr.msk.f32.gmra.mrb[66].mxu0 %vm3680_vm0, %v3604_v28 }
 0x387   : > { %v3343_v48 = vadd.f32 %v3215_v38, %v2570_v56  ;;  %v2904_v3 = vpop.permute.xlu1 %2903  ;;  %v3216_v38 = vmul.f32 %v9697_v32, %v2912_v22  ;;  %v2147_v56 = vpop.permute.xlu0 %2146 }
 0x388   : > { %v3214_v53 = vmul.f32 %v9697_v32, %v2904_v3 }
 0x389   : > { %2222 = vperm.xlu1 %7780, %v7928_v57   ;;  %v3478_v63 = vadd.f32 %v9729_v27, %v3343_v48 }
 0x38a   : > { %v3342_v35 = vadd.f32 %v3214_v53, %v2569_v30 }
 0x38b   : > { %v3606_v48 = vmax.f32 %v3478_v63, 0.0 }
 0x38c   : > { %v3477_v18 = vadd.f32 %v9729_v27, %v3342_v35  ;;  %v2139_v49 = vpop.permute.xlu1 %2138  ;;  %v10163_v51 = vpop.f32.mrb[32].mxu0  ;;  %v7929_v35 = vld [vmem:[%s8529_s11 + $0x2e8] sm:$0xff] }
 0x38d   : > { %11885 = vst [vmem:[#allocation14_spill] sm:$0xff] %v10163_v51  ;;  %v2443_v26 = vmul.f32 %v9716_v46, %v2139_v49  ;;  %7781 = vset.pattern.permute.xlu1 %v11782_v7  ;;  %v10170_v28 = vpop.f32.mrb[33].mxu0  ;;  %v10180_v49 = vpop.permute.xlu0 %2162 }
 0x38e   : > { %11887 = vst [vmem:[#allocation19_spill] sm:$0xff] %v10170_v28  ;;  %v3605_v30 = vmax.f32 %v3477_v18, 0.0  ;;  %2995 = vperm.xlu1 %7781, %v7928_v57   ;;  %v11888_v18 = vld [vmem:[#allocation78_spill] sm:$0xff] }
 0x38f   : > { %v2571_v58 = vadd.f32 %v2443_v26, %v1798_v59  ;;  %v1799_v57 = vmul.f32 %v9708_v6, %v11888_v18 }
 0x390   : > { %v2143_v3 = vpop.permute.xlu1 %2142  ;;  %7338 = vmatprep.mubr.msk.f32.mxu0 %vm3680_vm0, %v3605_v30 }
 0x391   : > { %v3344_v53 = vadd.f32 %v3216_v38, %v2571_v58  ;;  %7339 = vmatmul.mubr.msk.f32.gmra.mrb[68].mxu0 %vm3680_vm0, %v3606_v48  ;;  %v2444_v33 = vmul.f32 %v9716_v46, %v2143_v3  ;;  %v7930_v58 = vld [vmem:[%s8529_s11 + $0x2e0] sm:$0xff]  ;;  %v2924_v48 = vpop.permute.xlu0 %2923 }
 0x392   : > { %7783 = vset.pattern.permute.xlu1 %v11783_v40 }
 0x393   : > { %v3479_v22 = vadd.f32 %v9729_v27, %v3344_v53  ;;  %2230 = vperm.xlu1 %7783, %v7929_v35   ;;  %v2572_v26 = vadd.f32 %v2444_v33, %v1799_v57  ;;  %v10189_v53 = vld [vmem:[%s11662_s4] ss:$0 sm:$0xff]  ;;  %v10197_v57 = vld [vmem:[%s11659_s1 + $0x2] ss:$0 sm:$0xff] }
 0x395   : > { %v2916_v63 = vpop.permute.xlu1 %2915  ;;  %v3607_v59 = vmax.f32 %v3479_v22, 0.0  ;;  %v2928_v28 = vpop.permute.xlu0 %2927 }
 0x396   : > { %v3217_v38 = vmul.f32 %v9697_v32, %v2916_v63  ;;  %v11889_v32 = vld [vmem:[#allocation80_spill] sm:$0xff]  ;;  %v3219_v63 = vmul.f32 %v10197_v57, %v2924_v48  ;;  %v7933_v48 = vld [vmem:[%s8529_s11 + $0x2f0] sm:$0xff] }
 0x397   : > { %7784 = vset.pattern.permute.xlu1 %v11782_v7  ;;  %7341 = vmatprep.mubr.msk.f32.mxu0 %vm3680_vm0, %v3607_v59  ;;  %v1801_v18 = vmul.f32 %v9708_v6, %v11889_v32 }
 0x398   : > { %v3345_v30 = vadd.f32 %v3217_v38, %v2572_v26  ;;  %2999 = vperm.xlu1 %7784, %v7930_v58  }
 0x399   : > { %v7289_v3 = vpop.f32.mrb[34].mxu0 }
 0x39a   : > { %v3480_v22 = vadd.f32 %v9729_v27, %v3345_v30  ;;  %v2151_v33 = vpop.permute.xlu1 %2150  ;;  %v4301_v35 = vpop.f32.mrb[35].mxu0  ;;  %v10205_v27 = vld [vmem:[%s11659_s1 + $0x1] ss:$0 sm:$0xff]  ;;  %v4307_v6 = vadd.f32 %v7289_v3, %v10189_v53 }
 0x39b   : > { %v2446_v59 = vmul.f32 %v9716_v46, %v2151_v33  ;;  %v4302_v26 = vadd.f32 %v10189_v53, %v4301_v35  ;;  %v2445_v38 = vmul.f32 %v10205_v27, %v2147_v56  ;;  %v10214_v46 = vld [vmem:[%s11659_s1] ss:$0 sm:$0xff]  ;;  %v11890_v33 = vld [vmem:[#allocation81_spill] sm:$0xff] }
 0x39c   : > { %v3608_v30 = vmax.f32 %v3480_v22, 0.0  ;;  %7785 = vset.pattern.permute.xlu1 %v11783_v40  ;;  %v1800_v35 = vmul.f32 %v10214_v46, %v11890_v33 }
 0x39d   : > { %v2574_v58 = vadd.f32 %v2446_v59, %v1801_v18  ;;  %v4804_v32 = vmax.f32 %v4302_v26, 0.0  ;;  %2234 = vperm.xlu1 %7785, %v7933_v48   ;;  %v11891_v18 = vmov 0.0   ;;  %v4805_v59 = vmax.f32 %v4307_v6, 0.0  ;;  %v7935_v26 = vld [vmem:[%s8529_s11 + $0x2f8] sm:$0xff] }
 0x39e   : > { %7342 = vmatmul.mubr.msk.f32.gmra.mrb[70].mxu0 %vm3680_vm0, %v3608_v30  ;;  %v2573_v51 = vadd.f32 %v2445_v38, %v1800_v35 }
 0x39f   : > { %v3347_v56 = vadd.f32 %v3219_v63, %v2574_v58  ;;  %v2920_v22 = vpop.permute.xlu1 %2919  ;;  %5211 = vmatmul.mubr.f32.vlgmr.msra.gmra.mrb[0].mxu1 %v4804_v32  ;;  %v11892_v32 = vld [vmem:[#allocation83_spill] sm:$0xff] }
 0x3a0   : > { %v3218_v3 = vmul.f32 %v10197_v57, %v2920_v22  ;;  %5216 = vmatprep.mubr.f32.mxu1 %v11891_v18  ;;  %v1802_v6 = vmul.f32 %v10214_v46, %v11892_v32 }
 0x3a1   : > { %2238 = vperm.xlu1 %7785, %v7935_v26   ;;  %v3482_v30 = vadd.f32 %v10225_v50, %v3347_v56 }
 0x3a2   : > { %v3346_v48 = vadd.f32 %v3218_v3, %v2573_v51  ;;  %v3220_v51 = vmul.f32 %v10197_v57, %v2928_v28 }
 0x3a3   : > { %5217 = vmatmul.mubr.f32.gmra.mrb[2].mxu1 %v4805_v59  ;;  %v3610_v59 = vmax.f32 %v3482_v30, 0.0  ;;  %v11893_v30 = vld [vmem:[#allocation82_spill] sm:$0xff] }
 0x3a4   : > { %v3481_v63 = vadd.f32 %v10225_v50, %v3346_v48  ;;  %v2155_v38 = vpop.permute.xlu1 %2154  ;;  %v7292_v58 = vpop.f32.mrb[36].mxu0  ;;  %5222 = vmatprep.mubr.f32.mxu1 %v11891_v18 }
 0x3a5   : > { %v2447_v33 = vmul.f32 %v10205_v27, %v2155_v38  ;;  %7786 = vset.pattern.permute.xlu1 %v11782_v7  ;;  %v4311_v35 = vpop.f32.mrb[37].mxu0  ;;  %v4317_v48 = vadd.f32 %v7292_v58, %v10189_v53  ;;  %v1803_v38 = vmul.f32 %v10214_v46, %v11893_v30  ;;  %v2449_v30 = vmul.f32 %v10205_v27, %v10180_v49 }
 0x3a6   : > { %v3609_v22 = vmax.f32 %v3481_v63, 0.0  ;;  %v4312_v56 = vadd.f32 %v10189_v53, %v4311_v35  ;;  %3011 = vperm.xlu1 %7786, %v7935_v26   ;;  %v7937_v26 = vld [vmem:[%s8529_s11 + $0x308] sm:$0xff] }
 0x3a7   : > { %v2575_v3 = vadd.f32 %v2447_v33, %v1802_v6  ;;  %v4807_v58 = vmax.f32 %v4317_v48, 0.0 }
 0x3a8   : > { %v4806_v8 = vmax.f32 %v4312_v56, 0.0  ;;  %v2159_v14 = vpop.permute.xlu1 %2158  ;;  %7344 = vmatprep.mubr.msk.f32.mxu0 %vm3680_vm0, %v3609_v22  ;;  %v2940_v22 = vpop.permute.xlu0 %2939 }
 0x3a9   : > { %v3348_v32 = vadd.f32 %v3220_v51, %v2575_v3  ;;  %7345 = vmatmul.mubr.msk.f32.gmra.mrb[72].mxu0 %vm3680_vm0, %v3610_v59  ;;  %v2448_v28 = vmul.f32 %v10205_v27, %v2159_v14 }
 0x3aa   : > { %7788 = vset.pattern.permute.xlu1 %v11783_v40  ;;  %5223 = vmatmul.mubr.f32.gmra.mrb[4].mxu1 %v4806_v8  ;;  %v7938_v8 = vld [vmem:[%s8529_s11 + $0x300] sm:$0xff] }
 0x3ab   : > { %v3483_v63 = vadd.f32 %v10225_v50, %v3348_v32  ;;  %2246 = vperm.xlu1 %7788, %v7937_v26   ;;  %5228 = vmatprep.mubr.f32.mxu1 %v11891_v18  ;;  %v2576_v33 = vadd.f32 %v2448_v28, %v1803_v38  ;;  %v1805_v32 = vmul.f32 %v10214_v46, %v8987_v0  ;;  %v11894_v0 = vld [vmem:[#allocation84_spill] sm:$0xff] }
 0x3ac   : > { %v3223_v28 = vmul.f32 %v10197_v57, %v2940_v22 }
 0x3ad   : > { %v2932_v6 = vpop.permute.xlu1 %2931  ;;  %v3611_v51 = vmax.f32 %v3483_v63, 0.0 }
 0x3ae   : > { %v3221_v35 = vmul.f32 %v10197_v57, %v2932_v6  ;;  %5229 = vmatmul.mubr.f32.gmra.mrb[6].mxu1 %v4807_v58 }
 0x3af   : > { %7789 = vset.pattern.permute.xlu1 %v11782_v7  ;;  %7347 = vmatprep.mubr.msk.f32.mxu0 %vm3680_vm0, %v3611_v51 }
 0x3b0   : > { %v3349_v14 = vadd.f32 %v3221_v35, %v2576_v33  ;;  %3015 = vperm.xlu1 %7789, %v7938_v8   ;;  %5234 = vmatprep.mubr.f32.mxu1 %v11891_v18  ;;  %v7939_v33 = vld [vmem:[%s8529_s11 + $0x310] sm:$0xff]  ;;  %v1804_v35 = vmul.f32 %v10214_v46, %v11894_v0 }
 0x3b1   : > { %v7295_v56 = vpop.f32.mrb[38].mxu0 }
 0x3b2   : > { %v3484_v3 = vadd.f32 %v10225_v50, %v3349_v14  ;;  %v2167_v59 = vpop.permute.xlu1 %2166  ;;  %v4321_v48 = vpop.f32.mrb[39].mxu0  ;;  %v4327_v58 = vadd.f32 %v7295_v56, %v10189_v53  ;;  %v2577_v22 = vadd.f32 %v2449_v30, %v1804_v35  ;;  %v7940_v56 = vld [vmem:[%s8529_s11 + $0x318] sm:$0xff] }
 0x3b3   : > { %v2450_v63 = vmul.f32 %v10205_v27, %v2167_v59  ;;  %v4322_v26 = vadd.f32 %v10189_v53, %v4321_v48 }
 0x3b4   : > { %v3612_v38 = vmax.f32 %v3484_v3, 0.0  ;;  %7790 = vset.pattern.permute.xlu1 %v11783_v40  ;;  %v2944_v3 = vpop.permute.xlu0 %2943  ;;  %v4809_v59 = vmax.f32 %v4327_v58, 0.0 }
 0x3b5   : > { %v2578_v6 = vadd.f32 %v2450_v63, %v1805_v32  ;;  %v4808_v51 = vmax.f32 %v4322_v26, 0.0  ;;  %2250 = vperm.xlu1 %7790, %v7939_v33  }
 0x3b6   : > { %7348 = vmatmul.mubr.msk.f32.gmra.mrb[74].mxu0 %vm3680_vm0, %v3612_v38 }
 0x3b7   : > { %v3351_v14 = vadd.f32 %v3223_v28, %v2578_v6  ;;  %v2936_v8 = vpop.permute.xlu1 %2935  ;;  %5235 = vmatmul.mubr.f32.gmra.mrb[8].mxu1 %v4808_v51  ;;  %v11895_v28 = vld [vmem:[#allocation86_spill] sm:$0xff]  ;;  %v3224_v6 = vmul.f32 %v10197_v57, %v2944_v3 }
 0x3b8   : > { %v3222_v49 = vmul.f32 %v10197_v57, %v2936_v8  ;;  %5240 = vmatprep.mubr.f32.mxu1 %v11891_v18  ;;  %v1806_v30 = vmul.f32 %v10214_v46, %v11895_v28  ;;  %v2179_v35 = vpop.permute.xlu0 %2178 }
 0x3b9   : > { %2254 = vperm.xlu1 %7790, %v7940_v56   ;;  %v3486_v32 = vadd.f32 %v10225_v50, %v3351_v14 }
 0x3ba   : > { %v3350_v48 = vadd.f32 %v3222_v49, %v2577_v22 }
 0x3bb   : > { %5241 = vmatmul.mubr.f32.gmra.mrb[10].mxu1 %v4809_v59  ;;  %v3614_v8 = vmax.f32 %v3486_v32, 0.0  ;;  %v11896_v32 = vld [vmem:[#allocation85_spill] sm:$0xff] }
 0x3bc   : > { %v3485_v63 = vadd.f32 %v10225_v50, %v3350_v48  ;;  %v2171_v26 = vpop.permute.xlu1 %2170  ;;  %v7298_v38 = vpop.f32.mrb[40].mxu0  ;;  %5246 = vmatprep.mubr.f32.mxu1 %v11891_v18 }
 0x3bd   : > { %v2451_v51 = vmul.f32 %v10205_v27, %v2171_v26  ;;  %7791 = vset.pattern.permute.xlu1 %v11782_v7  ;;  %v4331_v58 = vpop.f32.mrb[41].mxu0  ;;  %v4337_v22 = vadd.f32 %v7298_v38, %v10189_v53  ;;  %v1807_v26 = vmul.f32 %v10214_v46, %v11896_v32  ;;  %v10287_v28 = vpop.permute.xlu0 %2194 }
 0x3be   : > { %v3613_v33 = vmax.f32 %v3485_v63, 0.0  ;;  %v4332_v0 = vadd.f32 %v10189_v53, %v4331_v58  ;;  %3027 = vperm.xlu1 %7791, %v7940_v56   ;;  %v7941_v63 = vld [vmem:[%s8529_s11 + $0x328] sm:$0xff] }
 0x3bf   : > { %v2579_v14 = vadd.f32 %v2451_v51, %v1806_v30  ;;  %v4811_v38 = vmax.f32 %v4337_v22, 0.0 }
 0x3c0   : > { %v4810_v49 = vmax.f32 %v4332_v0, 0.0  ;;  %v2175_v59 = vpop.permute.xlu1 %2174  ;;  %7350 = vmatprep.mubr.msk.f32.mxu0 %vm3680_vm0, %v3613_v33  ;;  %v7942_v0 = vld [vmem:[%s8529_s11 + $0x320] sm:$0xff] }
 0x3c1   : > { %v3352_v3 = vadd.f32 %v3224_v6, %v2579_v14  ;;  %7351 = vmatmul.mubr.msk.f32.gmra.mrb[76].mxu0 %vm3680_vm0, %v3614_v8  ;;  %v2452_v48 = vmul.f32 %v10205_v27, %v2175_v59  ;;  %v2956_v14 = vpop.permute.xlu0 %2955 }
 0x3c2   : > { %7793 = vset.pattern.permute.xlu1 %v11783_v40  ;;  %5247 = vmatmul.mubr.f32.gmra.mrb[12].mxu1 %v4810_v49 }
 0x3c3   : > { %v3487_v56 = vadd.f32 %v10225_v50, %v3352_v3  ;;  %2262 = vperm.xlu1 %7793, %v7941_v63   ;;  %5252 = vmatprep.mubr.f32.mxu1 %v11891_v18  ;;  %v2580_v51 = vadd.f32 %v2452_v48, %v1807_v26  ;;  %v11897_v3 = vld [vmem:[#allocation87_spill] sm:$0xff]  ;;  %v2453_v26 = vmul.f32 %v10205_v27, %v2179_v35 }
 0x3c4   : > { %v1809_v48 = vmul.f32 %v10214_v46, %v11897_v3  ;;  %v7944_v3 = vld [vmem:[%s8529_s11 + $0x338] sm:$0xff] }
 0x3c5   : > { %v2948_v30 = vpop.permute.xlu1 %2947  ;;  %v3615_v6 = vmax.f32 %v3487_v56, 0.0  ;;  %v3227_v56 = vmul.f32 %v10197_v57, %v2956_v14 }
 0x3c6   : > { %v3225_v58 = vmul.f32 %v10197_v57, %v2948_v30  ;;  %5253 = vmatmul.mubr.f32.gmra.mrb[14].mxu1 %v4811_v38 }
 0x3c7   : > { %7794 = vset.pattern.permute.xlu1 %v11782_v7  ;;  %7353 = vmatprep.mubr.msk.f32.mxu0 %vm3680_vm0, %v3615_v6 }
 0x3c8   : > { %v3353_v33 = vadd.f32 %v3225_v58, %v2580_v51  ;;  %3031 = vperm.xlu1 %7794, %v7942_v0   ;;  %5258 = vmatprep.mubr.f32.mxu1 %v11891_v18  ;;  %v7943_v58 = vld [vmem:[%s8529_s11 + $0x330] sm:$0xff] }
 0x3c9   : > { %v7301_v8 = vpop.f32.mrb[42].mxu0 }
 0x3ca   : > { %v3488_v22 = vadd.f32 %v10225_v50, %v3353_v33  ;;  %v2183_v49 = vpop.permute.xlu1 %2182  ;;  %v4341_v59 = vpop.f32.mrb[43].mxu0  ;;  %v4347_v30 = vadd.f32 %v7301_v8, %v10189_v53  ;;  %v11898_v33 = vld [vmem:[#allocation88_spill] sm:$0xff] }
 0x3cb   : > { %v2454_v63 = vmul.f32 %v10205_v27, %v2183_v49  ;;  %v4342_v32 = vadd.f32 %v10189_v53, %v4341_v59  ;;  %v1808_v0 = vmul.f32 %v10214_v46, %v11898_v33 }
 0x3cc   : > { %v3616_v38 = vmax.f32 %v3488_v22, 0.0  ;;  %7795 = vset.pattern.permute.xlu1 %v11783_v40  ;;  %v4813_v22 = vmax.f32 %v4347_v30, 0.0 }
 0x3cd   : > { %v2582_v6 = vadd.f32 %v2454_v63, %v1809_v48  ;;  %v4812_v51 = vmax.f32 %v4342_v32, 0.0  ;;  %2266 = vperm.xlu1 %7795, %v7943_v58   ;;  %v2581_v59 = vadd.f32 %v2453_v26, %v1808_v0  ;;  %v2960_v48 = vpop.permute.xlu0 %2959 }
 0x3ce   : > { %7354 = vmatmul.mubr.msk.f32.gmra.mrb[78].mxu0 %vm3680_vm0, %v3616_v38  ;;  %v3228_v26 = vmul.f32 %v10197_v57, %v2960_v48  ;;  %v11899_v48 = vld [vmem:[#allocation89_spill] sm:$0xff] }
 0x3cf   : > { %v3355_v14 = vadd.f32 %v3227_v56, %v2582_v6  ;;  %v2952_v49 = vpop.permute.xlu1 %2951  ;;  %5259 = vmatmul.mubr.f32.gmra.mrb[16].mxu1 %v4812_v51  ;;  %v1810_v56 = vmul.f32 %v10214_v46, %v9008_v44 }
 0x3d0   : > { %v3226_v35 = vmul.f32 %v10197_v57, %v2952_v49  ;;  %5264 = vmatprep.mubr.f32.mxu1 %v11891_v18 }
 0x3d1   : > { %2270 = vperm.xlu1 %7795, %v7944_v3   ;;  %v3490_v63 = vadd.f32 %v10225_v50, %v3355_v14 }
 0x3d2   : > { %v3354_v8 = vadd.f32 %v3226_v35, %v2581_v59 }
 0x3d3   : > { %5265 = vmatmul.mubr.f32.gmra.mrb[18].mxu1 %v4813_v22  ;;  %v3618_v14 = vmax.f32 %v3490_v63, 0.0  ;;  %v1811_v63 = vmul.f32 %v10214_v46, %v11899_v48 }
 0x3d4   : > { %v3489_v32 = vadd.f32 %v10225_v50, %v3354_v8  ;;  %v2187_v58 = vpop.permute.xlu1 %2186  ;;  %v7304_v38 = vpop.f32.mrb[44].mxu0  ;;  %5270 = vmatprep.mubr.f32.mxu1 %v11891_v18 }
 0x3d5   : > { %v2455_v30 = vmul.f32 %v10205_v27, %v2187_v58  ;;  %7796 = vset.pattern.permute.xlu1 %v11782_v7  ;;  %v4351_v6 = vpop.f32.mrb[45].mxu0  ;;  %v4357_v49 = vadd.f32 %v7304_v38, %v10189_v53 }
 0x3d6   : > { %v3617_v51 = vmax.f32 %v3489_v32, 0.0  ;;  %v4352_v33 = vadd.f32 %v10189_v53, %v4351_v6  ;;  %3043 = vperm.xlu1 %7796, %v7944_v3   ;;  %v7945_v3 = vld [vmem:[%s8529_s11 + $0x348] sm:$0xff]  ;;  %v7946_v6 = vld [vmem:[%s8529_s11 + $0x340] sm:$0xff] }
 0x3d7   : > { %v2583_v0 = vadd.f32 %v2455_v30, %v1810_v56  ;;  %v4815_v32 = vmax.f32 %v4357_v49, 0.0 }
 0x3d8   : > { %v4814_v59 = vmax.f32 %v4352_v33, 0.0  ;;  %v2191_v35 = vpop.permute.xlu1 %2190  ;;  %7356 = vmatprep.mubr.msk.f32.mxu0 %vm3680_vm0, %v3617_v51  ;;  %v2972_v51 = vpop.permute.xlu0 %2971 }
 0x3d9   : > { %v3356_v44 = vadd.f32 %v3228_v26, %v2583_v0  ;;  %7357 = vmatmul.mubr.msk.f32.gmra.mrb[80].mxu0 %vm3680_vm0, %v3618_v14  ;;  %v2456_v22 = vmul.f32 %v10205_v27, %v2191_v35 }
 0x3da   : > { %7798 = vset.pattern.permute.xlu1 %v11783_v40  ;;  %5271 = vmatmul.mubr.f32.gmra.mrb[20].mxu1 %v4814_v59  ;;  %v11900_v59 = vld [vmem:[#allocation90_spill] sm:$0xff] }
 0x3db   : > { %v3491_v8 = vadd.f32 %v10225_v50, %v3356_v44  ;;  %2278 = vperm.xlu1 %7798, %v7945_v3   ;;  %5276 = vmatprep.mubr.f32.mxu1 %v11891_v18  ;;  %v2584_v56 = vadd.f32 %v2456_v22, %v1811_v63  ;;  %v1813_v35 = vmul.f32 %v10214_v46, %v11900_v59 }
 0x3dc   : > { %v3231_v44 = vmul.f32 %v10197_v57, %v2972_v51  ;;  %v2457_v3 = vmul.f32 %v10205_v27, %v10287_v28 }
 0x3dd   : > { %v2964_v58 = vpop.permute.xlu1 %2963  ;;  %v3619_v38 = vmax.f32 %v3491_v8, 0.0 }
 0x3de   : > { %v3229_v26 = vmul.f32 %v10197_v57, %v2964_v58  ;;  %5277 = vmatmul.mubr.f32.gmra.mrb[22].mxu1 %v4815_v32 }
 0x3df   : > { %7799 = vset.pattern.permute.xlu1 %v11782_v7  ;;  %7359 = vmatprep.mubr.msk.f32.mxu0 %vm3680_vm0, %v3619_v38  ;;  %v7947_v38 = vld [vmem:[%s8529_s11 + $0x350] sm:$0xff] }
 0x3e0   : > { %v3357_v30 = vadd.f32 %v3229_v26, %v2584_v56  ;;  %3047 = vperm.xlu1 %7799, %v7946_v6   ;;  %5282 = vmatprep.mubr.f32.mxu1 %v11891_v18  ;;  %v11901_v56 = vld [vmem:[#allocation91_spill] sm:$0xff] }
 0x3e1   : > { %v7307_v33 = vpop.f32.mrb[46].mxu0  ;;  %v1812_v26 = vmul.f32 %v10214_v46, %v11901_v56 }
 0x3e2   : > { %v3492_v0 = vadd.f32 %v10225_v50, %v3357_v30  ;;  %v2199_v14 = vpop.permute.xlu1 %2198  ;;  %v4361_v49 = vpop.f32.mrb[47].mxu0  ;;  %v4367_v63 = vadd.f32 %v7307_v33, %v10189_v53  ;;  %v7948_v33 = vld [vmem:[%s8529_s11 + $0x358] sm:$0xff] }
 0x3e3   : > { %v2458_v22 = vmul.f32 %v10205_v27, %v2199_v14  ;;  %v4362_v8 = vadd.f32 %v10189_v53, %v4361_v49  ;;  %v2585_v51 = vadd.f32 %v2457_v3, %v1812_v26 }
 0x3e4   : > { %v3620_v48 = vmax.f32 %v3492_v0, 0.0  ;;  %7800 = vset.pattern.permute.xlu1 %v11783_v40  ;;  %v2976_v0 = vpop.permute.xlu0 %2975  ;;  %v4817_v14 = vmax.f32 %v4367_v63, 0.0 }
 0x3e5   : > { %v2586_v32 = vadd.f32 %v2458_v22, %v1813_v35  ;;  %v4816_v58 = vmax.f32 %v4362_v8, 0.0  ;;  %2282 = vperm.xlu1 %7800, %v7947_v38  }
 0x3e6   : > { %7360 = vmatmul.mubr.msk.f32.gmra.mrb[82].mxu0 %vm3680_vm0, %v3620_v48  ;;  %v3232_v48 = vmul.f32 %v10197_v57, %v2976_v0 }
 0x3e7   : > { %v3359_v30 = vadd.f32 %v3231_v44, %v2586_v32  ;;  %v2968_v6 = vpop.permute.xlu1 %2967  ;;  %5283 = vmatmul.mubr.f32.gmra.mrb[24].mxu1 %v4816_v58  ;;  %v11902_v44 = vld [vmem:[#allocation93_spill] sm:$0xff] }
 0x3e8   : > { %v3230_v28 = vmul.f32 %v10197_v57, %v2968_v6  ;;  %5288 = vmatprep.mubr.f32.mxu1 %v11891_v18  ;;  %v1814_v3 = vmul.f32 %v10214_v46, %v11902_v44  ;;  %v2211_v56 = vpop.permute.xlu0 %2210 }
 0x3e9   : > { %2286 = vperm.xlu1 %7800, %v7948_v33   ;;  %v3494_v59 = vadd.f32 %v10225_v50, %v3359_v30 }
 0x3ea   : > { %v3358_v49 = vadd.f32 %v3230_v28, %v2585_v51 }
 0x3eb   : > { %5289 = vmatmul.mubr.f32.gmra.mrb[26].mxu1 %v4817_v14  ;;  %v3622_v30 = vmax.f32 %v3494_v59, 0.0  ;;  %v11903_v59 = vld [vmem:[#allocation92_spill] sm:$0xff] }
 0x3ec   : > { %v3493_v35 = vadd.f32 %v10225_v50, %v3358_v49  ;;  %v2203_v22 = vpop.permute.xlu1 %2202  ;;  %v7310_v8 = vpop.f32.mrb[48].mxu0  ;;  %5294 = vmatprep.mubr.f32.mxu1 %v11891_v18  ;;  %v7949_v49 = vld [vmem:[%s8529_s11 + $0x368] sm:$0xff] }
 0x3ed   : > { %v2459_v32 = vmul.f32 %v10205_v27, %v2203_v22  ;;  %7801 = vset.pattern.permute.xlu1 %v11782_v7  ;;  %v4371_v63 = vpop.f32.mrb[49].mxu0  ;;  %v4377_v6 = vadd.f32 %v7310_v8, %v10189_v53  ;;  %v10370_v8 = vpop.permute.xlu0 %2226 }
 0x3ee   : > { %v3621_v58 = vmax.f32 %v3493_v35, 0.0  ;;  %v4372_v38 = vadd.f32 %v10189_v53, %v4371_v63  ;;  %3059 = vperm.xlu1 %7801, %v7948_v33   ;;  %v1815_v35 = vmul.f32 %v10214_v46, %v11903_v59 }
 0x3ef   : > { %v2587_v26 = vadd.f32 %v2459_v32, %v1814_v3  ;;  %v4819_v22 = vmax.f32 %v4377_v6, 0.0 }
 0x3f0   : > { %v4818_v51 = vmax.f32 %v4372_v38, 0.0  ;;  %v2207_v28 = vpop.permute.xlu1 %2206  ;;  %7362 = vmatprep.mubr.msk.f32.mxu0 %vm3680_vm0, %v3621_v58  ;;  %v7950_v58 = vld [vmem:[%s8529_s11 + $0x360] sm:$0xff] }
 0x3f1   : > { %v3360_v0 = vadd.f32 %v3232_v48, %v2587_v26  ;;  %7363 = vmatmul.mubr.msk.f32.gmra.mrb[84].mxu0 %vm3680_vm0, %v3622_v30  ;;  %v2460_v14 = vmul.f32 %v10205_v27, %v2207_v28  ;;  %v2988_v38 = vpop.permute.xlu0 %2987  ;;  %v1817_v28 = vmul.f32 %v10214_v46, %v9030_v60 }
 0x3f2   : > { %7803 = vset.pattern.permute.xlu1 %v11783_v40  ;;  %5295 = vmatmul.mubr.f32.gmra.mrb[28].mxu1 %v4818_v51 }
 0x3f3   : > { %v3495_v33 = vadd.f32 %v10225_v50, %v3360_v0  ;;  %2294 = vperm.xlu1 %7803, %v7949_v49   ;;  %5300 = vmatprep.mubr.f32.mxu1 %v11891_v18  ;;  %v2588_v48 = vadd.f32 %v2460_v14, %v1815_v35  ;;  %v3235_v0 = vmul.f32 %v10197_v57, %v2988_v38 }
 0x3f4   : > { %v2461_v49 = vmul.f32 %v10205_v27, %v2211_v56 }
 0x3f5   : > { %v2980_v44 = vpop.permute.xlu1 %2979  ;;  %v3623_v3 = vmax.f32 %v3495_v33, 0.0 }
 0x3f6   : > { %v3233_v32 = vmul.f32 %v10197_v57, %v2980_v44  ;;  %5301 = vmatmul.mubr.f32.gmra.mrb[30].mxu1 %v4819_v22 }
 0x3f7   : > { %7804 = vset.pattern.permute.xlu1 %v11782_v7  ;;  %7365 = vmatprep.mubr.msk.f32.mxu0 %vm3680_vm0, %v3623_v3  ;;  %v7951_v3 = vld [vmem:[%s8529_s11 + $0x370] sm:$0xff] }
 0x3f8   : > { %v3361_v63 = vadd.f32 %v3233_v32, %v2588_v48  ;;  %3063 = vperm.xlu1 %7804, %v7950_v58   ;;  %5306 = vmatprep.mubr.f32.mxu1 %v11891_v18  ;;  %v11904_v48 = vld [vmem:[#allocation94_spill] sm:$0xff] }
 0x3f9   : > { %v7313_v26 = vpop.f32.mrb[50].mxu0  ;;  %v1816_v60 = vmul.f32 %v10214_v46, %v11904_v48 }
 0x3fa   : > { %v3496_v30 = vadd.f32 %v10225_v50, %v3361_v63  ;;  %v2215_v6 = vpop.permute.xlu1 %2214  ;;  %v4381_v51 = vpop.f32.mrb[51].mxu0  ;;  %v4387_v35 = vadd.f32 %v7313_v26, %v10189_v53 }
 0x3fb   : > { %v2462_v14 = vmul.f32 %v10205_v27, %v2215_v6  ;;  %v4382_v33 = vadd.f32 %v10189_v53, %v4381_v51  ;;  %v2589_v58 = vadd.f32 %v2461_v49, %v1816_v60  ;;  %v2992_v6 = vpop.permute.xlu0 %2991 }
 0x3fc   : > { %v3624_v59 = vmax.f32 %v3496_v30, 0.0  ;;  %7805 = vset.pattern.permute.xlu1 %v11783_v40  ;;  %v4821_v38 = vmax.f32 %v4387_v35, 0.0  ;;  %v7952_v30 = vld [vmem:[%s8529_s11 + $0x378] sm:$0xff]  ;;  %v3236_v49 = vmul.f32 %v10197_v57, %v2992_v6 }
 0x3fd   : > { %v2590_v22 = vadd.f32 %v2462_v14, %v1817_v28  ;;  %v4820_v44 = vmax.f32 %v4382_v33, 0.0  ;;  %2298 = vperm.xlu1 %7805, %v7951_v3  }
 0x3fe   : > { %7366 = vmatmul.mubr.msk.f32.gmra.mrb[86].mxu0 %vm3680_vm0, %v3624_v59 }
 0x3ff   : > { %v3363_v32 = vadd.f32 %v3235_v0, %v2590_v22  ;;  %v2984_v63 = vpop.permute.xlu1 %2983  ;;  %5307 = vmatmul.mubr.f32.gmra.mrb[32].mxu1 %v4820_v44  ;;  %v1818_v0 = vmul.f32 %v10214_v46, %v9044_v5 }
 0x400   : > { %v3234_v56 = vmul.f32 %v10197_v57, %v2984_v63  ;;  %5312 = vmatprep.mubr.f32.mxu1 %v11891_v18 }
 0x401   : > { %2302 = vperm.xlu1 %7805, %v7952_v30   ;;  %v3498_v51 = vadd.f32 %v10225_v50, %v3363_v32 }
 0x402   : > { %v3362_v26 = vadd.f32 %v3234_v56, %v2589_v58 }
 0x403   : > { %5313 = vmatmul.mubr.f32.gmra.mrb[34].mxu1 %v4821_v38  ;;  %v3626_v48 = vmax.f32 %v3498_v51, 0.0  ;;  %v7953_v38 = vld [vmem:[%s8529_s11 + $0x388] sm:$0xff] }
 0x404   : > { %v3497_v28 = vadd.f32 %v10225_v50, %v3362_v26  ;;  %v2219_v14 = vpop.permute.xlu1 %2218  ;;  %v7316_v33 = vpop.f32.mrb[52].mxu0  ;;  %5318 = vmatprep.mubr.f32.mxu1 %v11891_v18 }
 0x405   : > { %v2463_v59 = vmul.f32 %v10205_v27, %v2219_v14  ;;  %7806 = vset.pattern.permute.xlu1 %v11782_v7  ;;  %v4391_v35 = vpop.f32.mrb[53].mxu0  ;;  %v4397_v60 = vadd.f32 %v7316_v33, %v10189_v53 }
 0x406   : > { %v3625_v22 = vmax.f32 %v3497_v28, 0.0  ;;  %v4392_v44 = vadd.f32 %v10189_v53, %v4391_v35  ;;  %3075 = vperm.xlu1 %7806, %v7952_v30   ;;  %v11905_v30 = vld [vmem:[#allocation95_spill] sm:$0xff] }
 0x407   : > { %v2591_v3 = vadd.f32 %v2463_v59, %v1818_v0  ;;  %v1819_v26 = vmul.f32 %v10214_v46, %v11905_v30  ;;  %v4823_v6 = vmax.f32 %v4397_v60, 0.0  ;;  %v3004_v59 = vpop.permute.xlu0 %3003 }
 0x408   : > { %v4822_v32 = vmax.f32 %v4392_v44, 0.0  ;;  %v2223_v63 = vpop.permute.xlu1 %2222  ;;  %7368 = vmatprep.mubr.msk.f32.mxu0 %vm3680_vm0, %v3625_v22  ;;  %v3239_v60 = vmul.f32 %v10197_v57, %v3004_v59 }
 0x409   : > { %v3364_v5 = vadd.f32 %v3236_v49, %v2591_v3  ;;  %7369 = vmatmul.mubr.msk.f32.gmra.mrb[88].mxu0 %vm3680_vm0, %v3626_v48  ;;  %v2464_v58 = vmul.f32 %v10205_v27, %v2223_v63  ;;  %v7954_v49 = vld [vmem:[%s8529_s11 + $0x380] sm:$0xff]  ;;  %v1821_v48 = vmul.f32 %v10214_v46, %v9055_v11  ;;  %v1820_v11 = vmul.f32 %v10214_v46, %v9057_v36 }
 0x40a   : > { %7808 = vset.pattern.permute.xlu1 %v11783_v40  ;;  %5319 = vmatmul.mubr.f32.gmra.mrb[36].mxu1 %v4822_v32 }
 0x40b   : > { %v3499_v56 = vadd.f32 %v10225_v50, %v3364_v5  ;;  %2310 = vperm.xlu1 %7808, %v7953_v38   ;;  %5324 = vmatprep.mubr.f32.mxu1 %v11891_v18  ;;  %v2592_v14 = vadd.f32 %v2464_v58, %v1819_v26  ;;  %v2465_v5 = vmul.f32 %v10205_v27, %v10370_v8  ;;  %v7955_v26 = vld [vmem:[%s8529_s11 + $0x390] sm:$0xff] }
 0x40d   : > { %v3627_v51 = vmax.f32 %v3499_v56, 0.0  ;;  %v2996_v28 = vpop.permute.xlu1 %2995 }
 0x40e   : > { %v3237_v33 = vmul.f32 %v10197_v57, %v2996_v28  ;;  %5325 = vmatmul.mubr.f32.gmra.mrb[38].mxu1 %v4823_v6  ;;  %v2593_v28 = vadd.f32 %v2465_v5, %v1820_v11 }
 0x40f   : > { %7809 = vset.pattern.permute.xlu1 %v11782_v7  ;;  %7371 = vmatprep.mubr.msk.f32.mxu0 %vm3680_vm0, %v3627_v51 }
 0x410   : > { %v3365_v0 = vadd.f32 %v3237_v33, %v2592_v14  ;;  %3079 = vperm.xlu1 %7809, %v7954_v49   ;;  %5330 = vmatprep.mubr.f32.mxu1 %v11891_v18  ;;  %v3008_v14 = vpop.permute.xlu0 %3007 }
 0x411   : > { %v7319_v35 = vpop.f32.mrb[54].mxu0 }
 0x412   : > { %v3500_v22 = vadd.f32 %v10225_v50, %v3365_v0  ;;  %v2231_v44 = vpop.permute.xlu1 %2230  ;;  %v4401_v3 = vpop.f32.mrb[55].mxu0  ;;  %v4407_v56 = vadd.f32 %v7319_v35, %v10189_v53  ;;  %v7956_v0 = vld [vmem:[%s8529_s11 + $0x398] sm:$0xff] }
 0x413   : > { %v2466_v32 = vmul.f32 %v10205_v27, %v2231_v44  ;;  %v4402_v63 = vadd.f32 %v10189_v53, %v4401_v3  ;;  %v1822_v44 = vmul.f32 %v10214_v46, %v9069_v13  ;;  %v3240_v3 = vmul.f32 %v10197_v57, %v3008_v14 }
 0x414   : > { %v3628_v58 = vmax.f32 %v3500_v22, 0.0  ;;  %7810 = vset.pattern.permute.xlu1 %v11783_v40  ;;  %v4825_v33 = vmax.f32 %v4407_v56, 0.0  ;;  %v2243_v5 = vpop.permute.xlu0 %2242 }
 0x415   : > { %v2594_v38 = vadd.f32 %v2466_v32, %v1821_v48  ;;  %v4824_v30 = vmax.f32 %v4402_v63, 0.0  ;;  %2314 = vperm.xlu1 %7810, %v7955_v26  }
 0x416   : > { %7372 = vmatmul.mubr.msk.f32.gmra.mrb[90].mxu0 %vm3680_vm0, %v3628_v58 }
 0x417   : > { %v3367_v6 = vadd.f32 %v3239_v60, %v2594_v38  ;;  %v3000_v51 = vpop.permute.xlu1 %2999  ;;  %5331 = vmatmul.mubr.f32.gmra.mrb[40].mxu1 %v4824_v30 }
 0x418   : > { %v3238_v8 = vmul.f32 %v10197_v57, %v3000_v51  ;;  %5336 = vmatprep.mubr.f32.mxu1 %v11891_v18  ;;  %v7957_v51 = vld [vmem:[%s8529_s11 + $0x3a8] sm:$0xff]  ;;  %v10453_v14 = vpop.permute.xlu0 %2258 }
 0x419   : > { %2318 = vperm.xlu1 %7810, %v7956_v0   ;;  %v3502_v59 = vadd.f32 %v10225_v50, %v3367_v6 }
 0x41a   : > { %v3366_v49 = vadd.f32 %v3238_v8, %v2593_v28  ;;  %v1823_v28 = vmul.f32 %v10214_v46, %v9067_v2 }
 0x41b   : > { %5337 = vmatmul.mubr.f32.gmra.mrb[42].mxu1 %v4825_v33  ;;  %v3630_v58 = vmax.f32 %v3502_v59, 0.0 }
 0x41c   : > { %v3501_v36 = vadd.f32 %v10225_v50, %v3366_v49  ;;  %v2235_v35 = vpop.permute.xlu1 %2234  ;;  %v7322_v22 = vpop.f32.mrb[56].mxu0  ;;  %5342 = vmatprep.mubr.f32.mxu1 %v11891_v18 }
 0x41d   : > { %v2467_v48 = vmul.f32 %v10205_v27, %v2235_v35  ;;  %7811 = vset.pattern.permute.xlu1 %v11782_v7  ;;  %v4411_v60 = vpop.f32.mrb[57].mxu0  ;;  %v4417_v38 = vadd.f32 %v7322_v22, %v10189_v53  ;;  %v7958_v35 = vld [vmem:[%s8529_s11 + $0x3a0] sm:$0xff]  ;;  %v3020_v2 = vpop.permute.xlu0 %3019 }
 0x41e   : > { %v3629_v32 = vmax.f32 %v3501_v36, 0.0  ;;  %v4412_v63 = vadd.f32 %v10189_v53, %v4411_v60  ;;  %3091 = vperm.xlu1 %7811, %v7956_v0   ;;  %v1825_v60 = vmul.f32 %v10214_v46, %v9073_v1  ;;  %v1824_v1 = vmul.f32 %v10214_v46, %v9076_v39 }
 0x41f   : > { %v2595_v56 = vadd.f32 %v2467_v48, %v1822_v44  ;;  %v4827_v8 = vmax.f32 %v4417_v38, 0.0 }
 0x420   : > { %v4826_v30 = vmax.f32 %v4412_v63, 0.0  ;;  %v2239_v26 = vpop.permute.xlu1 %2238  ;;  %7374 = vmatprep.mubr.msk.f32.mxu0 %vm3680_vm0, %v3629_v32  ;;  %v3243_v32 = vmul.f32 %v10197_v57, %v3020_v2  ;;  %v1826_v2 = vmul.f32 %v10214_v46, %v9082_v4 }
 0x421   : > { %v3368_v13 = vadd.f32 %v3240_v3, %v2595_v56  ;;  %7375 = vmatmul.mubr.msk.f32.gmra.mrb[92].mxu0 %vm3680_vm0, %v3630_v58  ;;  %v2468_v11 = vmul.f32 %v10205_v27, %v2239_v26  ;;  %v2469_v56 = vmul.f32 %v10205_v27, %v2243_v5 }
 0x422   : > { %7813 = vset.pattern.permute.xlu1 %v11783_v40  ;;  %5343 = vmatmul.mubr.f32.gmra.mrb[44].mxu1 %v4826_v30 }
 0x423   : > { %v3503_v6 = vadd.f32 %v10225_v50, %v3368_v13  ;;  %2326 = vperm.xlu1 %7813, %v7957_v51   ;;  %5348 = vmatprep.mubr.f32.mxu1 %v11891_v18  ;;  %v2596_v49 = vadd.f32 %v2468_v11, %v1823_v28  ;;  %v7959_v11 = vld [vmem:[%s8529_s11 + $0x3b0] sm:$0xff]  ;;  %v2597_v28 = vadd.f32 %v2469_v56, %v1824_v1 }
 0x425   : > { %v3631_v33 = vmax.f32 %v3503_v6, 0.0  ;;  %v3012_v0 = vpop.permute.xlu1 %3011 }
 0x426   : > { %v3241_v59 = vmul.f32 %v10197_v57, %v3012_v0  ;;  %5349 = vmatmul.mubr.f32.gmra.mrb[46].mxu1 %v4827_v8 }
 0x427   : > { %7814 = vset.pattern.permute.xlu1 %v11782_v7  ;;  %7377 = vmatprep.mubr.msk.f32.mxu0 %vm3680_vm0, %v3631_v33  ;;  %v7960_v33 = vld [vmem:[%s8529_s11 + $0x3b8] sm:$0xff] }
 0x428   : > { %v3369_v36 = vadd.f32 %v3241_v59, %v2596_v49  ;;  %3095 = vperm.xlu1 %7814, %v7958_v35   ;;  %5354 = vmatprep.mubr.f32.mxu1 %v11891_v18  ;;  %v3024_v49 = vpop.permute.xlu0 %3023 }
 0x429   : > { %v7325_v22 = vpop.f32.mrb[58].mxu0 }
 0x42a   : > { %v3504_v44 = vadd.f32 %v10225_v50, %v3369_v36  ;;  %v2247_v3 = vpop.permute.xlu1 %2246  ;;  %v4421_v48 = vpop.f32.mrb[59].mxu0  ;;  %v4427_v30 = vadd.f32 %v7325_v22, %v10189_v53  ;;  %v3244_v22 = vmul.f32 %v10197_v57, %v3024_v49 }
 0x42b   : > { %v2470_v63 = vmul.f32 %v10205_v27, %v2247_v3  ;;  %v4422_v58 = vadd.f32 %v10189_v53, %v4421_v48 }
 0x42c   : > { %v3632_v38 = vmax.f32 %v3504_v44, 0.0  ;;  %7815 = vset.pattern.permute.xlu1 %v11783_v40  ;;  %v4829_v8 = vmax.f32 %v4427_v30, 0.0 }
 0x42d   : > { %v2598_v26 = vadd.f32 %v2470_v63, %v1825_v60  ;;  %v4828_v13 = vmax.f32 %v4422_v58, 0.0  ;;  %2330 = vperm.xlu1 %7815, %v7959_v11   ;;  %v1827_v11 = vmul.f32 %v10214_v46, %v9079_v15 }
 0x42e   : > { %7378 = vmatmul.mubr.msk.f32.gmra.mrb[94].mxu0 %vm3680_vm0, %v3632_v38 }
 0x42f   : > { %v3371_v6 = vadd.f32 %v3243_v32, %v2598_v26  ;;  %v3016_v51 = vpop.permute.xlu1 %3015  ;;  %5355 = vmatmul.mubr.f32.gmra.mrb[48].mxu1 %v4828_v13  ;;  %v7961_v13 = vld [vmem:[%s8529_s11 + $0x3c8] sm:$0xff] }
 0x430   : > { %v3242_v5 = vmul.f32 %v10197_v57, %v3016_v51  ;;  %5360 = vmatprep.mubr.f32.mxu1 %v11891_v18 }
 0x431   : > { %2334 = vperm.xlu1 %7815, %v7960_v33   ;;  %v3506_v59 = vadd.f32 %v10225_v50, %v3371_v6 }
 0x432   : > { %v3370_v0 = vadd.f32 %v3242_v5, %v2597_v28 }
 0x433   : > { %5361 = vmatmul.mubr.f32.gmra.mrb[50].mxu1 %v4829_v8  ;;  %v3634_v32 = vmax.f32 %v3506_v59, 0.0 }
 0x434   : > { %v3505_v39 = vadd.f32 %v10225_v50, %v3370_v0  ;;  %v2251_v36 = vpop.permute.xlu1 %2250  ;;  %v7328_v35 = vpop.f32.mrb[60].mxu0  ;;  %5366 = vmatprep.mubr.f32.mxu1 %v11891_v18 }
 0x435   : > { %v2471_v44 = vmul.f32 %v10205_v27, %v2251_v36  ;;  %7816 = vset.pattern.permute.xlu1 %v11782_v7  ;;  %v4431_v3 = vpop.f32.mrb[61].mxu0  ;;  %v4437_v58 = vadd.f32 %v7328_v35, %v10189_v53  ;;  %v3036_v0 = vpop.permute.xlu0 %3035  ;;  %v11906_v36 = vld [vmem:[#allocation96_spill] sm:$0xff] }
 0x436   : > { %v3633_v48 = vmax.f32 %v3505_v39, 0.0  ;;  %v4432_v60 = vadd.f32 %v10189_v53, %v4431_v3  ;;  %3107 = vperm.xlu1 %7816, %v7960_v33   ;;  %v7962_v33 = vld [vmem:[%s8529_s11 + $0x3c0] sm:$0xff]  ;;  %v1829_v35 = vmul.f32 %v10214_v46, %v11906_v36  ;;  %v2473_v3 = vmul.f32 %v10205_v27, %v10453_v14 }
 0x437   : > { %v2599_v63 = vadd.f32 %v2471_v44, %v1826_v2  ;;  %v4831_v1 = vmax.f32 %v4437_v58, 0.0  ;;  %v3247_v2 = vmul.f32 %v10197_v57, %v3036_v0  ;;  %v7963_v58 = vld [vmem:[%s8529_s11 + $0x3d0] sm:$0xff] }
 0x438   : > { %v4830_v56 = vmax.f32 %v4432_v60, 0.0  ;;  %v2255_v38 = vpop.permute.xlu1 %2254  ;;  %7380 = vmatprep.mubr.msk.f32.mxu0 %vm3680_vm0, %v3633_v48 }
 0x439   : > { %v3372_v4 = vadd.f32 %v3244_v22, %v2599_v63  ;;  %7381 = vmatmul.mubr.msk.f32.gmra.mrb[96].mxu0 %vm3680_vm0, %v3634_v32  ;;  %v2472_v30 = vmul.f32 %v10205_v27, %v2255_v38 }
 0x43a   : > { %7818 = vset.pattern.permute.xlu1 %v11783_v40  ;;  %5367 = vmatmul.mubr.f32.gmra.mrb[52].mxu1 %v4830_v56  ;;  %v11907_v56 = vld [vmem:[#allocation97_spill] sm:$0xff] }
 0x43b   : > { %v3507_v26 = vadd.f32 %v10225_v50, %v3372_v4  ;;  %2342 = vperm.xlu1 %7818, %v7961_v13   ;;  %5372 = vmatprep.mubr.f32.mxu1 %v11891_v18  ;;  %v2600_v28 = vadd.f32 %v2472_v30, %v1827_v11  ;;  %v1828_v38 = vmul.f32 %v10214_v46, %v11907_v56  ;;  %v3040_v13 = vpop.permute.xlu0 %3039 }
 0x43c   : > { %v3248_v0 = vmul.f32 %v10197_v57, %v3040_v13 }
 0x43d   : > { %v3635_v6 = vmax.f32 %v3507_v26, 0.0  ;;  %v3028_v51 = vpop.permute.xlu1 %3027  ;;  %v2601_v26 = vadd.f32 %v2473_v3, %v1828_v38  ;;  %v10537_v3 = vld [vmem:[%s11659_s1 + $0x1] ss:$0 sm:$0xff] }
 0x43e   : > { %v3245_v5 = vmul.f32 %v10197_v57, %v3028_v51  ;;  %5373 = vmatmul.mubr.f32.gmra.mrb[54].mxu1 %v4831_v1 }
 0x43f   : > { %7819 = vset.pattern.permute.xlu1 %v11782_v7  ;;  %7383 = vmatprep.mubr.msk.f32.mxu0 %vm3680_vm0, %v3635_v6 }
 0x440   : > { %v3373_v8 = vadd.f32 %v3245_v5, %v2600_v28  ;;  %3111 = vperm.xlu1 %7819, %v7962_v33   ;;  %5378 = vmatprep.mubr.f32.mxu1 %v11891_v18 }
 0x441   : > { %v7331_v49 = vpop.f32.mrb[62].mxu0 }
 0x442   : > { %v3508_v15 = vadd.f32 %v10225_v50, %v3373_v8  ;;  %v2263_v59 = vpop.permute.xlu1 %2262  ;;  %v4441_v39 = vpop.f32.mrb[63].mxu0  ;;  %v4447_v60 = vadd.f32 %v7331_v49, %v10189_v53  ;;  %v11908_v8 = vld [vmem:[#allocation99_spill] sm:$0xff] }
 0x443   : > { %v2474_v22 = vmul.f32 %v10205_v27, %v2263_v59  ;;  %v4442_v44 = vadd.f32 %v10189_v53, %v4441_v39  ;;  %v7964_v53 = vld [vmem:[%s8529_s11 + $0x3d8] sm:$0xff]  ;;  %v1830_v33 = vmul.f32 %v10214_v46, %v11908_v8  ;;  %v10528_v39 = vld [vmem:[%s11662_s4] ss:$0 sm:$0xff] }
 0x444   : > { %v3636_v48 = vmax.f32 %v3508_v15, 0.0  ;;  %7821 = vset.pattern.permute.xlu1 %v11783_v40  ;;  %v4833_v11 = vmax.f32 %v4447_v60, 0.0 }
 0x445   : > { %v2602_v32 = vadd.f32 %v2474_v22, %v1829_v35  ;;  %v4832_v63 = vmax.f32 %v4442_v44, 0.0  ;;  %2346 = vperm.xlu1 %7821, %v7963_v58   ;;  %v2275_v35 = vpop.permute.xlu0 %2274  ;;  %v11909_v58 = vld [vmem:[#allocation98_spill] sm:$0xff] }
 0x446   : > { %7384 = vmatmul.mubr.msk.f32.gmra.mrb[98].mxu0 %vm3680_vm0, %v3636_v48 }
 0x447   : > { %v3375_v4 = vadd.f32 %v3247_v2, %v2602_v32  ;;  %v3032_v30 = vpop.permute.xlu1 %3031  ;;  %5379 = vmatmul.mubr.f32.gmra.mrb[56].mxu1 %v4832_v63  ;;  %v7967_v32 = vld [vmem:[%s8529_s11 + $0x3e8] sm:$0xff]  ;;  %v10547_v63 = vld [vmem:[%s11659_s1] ss:$0 sm:$0xff] }
 0x448   : > { %v3246_v14 = vmul.f32 %v10197_v57, %v3032_v30  ;;  %5384 = vmatprep.mubr.f32.mxu1 %v11891_v18  ;;  %v1831_v56 = vmul.f32 %v10547_v63, %v11909_v58 }
 0x449   : > { %2350 = vperm.xlu1 %7821, %v7964_v53   ;;  %v3510_v6 = vadd.f32 %v10225_v50, %v3375_v4  ;;  %v10551_v4 = vpop.permute.xlu0 %2290 }
 0x44a   : > { %v3374_v1 = vadd.f32 %v3246_v14, %v2601_v26 }
 0x44b   : > { %5385 = vmatmul.mubr.f32.gmra.mrb[58].mxu1 %v4833_v11  ;;  %v3638_v2 = vmax.f32 %v3510_v6, 0.0 }
 0x44c   : > { %v3509_v51 = vadd.f32 %v10225_v50, %v3374_v1  ;;  %v2267_v28 = vpop.permute.xlu1 %2266  ;;  %v7334_v5 = vpop.f32.mrb[64].mxu0  ;;  %5390 = vmatprep.mubr.f32.mxu1 %v11891_v18 }
 0x44d   : > { %v2475_v49 = vmul.f32 %v10205_v27, %v2267_v28  ;;  %7822 = vset.pattern.permute.xlu1 %v11782_v7  ;;  %v4451_v15 = vpop.f32.mrb[65].mxu0  ;;  %v4457_v57 = vadd.f32 %v10528_v39, %v7334_v5  ;;  %v3052_v1 = vpop.permute.xlu0 %3051 }
 0x44e   : > { %v3637_v59 = vmax.f32 %v3509_v51, 0.0  ;;  %v4452_v36 = vadd.f32 %v10528_v39, %v4451_v15  ;;  %3123 = vperm.xlu1 %7822, %v7964_v53   ;;  %v7970_v53 = vld [vmem:[%s8529_s11 + $0x3e0] sm:$0xff] }
 0x44f   : > { %v2603_v46 = vadd.f32 %v2475_v49, %v1830_v33  ;;  %v4835_v38 = vmax.f32 %v4457_v57, 0.0  ;;  %v10566_v51 = vld [vmem:[%s11660_s2] ss:$0 sm:$0xff] }
 0x450   : > { %v4834_v22 = vmax.f32 %v4452_v36, 0.0  ;;  %v2271_v27 = vpop.permute.xlu1 %2270  ;;  %7386 = vmatprep.mubr.msk.f32.mxu0 %vm3680_vm0, %v3637_v59  ;;  %v11910_v33 = vld [vmem:[#allocation100_spill] sm:$0xff]  ;;  %v2477_v36 = vmul.f32 %v10537_v3, %v2275_v35 }
 0x451   : > { %v3376_v44 = vadd.f32 %v3248_v0, %v2603_v46  ;;  %7387 = vmatmul.mubr.msk.f32.gmra.mrb[100].mxu0 %vm3680_vm0, %v3638_v2  ;;  %v2476_v48 = vmul.f32 %v10537_v3, %v2271_v27  ;;  %v1833_v0 = vmul.f32 %v10547_v63, %v11910_v33  ;;  %v7972_v27 = vld [vmem:[%s8529_s11 + $0x3f0] sm:$0xff] }
 0x452   : > { %7824 = vset.pattern.permute.xlu1 %v11783_v40  ;;  %5391 = vmatmul.mubr.f32.gmra.mrb[60].mxu1 %v4834_v22 }
 0x453   : > { %v3511_v60 = vadd.f32 %v10225_v50, %v3376_v44  ;;  %2358 = vperm.xlu1 %7824, %v7967_v32   ;;  %5396 = vmatprep.mubr.f32.mxu1 %v11891_v18  ;;  %v2604_v14 = vadd.f32 %v2476_v48, %v1831_v56  ;;  %v10556_v50 = vld [vmem:[%s11659_s1 + $0x2] ss:$0 sm:$0xff]  ;;  %v11911_v44 = vld [vmem:[#allocation101_spill] sm:$0xff]  ;;  %v7973_v56 = vld [vmem:[%s8529_s11 + $0x3f8] sm:$0xff] }
 0x454   : > { %v3251_v49 = vmul.f32 %v10556_v50, %v3052_v1  ;;  %v1832_v48 = vmul.f32 %v10547_v63, %v11911_v44 }
 0x455   : > { %v3639_v30 = vmax.f32 %v3511_v60, 0.0  ;;  %v3044_v26 = vpop.permute.xlu1 %3043 }
 0x456   : > { %v3249_v13 = vmul.f32 %v10556_v50, %v3044_v26  ;;  %5397 = vmatmul.mubr.f32.gmra.mrb[62].mxu1 %v4835_v38  ;;  %v2605_v58 = vadd.f32 %v2477_v36, %v1832_v48 }
 0x457   : > { %7825 = vset.pattern.permute.xlu1 %v11782_v7  ;;  %7389 = vmatprep.mubr.msk.f32.mxu0 %vm3680_vm0, %v3639_v30  ;;  %v3056_v30 = vpop.permute.xlu0 %3055 }
 0x458   : > { %v3377_v11 = vadd.f32 %v3249_v13, %v2604_v14  ;;  %3127 = vperm.xlu1 %7825, %v7970_v53   ;;  %5402 = vmatprep.mubr.f32.mxu1 %v11891_v18  ;;  %v11912_v53 = vld [vmem:[#allocation103_spill] sm:$0xff] }
 0x459   : > { %v7337_v6 = vpop.f32.mrb[66].mxu0  ;;  %v1834_v1 = vmul.f32 %v10547_v63, %v11912_v53 }
 0x45a   : > { %v3512_v28 = vadd.f32 %v10566_v51, %v3377_v11  ;;  %v2279_v5 = vpop.permute.xlu1 %2278  ;;  %v4461_v8 = vpop.f32.mrb[67].mxu0  ;;  %v4467_v46 = vadd.f32 %v10528_v39, %v7337_v6  ;;  %v3252_v6 = vmul.f32 %v10556_v50, %v3056_v30 }
 0x45b   : > { %v2478_v15 = vmul.f32 %v10537_v3, %v2279_v5  ;;  %v4462_v59 = vadd.f32 %v10528_v39, %v4461_v8 }
 0x45c   : > { %v3640_v2 = vmax.f32 %v3512_v28, 0.0  ;;  %7827 = vset.pattern.permute.xlu1 %v11783_v40  ;;  %v4837_v40 = vmax.f32 %v4467_v46, 0.0 }
 0x45d   : > { %v2606_v57 = vadd.f32 %v2478_v15, %v1833_v0  ;;  %v4836_v22 = vmax.f32 %v4462_v59, 0.0  ;;  %2362 = vperm.xlu1 %7827, %v7972_v27  }
 0x45e   : > { %7390 = vmatmul.mubr.msk.f32.gmra.mrb[102].mxu0 %vm3680_vm0, %v3640_v2 }
 0x45f   : > { %v3379_v60 = vadd.f32 %v3251_v49, %v2606_v57  ;;  %v3048_v32 = vpop.permute.xlu1 %3047  ;;  %5403 = vmatmul.mubr.f32.gmra.mrb[64].mxu1 %v4836_v22  ;;  %v11913_v57 = vld [vmem:[#allocation102_spill] sm:$0xff] }
 0x460   : > { %v3250_v35 = vmul.f32 %v10556_v50, %v3048_v32  ;;  %5408 = vmatprep.mubr.f32.mxu1 %v11891_v18  ;;  %v1835_v22 = vmul.f32 %v10547_v63, %v11913_v57 }
 0x461   : > { %2366 = vperm.xlu1 %7827, %v7973_v56   ;;  %v3514_v26 = vadd.f32 %v10566_v51, %v3379_v60 }
 0x462   : > { %v3378_v38 = vadd.f32 %v3250_v35, %v2605_v58  ;;  %v3068_v35 = vpop.permute.xlu0 %3067 }
 0x463   : > { %5409 = vmatmul.mubr.f32.gmra.mrb[66].mxu1 %v4837_v40  ;;  %v3642_v0 = vmax.f32 %v3514_v26, 0.0  ;;  %v11914_v26 = vld [vmem:[#allocation104_spill] sm:$0xff] }
 0x464   : > { %v3513_v14 = vadd.f32 %v10566_v51, %v3378_v38  ;;  %v2283_v13 = vpop.permute.xlu1 %2282  ;;  %v7340_v11 = vpop.f32.mrb[68].mxu0  ;;  %5414 = vmatprep.mubr.f32.mxu1 %v11891_v18 }
 0x465   : > { %v2479_v28 = vmul.f32 %v10537_v3, %v2283_v13  ;;  %7828 = vset.pattern.permute.xlu1 %v11782_v7  ;;  %v4471_v5 = vpop.f32.mrb[69].mxu0  ;;  %v4477_v15 = vadd.f32 %v10528_v39, %v7340_v11  ;;  %v3255_v13 = vmul.f32 %v10556_v50, %v3068_v35 }
 0x466   : > { %v3641_v8 = vmax.f32 %v3513_v14, 0.0  ;;  %v4472_v33 = vadd.f32 %v10528_v39, %v4471_v5  ;;  %3139 = vperm.xlu1 %7828, %v7973_v56   ;;  %v1837_v14 = vmul.f32 %v10547_v63, %v11914_v26  ;;  %v3072_v57 = vpop.permute.xlu0 %3071 }
 0x467   : > { %v2607_v49 = vadd.f32 %v2479_v28, %v1834_v1  ;;  %v4839_v27 = vmax.f32 %v4477_v15, 0.0 }
 0x468   : > { %v4838_v59 = vmax.f32 %v4472_v33, 0.0  ;;  %v2287_v36 = vpop.permute.xlu1 %2286  ;;  %7392 = vmatprep.mubr.msk.f32.mxu0 %vm3680_vm0, %v3641_v8 }
 0x469   : > { %v3380_v2 = vadd.f32 %v3252_v6, %v2607_v49  ;;  %7393 = vmatmul.mubr.msk.f32.gmra.mrb[104].mxu0 %vm3680_vm0, %v3642_v0  ;;  %v2480_v46 = vmul.f32 %v10537_v3, %v2287_v36  ;;  %v2481_v6 = vmul.f32 %v10537_v3, %v10551_v4  ;;  %v11915_v49 = vld [vmem:[#allocation105_spill] sm:$0xff] }
 0x46a   : > { %5415 = vmatmul.mubr.f32.gmra.mrb[68].mxu1 %v4838_v59  ;;  %v1836_v15 = vmul.f32 %v10547_v63, %v11915_v49 }
 0x46b   : > { %v3515_v7 = vadd.f32 %v10566_v51, %v3380_v2  ;;  %5420 = vmatprep.mubr.f32.mxu1 %v11891_v18  ;;  %v2608_v60 = vadd.f32 %v2480_v46, %v1835_v22 }
 0x46c   : > { %v2609_v4 = vadd.f32 %v2481_v6, %v1836_v15 }
 0x46d   : > { %v3643_v44 = vmax.f32 %v3515_v7, 0.0  ;;  %v3060_v48 = vpop.permute.xlu1 %3059 }
 0x46e   : > { %v3253_v32 = vmul.f32 %v10556_v50, %v3060_v48  ;;  %5421 = vmatmul.mubr.f32.gmra.mrb[70].mxu1 %v4839_v27 }
 0x46f   : > { %7395 = vmatprep.mubr.msk.f32.mxu0 %vm3680_vm0, %v3643_v44  ;;  %5426 = vmatprep.mubr.f32.mxu1 %v11891_v18 }
 0x470   : > { %v3381_v58 = vadd.f32 %v3253_v32, %v2608_v60 }
 0x471   : > { %v7343_v40 = vpop.f32.mrb[70].mxu0 }
 0x472   : > { %v3516_v56 = vadd.f32 %v10566_v51, %v3381_v58  ;;  %v2295_v38 = vpop.permute.xlu1 %2294  ;;  %v4481_v30 = vpop.f32.mrb[71].mxu0  ;;  %v4487_v8 = vadd.f32 %v10528_v39, %v7343_v40  ;;  %v11916_v58 = vld [vmem:[#allocation107_spill] sm:$0xff]  ;;  %v3256_v40 = vmul.f32 %v10556_v50, %v3072_v57 }
 0x473   : > { %v2482_v11 = vmul.f32 %v10537_v3, %v2295_v38  ;;  %v4482_v53 = vadd.f32 %v10528_v39, %v4481_v30  ;;  %v10610_v1 = vpop.f32.mrb[0].mxu1  ;;  %v1838_v35 = vmul.f32 %v10547_v63, %v11916_v58 }
 0x474   : > { %v3644_v28 = vmax.f32 %v3516_v56, 0.0  ;;  %v10614_v5 = vpop.f32.mrb[1].mxu1  ;;  %v4841_v22 = vmax.f32 %v4487_v8, 0.0 }
 0x475   : > { %v2610_v33 = vadd.f32 %v2482_v11, %v1837_v14  ;;  %v4840_v0 = vmax.f32 %v4482_v53, 0.0  ;;  %v2307_v11 = vpop.permute.xlu0 %2306 }
 0x476   : > { %7396 = vmatmul.mubr.msk.f32.gmra.mrb[106].mxu0 %vm3680_vm0, %v3644_v28  ;;  %v10620_v59 = vpop.f32.mrb[2].mxu1 }
 0x477   : > { %v3383_v36 = vadd.f32 %v3255_v13, %v2610_v33  ;;  %v3064_v2 = vpop.permute.xlu1 %3063  ;;  %v10622_v46 = vpop.f32.mrb[3].mxu1  ;;  %5427 = vmatmul.mubr.f32.gmra.mrb[72].mxu1 %v4840_v0 }
 0x478   : > { %v3254_v7 = vmul.f32 %v10556_v50, %v3064_v2  ;;  %5432 = vmatprep.mubr.f32.mxu1 %v11891_v18 }
 0x479   : > { %v3518_v44 = vadd.f32 %v10566_v51, %v3383_v36 }
 0x47a   : > { %v3382_v27 = vadd.f32 %v3254_v7, %v2609_v4  ;;  %v11919_v4 = vld [vmem:[#allocation106_spill] sm:$0xff] }
 0x47b   : > { %5433 = vmatmul.mubr.f32.gmra.mrb[74].mxu1 %v4841_v22  ;;  %v3646_v53 = vmax.f32 %v3518_v44, 0.0  ;;  %v1839_v7 = vmul.f32 %v10547_v63, %v11919_v4  ;;  %v10650_v22 = vpop.permute.xlu0 %2322 }
 0x47c   : > { %v3517_v48 = vadd.f32 %v10566_v51, %v3382_v27  ;;  %v2299_v60 = vpop.permute.xlu1 %2298  ;;  %v7346_v32 = vpop.f32.mrb[72].mxu0  ;;  %5438 = vmatprep.mubr.f32.mxu1 %v11891_v18 }
 0x47d   : > { %v2483_v56 = vmul.f32 %v10537_v3, %v2299_v60  ;;  %v4491_v38 = vpop.f32.mrb[73].mxu0  ;;  %v10633_v30 = vpop.f32.mrb[4].mxu1  ;;  %v4497_v28 = vadd.f32 %v10528_v39, %v7346_v32 }
 0x47e   : > { %v3645_v26 = vmax.f32 %v3517_v48, 0.0  ;;  %v4492_v14 = vadd.f32 %v10528_v39, %v4491_v38  ;;  %v10636_v13 = vpop.f32.mrb[5].mxu1 }
 0x47f   : > { %v2611_v6 = vadd.f32 %v2483_v56, %v1838_v35  ;;  %v4843_v57 = vmax.f32 %v4497_v28, 0.0  ;;  %v3084_v58 = vpop.permute.xlu0 %3083 }
 0x480   : > { %v4842_v8 = vmax.f32 %v4492_v14, 0.0  ;;  %v2303_v33 = vpop.permute.xlu1 %2302  ;;  %7398 = vmatprep.mubr.msk.f32.mxu0 %vm3680_vm0, %v3645_v26  ;;  %v11920_v14 = vld [vmem:[#allocation108_spill] sm:$0xff] }
 0x481   : > { %v3384_v0 = vadd.f32 %v3256_v40, %v2611_v6  ;;  %7399 = vmatmul.mubr.msk.f32.gmra.mrb[108].mxu0 %vm3680_vm0, %v3646_v53  ;;  %v10641_v49 = vpop.f32.mrb[6].mxu1  ;;  %v2484_v15 = vmul.f32 %v10537_v3, %v2303_v33  ;;  %v4932_v40 = vlaneseq  ;;  %v1841_v53 = vmul.f32 %v10547_v63, %v11920_v14 }
 0x482   : > { %11917 = vst [vmem:[#allocation24_spill] sm:$0xff] %v10641_v49  ;;  %v10644_v36 = vpop.f32.mrb[7].mxu1  ;;  %5439 = vmatmul.mubr.f32.gmra.mrb[76].mxu1 %v4842_v8  ;;  %v3259_v6 = vmul.f32 %v10556_v50, %v3084_v58 }
 0x483   : > { %11918 = vst [vmem:[#allocation15_spill] sm:$0xff] %v10644_v36  ;;  %v3519_v2 = vadd.f32 %v10566_v51, %v3384_v0  ;;  %5444 = vmatprep.mubr.f32.mxu1 %v11891_v18  ;;  %v2612_v48 = vadd.f32 %v2484_v15, %v1839_v7  ;;  %v2485_v0 = vmul.f32 %v10537_v3, %v2307_v11 }
 0x485   : > { %v3647_v27 = vmax.f32 %v3519_v2, 0.0  ;;  %v3076_v44 = vpop.permute.xlu1 %3075 }
 0x486   : > { %v3257_v60 = vmul.f32 %v10556_v50, %v3076_v44  ;;  %5445 = vmatmul.mubr.f32.gmra.mrb[78].mxu1 %v4843_v57 }
 0x487   : > { %7401 = vmatprep.mubr.msk.f32.mxu0 %vm3680_vm0, %v3647_v27  ;;  %5450 = vmatprep.mubr.f32.mxu1 %v11891_v18  ;;  %v11923_v27 = vld [vmem:[#allocation109_spill] sm:$0xff] }
 0x488   : > { %v3385_v32 = vadd.f32 %v3257_v60, %v2612_v48  ;;  %v1840_v44 = vmul.f32 %v10547_v63, %v11923_v27  ;;  %v4933_v48 = vshrl.u32 %v4932_v40, 7  ;;  %v4930_v40 = vld [vmem:[%s11664_s6] sm:$0x3] }
 0x489   : > { %v7349_v35 = vpop.f32.mrb[74].mxu0 }
 0x48a   : > { %v3520_v56 = vadd.f32 %v10566_v51, %v3385_v32  ;;  %v2311_v38 = vpop.permute.xlu1 %2310  ;;  %v4501_v26 = vpop.f32.mrb[75].mxu0  ;;  %v4507_v4 = vadd.f32 %v10528_v39, %v7349_v35  ;;  %v2613_v11 = vadd.f32 %v2485_v0, %v1840_v44 }
 0x48b   : > { %v2486_v28 = vmul.f32 %v10537_v3, %v2311_v38  ;;  %v4502_v8 = vadd.f32 %v10528_v39, %v4501_v26  ;;  %v10661_v33 = vpop.f32.mrb[8].mxu1  ;;  %v4934_v26 = vsub.s32 0, %v4933_v48 }
 0x48c   : > { %11921 = vst [vmem:[#allocation21_spill] sm:$0xff] %v10661_v33  ;;  %v3648_v15 = vmax.f32 %v3520_v56, 0.0  ;;  %v10664_v2 = vpop.f32.mrb[9].mxu1  ;;  %v4845_v35 = vmax.f32 %v4507_v4, 0.0 }
 0x48d   : > { %11922 = vst [vmem:[#allocation23_spill] sm:$0xff] %v10664_v2  ;;  %v2614_v7 = vadd.f32 %v2486_v28, %v1841_v53  ;;  %v4844_v57 = vmax.f32 %v4502_v8, 0.0  ;;  %v3088_v53 = vpop.permute.xlu0 %3087  ;;  %v4938_v28 = vsub.s32 1, %v4933_v48 }
 0x48e   : > { %7402 = vmatmul.mubr.msk.f32.gmra.mrb[110].mxu0 %vm3680_vm0, %v3648_v15  ;;  %v10670_v60 = vpop.f32.mrb[10].mxu1 }
 0x48f   : > { %11924 = vst [vmem:[#allocation26_spill] sm:$0xff] %v10670_v60  ;;  %v3387_v32 = vadd.f32 %v3259_v6, %v2614_v7  ;;  %v3080_v58 = vpop.permute.xlu1 %3079  ;;  %v10672_v38 = vpop.f32.mrb[11].mxu1  ;;  %5451 = vmatmul.mubr.f32.gmra.mrb[80].mxu1 %v4844_v57  ;;  %v11926_v7 = vld [vmem:[#allocation111_spill] sm:$0xff]  ;;  %v3260_v57 = vmul.f32 %v10556_v50, %v3088_v53 }
 0x490   : > { %11925 = vst [vmem:[#allocation25_spill] sm:$0xff] %v10672_v38  ;;  %v3258_v56 = vmul.f32 %v10556_v50, %v3080_v58  ;;  %5456 = vmatprep.mubr.f32.mxu1 %v11891_v18  ;;  %v1842_v4 = vmul.f32 %v10547_v63, %v11926_v7 }
 0x491   : > { %v3522_v6 = vadd.f32 %v10566_v51, %v3387_v32  ;;  %v3100_v33 = vpop.permute.xlu0 %3099 }
 0x492   : > { %v3386_v14 = vadd.f32 %v3258_v56, %v2613_v11  ;;  %v10686_v11 = vrot.slane %v4930_v40, %v4934_v26 }
 0x493   : > { %5457 = vmatmul.mubr.f32.gmra.mrb[82].mxu1 %v4845_v35  ;;  %v10689_v35 = vrot.slane %v4930_v40, %v4938_v28 }
 0x494   : > { %v3521_v8 = vadd.f32 %v10566_v51, %v3386_v14  ;;  %v2315_v15 = vpop.permute.xlu1 %2314  ;;  %v7352_v0 = vpop.f32.mrb[76].mxu0  ;;  %5462 = vmatprep.mubr.f32.mxu1 %v11891_v18  ;;  %v3650_v14 = vmax.f32 %v3522_v6, 0.0 }
 0x495   : > { %v2487_v27 = vmul.f32 %v10537_v3, %v2315_v15  ;;  %v4511_v44 = vpop.f32.mrb[77].mxu0  ;;  %v5248_v58 = vpop.f32.mrb[12].mxu1  ;;  %v4517_v60 = vadd.f32 %v10528_v39, %v7352_v0 }
 0x496   : > { %v3649_v48 = vmax.f32 %v3521_v8, 0.0  ;;  %v4512_v32 = vadd.f32 %v10528_v39, %v4511_v44  ;;  %v5250_v56 = vpop.f32.mrb[13].mxu1  ;;  %v5249_v7 = vadd.f32 %v5248_v58, %v10686_v11 }
 0x497   : > { %v2615_v38 = vadd.f32 %v2487_v27, %v1842_v4  ;;  %v5251_v26 = vadd.f32 %v5250_v56, %v10689_v35  ;;  %v11927_v4 = vld [vmem:[#allocation110_spill] sm:$0xff] }
 0x498   : > { %v4846_v2 = vmax.f32 %v4512_v32, 0.0  ;;  %v2319_v53 = vpop.permute.xlu1 %2318  ;;  %7404 = vmatprep.mubr.msk.f32.mxu0 %vm3680_vm0, %v3649_v48  ;;  %v5855_v27 = vmax.f32 %v5249_v7, 0.0 }
 0x499   : > { %v3388_v15 = vadd.f32 %v3260_v57, %v2615_v38  ;;  %7405 = vmatmul.mubr.msk.f32.gmra.mrb[112].mxu0 %vm3680_vm0, %v3650_v14  ;;  %v5254_v8 = vpop.f32.mrb[14].mxu1  ;;  %v2488_v44 = vmul.f32 %v10537_v3, %v2319_v53  ;;  %v1843_v38 = vmul.f32 %v10547_v63, %v11927_v4  ;;  %v4847_v57 = vmax.f32 %v4517_v60, 0.0 }
 0x49a   : > { %v5255_v40 = vadd.f32 %v5254_v8, %v10686_v11  ;;  %v5256_v28 = vpop.f32.mrb[15].mxu1  ;;  %5463 = vmatmul.mubr.f32.gmra.mrb[84].mxu1 %v4846_v2  ;;  %v5856_v32 = vmax.f32 %v5251_v26, 0.0  ;;  %v11928_v26 = vld [vmem:[#allocation112_spill] sm:$0xff] }
 0x49b   : > { %v3523_v6 = vadd.f32 %v10566_v51, %v3388_v15  ;;  %v5257_v0 = vadd.f32 %v5256_v28, %v10689_v35  ;;  %5468 = vmatprep.mubr.f32.mxu1 %v11891_v18  ;;  %v2616_v53 = vadd.f32 %v2488_v44, %v1843_v38  ;;  %v3263_v44 = vmul.f32 %v10556_v50, %v3100_v33 }
 0x49c   : > { %v5857_v58 = vmax.f32 %v5255_v40, 0.0 }
 0x49d   : > { %v3651_v48 = vmax.f32 %v3523_v6, 0.0  ;;  %v5858_v56 = vmax.f32 %v5257_v0, 0.0  ;;  %v3092_v14 = vpop.permute.xlu1 %3091  ;;  %v1845_v6 = vmul.f32 %v10547_v63, %v11928_v26 }
 0x49e   : > { %v6161_v8 = vmax.f32 %v5855_v27, %v5857_v58  ;;  %v3261_v2 = vmul.f32 %v10556_v50, %v3092_v14  ;;  %5469 = vmatmul.mubr.f32.gmra.mrb[86].mxu1 %v4847_v57  ;;  %v2489_v27 = vmul.f32 %v10537_v3, %v10650_v22 }
 0x49f   : > { %v6174_v15 = vmax.f32 %v5856_v32, %v5858_v56  ;;  %7407 = vmatprep.mubr.msk.f32.mxu0 %vm3680_vm0, %v3651_v48  ;;  %5474 = vmatprep.mubr.f32.mxu1 %v11891_v18 }
 0x4a0   : > { %v3389_v28 = vadd.f32 %v3261_v2, %v2616_v53 }
 0x4a1   : > { %v7355_v4 = vpop.f32.mrb[78].mxu0 }
 0x4a2   : > { %v3524_v60 = vadd.f32 %v10566_v51, %v3389_v28  ;;  %v2327_v7 = vpop.permute.xlu1 %2326  ;;  %v4521_v40 = vpop.f32.mrb[79].mxu0  ;;  %v4527_v56 = vadd.f32 %v10528_v39, %v7355_v4  ;;  %v11929_v28 = vld [vmem:[#allocation113_spill] sm:$0xff] }
 0x4a3   : > { %v2490_v0 = vmul.f32 %v10537_v3, %v2327_v7  ;;  %v4522_v38 = vadd.f32 %v10528_v39, %v4521_v40  ;;  %v5260_v57 = vpop.f32.mrb[16].mxu1  ;;  %v1844_v33 = vmul.f32 %v10547_v63, %v11929_v28 }
 0x4a4   : > { %v3652_v58 = vmax.f32 %v3524_v60, 0.0  ;;  %v5261_v48 = vadd.f32 %v5260_v57, %v10686_v11  ;;  %v5262_v32 = vpop.f32.mrb[17].mxu1 }
 0x4a5   : > { %v2618_v14 = vadd.f32 %v2490_v0, %v1845_v6  ;;  %v4848_v53 = vmax.f32 %v4522_v38, 0.0  ;;  %v5263_v2 = vadd.f32 %v5262_v32, %v10689_v35  ;;  %v2617_v49 = vadd.f32 %v2489_v27, %v1844_v33 }
 0x4a6   : > { %v5859_v7 = vmax.f32 %v5261_v48, 0.0  ;;  %7408 = vmatmul.mubr.msk.f32.gmra.mrb[114].mxu0 %vm3680_vm0, %v3652_v58  ;;  %v5266_v40 = vpop.f32.mrb[18].mxu1  ;;  %v4849_v38 = vmax.f32 %v4527_v56, 0.0 }
 0x4a7   : > { %v3391_v26 = vadd.f32 %v3263_v44, %v2618_v14  ;;  %v5860_v36 = vmax.f32 %v5263_v2, 0.0  ;;  %v5267_v22 = vadd.f32 %v5266_v40, %v10686_v11  ;;  %v3096_v60 = vpop.permute.xlu1 %3095  ;;  %v5268_v57 = vpop.f32.mrb[19].mxu1  ;;  %5475 = vmatmul.mubr.f32.gmra.mrb[88].mxu1 %v4848_v53 }
 0x4a8   : > { %v6162_v4 = vmax.f32 %v6161_v8, %v5859_v7  ;;  %v3262_v6 = vmul.f32 %v10556_v50, %v3096_v60  ;;  %v5269_v0 = vadd.f32 %v5268_v57, %v10689_v35  ;;  %5480 = vmatprep.mubr.f32.mxu1 %v11891_v18  ;;  %v3104_v44 = vpop.permute.xlu0 %3103  ;;  %v11930_v7 = vld [vmem:[#allocation115_spill] sm:$0xff] }
 0x4a9   : > { %v6175_v48 = vmax.f32 %v6174_v15, %v5860_v36  ;;  %v5861_v32 = vmax.f32 %v5267_v22, 0.0  ;;  %v3526_v14 = vadd.f32 %v10566_v51, %v3391_v26  ;;  %v1846_v40 = vmul.f32 %v10547_v63, %v11930_v7 }
 0x4aa   : > { %v3390_v58 = vadd.f32 %v3262_v6, %v2617_v49  ;;  %v5862_v28 = vmax.f32 %v5269_v0, 0.0  ;;  %v3264_v36 = vmul.f32 %v10556_v50, %v3104_v44 }
 0x4ab   : > { %v6163_v2 = vmax.f32 %v6162_v4, %v5861_v32  ;;  %5481 = vmatmul.mubr.f32.gmra.mrb[90].mxu1 %v4849_v38  ;;  %v3654_v4 = vmax.f32 %v3526_v14, 0.0 }
 0x4ac   : > { %v3525_v53 = vadd.f32 %v10566_v51, %v3390_v58  ;;  %v6176_v27 = vmax.f32 %v6175_v48, %v5862_v28  ;;  %v2331_v8 = vpop.permute.xlu1 %2330  ;;  %v7358_v33 = vpop.f32.mrb[80].mxu0  ;;  %5486 = vmatprep.mubr.f32.mxu1 %v11891_v18 }
 0x4ad   : > { %v2491_v49 = vmul.f32 %v10537_v3, %v2331_v8  ;;  %v4531_v15 = vpop.f32.mrb[81].mxu0  ;;  %v5272_v56 = vpop.f32.mrb[20].mxu1  ;;  %v4537_v38 = vadd.f32 %v10528_v39, %v7358_v33 }
 0x4ae   : > { %v3653_v22 = vmax.f32 %v3525_v53, 0.0  ;;  %v4532_v26 = vadd.f32 %v10528_v39, %v4531_v15  ;;  %v5273_v60 = vadd.f32 %v5272_v56, %v10686_v11  ;;  %v5274_v57 = vpop.f32.mrb[21].mxu1  ;;  %v11931_v56 = vld [vmem:[#allocation114_spill] sm:$0xff] }
 0x4af   : > { %v2619_v6 = vadd.f32 %v2491_v49, %v1846_v40  ;;  %v5275_v0 = vadd.f32 %v5274_v57, %v10689_v35 }
 0x4b0   : > { %v4850_v48 = vmax.f32 %v4532_v26, 0.0  ;;  %v5863_v32 = vmax.f32 %v5273_v60, 0.0  ;;  %v2335_v58 = vpop.permute.xlu1 %2334  ;;  %7410 = vmatprep.mubr.msk.f32.mxu0 %vm3680_vm0, %v3653_v22  ;;  %v4851_v22 = vmax.f32 %v4537_v38, 0.0  ;;  %v2339_v60 = vpop.permute.xlu0 %2338 }
 0x4b1   : > { %v3392_v28 = vadd.f32 %v3264_v36, %v2619_v6  ;;  %v5864_v44 = vmax.f32 %v5275_v0, 0.0  ;;  %7411 = vmatmul.mubr.msk.f32.gmra.mrb[116].mxu0 %vm3680_vm0, %v3654_v4  ;;  %v5278_v53 = vpop.f32.mrb[22].mxu1  ;;  %v2492_v7 = vmul.f32 %v10537_v3, %v2335_v58  ;;  %v1847_v36 = vmul.f32 %v10547_v63, %v11931_v56 }
 0x4b2   : > { %v6164_v8 = vmax.f32 %v6163_v2, %v5863_v32  ;;  %v5279_v14 = vadd.f32 %v5278_v53, %v10686_v11  ;;  %v5280_v40 = vpop.f32.mrb[23].mxu1  ;;  %5487 = vmatmul.mubr.f32.gmra.mrb[92].mxu1 %v4850_v48 }
 0x4b3   : > { %v3527_v49 = vadd.f32 %v10566_v51, %v3392_v28  ;;  %v6177_v33 = vmax.f32 %v6176_v27, %v5864_v44  ;;  %v5281_v15 = vadd.f32 %v5280_v40, %v10689_v35  ;;  %5492 = vmatprep.mubr.f32.mxu1 %v11891_v18  ;;  %v2620_v6 = vadd.f32 %v2492_v7, %v1847_v36 }
 0x4b4   : > { %v5865_v26 = vmax.f32 %v5279_v14, 0.0  ;;  %v3116_v58 = vpop.permute.xlu0 %3115  ;;  %v11932_v14 = vld [vmem:[#allocation116_spill] sm:$0xff] }
 0x4b5   : > { %v3655_v2 = vmax.f32 %v3527_v49, 0.0  ;;  %v5866_v57 = vmax.f32 %v5281_v15, 0.0  ;;  %v3108_v4 = vpop.permute.xlu1 %3107  ;;  %v1849_v40 = vmul.f32 %v10547_v63, %v11932_v14  ;;  %v2493_v15 = vmul.f32 %v10537_v3, %v2339_v60 }
 0x4b6   : > { %v6165_v0 = vmax.f32 %v6164_v8, %v5865_v26  ;;  %v3265_v48 = vmul.f32 %v10556_v50, %v3108_v4  ;;  %5493 = vmatmul.mubr.f32.gmra.mrb[94].mxu1 %v4851_v22  ;;  %v3267_v8 = vmul.f32 %v10556_v50, %v3116_v58 }
 0x4b7   : > { %v6178_v32 = vmax.f32 %v6177_v33, %v5866_v57  ;;  %7413 = vmatprep.mubr.msk.f32.mxu0 %vm3680_vm0, %v3655_v2  ;;  %5498 = vmatprep.mubr.f32.mxu1 %v11891_v18 }
 0x4b8   : > { %v3393_v27 = vadd.f32 %v3265_v48, %v2620_v6  ;;  %v11933_v6 = vld [vmem:[#allocation117_spill] sm:$0xff] }
 0x4b9   : > { %v7361_v28 = vpop.f32.mrb[82].mxu0  ;;  %v1848_v48 = vmul.f32 %v10547_v63, %v11933_v6 }
 0x4ba   : > { %v3528_v38 = vadd.f32 %v10566_v51, %v3393_v27  ;;  %v2343_v44 = vpop.permute.xlu1 %2342  ;;  %v4541_v53 = vpop.f32.mrb[83].mxu0  ;;  %v4547_v26 = vadd.f32 %v10528_v39, %v7361_v28 }
 0x4bb   : > { %v2494_v7 = vmul.f32 %v10537_v3, %v2343_v44  ;;  %v4542_v49 = vadd.f32 %v10528_v39, %v4541_v53  ;;  %v5284_v33 = vpop.f32.mrb[24].mxu1 }
 0x4bc   : > { %v3656_v56 = vmax.f32 %v3528_v38, 0.0  ;;  %v5285_v36 = vadd.f32 %v5284_v33, %v10686_v11  ;;  %v5286_v22 = vpop.f32.mrb[25].mxu1  ;;  %v2621_v33 = vadd.f32 %v2493_v15, %v1848_v48 }
 0x4bd   : > { %v2622_v2 = vadd.f32 %v2494_v7, %v1849_v40  ;;  %v4852_v57 = vmax.f32 %v4542_v49, 0.0  ;;  %v5287_v4 = vadd.f32 %v5286_v22, %v10689_v35  ;;  %v4853_v49 = vmax.f32 %v4547_v26, 0.0 }
 0x4be   : > { %v5867_v27 = vmax.f32 %v5285_v36, 0.0  ;;  %7414 = vmatmul.mubr.msk.f32.gmra.mrb[118].mxu0 %vm3680_vm0, %v3656_v56  ;;  %v5290_v58 = vpop.f32.mrb[26].mxu1 }
 0x4bf   : > { %v3395_v44 = vadd.f32 %v3267_v8, %v2622_v2  ;;  %v5868_v53 = vmax.f32 %v5287_v4, 0.0  ;;  %v5291_v60 = vadd.f32 %v5290_v58, %v10686_v11  ;;  %v3112_v38 = vpop.permute.xlu1 %3111  ;;  %v5292_v14 = vpop.f32.mrb[27].mxu1  ;;  %5499 = vmatmul.mubr.f32.gmra.mrb[96].mxu1 %v4852_v57 }
 0x4c0   : > { %v6166_v28 = vmax.f32 %v6165_v0, %v5867_v27  ;;  %v3266_v40 = vmul.f32 %v10556_v50, %v3112_v38  ;;  %v5293_v7 = vadd.f32 %v5292_v14, %v10689_v35  ;;  %5504 = vmatprep.mubr.f32.mxu1 %v11891_v18  ;;  %v3120_v8 = vpop.permute.xlu0 %3119  ;;  %v11936_v27 = vld [vmem:[#allocation119_spill] sm:$0xff] }
 0x4c1   : > { %v6179_v36 = vmax.f32 %v6178_v32, %v5868_v53  ;;  %v5869_v22 = vmax.f32 %v5291_v60, 0.0  ;;  %v3530_v2 = vadd.f32 %v10566_v51, %v3395_v44  ;;  %v1850_v32 = vmul.f32 %v10547_v63, %v11936_v27  ;;  %v11937_v27 = vld [vmem:[#allocation118_spill] sm:$0xff] }
 0x4c2   : > { %v3394_v56 = vadd.f32 %v3266_v40, %v2621_v33  ;;  %v5870_v6 = vmax.f32 %v5293_v7, 0.0  ;;  %v3268_v26 = vmul.f32 %v10556_v50, %v3120_v8 }
 0x4c3   : > { %v10765_v4 = vmax.f32 %v6166_v28, %v5869_v22  ;;  %5505 = vmatmul.mubr.f32.gmra.mrb[98].mxu1 %v4853_v49  ;;  %v3658_v33 = vmax.f32 %v3530_v2, 0.0 }
 0x4c4   : > { %v3529_v15 = vadd.f32 %v10566_v51, %v3394_v56  ;;  %v10768_v0 = vmax.f32 %v6179_v36, %v5870_v6  ;;  %v2347_v57 = vpop.permute.xlu1 %2346  ;;  %v7364_v48 = vpop.f32.mrb[84].mxu0  ;;  %5510 = vmatprep.mubr.f32.mxu1 %v11891_v18 }
 0x4c5   : > { %11934 = vst [vmem:[#allocation27_spill] sm:$0xff] %v10765_v4  ;;  %v2495_v58 = vmul.f32 %v10537_v3, %v2347_v57  ;;  %v4551_v53 = vpop.f32.mrb[85].mxu0  ;;  %v5296_v44 = vpop.f32.mrb[28].mxu1  ;;  %v4557_v40 = vadd.f32 %v10528_v39, %v7364_v48 }
 0x4c6   : > { %11935 = vst [vmem:[#allocation30_spill] sm:$0xff] %v10768_v0  ;;  %v3657_v60 = vmax.f32 %v3529_v15, 0.0  ;;  %v4552_v38 = vadd.f32 %v10528_v39, %v4551_v53  ;;  %v5298_v14 = vpop.f32.mrb[29].mxu1  ;;  %v5297_v49 = vadd.f32 %v5296_v44, %v10686_v11 }
 0x4c7   : > { %v2623_v28 = vadd.f32 %v2495_v58, %v1850_v32  ;;  %v5299_v56 = vadd.f32 %v5298_v14, %v10689_v35  ;;  %v1851_v32 = vmul.f32 %v10547_v63, %v11937_v27  ;;  %v4855_v58 = vmax.f32 %v4557_v40, 0.0 }
 0x4c8   : > { %v4854_v7 = vmax.f32 %v4552_v38, 0.0  ;;  %v2351_v36 = vpop.permute.xlu1 %2350  ;;  %7416 = vmatprep.mubr.msk.f32.mxu0 %vm3680_vm0, %v3657_v60  ;;  %v5871_v53 = vmax.f32 %v5297_v49, 0.0 }
 0x4c9   : > { %v3396_v22 = vadd.f32 %v3268_v26, %v2623_v28  ;;  %7417 = vmatmul.mubr.msk.f32.gmra.mrb[120].mxu0 %vm3680_vm0, %v3658_v33  ;;  %v5302_v6 = vpop.f32.mrb[30].mxu1  ;;  %v2496_v8 = vmul.f32 %v10537_v3, %v2351_v36  ;;  %v2355_v26 = vpop.permute.xlu0 %2354  ;;  %v5872_v38 = vmax.f32 %v5299_v56, 0.0  ;;  %v11938_v56 = vld [vmem:[#allocation120_spill] sm:$0xff] }
 0x4ca   : > { %v5303_v15 = vadd.f32 %v5302_v6, %v10686_v11  ;;  %v5304_v2 = vpop.f32.mrb[31].mxu1  ;;  %5511 = vmatmul.mubr.f32.gmra.mrb[100].mxu1 %v4854_v7 }
 0x4cb   : > { %v3531_v57 = vadd.f32 %v10566_v51, %v3396_v22  ;;  %v5305_v48 = vadd.f32 %v5304_v2, %v10689_v35  ;;  %5516 = vmatprep.mubr.f32.mxu1 %v11891_v18  ;;  %v2624_v28 = vadd.f32 %v2496_v8, %v1851_v32 }
 0x4cc   : > { %v5873_v44 = vmax.f32 %v5303_v15, 0.0 }
 0x4cd   : > { %v3659_v60 = vmax.f32 %v3531_v57, 0.0  ;;  %v5874_v14 = vmax.f32 %v5305_v48, 0.0  ;;  %v3124_v33 = vpop.permute.xlu1 %3123  ;;  %v3132_v2 = vpop.permute.xlu0 %3131  ;;  %v1853_v57 = vmul.f32 %v10547_v63, %v11938_v56 }
 0x4ce   : > { %v6187_v36 = vmax.f32 %v5871_v53, %v5873_v44  ;;  %v3269_v7 = vmul.f32 %v10556_v50, %v3124_v33  ;;  %5517 = vmatmul.mubr.f32.gmra.mrb[102].mxu1 %v4855_v58  ;;  %v3271_v58 = vmul.f32 %v10556_v50, %v3132_v2  ;;  %v2497_v53 = vmul.f32 %v10537_v3, %v2355_v26 }
 0x4cf   : > { %v6200_v22 = vmax.f32 %v5872_v38, %v5874_v14  ;;  %7419 = vmatprep.mubr.msk.f32.mxu0 %vm3680_vm0, %v3659_v60  ;;  %5522 = vmatprep.mubr.f32.mxu1 %v11891_v18 }
 0x4d0   : > { %v3397_v6 = vadd.f32 %v3269_v7, %v2624_v28 }
 0x4d1   : > { %v7367_v27 = vpop.f32.mrb[86].mxu0 }
 0x4d2   : > { %v3532_v40 = vadd.f32 %v10566_v51, %v3397_v6  ;;  %v2359_v49 = vpop.permute.xlu1 %2358  ;;  %v4561_v15 = vpop.f32.mrb[87].mxu0  ;;  %v4567_v14 = vadd.f32 %v10528_v39, %v7367_v27  ;;  %v11939_v6 = vld [vmem:[#allocation121_spill] sm:$0xff] }
 0x4d3   : > { %v2498_v8 = vmul.f32 %v10537_v3, %v2359_v49  ;;  %v4562_v48 = vadd.f32 %v10528_v39, %v4561_v15  ;;  %v5308_v32 = vpop.f32.mrb[32].mxu1  ;;  %v1852_v49 = vmul.f32 %v10547_v63, %v11939_v6 }
 0x4d4   : > { %v3660_v44 = vmax.f32 %v3532_v40, 0.0  ;;  %v5309_v60 = vadd.f32 %v5308_v32, %v10686_v11  ;;  %v5310_v38 = vpop.f32.mrb[33].mxu1 }
 0x4d5   : > { %v2626_v33 = vadd.f32 %v2498_v8, %v1853_v57  ;;  %v4856_v28 = vmax.f32 %v4562_v48, 0.0  ;;  %v5311_v7 = vadd.f32 %v5310_v38, %v10689_v35  ;;  %v2625_v4 = vadd.f32 %v2497_v53, %v1852_v49 }
 0x4d6   : > { %v5875_v56 = vmax.f32 %v5309_v60, 0.0  ;;  %7420 = vmatmul.mubr.msk.f32.gmra.mrb[122].mxu0 %vm3680_vm0, %v3660_v44  ;;  %v5314_v15 = vpop.f32.mrb[34].mxu1  ;;  %v4857_v48 = vmax.f32 %v4567_v14, 0.0 }
 0x4d7   : > { %v5876_v2 = vmax.f32 %v5311_v7, 0.0  ;;  %v3399_v0 = vadd.f32 %v3271_v58, %v2626_v33  ;;  %v5315_v26 = vadd.f32 %v5314_v15, %v10686_v11  ;;  %v3128_v40 = vpop.permute.xlu1 %3127  ;;  %v5316_v32 = vpop.f32.mrb[35].mxu1  ;;  %5523 = vmatmul.mubr.f32.gmra.mrb[104].mxu1 %v4856_v28 }
 0x4d8   : > { %v6188_v27 = vmax.f32 %v6187_v36, %v5875_v56  ;;  %v3270_v57 = vmul.f32 %v10556_v50, %v3128_v40  ;;  %v5317_v8 = vadd.f32 %v5316_v32, %v10689_v35  ;;  %5528 = vmatprep.mubr.f32.mxu1 %v11891_v18  ;;  %v3136_v7 = vpop.permute.xlu0 %3135  ;;  %v11940_v56 = vld [vmem:[#allocation123_spill] sm:$0xff] }
 0x4d9   : > { %v6201_v60 = vmax.f32 %v6200_v22, %v5876_v2  ;;  %v5877_v38 = vmax.f32 %v5315_v26, 0.0  ;;  %v3534_v58 = vadd.f32 %v10566_v51, %v3399_v0  ;;  %v1854_v15 = vmul.f32 %v10547_v63, %v11940_v56 }
 0x4da   : > { %v3398_v44 = vadd.f32 %v3270_v57, %v2625_v4  ;;  %v5878_v6 = vmax.f32 %v5317_v8, 0.0  ;;  %v3272_v2 = vmul.f32 %v10556_v50, %v3136_v7 }
 0x4db   : > { %v6189_v33 = vmax.f32 %v6188_v27, %v5877_v38  ;;  %5529 = vmatmul.mubr.f32.gmra.mrb[106].mxu1 %v4857_v48  ;;  %v3662_v27 = vmax.f32 %v3534_v58, 0.0 }
 0x4dc   : > { %v3533_v28 = vadd.f32 %v10566_v51, %v3398_v44  ;;  %v6202_v53 = vmax.f32 %v6201_v60, %v5878_v6  ;;  %v2363_v36 = vpop.permute.xlu1 %2362  ;;  %v7370_v49 = vpop.f32.mrb[88].mxu0  ;;  %5534 = vmatprep.mubr.f32.mxu1 %v11891_v18 }
 0x4dd   : > { %v2499_v22 = vmul.f32 %v10537_v3, %v2363_v36  ;;  %v4571_v14 = vpop.f32.mrb[89].mxu0  ;;  %v5320_v4 = vpop.f32.mrb[36].mxu1  ;;  %v4577_v48 = vadd.f32 %v10528_v39, %v7370_v49 }
 0x4de   : > { %v3661_v26 = vmax.f32 %v3533_v28, 0.0  ;;  %v4572_v0 = vadd.f32 %v10528_v39, %v4571_v14  ;;  %v5321_v40 = vadd.f32 %v5320_v4, %v10686_v11  ;;  %v5322_v32 = vpop.f32.mrb[37].mxu1  ;;  %v11941_v14 = vld [vmem:[#allocation122_spill] sm:$0xff] }
 0x4df   : > { %v2627_v57 = vadd.f32 %v2499_v22, %v1854_v15  ;;  %v5323_v8 = vadd.f32 %v5322_v32, %v10689_v35  ;;  %v1855_v4 = vmul.f32 %v10547_v63, %v11941_v14 }
 0x4e0   : > { %v4858_v60 = vmax.f32 %v4572_v0, 0.0  ;;  %v5879_v38 = vmax.f32 %v5321_v40, 0.0  ;;  %v2367_v44 = vpop.permute.xlu1 %2366  ;;  %7422 = vmatprep.mubr.msk.f32.mxu0 %vm3680_vm0, %v3661_v26 }
 0x4e1   : > { %v3400_v6 = vadd.f32 %v3272_v2, %v2627_v57  ;;  %v5880_v36 = vmax.f32 %v5323_v8, 0.0  ;;  %7423 = vmatmul.mubr.msk.f32.gmra.mrb[124].mxu0 %vm3680_vm0, %v3662_v27  ;;  %v5326_v7 = vpop.f32.mrb[38].mxu1  ;;  %v2500_v56 = vmul.f32 %v10537_v3, %v2367_v44  ;;  %v4859_v2 = vmax.f32 %v4577_v48, 0.0 }
 0x4e2   : > { %v6190_v28 = vmax.f32 %v6189_v33, %v5879_v38  ;;  %v5327_v58 = vadd.f32 %v5326_v7, %v10686_v11  ;;  %v5328_v15 = vpop.f32.mrb[39].mxu1  ;;  %5535 = vmatmul.mubr.f32.gmra.mrb[108].mxu1 %v4858_v60  ;;  %v10835_v38 = vld [vmem:[%s11662_s4] ss:$0 sm:$0xff] }
 0x4e3   : > { %v3535_v22 = vadd.f32 %v10566_v51, %v3400_v6  ;;  %v6203_v39 = vmax.f32 %v6202_v53, %v5880_v36  ;;  %v5329_v49 = vadd.f32 %v5328_v15, %v10689_v35  ;;  %5540 = vmatprep.mubr.f32.mxu1 %v11891_v18  ;;  %v2628_v3 = vadd.f32 %v2500_v56, %v1855_v4 }
 0x4e4   : > { %v5881_v26 = vmax.f32 %v5327_v58, 0.0  ;;  %v4132_v36 = vadd.f32 %v10835_v38, %v9896_v37  ;;  %v4137_v37 = vadd.f32 %v10835_v38, %v9888_v25 }
 0x4e5   : > { %v3663_v0 = vmax.f32 %v3535_v22, 0.0  ;;  %v5882_v33 = vmax.f32 %v5329_v49, 0.0  ;;  %v3140_v40 = vpop.permute.xlu1 %3139 }
 0x4e6   : > { %v6191_v32 = vmax.f32 %v6190_v28, %v5881_v26  ;;  %v3273_v27 = vmul.f32 %v10556_v50, %v3140_v40  ;;  %5541 = vmatmul.mubr.f32.gmra.mrb[110].mxu1 %v4859_v2  ;;  %v4770_v4 = vmax.f32 %v4132_v36, 0.0 }
 0x4e7   : > { %v6204_v57 = vmax.f32 %v6203_v39, %v5882_v33  ;;  %7425 = vmatprep.mubr.msk.f32.mxu0 %vm3680_vm0, %v3663_v0  ;;  %5546 = vmatprep.mubr.f32.mxu1 %v11891_v18 }
 0x4e8   : > { %v3401_v53 = vadd.f32 %v3273_v27, %v2628_v3  ;;  %v4142_v27 = vadd.f32 %v10835_v38, %v9916_v9 }
 0x4e9   : > { %v7373_v8 = vpop.f32.mrb[90].mxu0 }
 0x4ea   : > { %v3536_v60 = vadd.f32 %v10566_v51, %v3401_v53  ;;  %v4581_v63 = vpop.f32.mrb[91].mxu0  ;;  %v5332_v48 = vpop.f32.mrb[40].mxu1  ;;  %v4587_v51 = vadd.f32 %v10835_v38, %v7373_v8 }
 0x4eb   : > { %v4582_v44 = vadd.f32 %v10835_v38, %v4581_v63  ;;  %v5333_v50 = vadd.f32 %v5332_v48, %v10686_v11  ;;  %v5334_v6 = vpop.f32.mrb[41].mxu1  ;;  %v4147_v48 = vadd.f32 %v10835_v38, %v9913_v19  ;;  %v4152_v19 = vadd.f32 %v10835_v38, %v9943_v10 }
 0x4ec   : > { %v3664_v7 = vmax.f32 %v3536_v60, 0.0  ;;  %v5335_v28 = vadd.f32 %v5334_v6, %v10689_v35  ;;  %v4861_v0 = vmax.f32 %v4587_v51, 0.0 }
 0x4ed   : > { %v4860_v56 = vmax.f32 %v4582_v44, 0.0  ;;  %v5883_v58 = vmax.f32 %v5333_v50, 0.0  ;;  %v4772_v44 = vmax.f32 %v4142_v27, 0.0 }
 0x4ee   : > { %v5884_v15 = vmax.f32 %v5335_v28, 0.0  ;;  %7426 = vmatmul.mubr.msk.f32.gmra.mrb[126].mxu0 %vm3680_vm0, %v3664_v7  ;;  %v5338_v22 = vpop.f32.mrb[42].mxu1 }
 0x4ef   : > { %v6192_v39 = vmax.f32 %v6191_v32, %v5883_v58  ;;  %v5339_v49 = vadd.f32 %v5338_v22, %v10686_v11  ;;  %v5340_v14 = vpop.f32.mrb[43].mxu1  ;;  %5547 = vmatmul.mubr.f32.gmra.mrb[112].mxu1 %v4860_v56  ;;  %5006 = vmatprep.mubr.f32.mxu0 %v11891_v18  ;;  %v4771_v32 = vmax.f32 %v4137_v37, 0.0  ;;  %v4773_v56 = vmax.f32 %v4147_v48, 0.0 }
 0x4f0   : > { %v6205_v2 = vmax.f32 %v6204_v57, %v5884_v15  ;;  %v5341_v26 = vadd.f32 %v5340_v14, %v10689_v35  ;;  %5552 = vmatprep.mubr.f32.mxu1 %v11891_v18 }
 0x4f1   : > { %v5885_v33 = vmax.f32 %v5339_v49, 0.0 }
 0x4f2   : > { %v5886_v40 = vmax.f32 %v5341_v26, 0.0  ;;  %5007 = vmatmul.mubr.f32.vlgmr.msra.gmra.mrb[128].mxu0 %v4770_v4  ;;  %v4774_v26 = vmax.f32 %v4152_v19, 0.0 }
 0x4f3   : > { %v10850_v3 = vmax.f32 %v6192_v39, %v5885_v33  ;;  %5553 = vmatmul.mubr.f32.gmra.mrb[114].mxu1 %v4861_v0  ;;  %5012 = vmatprep.mubr.f32.mxu0 %v11891_v18 }
 0x4f4   : > { %v10855_v25 = vmax.f32 %v6205_v2, %v5886_v40  ;;  %v7376_v57 = vpop.f32.mrb[92].mxu0  ;;  %5558 = vmatprep.mubr.f32.mxu1 %v11891_v18  ;;  %v4157_v2 = vadd.f32 %v10835_v38, %v9941_v31 }
 0x4f5   : > { %v4591_v53 = vpop.f32.mrb[93].mxu0  ;;  %v5344_v8 = vpop.f32.mrb[44].mxu1  ;;  %v4597_v50 = vadd.f32 %v10835_v38, %v7376_v57 }
 0x4f6   : > { %v4592_v60 = vadd.f32 %v10835_v38, %v4591_v53  ;;  %5013 = vmatmul.mubr.f32.gmra.mrb[130].mxu0 %v4771_v32  ;;  %v5346_v63 = vpop.f32.mrb[45].mxu1  ;;  %v5345_v6 = vadd.f32 %v5344_v8, %v10686_v11  ;;  %v4775_v57 = vmax.f32 %v4157_v2, 0.0  ;;  %v4162_v53 = vadd.f32 %v10835_v38, %v9953_v61 }
 0x4f7   : > { %5018 = vmatprep.mubr.f32.mxu0 %v11891_v18  ;;  %v5347_v36 = vadd.f32 %v5346_v63, %v10689_v35  ;;  %v4863_v15 = vmax.f32 %v4597_v50, 0.0 }
 0x4f8   : > { %v4862_v9 = vmax.f32 %v4592_v60, 0.0  ;;  %v5887_v22 = vmax.f32 %v5345_v6, 0.0  ;;  %v4776_v61 = vmax.f32 %v4162_v53, 0.0 }
 0x4f9   : > { %v5350_v7 = vpop.f32.mrb[46].mxu1  ;;  %v5888_v49 = vmax.f32 %v5347_v36, 0.0  ;;  %v4167_v36 = vadd.f32 %v10835_v38, %v9951_v45 }
 0x4fa   : > { %v5351_v28 = vadd.f32 %v5350_v7, %v10686_v11  ;;  %5019 = vmatmul.mubr.f32.gmra.mrb[132].mxu0 %v4772_v44  ;;  %v5352_v51 = vpop.f32.mrb[47].mxu1  ;;  %5559 = vmatmul.mubr.f32.gmra.mrb[116].mxu1 %v4862_v9 }
 0x4fb   : > { %v5353_v58 = vadd.f32 %v5352_v51, %v10689_v35  ;;  %5024 = vmatprep.mubr.f32.mxu0 %v11891_v18  ;;  %5564 = vmatprep.mubr.f32.mxu1 %v11891_v18 }
 0x4fc   : > { %v5889_v39 = vmax.f32 %v5351_v28, 0.0 }
 0x4fd   : > { %v5890_v14 = vmax.f32 %v5353_v58, 0.0 }
 0x4fe   : > { %v6213_v37 = vmax.f32 %v5887_v22, %v5889_v39  ;;  %5025 = vmatmul.mubr.f32.gmra.mrb[134].mxu0 %v4773_v56  ;;  %5565 = vmatmul.mubr.f32.gmra.mrb[118].mxu1 %v4863_v15  ;;  %v4777_v15 = vmax.f32 %v4167_v36, 0.0  ;;  %v4172_v22 = vadd.f32 %v10835_v38, %v9970_v42  ;;  %v4187_v36 = vadd.f32 %v10835_v38, %v9979_v24 }
 0x4ff   : > { %v6226_v4 = vmax.f32 %v5888_v49, %v5890_v14  ;;  %5030 = vmatprep.mubr.f32.mxu0 %v11891_v18  ;;  %5570 = vmatprep.mubr.f32.mxu1 %v11891_v18 }
 0x500   : > { %v4778_v42 = vmax.f32 %v4172_v22, 0.0 }
 0x501   : > { %v7379_v0 = vpop.f32.mrb[94].mxu0 }
 0x502   : > { %v4601_v33 = vpop.f32.mrb[95].mxu0  ;;  %5031 = vmatmul.mubr.f32.gmra.mrb[136].mxu0 %v4774_v26  ;;  %v5356_v10 = vpop.f32.mrb[48].mxu1  ;;  %v4607_v31 = vadd.f32 %v10835_v38, %v7379_v0  ;;  %v4177_v26 = vadd.f32 %v10835_v38, %v9967_v54 }
 0x503   : > { %v4602_v40 = vadd.f32 %v10835_v38, %v4601_v33  ;;  %v5357_v32 = vadd.f32 %v5356_v10, %v10686_v11  ;;  %v5358_v27 = vpop.f32.mrb[49].mxu1  ;;  %5036 = vmatprep.mubr.f32.mxu0 %v11891_v18 }
 0x504   : > { %v5359_v8 = vadd.f32 %v5358_v27, %v10689_v35  ;;  %v4865_v51 = vmax.f32 %v4607_v31, 0.0 }
 0x505   : > { %v4864_v60 = vmax.f32 %v4602_v40, 0.0  ;;  %v5891_v63 = vmax.f32 %v5357_v32, 0.0 }
 0x506   : > { %v5892_v48 = vmax.f32 %v5359_v8, 0.0  ;;  %5037 = vmatmul.mubr.f32.gmra.mrb[138].mxu0 %v4775_v57  ;;  %v5362_v44 = vpop.f32.mrb[50].mxu1 }
 0x507   : > { %v6214_v50 = vmax.f32 %v6213_v37, %v5891_v63  ;;  %v5363_v9 = vadd.f32 %v5362_v44, %v10686_v11  ;;  %v5364_v6 = vpop.f32.mrb[51].mxu1  ;;  %5571 = vmatmul.mubr.f32.gmra.mrb[120].mxu1 %v4864_v60  ;;  %5042 = vmatprep.mubr.f32.mxu0 %v11891_v18  ;;  %v4779_v60 = vmax.f32 %v4177_v26, 0.0  ;;  %v4182_v63 = vadd.f32 %v10835_v38, %v9982_v16 }
 0x508   : > { %v6227_v7 = vmax.f32 %v6226_v4, %v5892_v48  ;;  %v5365_v28 = vadd.f32 %v5364_v6, %v10689_v35  ;;  %5576 = vmatprep.mubr.f32.mxu1 %v11891_v18  ;;  %v4197_v26 = vadd.f32 %v10835_v38, %v9986_v55 }
 0x509   : > { %v5893_v56 = vmax.f32 %v5363_v9, 0.0 }
 0x50a   : > { %v5894_v58 = vmax.f32 %v5365_v28, 0.0  ;;  %5043 = vmatmul.mubr.f32.gmra.mrb[140].mxu0 %v4776_v61  ;;  %v4780_v61 = vmax.f32 %v4182_v63, 0.0  ;;  %v4207_v63 = vadd.f32 %v10835_v38, %v9996_v23  ;;  %v4212_v23 = vadd.f32 %v10835_v38, %v10010_v20 }
 0x50b   : > { %v6215_v19 = vmax.f32 %v6214_v50, %v5893_v56  ;;  %5577 = vmatmul.mubr.f32.gmra.mrb[122].mxu1 %v4865_v51  ;;  %5048 = vmatprep.mubr.f32.mxu0 %v11891_v18 }
 0x50c   : > { %v6228_v39 = vmax.f32 %v6227_v7, %v5894_v58  ;;  %v7382_v45 = vpop.f32.mrb[96].mxu0  ;;  %5582 = vmatprep.mubr.f32.mxu1 %v11891_v18 }
 0x50d   : > { %v4611_v49 = vpop.f32.mrb[97].mxu0  ;;  %v5368_v14 = vpop.f32.mrb[52].mxu1  ;;  %v4617_v33 = vadd.f32 %v10835_v38, %v7382_v45 }
 0x50e   : > { %v4612_v37 = vadd.f32 %v10835_v38, %v4611_v49  ;;  %v5369_v4 = vadd.f32 %v5368_v14, %v10686_v11  ;;  %5049 = vmatmul.mubr.f32.gmra.mrb[142].mxu0 %v4777_v15  ;;  %v5370_v2 = vpop.f32.mrb[53].mxu1  ;;  %v4192_v15 = vadd.f32 %v10835_v38, %v9994_v41 }
 0x50f   : > { %v5371_v0 = vadd.f32 %v5370_v2, %v10689_v35  ;;  %5054 = vmatprep.mubr.f32.mxu0 %v11891_v18  ;;  %v4867_v48 = vmax.f32 %v4617_v33, 0.0 }
 0x510   : > { %v4866_v10 = vmax.f32 %v4612_v37, 0.0  ;;  %v5895_v40 = vmax.f32 %v5369_v4, 0.0  ;;  %v4782_v41 = vmax.f32 %v4192_v15, 0.0 }
 0x511   : > { %v5896_v32 = vmax.f32 %v5371_v0, 0.0  ;;  %v5374_v27 = vpop.f32.mrb[54].mxu1 }
 0x512   : > { %v6216_v57 = vmax.f32 %v6215_v19, %v5895_v40  ;;  %v5375_v53 = vadd.f32 %v5374_v27, %v10686_v11  ;;  %5055 = vmatmul.mubr.f32.gmra.mrb[144].mxu0 %v4778_v42  ;;  %v5376_v8 = vpop.f32.mrb[55].mxu1  ;;  %5583 = vmatmul.mubr.f32.gmra.mrb[124].mxu1 %v4866_v10  ;;  %v4781_v19 = vmax.f32 %v4187_v36, 0.0  ;;  %v4783_v27 = vmax.f32 %v4197_v26, 0.0 }
 0x513   : > { %v6229_v31 = vmax.f32 %v6228_v39, %v5896_v32  ;;  %v5377_v54 = vadd.f32 %v5376_v8, %v10689_v35  ;;  %5060 = vmatprep.mubr.f32.mxu0 %v11891_v18  ;;  %5588 = vmatprep.mubr.f32.mxu1 %v11891_v18  ;;  %v4222_v26 = vadd.f32 %v10835_v38, %v10019_v43 }
 0x514   : > { %v5897_v44 = vmax.f32 %v5375_v53, 0.0 }
 0x515   : > { %v5898_v50 = vmax.f32 %v5377_v54, 0.0  ;;  %v4788_v43 = vmax.f32 %v4222_v26, 0.0  ;;  %v4247_v26 = vadd.f32 %v10835_v38, %v10059_v29 }
 0x516   : > { %v6217_v9 = vmax.f32 %v6216_v57, %v5897_v44  ;;  %5061 = vmatmul.mubr.f32.gmra.mrb[146].mxu0 %v4779_v60  ;;  %5589 = vmatmul.mubr.f32.gmra.mrb[126].mxu1 %v4867_v48  ;;  %v4202_v57 = vadd.f32 %v10835_v38, %v9999_v21 }
 0x517   : > { %v6230_v6 = vmax.f32 %v6229_v31, %v5898_v50  ;;  %5066 = vmatprep.mubr.f32.mxu0 %v11891_v18  ;;  %5594 = vmatprep.mubr.f32.mxu1 %v11891_v18 }
 0x518   : > { %v4784_v48 = vmax.f32 %v4202_v57, 0.0 }
 0x519   : > { %v7385_v7 = vpop.f32.mrb[98].mxu0 }
 0x51a   : > { %v4621_v28 = vpop.f32.mrb[99].mxu0  ;;  %5067 = vmatmul.mubr.f32.gmra.mrb[148].mxu0 %v4780_v61  ;;  %v5380_v51 = vpop.f32.mrb[56].mxu1  ;;  %v4627_v24 = vadd.f32 %v10835_v38, %v7385_v7  ;;  %v4785_v7 = vmax.f32 %v4207_v63, 0.0 }
 0x51b   : > { %v4622_v16 = vadd.f32 %v10835_v38, %v4621_v28  ;;  %v5381_v56 = vadd.f32 %v5380_v51, %v10686_v11  ;;  %v5382_v58 = vpop.f32.mrb[57].mxu1  ;;  %5072 = vmatprep.mubr.f32.mxu0 %v11891_v18 }
 0x51c   : > { %v5383_v22 = vadd.f32 %v5382_v58, %v10689_v35  ;;  %v4869_v33 = vmax.f32 %v4627_v24, 0.0  ;;  %v4217_v24 = vadd.f32 %v10835_v38, %v10008_v62 }
 0x51d   : > { %v4868_v39 = vmax.f32 %v4622_v16, 0.0  ;;  %v5899_v45 = vmax.f32 %v5381_v56, 0.0 }
 0x51e   : > { %v5900_v49 = vmax.f32 %v5383_v22, 0.0  ;;  %5073 = vmatmul.mubr.f32.gmra.mrb[150].mxu0 %v4781_v19  ;;  %v5386_v14 = vpop.f32.mrb[58].mxu1 }
 0x51f   : > { %v6218_v37 = vmax.f32 %v6217_v9, %v5899_v45  ;;  %v5387_v4 = vadd.f32 %v5386_v14, %v10686_v11  ;;  %v5388_v2 = vpop.f32.mrb[59].mxu1  ;;  %5595 = vmatmul.mubr.f32.gmra.mrb[128].mxu1 %v4868_v39  ;;  %5078 = vmatprep.mubr.f32.mxu0 %v11891_v18  ;;  %v4786_v39 = vmax.f32 %v4212_v23, 0.0 }
 0x520   : > { %v6231_v0 = vmax.f32 %v6230_v6, %v5900_v49  ;;  %v5389_v42 = vadd.f32 %v5388_v2, %v10689_v35  ;;  %5600 = vmatprep.mubr.f32.mxu1 %v11891_v18  ;;  %v4787_v2 = vmax.f32 %v4217_v24, 0.0 }
 0x521   : > { %v5901_v10 = vmax.f32 %v5387_v4, 0.0 }
 0x522   : > { %v5902_v40 = vmax.f32 %v5389_v42, 0.0  ;;  %5079 = vmatmul.mubr.f32.gmra.mrb[152].mxu0 %v4782_v41 }
 0x523   : > { %v10922_v32 = vmax.f32 %v6218_v37, %v5901_v10  ;;  %5601 = vmatmul.mubr.f32.gmra.mrb[130].mxu1 %v4869_v33  ;;  %5084 = vmatprep.mubr.f32.mxu0 %v11891_v18 }
 0x524   : > { %v10927_v55 = vmax.f32 %v6231_v0, %v5902_v40  ;;  %v7388_v53 = vpop.f32.mrb[100].mxu0  ;;  %5606 = vmatprep.mubr.f32.mxu1 %v11891_v18 }
 0x525   : > { %v4631_v8 = vpop.f32.mrb[101].mxu0  ;;  %v5392_v31 = vpop.f32.mrb[60].mxu1  ;;  %v4637_v44 = vadd.f32 %v10835_v38, %v7388_v53  ;;  %v4227_v53 = vadd.f32 %v10835_v38, %v10016_v47 }
 0x526   : > { %v4632_v54 = vadd.f32 %v10835_v38, %v4631_v8  ;;  %5085 = vmatmul.mubr.f32.gmra.mrb[154].mxu0 %v4783_v27  ;;  %v5394_v60 = vpop.f32.mrb[61].mxu1  ;;  %v5393_v50 = vadd.f32 %v5392_v31, %v10686_v11 }
 0x527   : > { %5090 = vmatprep.mubr.f32.mxu0 %v11891_v18  ;;  %v5395_v9 = vadd.f32 %v5394_v60, %v10689_v35  ;;  %v4871_v51 = vmax.f32 %v4637_v44, 0.0  ;;  %v4789_v44 = vmax.f32 %v4227_v53, 0.0 }
 0x528   : > { %v4870_v21 = vmax.f32 %v4632_v54, 0.0  ;;  %v5903_v16 = vmax.f32 %v5393_v50, 0.0 }
 0x529   : > { %v5398_v6 = vpop.f32.mrb[62].mxu1  ;;  %v5904_v58 = vmax.f32 %v5395_v9, 0.0 }
 0x52a   : > { %v5399_v36 = vadd.f32 %v5398_v6, %v10686_v11  ;;  %5091 = vmatmul.mubr.f32.gmra.mrb[156].mxu0 %v4784_v48  ;;  %v5400_v61 = vpop.f32.mrb[63].mxu1  ;;  %5607 = vmatmul.mubr.f32.gmra.mrb[132].mxu1 %v4870_v21  ;;  %v4232_v21 = vadd.f32 %v10835_v38, %v10045_v34 }
 0x52b   : > { %v5401_v28 = vadd.f32 %v5400_v61, %v10689_v35  ;;  %5096 = vmatprep.mubr.f32.mxu0 %v11891_v18  ;;  %5612 = vmatprep.mubr.f32.mxu1 %v11891_v18 }
 0x52c   : > { %v5905_v56 = vmax.f32 %v5399_v36, 0.0  ;;  %v4790_v34 = vmax.f32 %v4232_v21, 0.0 }
 0x52d   : > { %v5906_v19 = vmax.f32 %v5401_v28, 0.0  ;;  %v4237_v28 = vadd.f32 %v10835_v38, %v10037_v12 }
 0x52e   : > { %v6239_v15 = vmax.f32 %v5903_v16, %v5905_v56  ;;  %5097 = vmatmul.mubr.f32.gmra.mrb[158].mxu0 %v4785_v7  ;;  %5613 = vmatmul.mubr.f32.gmra.mrb[134].mxu1 %v4871_v51 }
 0x52f   : > { %v6252_v22 = vmax.f32 %v5904_v58, %v5906_v19  ;;  %5102 = vmatprep.mubr.f32.mxu0 %v11891_v18  ;;  %5618 = vmatprep.mubr.f32.mxu1 %v11891_v18 }
 0x531   : > { %v7391_v45 = vpop.f32.mrb[102].mxu0 }
 0x532   : > { %v4641_v49 = vpop.f32.mrb[103].mxu0  ;;  %5103 = vmatmul.mubr.f32.gmra.mrb[160].mxu0 %v4786_v39  ;;  %v5404_v20 = vpop.f32.mrb[64].mxu1  ;;  %v4647_v62 = vadd.f32 %v10835_v38, %v7391_v45  ;;  %v4791_v45 = vmax.f32 %v4237_v28, 0.0 }
 0x533   : > { %v4642_v14 = vadd.f32 %v10835_v38, %v4641_v49  ;;  %v5405_v37 = vadd.f32 %v5404_v20, %v10686_v11  ;;  %v5406_v4 = vpop.f32.mrb[65].mxu1  ;;  %5108 = vmatprep.mubr.f32.mxu0 %v11891_v18  ;;  %v4242_v49 = vadd.f32 %v10835_v38, %v10062_v52 }
 0x534   : > { %v5407_v41 = vadd.f32 %v5406_v4, %v10689_v35  ;;  %v4873_v54 = vmax.f32 %v4647_v62, 0.0 }
 0x535   : > { %v4872_v0 = vmax.f32 %v4642_v14, 0.0  ;;  %v5907_v42 = vmax.f32 %v5405_v37, 0.0 }
 0x536   : > { %v5908_v33 = vmax.f32 %v5407_v41, 0.0  ;;  %5109 = vmatmul.mubr.f32.gmra.mrb[162].mxu0 %v4787_v2  ;;  %v5410_v10 = vpop.f32.mrb[66].mxu1  ;;  %v4792_v41 = vmax.f32 %v4242_v49, 0.0 }
 0x537   : > { %v6240_v40 = vmax.f32 %v6239_v15, %v5907_v42  ;;  %v5411_v27 = vadd.f32 %v5410_v10, %v10686_v11  ;;  %v5412_v57 = vpop.f32.mrb[67].mxu1  ;;  %5619 = vmatmul.mubr.f32.gmra.mrb[136].mxu1 %v4872_v0  ;;  %5114 = vmatprep.mubr.f32.mxu0 %v11891_v18 }
 0x538   : > { %v6253_v8 = vmax.f32 %v6252_v22, %v5908_v33  ;;  %v5413_v31 = vadd.f32 %v5412_v57, %v10689_v35  ;;  %5624 = vmatprep.mubr.f32.mxu1 %v11891_v18 }
 0x539   : > { %v5909_v60 = vmax.f32 %v5411_v27, 0.0  ;;  %v4252_v27 = vadd.f32 %v10835_v38, %v10087_v17 }
 0x53a   : > { %v5910_v63 = vmax.f32 %v5413_v31, 0.0  ;;  %5115 = vmatmul.mubr.f32.gmra.mrb[164].mxu0 %v4788_v43 }
 0x53b   : > { %v6241_v48 = vmax.f32 %v6240_v40, %v5909_v60  ;;  %5625 = vmatmul.mubr.f32.gmra.mrb[138].mxu1 %v4873_v54  ;;  %5120 = vmatprep.mubr.f32.mxu0 %v11891_v18  ;;  %v4793_v40 = vmax.f32 %v4247_v26, 0.0  ;;  %v4794_v17 = vmax.f32 %v4252_v27, 0.0 }
 0x53c   : > { %v6254_v50 = vmax.f32 %v6253_v8, %v5910_v63  ;;  %v7394_v47 = vpop.f32.mrb[104].mxu0  ;;  %5630 = vmatprep.mubr.f32.mxu1 %v11891_v18 }
 0x53d   : > { %v4651_v9 = vpop.f32.mrb[105].mxu0  ;;  %v5416_v6 = vpop.f32.mrb[68].mxu1  ;;  %v4657_v51 = vadd.f32 %v10835_v38, %v7394_v47 }
 0x53e   : > { %v4652_v36 = vadd.f32 %v10835_v38, %v4651_v9  ;;  %v5417_v61 = vadd.f32 %v5416_v6, %v10686_v11  ;;  %5121 = vmatmul.mubr.f32.gmra.mrb[166].mxu0 %v4789_v44  ;;  %v5418_v7 = vpop.f32.mrb[69].mxu1 }
 0x53f   : > { %v5419_v23 = vadd.f32 %v5418_v7, %v10689_v35  ;;  %5126 = vmatprep.mubr.f32.mxu0 %v11891_v18  ;;  %v4875_v20 = vmax.f32 %v4657_v51, 0.0  ;;  %v11943_v7 = vld [vmem:[#allocation12_spill] sm:$0xff] }
 0x540   : > { %v4874_v16 = vmax.f32 %v4652_v36, 0.0  ;;  %v5911_v56 = vmax.f32 %v5417_v61, 0.0  ;;  %v4262_v28 = vadd.f32 %v10835_v38, %v11943_v7 }
 0x541   : > { %v5912_v58 = vmax.f32 %v5419_v23, 0.0  ;;  %v5422_v19 = vpop.f32.mrb[70].mxu1 }
 0x542   : > { %v6242_v15 = vmax.f32 %v6241_v48, %v5911_v56  ;;  %v5423_v22 = vadd.f32 %v5422_v19, %v10686_v11  ;;  %5127 = vmatmul.mubr.f32.gmra.mrb[168].mxu0 %v4790_v34  ;;  %v5424_v24 = vpop.f32.mrb[71].mxu1  ;;  %5631 = vmatmul.mubr.f32.gmra.mrb[140].mxu1 %v4874_v16  ;;  %v11942_v48 = vld [vmem:[#allocation18_spill] sm:$0xff]  ;;  %v11944_v19 = vld [vmem:[#allocation13_spill] sm:$0xff] }
 0x543   : > { %v6255_v39 = vmax.f32 %v6254_v50, %v5912_v58  ;;  %v5425_v12 = vadd.f32 %v5424_v24, %v10689_v35  ;;  %5132 = vmatprep.mubr.f32.mxu0 %v11891_v18  ;;  %5636 = vmatprep.mubr.f32.mxu1 %v11891_v18  ;;  %v4257_v44 = vadd.f32 %v10835_v38, %v11942_v48 }
 0x544   : > { %v5913_v14 = vmax.f32 %v5423_v22, 0.0  ;;  %v4796_v22 = vmax.f32 %v4262_v28, 0.0  ;;  %v11948_v28 = vld [vmem:[#allocation20_spill] sm:$0xff] }
 0x545   : > { %v5914_v37 = vmax.f32 %v5425_v12, 0.0  ;;  %v4795_v61 = vmax.f32 %v4257_v44, 0.0 }
 0x546   : > { %v6243_v4 = vmax.f32 %v6242_v15, %v5913_v14  ;;  %5133 = vmatmul.mubr.f32.gmra.mrb[170].mxu0 %v4791_v45  ;;  %5637 = vmatmul.mubr.f32.gmra.mrb[142].mxu1 %v4875_v20  ;;  %v4267_v15 = vadd.f32 %v10835_v38, %v11944_v19 }
 0x547   : > { %v6256_v2 = vmax.f32 %v6255_v39, %v5914_v37  ;;  %5138 = vmatprep.mubr.f32.mxu0 %v11891_v18  ;;  %5642 = vmatprep.mubr.f32.mxu1 %v11891_v18 }
 0x548   : > { %v4797_v37 = vmax.f32 %v4267_v15, 0.0 }
 0x549   : > { %v7397_v62 = vpop.f32.mrb[106].mxu0 }
 0x54a   : > { %v4661_v0 = vpop.f32.mrb[107].mxu0  ;;  %5139 = vmatmul.mubr.f32.gmra.mrb[172].mxu0 %v4792_v41  ;;  %v5428_v42 = vpop.f32.mrb[72].mxu1  ;;  %v4667_v29 = vadd.f32 %v10835_v38, %v7397_v62 }
 0x54b   : > { %v4662_v52 = vadd.f32 %v10835_v38, %v4661_v0  ;;  %v5429_v33 = vadd.f32 %v5428_v42, %v10686_v11  ;;  %v5430_v10 = vpop.f32.mrb[73].mxu1  ;;  %5144 = vmatprep.mubr.f32.mxu0 %v11891_v18 }
 0x54c   : > { %v5431_v57 = vadd.f32 %v5430_v10, %v10689_v35  ;;  %v4877_v47 = vmax.f32 %v4667_v29, 0.0 }
 0x54d   : > { %v4876_v53 = vmax.f32 %v4662_v52, 0.0  ;;  %v5915_v43 = vmax.f32 %v5429_v33, 0.0 }
 0x54e   : > { %v5916_v8 = vmax.f32 %v5431_v57, 0.0  ;;  %5145 = vmatmul.mubr.f32.gmra.mrb[174].mxu0 %v4793_v40  ;;  %v5434_v31 = vpop.f32.mrb[74].mxu1  ;;  %v11946_v40 = vld [vmem:[#allocation16_spill] sm:$0xff] }
 0x54f   : > { %v6244_v54 = vmax.f32 %v6243_v4, %v5915_v43  ;;  %v5435_v60 = vadd.f32 %v5434_v31, %v10686_v11  ;;  %v5436_v63 = vpop.f32.mrb[75].mxu1  ;;  %5643 = vmatmul.mubr.f32.gmra.mrb[144].mxu1 %v4876_v53  ;;  %5150 = vmatprep.mubr.f32.mxu0 %v11891_v18  ;;  %v4277_v27 = vadd.f32 %v10835_v38, %v11946_v40 }
 0x550   : > { %v6257_v21 = vmax.f32 %v6256_v2, %v5916_v8  ;;  %v5437_v50 = vadd.f32 %v5436_v63, %v10689_v35  ;;  %5648 = vmatprep.mubr.f32.mxu1 %v11891_v18  ;;  %v11945_v2 = vld [vmem:[#allocation17_spill] sm:$0xff]  ;;  %v11947_v63 = vld [vmem:[#allocation22_spill] sm:$0xff] }
 0x551   : > { %v5917_v9 = vmax.f32 %v5435_v60, 0.0  ;;  %v4272_v26 = vadd.f32 %v10835_v38, %v11945_v2  ;;  %v4799_v60 = vmax.f32 %v4277_v27, 0.0  ;;  %v4282_v48 = vadd.f32 %v10835_v38, %v11947_v63 }
 0x552   : > { %v5918_v6 = vmax.f32 %v5437_v50, 0.0  ;;  %5151 = vmatmul.mubr.f32.gmra.mrb[176].mxu0 %v4794_v17 }
 0x553   : > { %v10994_v36 = vmax.f32 %v6244_v54, %v5917_v9  ;;  %5649 = vmatmul.mubr.f32.gmra.mrb[146].mxu1 %v4877_v47  ;;  %5156 = vmatprep.mubr.f32.mxu0 %v11891_v18  ;;  %v4798_v57 = vmax.f32 %v4272_v26, 0.0  ;;  %v11950_v26 = vld [vmem:[#allocation14_spill] sm:$0xff] }
 0x554   : > { %v10999_v23 = vmax.f32 %v6257_v21, %v5918_v6  ;;  %v7400_v34 = vpop.f32.mrb[108].mxu0  ;;  %5654 = vmatprep.mubr.f32.mxu1 %v11891_v18 }
 0x555   : > { %v4671_v51 = vpop.f32.mrb[109].mxu0  ;;  %v5440_v16 = vpop.f32.mrb[76].mxu1  ;;  %v4677_v24 = vadd.f32 %v10835_v38, %v7400_v34  ;;  %v4287_v34 = vadd.f32 %v10835_v38, %v11948_v28 }
 0x556   : > { %v4672_v56 = vadd.f32 %v10835_v38, %v4671_v51  ;;  %5157 = vmatmul.mubr.f32.gmra.mrb[178].mxu0 %v4795_v61  ;;  %v5442_v58 = vpop.f32.mrb[77].mxu1  ;;  %v5441_v12 = vadd.f32 %v5440_v16, %v10686_v11  ;;  %v4800_v51 = vmax.f32 %v4282_v48, 0.0 }
 0x557   : > { %5162 = vmatprep.mubr.f32.mxu0 %v11891_v18  ;;  %v5443_v45 = vadd.f32 %v5442_v58, %v10689_v35  ;;  %v4879_v41 = vmax.f32 %v4677_v24, 0.0  ;;  %v4801_v24 = vmax.f32 %v4287_v34, 0.0 }
 0x558   : > { %v4878_v39 = vmax.f32 %v4672_v56, 0.0  ;;  %v5919_v62 = vmax.f32 %v5441_v12, 0.0 }
 0x559   : > { %v5446_v49 = vpop.f32.mrb[78].mxu1  ;;  %v5920_v42 = vmax.f32 %v5443_v45, 0.0 }
 0x55a   : > { %v5447_v20 = vadd.f32 %v5446_v49, %v10686_v11  ;;  %5163 = vmatmul.mubr.f32.gmra.mrb[180].mxu0 %v4796_v22  ;;  %v5448_v14 = vpop.f32.mrb[79].mxu1  ;;  %5655 = vmatmul.mubr.f32.gmra.mrb[148].mxu1 %v4878_v39  ;;  %v11949_v39 = vld [vmem:[#allocation19_spill] sm:$0xff] }
 0x55b   : > { %v5449_v4 = vadd.f32 %v5448_v14, %v10689_v35  ;;  %5168 = vmatprep.mubr.f32.mxu0 %v11891_v18  ;;  %5660 = vmatprep.mubr.f32.mxu1 %v11891_v18  ;;  %v4292_v12 = vadd.f32 %v10835_v38, %v11949_v39 }
 0x55c   : > { %v5921_v0 = vmax.f32 %v5447_v20, 0.0 }
 0x55d   : > { %v5922_v52 = vmax.f32 %v5449_v4, 0.0 }
 0x55e   : > { %v6265_v33 = vmax.f32 %v5919_v62, %v5921_v0  ;;  %5169 = vmatmul.mubr.f32.gmra.mrb[182].mxu0 %v4797_v37  ;;  %5661 = vmatmul.mubr.f32.gmra.mrb[150].mxu1 %v4879_v41  ;;  %v4297_v41 = vadd.f32 %v10835_v38, %v11950_v26  ;;  %v4802_v0 = vmax.f32 %v4292_v12, 0.0 }
 0x55f   : > { %v6278_v10 = vmax.f32 %v5920_v42, %v5922_v52  ;;  %5174 = vmatprep.mubr.f32.mxu0 %v11891_v18  ;;  %5666 = vmatprep.mubr.f32.mxu1 %v11891_v18 }
 0x561   : > { %v7403_v29 = vpop.f32.mrb[110].mxu0 }
 0x562   : > { %v4681_v53 = vpop.f32.mrb[111].mxu0  ;;  %5175 = vmatmul.mubr.f32.gmra.mrb[184].mxu0 %v4798_v57  ;;  %v5452_v43 = vpop.f32.mrb[80].mxu1  ;;  %v4687_v17 = vadd.f32 %v10835_v38, %v7403_v29 }
 0x563   : > { %v4682_v8 = vadd.f32 %v10835_v38, %v4681_v53  ;;  %v5453_v31 = vadd.f32 %v5452_v43, %v10686_v11  ;;  %v5454_v54 = vpop.f32.mrb[81].mxu1  ;;  %5180 = vmatprep.mubr.f32.mxu0 %v11891_v18 }
 0x564   : > { %v5455_v44 = vadd.f32 %v5454_v54, %v10689_v35  ;;  %v4881_v58 = vmax.f32 %v4687_v17, 0.0 }
 0x565   : > { %v4880_v21 = vmax.f32 %v4682_v8, 0.0  ;;  %v5923_v50 = vmax.f32 %v5453_v31, 0.0  ;;  %v4803_v8 = vmax.f32 %v4297_v41, 0.0 }
 0x566   : > { %v5924_v47 = vmax.f32 %v5455_v44, 0.0  ;;  %5181 = vmatmul.mubr.f32.gmra.mrb[186].mxu0 %v4799_v60  ;;  %v5458_v9 = vpop.f32.mrb[82].mxu1 }
 0x567   : > { %v6266_v6 = vmax.f32 %v6265_v33, %v5923_v50  ;;  %v5459_v61 = vadd.f32 %v5458_v9, %v10686_v11  ;;  %v5460_v7 = vpop.f32.mrb[83].mxu1  ;;  %5667 = vmatmul.mubr.f32.gmra.mrb[152].mxu1 %v4880_v21  ;;  %5186 = vmatprep.mubr.f32.mxu0 %v11891_v18  ;;  %v6246_v50 = vrot.slane %v10994_v36, 4 }
 0x568   : > { %v6279_v16 = vmax.f32 %v6278_v10, %v5924_v47  ;;  %v5461_v56 = vadd.f32 %v5460_v7, %v10689_v35  ;;  %5672 = vmatprep.mubr.f32.mxu1 %v11891_v18  ;;  %v6259_v47 = vrot.slane %v10999_v23, 4 }
 0x569   : > { %v5925_v19 = vmax.f32 %v5459_v61, 0.0 }
 0x56a   : > { %v5926_v15 = vmax.f32 %v5461_v56, 0.0  ;;  %5187 = vmatmul.mubr.f32.gmra.mrb[188].mxu0 %v4800_v51 }
 0x56b   : > { %v6267_v22 = vmax.f32 %v6266_v6, %v5925_v19  ;;  %5673 = vmatmul.mubr.f32.gmra.mrb[154].mxu1 %v4881_v58  ;;  %5192 = vmatprep.mubr.f32.mxu0 %v11891_v18  ;;  %v6247_v58 = vmax.f32 %v10994_v36, %v6246_v50  ;;  %v6260_v19 = vmax.f32 %v10999_v23, %v6259_v47 }
 0x56c   : > { %v6280_v45 = vmax.f32 %v6279_v16, %v5926_v15  ;;  %v7406_v49 = vpop.f32.mrb[112].mxu0  ;;  %5678 = vmatprep.mubr.f32.mxu1 %v11891_v18 }
 0x56d   : > { %v4691_v20 = vpop.f32.mrb[113].mxu0  ;;  %v5464_v14 = vpop.f32.mrb[84].mxu1  ;;  %v4697_v42 = vadd.f32 %v10835_v38, %v7406_v49 }
 0x56e   : > { %v4692_v37 = vadd.f32 %v10835_v38, %v4691_v20  ;;  %v5465_v4 = vadd.f32 %v5464_v14, %v10686_v11  ;;  %5193 = vmatmul.mubr.f32.gmra.mrb[190].mxu0 %v4801_v24  ;;  %v5466_v2 = vpop.f32.mrb[85].mxu1  ;;  %v6248_v14 = vrot.slane %v6247_v58, 2 }
 0x56f   : > { %v5467_v62 = vadd.f32 %v5466_v2, %v10689_v35  ;;  %5198 = vmatprep.mubr.f32.mxu0 %v11891_v18  ;;  %v4883_v31 = vmax.f32 %v4697_v42, 0.0 }
 0x570   : > { %v4882_v52 = vmax.f32 %v4692_v37, 0.0  ;;  %v5927_v33 = vmax.f32 %v5465_v4, 0.0  ;;  %v6261_v37 = vrot.slane %v6260_v19, 2 }
 0x571   : > { %v5928_v10 = vmax.f32 %v5467_v62, 0.0  ;;  %v5470_v40 = vpop.f32.mrb[86].mxu1 }
 0x572   : > { %v6268_v27 = vmax.f32 %v6267_v22, %v5927_v33  ;;  %v5471_v57 = vadd.f32 %v5470_v40, %v10686_v11  ;;  %5199 = vmatmul.mubr.f32.gmra.mrb[192].mxu0 %v4802_v0  ;;  %v5472_v29 = vpop.f32.mrb[87].mxu1  ;;  %5679 = vmatmul.mubr.f32.gmra.mrb[156].mxu1 %v4882_v52  ;;  %v6249_v52 = vmax.f32 %v6247_v58, %v6248_v14 }
 0x573   : > { %v6281_v53 = vmax.f32 %v6280_v45, %v5928_v10  ;;  %v5473_v43 = vadd.f32 %v5472_v29, %v10689_v35  ;;  %5204 = vmatprep.mubr.f32.mxu0 %v11891_v18  ;;  %5684 = vmatprep.mubr.f32.mxu1 %v11891_v18  ;;  %v6262_v33 = vmax.f32 %v6260_v19, %v6261_v37 }
 0x574   : > { %v5929_v54 = vmax.f32 %v5471_v57, 0.0 }
 0x575   : > { %v5930_v60 = vmax.f32 %v5473_v43, 0.0 }
 0x576   : > { %v6269_v63 = vmax.f32 %v6268_v27, %v5929_v54  ;;  %5205 = vmatmul.mubr.f32.gmra.mrb[194].mxu0 %v4803_v8  ;;  %5685 = vmatmul.mubr.f32.gmra.mrb[158].mxu1 %v4883_v31 }
 0x577   : > { %v6282_v48 = vmax.f32 %v6281_v53, %v5930_v60  ;;  %5690 = vmatprep.mubr.f32.mxu1 %v11891_v18 }
 0x579   : > { %v7409_v44 = vpop.f32.mrb[114].mxu0 }
 0x57a   : > { %v4701_v17 = vpop.f32.mrb[115].mxu0  ;;  %v5476_v21 = vpop.f32.mrb[88].mxu1  ;;  %v4707_v28 = vadd.f32 %v10835_v38, %v7409_v44 }
 0x57b   : > { %v4702_v9 = vadd.f32 %v10835_v38, %v4701_v17  ;;  %v5477_v6 = vadd.f32 %v5476_v21, %v10686_v11  ;;  %v5478_v61 = vpop.f32.mrb[89].mxu1 }
 0x57c   : > { %v5479_v7 = vadd.f32 %v5478_v61, %v10689_v35  ;;  %v4885_v45 = vmax.f32 %v4707_v28, 0.0 }
 0x57d   : > { %v4884_v34 = vmax.f32 %v4702_v9, 0.0  ;;  %v5931_v51 = vmax.f32 %v5477_v6, 0.0 }
 0x57e   : > { %v5932_v16 = vmax.f32 %v5479_v7, 0.0  ;;  %v5482_v56 = vpop.f32.mrb[90].mxu1 }
 0x57f   : > { %v6270_v15 = vmax.f32 %v6269_v63, %v5931_v51  ;;  %v5483_v22 = vadd.f32 %v5482_v56, %v10686_v11  ;;  %v5484_v24 = vpop.f32.mrb[91].mxu1  ;;  %5691 = vmatmul.mubr.f32.gmra.mrb[160].mxu1 %v4884_v34  ;;  %v6250_v63 = vrot.slane %v6249_v52, 1 }
 0x580   : > { %v6283_v39 = vmax.f32 %v6282_v48, %v5932_v16  ;;  %v5485_v12 = vadd.f32 %v5484_v24, %v10689_v35  ;;  %5696 = vmatprep.mubr.f32.mxu1 %v11891_v18  ;;  %v6263_v48 = vrot.slane %v6262_v33, 1 }
 0x581   : > { %v5933_v49 = vmax.f32 %v5483_v22, 0.0  ;;  %v6251_v34 = vmax.f32 %v6249_v52, %v6250_v63 }
 0x582   : > { %v5934_v20 = vmax.f32 %v5485_v12, 0.0  ;;  %v6264_v56 = vmax.f32 %v6262_v33, %v6263_v48  ;;  %v11077_v12 = vld [vmem:[%s11662_s4] ss:$0 sm:$0xff] }
 0x583   : > { %v6271_v4 = vmax.f32 %v6270_v15, %v5933_v49  ;;  %5697 = vmatmul.mubr.f32.gmra.mrb[162].mxu1 %v4885_v45 }
 0x584   : > { %v6284_v36 = vmax.f32 %v6283_v39, %v5934_v20  ;;  %v7412_v2 = vpop.f32.mrb[116].mxu0  ;;  %5702 = vmatprep.mubr.f32.mxu1 %v11891_v18 }
 0x585   : > { %v6272_v23 = vrot.slane %v6271_v4, 4  ;;  %v4711_v26 = vpop.f32.mrb[117].mxu0  ;;  %v5488_v41 = vpop.f32.mrb[92].mxu1  ;;  %v4717_v27 = vadd.f32 %v10835_v38, %v7412_v2 }
 0x586   : > { %v6285_v62 = vrot.slane %v6284_v36, 4  ;;  %v4712_v0 = vadd.f32 %v10835_v38, %v4711_v26  ;;  %v5490_v42 = vpop.f32.mrb[93].mxu1  ;;  %v5489_v29 = vadd.f32 %v5488_v41, %v10686_v11 }
 0x587   : > { %v6273_v10 = vmax.f32 %v6271_v4, %v6272_v23  ;;  %v5491_v43 = vadd.f32 %v5490_v42, %v10689_v35  ;;  %v4887_v21 = vmax.f32 %v4717_v27, 0.0 }
 0x588   : > { %v6286_v40 = vmax.f32 %v6284_v36, %v6285_v62  ;;  %v4886_v57 = vmax.f32 %v4712_v0, 0.0  ;;  %v5935_v50 = vmax.f32 %v5489_v29, 0.0 }
 0x589   : > { %v6274_v53 = vrot.slane %v6273_v10, 2  ;;  %v5494_v8 = vpop.f32.mrb[94].mxu1  ;;  %v5936_v6 = vmax.f32 %v5491_v43, 0.0 }
 0x58a   : > { %v6287_v31 = vrot.slane %v6286_v40, 2  ;;  %v5495_v54 = vadd.f32 %v5494_v8, %v10686_v11  ;;  %v5496_v60 = vpop.f32.mrb[95].mxu1  ;;  %5703 = vmatmul.mubr.f32.gmra.mrb[164].mxu1 %v4886_v57 }
 0x58b   : > { %v6275_v44 = vmax.f32 %v6273_v10, %v6274_v53  ;;  %v5497_v17 = vadd.f32 %v5496_v60, %v10689_v35  ;;  %5708 = vmatprep.mubr.f32.mxu1 %v11891_v18 }
 0x58c   : > { %v6288_v38 = vmax.f32 %v6286_v40, %v6287_v31  ;;  %v5937_v47 = vmax.f32 %v5495_v54, 0.0 }
 0x58d   : > { %v6276_v9 = vrot.slane %v6275_v44, 1  ;;  %v5938_v61 = vmax.f32 %v5497_v17, 0.0 }
 0x58e   : > { %v6289_v7 = vrot.slane %v6288_v38, 1  ;;  %v6291_v28 = vmax.f32 %v5935_v50, %v5937_v47  ;;  %5709 = vmatmul.mubr.f32.gmra.mrb[166].mxu1 %v4887_v21 }
 0x58f   : > { %v6277_v51 = vmax.f32 %v6275_v44, %v6276_v9  ;;  %v6304_v16 = vmax.f32 %v5936_v6, %v5938_v61  ;;  %5714 = vmatprep.mubr.f32.mxu1 %v11891_v18 }
 0x590   : > { %v6290_v58 = vmax.f32 %v6288_v38, %v6289_v7 }
 0x591   : > { %v11069_v19 = vsel %vm6483_vm1, %v6277_v51, %v6251_v34  ;;  %v7415_v15 = vpop.f32.mrb[118].mxu0 }
 0x592   : > { %v11072_v22 = vsel %vm6483_vm1, %v6290_v58, %v6264_v56  ;;  %v4721_v24 = vpop.f32.mrb[119].mxu0  ;;  %v5500_v39 = vpop.f32.mrb[96].mxu1  ;;  %v4727_v37 = vadd.f32 %v11077_v12, %v7415_v15 }
 0x593   : > { %v4722_v45 = vadd.f32 %v11077_v12, %v4721_v24  ;;  %v5501_v49 = vadd.f32 %v5500_v39, %v10686_v11  ;;  %v5502_v20 = vpop.f32.mrb[97].mxu1 }
 0x594   : > { %v5503_v14 = vadd.f32 %v5502_v20, %v10689_v35  ;;  %v4889_v52 = vmax.f32 %v4727_v37, 0.0 }
 0x595   : > { %v4888_v4 = vmax.f32 %v4722_v45, 0.0  ;;  %v5939_v36 = vmax.f32 %v5501_v49, 0.0 }
 0x596   : > { %v5940_v2 = vmax.f32 %v5503_v14, 0.0  ;;  %v5506_v23 = vpop.f32.mrb[98].mxu1 }
 0x597   : > { %v6292_v26 = vmax.f32 %v6291_v28, %v5939_v36  ;;  %v5507_v41 = vadd.f32 %v5506_v23, %v10686_v11  ;;  %v5508_v62 = vpop.f32.mrb[99].mxu1  ;;  %5715 = vmatmul.mubr.f32.gmra.mrb[168].mxu1 %v4888_v4 }
 0x598   : > { %v6305_v0 = vmax.f32 %v6304_v16, %v5940_v2  ;;  %v5509_v42 = vadd.f32 %v5508_v62, %v10689_v35  ;;  %5720 = vmatprep.mubr.f32.mxu1 %v11891_v18 }
 0x599   : > { %v5941_v33 = vmax.f32 %v5507_v41, 0.0 }
 0x59a   : > { %v5942_v10 = vmax.f32 %v5509_v42, 0.0 }
 0x59b   : > { %v6293_v40 = vmax.f32 %v6292_v26, %v5941_v33  ;;  %5721 = vmatmul.mubr.f32.gmra.mrb[170].mxu1 %v4889_v52 }
 0x59c   : > { %v6306_v27 = vmax.f32 %v6305_v0, %v5942_v10  ;;  %v7418_v57 = vpop.f32.mrb[120].mxu0  ;;  %5726 = vmatprep.mubr.f32.mxu1 %v11891_v18 }
 0x59d   : > { %v4731_v29 = vpop.f32.mrb[121].mxu0  ;;  %v5512_v53 = vpop.f32.mrb[100].mxu1  ;;  %v4737_v60 = vadd.f32 %v11077_v12, %v7418_v57 }
 0x59e   : > { %v4732_v43 = vadd.f32 %v11077_v12, %v4731_v29  ;;  %v5513_v8 = vadd.f32 %v5512_v53, %v10686_v11  ;;  %v5514_v31 = vpop.f32.mrb[101].mxu1 }
 0x59f   : > { %v5515_v54 = vadd.f32 %v5514_v31, %v10689_v35  ;;  %v4891_v6 = vmax.f32 %v4737_v60, 0.0 }
 0x5a0   : > { %v4890_v63 = vmax.f32 %v4732_v43, 0.0  ;;  %v5943_v48 = vmax.f32 %v5513_v8, 0.0 }
 0x5a1   : > { %v5944_v44 = vmax.f32 %v5515_v54, 0.0  ;;  %v5518_v17 = vpop.f32.mrb[102].mxu1 }
 0x5a2   : > { %v6294_v38 = vmax.f32 %v6293_v40, %v5943_v48  ;;  %v5519_v21 = vadd.f32 %v5518_v17, %v10686_v11  ;;  %v5520_v50 = vpop.f32.mrb[103].mxu1  ;;  %5727 = vmatmul.mubr.f32.gmra.mrb[172].mxu1 %v4890_v63 }
 0x5a3   : > { %v6307_v47 = vmax.f32 %v6306_v27, %v5944_v44  ;;  %v5521_v9 = vadd.f32 %v5520_v50, %v10689_v35  ;;  %5732 = vmatprep.mubr.f32.mxu1 %v11891_v18 }
 0x5a4   : > { %v5945_v61 = vmax.f32 %v5519_v21, 0.0 }
 0x5a5   : > { %v5946_v7 = vmax.f32 %v5521_v9, 0.0 }
 0x5a6   : > { %v6295_v28 = vmax.f32 %v6294_v38, %v5945_v61  ;;  %5733 = vmatmul.mubr.f32.gmra.mrb[174].mxu1 %v4891_v6 }
 0x5a7   : > { %v6308_v34 = vmax.f32 %v6307_v47, %v5946_v7  ;;  %5738 = vmatprep.mubr.f32.mxu1 %v11891_v18 }
 0x5a9   : > { %v7421_v51 = vpop.f32.mrb[122].mxu0 }
 0x5aa   : > { %v4741_v16 = vpop.f32.mrb[123].mxu0  ;;  %v5524_v56 = vpop.f32.mrb[104].mxu1  ;;  %v4747_v45 = vadd.f32 %v11077_v12, %v7421_v51 }
 0x5ab   : > { %v4742_v58 = vadd.f32 %v11077_v12, %v4741_v16  ;;  %v5525_v15 = vadd.f32 %v5524_v56, %v10686_v11  ;;  %v5526_v24 = vpop.f32.mrb[105].mxu1 }
 0x5ac   : > { %v5527_v39 = vadd.f32 %v5526_v24, %v10689_v35  ;;  %v4893_v41 = vmax.f32 %v4747_v45, 0.0 }
 0x5ad   : > { %v4892_v49 = vmax.f32 %v4742_v58, 0.0  ;;  %v5947_v20 = vmax.f32 %v5525_v15, 0.0 }
 0x5ae   : > { %v5948_v14 = vmax.f32 %v5527_v39, 0.0  ;;  %v5530_v37 = vpop.f32.mrb[106].mxu1 }
 0x5af   : > { %v6296_v4 = vmax.f32 %v6295_v28, %v5947_v20  ;;  %v5531_v36 = vadd.f32 %v5530_v37, %v10686_v11  ;;  %v5532_v2 = vpop.f32.mrb[107].mxu1  ;;  %5739 = vmatmul.mubr.f32.gmra.mrb[176].mxu1 %v4892_v49 }
 0x5b0   : > { %v6309_v23 = vmax.f32 %v6308_v34, %v5948_v14  ;;  %v5533_v26 = vadd.f32 %v5532_v2, %v10689_v35  ;;  %5744 = vmatprep.mubr.f32.mxu1 %v11891_v18 }
 0x5b1   : > { %v5949_v62 = vmax.f32 %v5531_v36, 0.0 }
 0x5b2   : > { %v5950_v0 = vmax.f32 %v5533_v26, 0.0 }
 0x5b3   : > { %v6297_v42 = vmax.f32 %v6296_v4, %v5949_v62  ;;  %5745 = vmatmul.mubr.f32.gmra.mrb[178].mxu1 %v4893_v41 }
 0x5b4   : > { %v6310_v52 = vmax.f32 %v6309_v23, %v5950_v0  ;;  %v7424_v33 = vpop.f32.mrb[124].mxu0  ;;  %5750 = vmatprep.mubr.f32.mxu1 %v11891_v18 }
 0x5b5   : > { %v6298_v10 = vrot.slane %v6297_v42, 4  ;;  %v4751_v40 = vpop.f32.mrb[125].mxu0  ;;  %v5536_v27 = vpop.f32.mrb[108].mxu1  ;;  %v4757_v31 = vadd.f32 %v11077_v12, %v7424_v33 }
 0x5b6   : > { %v6311_v57 = vrot.slane %v6310_v52, 4  ;;  %v4752_v29 = vadd.f32 %v11077_v12, %v4751_v40  ;;  %v5538_v53 = vpop.f32.mrb[109].mxu1  ;;  %v5537_v60 = vadd.f32 %v5536_v27, %v10686_v11 }
 0x5b7   : > { %v6299_v43 = vmax.f32 %v6297_v42, %v6298_v10  ;;  %v5539_v48 = vadd.f32 %v5538_v53, %v10689_v35  ;;  %v4895_v6 = vmax.f32 %v4757_v31, 0.0 }
 0x5b8   : > { %v6312_v8 = vmax.f32 %v6310_v52, %v6311_v57  ;;  %v4894_v54 = vmax.f32 %v4752_v29, 0.0  ;;  %v5951_v61 = vmax.f32 %v5537_v60, 0.0 }
 0x5b9   : > { %v6300_v63 = vrot.slane %v6299_v43, 2  ;;  %v5542_v44 = vpop.f32.mrb[110].mxu1  ;;  %v5952_v34 = vmax.f32 %v5539_v48, 0.0 }
 0x5ba   : > { %v6313_v17 = vrot.slane %v6312_v8, 2  ;;  %v5543_v38 = vadd.f32 %v5542_v44, %v10686_v11  ;;  %v5544_v21 = vpop.f32.mrb[111].mxu1  ;;  %5751 = vmatmul.mubr.f32.gmra.mrb[180].mxu1 %v4894_v54 }
 0x5bb   : > { %v6301_v50 = vmax.f32 %v6299_v43, %v6300_v63  ;;  %v5545_v47 = vadd.f32 %v5544_v21, %v10689_v35  ;;  %5756 = vmatprep.mubr.f32.mxu1 %v11891_v18 }
 0x5bc   : > { %v6314_v9 = vmax.f32 %v6312_v8, %v6313_v17  ;;  %v5953_v7 = vmax.f32 %v5543_v38, 0.0 }
 0x5bd   : > { %v6302_v28 = vrot.slane %v6301_v50, 1  ;;  %v5954_v51 = vmax.f32 %v5545_v47, 0.0 }
 0x5be   : > { %v6315_v16 = vrot.slane %v6314_v9, 1  ;;  %v6317_v56 = vmax.f32 %v5951_v61, %v5953_v7  ;;  %5757 = vmatmul.mubr.f32.gmra.mrb[182].mxu1 %v4895_v6 }
 0x5bf   : > { %v6303_v58 = vmax.f32 %v6301_v50, %v6302_v28  ;;  %v6330_v15 = vmax.f32 %v5952_v34, %v5954_v51  ;;  %5762 = vmatprep.mubr.f32.mxu1 %v11891_v18 }
 0x5c0   : > { %v6316_v24 = vmax.f32 %v6314_v9, %v6315_v16 }
 0x5c1   : > { %v11113_v39 = vsel %vm6485_vm2, %v6303_v58, %v11069_v19  ;;  %v7427_v45 = vpop.f32.mrb[126].mxu0 }
 0x5c2   : > { %v11117_v49 = vsel %vm6485_vm2, %v6316_v24, %v11072_v22  ;;  %v4761_v20 = vpop.f32.mrb[127].mxu0  ;;  %v5548_v14 = vpop.f32.mrb[112].mxu1  ;;  %v4767_v23 = vadd.f32 %v11077_v12, %v7427_v45 }
 0x5c3   : > { %v4762_v37 = vadd.f32 %v11077_v12, %v4761_v20  ;;  %v5549_v4 = vadd.f32 %v5548_v14, %v10686_v11  ;;  %v5550_v36 = vpop.f32.mrb[113].mxu1 }
 0x5c4   : > { %v5551_v2 = vadd.f32 %v5550_v36, %v10689_v35  ;;  %v4897_v57 = vmax.f32 %v4767_v23, 0.0 }
 0x5c5   : > { %v4896_v26 = vmax.f32 %v4762_v37, 0.0  ;;  %v5955_v41 = vmax.f32 %v5549_v4, 0.0  ;;  %v5008_v19 = vpop.f32.mrb[128].mxu0 }
 0x5c6   : > { %v5956_v62 = vmax.f32 %v5551_v2, 0.0  ;;  %v5010_v0 = vpop.f32.mrb[129].mxu0  ;;  %v5554_v42 = vpop.f32.mrb[114].mxu1  ;;  %v5009_v40 = vadd.f32 %v5008_v19, %v10686_v11 }
 0x5c7   : > { %v6318_v52 = vmax.f32 %v6317_v56, %v5955_v41  ;;  %v5555_v22 = vadd.f32 %v5554_v42, %v10686_v11  ;;  %v5556_v33 = vpop.f32.mrb[115].mxu1  ;;  %5763 = vmatmul.mubr.f32.gmra.mrb[184].mxu1 %v4896_v26  ;;  %v5011_v12 = vadd.f32 %v5010_v0, %v10689_v35 }
 0x5c8   : > { %v6331_v10 = vmax.f32 %v6330_v15, %v5956_v62  ;;  %v5557_v27 = vadd.f32 %v5556_v33, %v10689_v35  ;;  %5768 = vmatprep.mubr.f32.mxu1 %v11891_v18  ;;  %v5775_v63 = vmax.f32 %v5009_v40, 0.0 }
 0x5c9   : > { %v5957_v29 = vmax.f32 %v5555_v22, 0.0  ;;  %v5014_v53 = vpop.f32.mrb[130].mxu0  ;;  %v5776_v17 = vmax.f32 %v5011_v12, 0.0 }
 0x5ca   : > { %v5958_v43 = vmax.f32 %v5557_v27, 0.0  ;;  %v5015_v8 = vadd.f32 %v5014_v53, %v10686_v11  ;;  %v5016_v31 = vpop.f32.mrb[131].mxu0 }
 0x5cb   : > { %v6319_v54 = vmax.f32 %v6318_v52, %v5957_v29  ;;  %v5017_v60 = vadd.f32 %v5016_v31, %v10689_v35  ;;  %5769 = vmatmul.mubr.f32.gmra.mrb[186].mxu1 %v4897_v57 }
 0x5cc   : > { %v6332_v48 = vmax.f32 %v6331_v10, %v5958_v43  ;;  %v5777_v44 = vmax.f32 %v5015_v8, 0.0 }
 0x5cd   : > { %v5778_v38 = vmax.f32 %v5017_v60, 0.0  ;;  %v5020_v21 = vpop.f32.mrb[132].mxu0  ;;  %v5560_v18 = vpop.f32.mrb[116].mxu1 }
 0x5ce   : > { %v6031_v50 = vmax.f32 %v5775_v63, %v5777_v44  ;;  %v5021_v47 = vadd.f32 %v5020_v21, %v10686_v11  ;;  %v5561_v9 = vadd.f32 %v5560_v18, %v10686_v11  ;;  %v5022_v6 = vpop.f32.mrb[133].mxu0  ;;  %v5562_v61 = vpop.f32.mrb[117].mxu1 }
 0x5cf   : > { %v6044_v7 = vmax.f32 %v5776_v17, %v5778_v38  ;;  %v5023_v28 = vadd.f32 %v5022_v6, %v10689_v35  ;;  %v5563_v34 = vadd.f32 %v5562_v61, %v10689_v35 }
 0x5d0   : > { %v5779_v51 = vmax.f32 %v5021_v47, 0.0  ;;  %v5959_v16 = vmax.f32 %v5561_v9, 0.0 }
 0x5d1   : > { %v5780_v56 = vmax.f32 %v5023_v28, 0.0  ;;  %v5960_v58 = vmax.f32 %v5563_v34, 0.0  ;;  %v5026_v15 = vpop.f32.mrb[134].mxu0  ;;  %v5566_v24 = vpop.f32.mrb[118].mxu1 }
 0x5d2   : > { %v6032_v45 = vmax.f32 %v6031_v50, %v5779_v51  ;;  %v6320_v20 = vmax.f32 %v6319_v54, %v5959_v16  ;;  %v5027_v14 = vadd.f32 %v5026_v15, %v10686_v11  ;;  %v5567_v37 = vadd.f32 %v5566_v24, %v10686_v11  ;;  %v5028_v4 = vpop.f32.mrb[135].mxu0  ;;  %v5568_v36 = vpop.f32.mrb[119].mxu1 }
 0x5d3   : > { %v6045_v2 = vmax.f32 %v6044_v7, %v5780_v56  ;;  %v6333_v23 = vmax.f32 %v6332_v48, %v5960_v58  ;;  %v5029_v26 = vadd.f32 %v5028_v4, %v10689_v35  ;;  %v5569_v41 = vadd.f32 %v5568_v36, %v10689_v35 }
 0x5d4   : > { %v5781_v19 = vmax.f32 %v5027_v14, 0.0  ;;  %v5961_v62 = vmax.f32 %v5567_v37, 0.0 }
 0x5d5   : > { %v5782_v0 = vmax.f32 %v5029_v26, 0.0  ;;  %v5962_v42 = vmax.f32 %v5569_v41, 0.0  ;;  %v5032_v52 = vpop.f32.mrb[136].mxu0 }
 0x5d6   : > { %v6033_v22 = vmax.f32 %v6032_v45, %v5781_v19  ;;  %v6321_v33 = vmax.f32 %v6320_v20, %v5961_v62  ;;  %v5033_v10 = vadd.f32 %v5032_v52, %v10686_v11  ;;  %v5034_v40 = vpop.f32.mrb[137].mxu0 }
 0x5d7   : > { %v6046_v27 = vmax.f32 %v6045_v2, %v5782_v0  ;;  %v6334_v57 = vmax.f32 %v6333_v23, %v5962_v42  ;;  %v5035_v12 = vadd.f32 %v5034_v40, %v10689_v35 }
 0x5d8   : > { %v5783_v29 = vmax.f32 %v5033_v10, 0.0 }
 0x5d9   : > { %v5784_v53 = vmax.f32 %v5035_v12, 0.0  ;;  %v5038_v43 = vpop.f32.mrb[138].mxu0 }
 0x5da   : > { %v6034_v8 = vmax.f32 %v6033_v22, %v5783_v29  ;;  %v5039_v31 = vadd.f32 %v5038_v43, %v10686_v11  ;;  %v5040_v54 = vpop.f32.mrb[139].mxu0  ;;  %v5572_v60 = vpop.f32.mrb[120].mxu1 }
 0x5db   : > { %v6047_v63 = vmax.f32 %v6046_v27, %v5784_v53  ;;  %v5041_v48 = vadd.f32 %v5040_v54, %v10689_v35  ;;  %v5573_v44 = vadd.f32 %v5572_v60, %v10686_v11  ;;  %v5574_v17 = vpop.f32.mrb[121].mxu1 }
 0x5dc   : > { %v5785_v38 = vmax.f32 %v5039_v31, 0.0  ;;  %v5575_v21 = vadd.f32 %v5574_v17, %v10689_v35 }
 0x5dd   : > { %v5786_v18 = vmax.f32 %v5041_v48, 0.0  ;;  %v5963_v50 = vmax.f32 %v5573_v44, 0.0  ;;  %v5044_v47 = vpop.f32.mrb[140].mxu0 }
 0x5de   : > { %v6035_v9 = vmax.f32 %v6034_v8, %v5785_v38  ;;  %v5964_v6 = vmax.f32 %v5575_v21, 0.0  ;;  %v5045_v61 = vadd.f32 %v5044_v47, %v10686_v11  ;;  %v5046_v7 = vpop.f32.mrb[141].mxu0  ;;  %v5578_v28 = vpop.f32.mrb[122].mxu1 }
 0x5df   : > { %v6048_v34 = vmax.f32 %v6047_v63, %v5786_v18  ;;  %v6322_v51 = vmax.f32 %v6321_v33, %v5963_v50  ;;  %v5047_v16 = vadd.f32 %v5046_v7, %v10689_v35  ;;  %v5579_v56 = vadd.f32 %v5578_v28, %v10686_v11  ;;  %v5580_v58 = vpop.f32.mrb[123].mxu1 }
 0x5e0   : > { %v6335_v15 = vmax.f32 %v6334_v57, %v5964_v6  ;;  %v5787_v24 = vmax.f32 %v5045_v61, 0.0  ;;  %v5581_v45 = vadd.f32 %v5580_v58, %v10689_v35 }
 0x5e1   : > { %v5788_v20 = vmax.f32 %v5047_v16, 0.0  ;;  %v5965_v14 = vmax.f32 %v5579_v56, 0.0  ;;  %v5050_v37 = vpop.f32.mrb[142].mxu0 }
 0x5e2   : > { %v6036_v4 = vmax.f32 %v6035_v9, %v5787_v24  ;;  %v5966_v36 = vmax.f32 %v5581_v45, 0.0  ;;  %v5051_v2 = vadd.f32 %v5050_v37, %v10686_v11  ;;  %v5052_v23 = vpop.f32.mrb[143].mxu0 }
 0x5e3   : > { %v6049_v26 = vmax.f32 %v6048_v34, %v5788_v20  ;;  %v6323_v41 = vmax.f32 %v6322_v51, %v5965_v14  ;;  %v5053_v19 = vadd.f32 %v5052_v23, %v10689_v35 }
 0x5e4   : > { %v6336_v62 = vmax.f32 %v6335_v15, %v5966_v36  ;;  %v5789_v0 = vmax.f32 %v5051_v2, 0.0 }
 0x5e5   : > { %v6324_v42 = vrot.slane %v6323_v41, 4  ;;  %v5790_v52 = vmax.f32 %v5053_v19, 0.0  ;;  %v5056_v22 = vpop.f32.mrb[144].mxu0  ;;  %v5584_v33 = vpop.f32.mrb[124].mxu1 }
 0x5e6   : > { %v6337_v10 = vrot.slane %v6336_v62, 4  ;;  %v11150_v40 = vmax.f32 %v6036_v4, %v5789_v0  ;;  %v5057_v27 = vadd.f32 %v5056_v22, %v10686_v11  ;;  %v5058_v57 = vpop.f32.mrb[145].mxu0  ;;  %v5586_v12 = vpop.f32.mrb[125].mxu1  ;;  %v5585_v43 = vadd.f32 %v5584_v33, %v10686_v11 }
 0x5e7   : > { %v6325_v29 = vmax.f32 %v6323_v41, %v6324_v42  ;;  %v11153_v53 = vmax.f32 %v6049_v26, %v5790_v52  ;;  %v5059_v31 = vadd.f32 %v5058_v57, %v10689_v35  ;;  %v5587_v60 = vadd.f32 %v5586_v12, %v10689_v35 }
 0x5e8   : > { %v6338_v8 = vmax.f32 %v6336_v62, %v6337_v10  ;;  %v5791_v17 = vmax.f32 %v5057_v27, 0.0  ;;  %v5967_v9 = vmax.f32 %v5585_v43, 0.0 }
 0x5e9   : > { %v6326_v54 = vrot.slane %v6325_v29, 2  ;;  %v5062_v63 = vpop.f32.mrb[146].mxu0  ;;  %v5590_v48 = vpop.f32.mrb[126].mxu1  ;;  %v5792_v28 = vmax.f32 %v5059_v31, 0.0  ;;  %v5968_v56 = vmax.f32 %v5587_v60, 0.0 }
 0x5ea   : > { %v6339_v44 = vrot.slane %v6338_v8, 2  ;;  %v5063_v38 = vadd.f32 %v5062_v63, %v10686_v11  ;;  %v5591_v21 = vadd.f32 %v5590_v48, %v10686_v11  ;;  %v5064_v18 = vpop.f32.mrb[147].mxu0  ;;  %v5592_v50 = vpop.f32.mrb[127].mxu1 }
 0x5eb   : > { %v6327_v47 = vmax.f32 %v6325_v29, %v6326_v54  ;;  %v5065_v6 = vadd.f32 %v5064_v18, %v10689_v35  ;;  %v5593_v61 = vadd.f32 %v5592_v50, %v10689_v35 }
 0x5ec   : > { %v6340_v7 = vmax.f32 %v6338_v8, %v6339_v44  ;;  %v5793_v34 = vmax.f32 %v5063_v38, 0.0  ;;  %v5969_v51 = vmax.f32 %v5591_v21, 0.0  ;;  %v6038_v8 = vrot.slane %v11150_v40, 4 }
 0x5ed   : > { %v6328_v16 = vrot.slane %v6327_v47, 1  ;;  %v5794_v58 = vmax.f32 %v5065_v6, 0.0  ;;  %v5970_v15 = vmax.f32 %v5593_v61, 0.0  ;;  %v5068_v24 = vpop.f32.mrb[148].mxu0 }
 0x5ee   : > { %v6341_v45 = vrot.slane %v6340_v7, 1  ;;  %v6057_v20 = vmax.f32 %v5791_v17, %v5793_v34  ;;  %v6343_v14 = vmax.f32 %v5967_v9, %v5969_v51  ;;  %v5070_v37 = vpop.f32.mrb[149].mxu0  ;;  %v5069_v26 = vadd.f32 %v5068_v24, %v10686_v11 }
 0x5ef   : > { %v6329_v4 = vmax.f32 %v6327_v47, %v6328_v16  ;;  %v6070_v36 = vmax.f32 %v5792_v28, %v5794_v58  ;;  %v6356_v2 = vmax.f32 %v5968_v56, %v5970_v15  ;;  %v5071_v41 = vadd.f32 %v5070_v37, %v10689_v35 }
 0x5f0   : > { %v6342_v23 = vmax.f32 %v6340_v7, %v6341_v45  ;;  %v5795_v42 = vmax.f32 %v5069_v26, 0.0  ;;  %v6039_v28 = vmax.f32 %v11150_v40, %v6038_v8  ;;  %v6051_v34 = vrot.slane %v11153_v53, 4 }
 0x5f1   : > { %v11166_v19 = vsel %vm6487_vm3, %v6329_v4, %v11113_v39  ;;  %v5074_v62 = vpop.f32.mrb[150].mxu0  ;;  %v5796_v52 = vmax.f32 %v5071_v41, 0.0 }
 0x5f2   : > { %v11170_v0 = vsel %vm6487_vm3, %v6342_v23, %v11117_v49  ;;  %v5076_v22 = vpop.f32.mrb[151].mxu0  ;;  %v5596_v33 = vpop.f32.mrb[128].mxu1  ;;  %v5075_v10 = vadd.f32 %v5074_v62, %v10686_v11  ;;  %v6058_v29 = vmax.f32 %v6057_v20, %v5795_v42  ;;  %v6052_v23 = vmax.f32 %v11153_v53, %v6051_v34 }
 0x5f3   : > { %v5077_v27 = vadd.f32 %v5076_v22, %v10689_v35  ;;  %v5597_v57 = vadd.f32 %v5596_v33, %v10686_v11  ;;  %v5598_v12 = vpop.f32.mrb[129].mxu1  ;;  %v6071_v43 = vmax.f32 %v6070_v36, %v5796_v52 }
 0x5f4   : > { %v5599_v39 = vadd.f32 %v5598_v12, %v10689_v35  ;;  %v5797_v31 = vmax.f32 %v5075_v10, 0.0 }
 0x5f5   : > { %v5798_v49 = vmax.f32 %v5077_v27, 0.0  ;;  %v5971_v54 = vmax.f32 %v5597_v57, 0.0  ;;  %v5080_v60 = vpop.f32.mrb[152].mxu0 }
 0x5f6   : > { %v5972_v63 = vmax.f32 %v5599_v39, 0.0  ;;  %v5081_v48 = vadd.f32 %v5080_v60, %v10686_v11  ;;  %v5082_v44 = vpop.f32.mrb[153].mxu0  ;;  %v5602_v17 = vpop.f32.mrb[130].mxu1  ;;  %v6059_v38 = vmax.f32 %v6058_v29, %v5797_v31  ;;  %v6053_v39 = vrot.slane %v6052_v23, 2 }
 0x5f7   : > { %v6072_v21 = vmax.f32 %v6071_v43, %v5798_v49  ;;  %v6344_v18 = vmax.f32 %v6343_v14, %v5971_v54  ;;  %v5083_v50 = vadd.f32 %v5082_v44, %v10689_v35  ;;  %v5604_v47 = vpop.f32.mrb[131].mxu1  ;;  %v5603_v61 = vadd.f32 %v5602_v17, %v10686_v11 }
 0x5f8   : > { %v6357_v9 = vmax.f32 %v6356_v2, %v5972_v63  ;;  %v5799_v6 = vmax.f32 %v5081_v48, 0.0  ;;  %v5605_v7 = vadd.f32 %v5604_v47, %v10689_v35  ;;  %v6040_v2 = vrot.slane %v6039_v28, 2 }
 0x5f9   : > { %v5800_v51 = vmax.f32 %v5083_v50, 0.0  ;;  %v5086_v16 = vpop.f32.mrb[154].mxu0  ;;  %v5973_v58 = vmax.f32 %v5603_v61, 0.0 }
 0x5fa   : > { %v6060_v56 = vmax.f32 %v6059_v38, %v5799_v6  ;;  %v5974_v15 = vmax.f32 %v5605_v7, 0.0  ;;  %v5087_v24 = vadd.f32 %v5086_v16, %v10686_v11  ;;  %v5088_v45 = vpop.f32.mrb[155].mxu0  ;;  %v6041_v43 = vmax.f32 %v6039_v28, %v6040_v2 }
 0x5fb   : > { %v6073_v20 = vmax.f32 %v6072_v21, %v5800_v51  ;;  %v5089_v14 = vadd.f32 %v5088_v45, %v10689_v35  ;;  %v6345_v37 = vmax.f32 %v6344_v18, %v5973_v58  ;;  %v6054_v28 = vmax.f32 %v6052_v23, %v6053_v39 }
 0x5fc   : > { %v6358_v4 = vmax.f32 %v6357_v9, %v5974_v15  ;;  %v5801_v36 = vmax.f32 %v5087_v24, 0.0 }
 0x5fd   : > { %v5802_v40 = vmax.f32 %v5089_v14, 0.0  ;;  %v5092_v26 = vpop.f32.mrb[156].mxu0  ;;  %v5608_v41 = vpop.f32.mrb[132].mxu1 }
 0x5fe   : > { %v6061_v62 = vmax.f32 %v6060_v56, %v5801_v36  ;;  %v5093_v42 = vadd.f32 %v5092_v26, %v10686_v11  ;;  %v5609_v52 = vadd.f32 %v5608_v41, %v10686_v11  ;;  %v5094_v22 = vpop.f32.mrb[157].mxu0  ;;  %v5610_v33 = vpop.f32.mrb[133].mxu1  ;;  %v6042_v56 = vrot.slane %v6041_v43, 1 }
 0x5ff   : > { %v6074_v10 = vmax.f32 %v6073_v20, %v5802_v40  ;;  %v5095_v27 = vadd.f32 %v5094_v22, %v10689_v35  ;;  %v5611_v57 = vadd.f32 %v5610_v33, %v10689_v35 }
 0x600   : > { %v5803_v12 = vmax.f32 %v5093_v42, 0.0  ;;  %v5975_v29 = vmax.f32 %v5609_v52, 0.0  ;;  %v6043_v23 = vmax.f32 %v6041_v43, %v6042_v56 }
 0x601   : > { %v5804_v53 = vmax.f32 %v5095_v27, 0.0  ;;  %v5976_v8 = vmax.f32 %v5611_v57, 0.0  ;;  %v5098_v31 = vpop.f32.mrb[158].mxu0  ;;  %v5614_v49 = vpop.f32.mrb[134].mxu1 }
 0x602   : > { %v6062_v54 = vmax.f32 %v6061_v62, %v5803_v12  ;;  %v6346_v60 = vmax.f32 %v6345_v37, %v5975_v29  ;;  %v5099_v63 = vadd.f32 %v5098_v31, %v10686_v11  ;;  %v5615_v48 = vadd.f32 %v5614_v49, %v10686_v11  ;;  %v5100_v44 = vpop.f32.mrb[159].mxu0  ;;  %v5616_v17 = vpop.f32.mrb[135].mxu1 }
 0x603   : > { %v6075_v38 = vmax.f32 %v6074_v10, %v5804_v53  ;;  %v6359_v21 = vmax.f32 %v6358_v4, %v5976_v8  ;;  %v5101_v18 = vadd.f32 %v5100_v44, %v10689_v35  ;;  %v5617_v50 = vadd.f32 %v5616_v17, %v10689_v35 }
 0x604   : > { %v5805_v47 = vmax.f32 %v5099_v63, 0.0  ;;  %v5977_v9 = vmax.f32 %v5615_v48, 0.0  ;;  %v6055_v4 = vrot.slane %v6054_v28, 1 }
 0x605   : > { %v5806_v6 = vmax.f32 %v5101_v18, 0.0  ;;  %v5978_v61 = vmax.f32 %v5617_v50, 0.0  ;;  %v5104_v7 = vpop.f32.mrb[160].mxu0 }
 0x606   : > { %v6063_v34 = vmax.f32 %v6062_v54, %v5805_v47  ;;  %v6347_v51 = vmax.f32 %v6346_v60, %v5977_v9  ;;  %v5106_v16 = vpop.f32.mrb[161].mxu0  ;;  %v5105_v45 = vadd.f32 %v5104_v7, %v10686_v11  ;;  %v6056_v9 = vmax.f32 %v6054_v28, %v6055_v4 }
 0x607   : > { %v6076_v58 = vmax.f32 %v6075_v38, %v5806_v6  ;;  %v6360_v15 = vmax.f32 %v6359_v21, %v5978_v61  ;;  %v5107_v14 = vadd.f32 %v5106_v16, %v10689_v35 }
 0x608   : > { %v6064_v24 = vrot.slane %v6063_v34, 4  ;;  %v5807_v33 = vmax.f32 %v5105_v45, 0.0 }
 0x609   : > { %v6077_v20 = vrot.slane %v6076_v58, 4  ;;  %v5110_v37 = vpop.f32.mrb[162].mxu0  ;;  %v5808_v12 = vmax.f32 %v5107_v14, 0.0 }
 0x60a   : > { %v6065_v36 = vmax.f32 %v6063_v34, %v6064_v24  ;;  %v5111_v2 = vadd.f32 %v5110_v37, %v10686_v11  ;;  %v5112_v40 = vpop.f32.mrb[163].mxu0  ;;  %v5620_v26 = vpop.f32.mrb[136].mxu1 }
 0x60b   : > { %v6078_v41 = vmax.f32 %v6076_v58, %v6077_v20  ;;  %v5113_v62 = vadd.f32 %v5112_v40, %v10689_v35  ;;  %v5621_v42 = vadd.f32 %v5620_v26, %v10686_v11  ;;  %v5622_v52 = vpop.f32.mrb[137].mxu1 }
 0x60c   : > { %v6066_v22 = vrot.slane %v6065_v36, 2  ;;  %v5809_v10 = vmax.f32 %v5111_v2, 0.0  ;;  %v5623_v27 = vadd.f32 %v5622_v52, %v10689_v35 }
 0x60d   : > { %v6079_v57 = vrot.slane %v6078_v41, 2  ;;  %v5810_v29 = vmax.f32 %v5113_v62, 0.0  ;;  %v5979_v39 = vmax.f32 %v5621_v42, 0.0  ;;  %v5116_v53 = vpop.f32.mrb[164].mxu0 }
 0x60e   : > { %v6067_v8 = vmax.f32 %v6065_v36, %v6066_v22  ;;  %v6083_v31 = vmax.f32 %v5807_v33, %v5809_v10  ;;  %v5980_v49 = vmax.f32 %v5623_v27, 0.0  ;;  %v5117_v43 = vadd.f32 %v5116_v53, %v10686_v11  ;;  %v5118_v54 = vpop.f32.mrb[165].mxu0  ;;  %v5626_v60 = vpop.f32.mrb[138].mxu1 }
 0x60f   : > { %v6080_v63 = vmax.f32 %v6078_v41, %v6079_v57  ;;  %v6096_v48 = vmax.f32 %v5808_v12, %v5810_v29  ;;  %v6348_v44 = vmax.f32 %v6347_v51, %v5979_v39  ;;  %v5119_v17 = vadd.f32 %v5118_v54, %v10689_v35  ;;  %v5628_v38 = vpop.f32.mrb[139].mxu1 }
 0x610   : > { %v6068_v21 = vrot.slane %v6067_v8, 1  ;;  %v6361_v18 = vmax.f32 %v6360_v15, %v5980_v49  ;;  %v5811_v50 = vmax.f32 %v5117_v43, 0.0  ;;  %v5627_v47 = vadd.f32 %v5626_v60, %v10686_v11 }
 0x611   : > { %v6081_v6 = vrot.slane %v6080_v63, 1  ;;  %v5812_v61 = vmax.f32 %v5119_v17, 0.0  ;;  %v5629_v7 = vadd.f32 %v5628_v38, %v10689_v35  ;;  %v5122_v34 = vpop.f32.mrb[166].mxu0 }
 0x612   : > { %v6069_v16 = vmax.f32 %v6067_v8, %v6068_v21  ;;  %v6084_v56 = vmax.f32 %v6083_v31, %v5811_v50  ;;  %v5981_v58 = vmax.f32 %v5627_v47, 0.0  ;;  %v5123_v24 = vadd.f32 %v5122_v34, %v10686_v11  ;;  %v5124_v51 = vpop.f32.mrb[167].mxu0 }
 0x613   : > { %v6082_v45 = vmax.f32 %v6080_v63, %v6081_v6  ;;  %v6097_v20 = vmax.f32 %v6096_v48, %v5812_v61  ;;  %v5982_v14 = vmax.f32 %v5629_v7, 0.0  ;;  %v5125_v15 = vadd.f32 %v5124_v51, %v10689_v35 }
 0x614   : > { %v11207_v37 = vsel %vm6483_vm1, %v6069_v16, %v6043_v23  ;;  %v6349_v28 = vmax.f32 %v6348_v44, %v5981_v58  ;;  %v5813_v4 = vmax.f32 %v5123_v24, 0.0 }
 0x615   : > { %v11210_v36 = vsel %vm6483_vm1, %v6082_v45, %v6056_v9  ;;  %v6362_v2 = vmax.f32 %v6361_v18, %v5982_v14  ;;  %v5814_v40 = vmax.f32 %v5125_v15, 0.0  ;;  %v5128_v26 = vpop.f32.mrb[168].mxu0  ;;  %v5632_v41 = vpop.f32.mrb[140].mxu1 }
 0x616   : > { %v6350_v62 = vrot.slane %v6349_v28, 4  ;;  %v6085_v42 = vmax.f32 %v6084_v56, %v5813_v4  ;;  %v5129_v52 = vadd.f32 %v5128_v26, %v10686_v11  ;;  %v5130_v22 = vpop.f32.mrb[169].mxu0  ;;  %v5634_v33 = vpop.f32.mrb[141].mxu1  ;;  %v5633_v29 = vadd.f32 %v5632_v41, %v10686_v11 }
 0x617   : > { %v6363_v10 = vrot.slane %v6362_v2, 4  ;;  %v6098_v27 = vmax.f32 %v6097_v20, %v5814_v40  ;;  %v5131_v23 = vadd.f32 %v5130_v22, %v10689_v35  ;;  %v5635_v8 = vadd.f32 %v5634_v33, %v10689_v35 }
 0x618   : > { %v6351_v57 = vmax.f32 %v6349_v28, %v6350_v62  ;;  %v5815_v12 = vmax.f32 %v5129_v52, 0.0  ;;  %v5983_v47 = vmax.f32 %v5633_v29, 0.0 }
 0x619   : > { %v6364_v39 = vmax.f32 %v6362_v2, %v6363_v10  ;;  %v5816_v53 = vmax.f32 %v5131_v23, 0.0  ;;  %v5134_v31 = vpop.f32.mrb[170].mxu0  ;;  %v5638_v49 = vpop.f32.mrb[142].mxu1  ;;  %v5984_v7 = vmax.f32 %v5635_v8, 0.0 }
 0x61a   : > { %v6352_v43 = vrot.slane %v6351_v57, 2  ;;  %v6086_v54 = vmax.f32 %v6085_v42, %v5815_v12  ;;  %v5135_v60 = vadd.f32 %v5134_v31, %v10686_v11  ;;  %v5639_v63 = vadd.f32 %v5638_v49, %v10686_v11  ;;  %v5136_v48 = vpop.f32.mrb[171].mxu0  ;;  %v5640_v44 = vpop.f32.mrb[143].mxu1 }
 0x61b   : > { %v6365_v17 = vrot.slane %v6364_v39, 2  ;;  %v6099_v38 = vmax.f32 %v6098_v27, %v5816_v53  ;;  %v5137_v21 = vadd.f32 %v5136_v48, %v10689_v35  ;;  %v5641_v18 = vadd.f32 %v5640_v44, %v10689_v35 }
 0x61c   : > { %v6353_v50 = vmax.f32 %v6351_v57, %v6352_v43  ;;  %v5817_v9 = vmax.f32 %v5135_v60, 0.0  ;;  %v5985_v6 = vmax.f32 %v5639_v63, 0.0 }
 0x61d   : > { %v6366_v61 = vmax.f32 %v6364_v39, %v6365_v17  ;;  %v5818_v34 = vmax.f32 %v5137_v21, 0.0  ;;  %v5986_v16 = vmax.f32 %v5641_v18, 0.0  ;;  %v5140_v56 = vpop.f32.mrb[172].mxu0 }
 0x61e   : > { %v6354_v58 = vrot.slane %v6353_v50, 1  ;;  %v6087_v24 = vmax.f32 %v6086_v54, %v5817_v9  ;;  %v6369_v51 = vmax.f32 %v5983_v47, %v5985_v6  ;;  %v5141_v45 = vadd.f32 %v5140_v56, %v10686_v11  ;;  %v5142_v20 = vpop.f32.mrb[173].mxu0 }
 0x61f   : > { %v6367_v14 = vrot.slane %v6366_v61, 1  ;;  %v6100_v15 = vmax.f32 %v6099_v38, %v5818_v34  ;;  %v6382_v28 = vmax.f32 %v5984_v7, %v5986_v16  ;;  %v5143_v4 = vadd.f32 %v5142_v20, %v10689_v35 }
 0x620   : > { %v6355_v2 = vmax.f32 %v6353_v50, %v6354_v58  ;;  %v5819_v40 = vmax.f32 %v5141_v45, 0.0 }
 0x621   : > { %v6368_v26 = vmax.f32 %v6366_v61, %v6367_v14  ;;  %v5820_v41 = vmax.f32 %v5143_v4, 0.0  ;;  %v5146_v62 = vpop.f32.mrb[174].mxu0 }
 0x622   : > { %v11224_v42 = vsel %vm6489_vm4, %v6355_v2, %v11166_v19  ;;  %v6088_v52 = vmax.f32 %v6087_v24, %v5819_v40  ;;  %v5147_v22 = vadd.f32 %v5146_v62, %v10686_v11  ;;  %v5148_v33 = vpop.f32.mrb[175].mxu0  ;;  %v5644_v10 = vpop.f32.mrb[144].mxu1 }
 0x623   : > { %v11229_v27 = vsel %vm6489_vm4, %v6368_v26, %v11170_v0  ;;  %v6101_v23 = vmax.f32 %v6100_v15, %v5820_v41  ;;  %v5149_v57 = vadd.f32 %v5148_v33, %v10689_v35  ;;  %v5645_v12 = vadd.f32 %v5644_v10, %v10686_v11  ;;  %v5646_v29 = vpop.f32.mrb[145].mxu1 }
 0x624   : > { %v5821_v39 = vmax.f32 %v5147_v22, 0.0  ;;  %v5647_v53 = vadd.f32 %v5646_v29, %v10689_v35 }
 0x625   : > { %v5822_v19 = vmax.f32 %v5149_v57, 0.0  ;;  %v5987_v8 = vmax.f32 %v5645_v12, 0.0  ;;  %v5152_v31 = vpop.f32.mrb[176].mxu0 }
 0x626   : > { %v6089_v49 = vmax.f32 %v6088_v52, %v5821_v39  ;;  %v5988_v43 = vmax.f32 %v5647_v53, 0.0  ;;  %v5154_v54 = vpop.f32.mrb[177].mxu0  ;;  %v5650_v60 = vpop.f32.mrb[146].mxu1  ;;  %v5153_v21 = vadd.f32 %v5152_v31, %v10686_v11 }
 0x627   : > { %v6102_v63 = vmax.f32 %v6101_v23, %v5822_v19  ;;  %v6370_v48 = vmax.f32 %v6369_v51, %v5987_v8  ;;  %v5651_v0 = vadd.f32 %v5650_v60, %v10686_v11  ;;  %v5652_v44 = vpop.f32.mrb[147].mxu1  ;;  %v5155_v47 = vadd.f32 %v5154_v54, %v10689_v35 }
 0x628   : > { %v6090_v17 = vrot.slane %v6089_v49, 4  ;;  %v6383_v38 = vmax.f32 %v6382_v28, %v5988_v43  ;;  %v5653_v18 = vadd.f32 %v5652_v44, %v10689_v35  ;;  %v5823_v45 = vmax.f32 %v5153_v21, 0.0 }
 0x629   : > { %v6103_v50 = vrot.slane %v6102_v63, 4  ;;  %v5989_v9 = vmax.f32 %v5651_v0, 0.0  ;;  %v5158_v6 = vpop.f32.mrb[178].mxu0  ;;  %v5824_v28 = vmax.f32 %v5155_v47, 0.0  ;;  %v11246_v19 = vadd.f32 %v10610_v1, %v10686_v11 }
 0x62a   : > { %v6091_v61 = vmax.f32 %v6089_v49, %v6090_v17  ;;  %v5990_v7 = vmax.f32 %v5653_v18, 0.0  ;;  %v5159_v34 = vadd.f32 %v5158_v6, %v10686_v11  ;;  %v5160_v16 = vpop.f32.mrb[179].mxu0 }
 0x62b   : > { %v6104_v56 = vmax.f32 %v6102_v63, %v6103_v50  ;;  %v6371_v58 = vmax.f32 %v6370_v48, %v5989_v9  ;;  %v5161_v24 = vadd.f32 %v5160_v16, %v10689_v35 }
 0x62c   : > { %v6092_v51 = vrot.slane %v6091_v61, 2  ;;  %v6384_v20 = vmax.f32 %v6383_v38, %v5990_v7  ;;  %v5825_v14 = vmax.f32 %v5159_v34, 0.0  ;;  %v11262_v7 = vadd.f32 %v10620_v59, %v10686_v11 }
 0x62d   : > { %v6105_v15 = vrot.slane %v6104_v56, 2  ;;  %v5826_v4 = vmax.f32 %v5161_v24, 0.0  ;;  %v5164_v2 = vpop.f32.mrb[180].mxu0  ;;  %v5656_v40 = vpop.f32.mrb[148].mxu1 }
 0x62e   : > { %v6093_v26 = vmax.f32 %v6091_v61, %v6092_v51  ;;  %v6109_v41 = vmax.f32 %v5823_v45, %v5825_v14  ;;  %v5165_v62 = vadd.f32 %v5164_v2, %v10686_v11  ;;  %v5657_v52 = vadd.f32 %v5656_v40, %v10686_v11  ;;  %v5166_v22 = vpop.f32.mrb[181].mxu0  ;;  %v5658_v33 = vpop.f32.mrb[149].mxu1 }
 0x62f   : > { %v6106_v10 = vmax.f32 %v6104_v56, %v6105_v15  ;;  %v6122_v23 = vmax.f32 %v5824_v28, %v5826_v4  ;;  %v5167_v57 = vadd.f32 %v5166_v22, %v10689_v35  ;;  %v5659_v12 = vadd.f32 %v5658_v33, %v10689_v35 }
 0x630   : > { %v6094_v29 = vrot.slane %v6093_v26, 1  ;;  %v5827_v39 = vmax.f32 %v5165_v62, 0.0  ;;  %v5991_v53 = vmax.f32 %v5657_v52, 0.0  ;;  %v11258_v61 = vadd.f32 %v10614_v5, %v10689_v35 }
 0x631   : > { %v6107_v8 = vrot.slane %v6106_v10, 1  ;;  %v5828_v31 = vmax.f32 %v5167_v57, 0.0  ;;  %v5992_v49 = vmax.f32 %v5659_v12, 0.0  ;;  %v5170_v43 = vpop.f32.mrb[182].mxu0  ;;  %v5662_v54 = vpop.f32.mrb[150].mxu1  ;;  %v11271_v5 = vadd.f32 %v10622_v46, %v10689_v35 }
 0x632   : > { %v6095_v60 = vmax.f32 %v6093_v26, %v6094_v29  ;;  %v6110_v63 = vmax.f32 %v6109_v41, %v5827_v39  ;;  %v6372_v48 = vmax.f32 %v6371_v58, %v5991_v53  ;;  %v5171_v0 = vadd.f32 %v5170_v43, %v10686_v11  ;;  %v5172_v44 = vpop.f32.mrb[183].mxu0  ;;  %v5664_v17 = vpop.f32.mrb[151].mxu1 }
 0x633   : > { %v6108_v38 = vmax.f32 %v6106_v10, %v6107_v8  ;;  %v6123_v21 = vmax.f32 %v6122_v23, %v5828_v31  ;;  %v6385_v18 = vmax.f32 %v6384_v20, %v5992_v49  ;;  %v5663_v50 = vadd.f32 %v5662_v54, %v10686_v11  ;;  %v11951_v8 = vld [vmem:[#allocation24_spill] sm:$0xff]  ;;  %v11952_v49 = vld [vmem:[#allocation15_spill] sm:$0xff] }
 0x634   : > { %v11252_v1 = vsel %vm6485_vm2, %v6095_v60, %v11207_v37  ;;  %v5829_v47 = vmax.f32 %v5171_v0, 0.0  ;;  %v5173_v9 = vadd.f32 %v5172_v44, %v10689_v35  ;;  %v5665_v6 = vadd.f32 %v5664_v17, %v10689_v35 }
 0x635   : > { %v11266_v34 = vsel %vm6485_vm2, %v6108_v38, %v11210_v36  ;;  %v5993_v16 = vmax.f32 %v5663_v50, 0.0  ;;  %v5176_v37 = vpop.f32.mrb[184].mxu0  ;;  %v11276_v14 = vadd.f32 %v10633_v30, %v10686_v11  ;;  %v5843_v4 = vmax.f32 %v11246_v19, 0.0 }
 0x636   : > { %v6111_v56 = vmax.f32 %v6110_v63, %v5829_v47  ;;  %v5830_v58 = vmax.f32 %v5173_v9, 0.0  ;;  %v5994_v24 = vmax.f32 %v5665_v6, 0.0  ;;  %v5177_v51 = vadd.f32 %v5176_v37, %v10686_v11  ;;  %v5178_v45 = vpop.f32.mrb[185].mxu0 }
 0x637   : > { %v6373_v20 = vmax.f32 %v6372_v48, %v5993_v16  ;;  %v5179_v59 = vadd.f32 %v5178_v45, %v10689_v35  ;;  %v5844_v26 = vmax.f32 %v11258_v61, 0.0  ;;  %v5845_v41 = vmax.f32 %v11262_v7, 0.0  ;;  %v11953_v48 = vld [vmem:[#allocation21_spill] sm:$0xff]  ;;  %v11954_v16 = vld [vmem:[#allocation23_spill] sm:$0xff]  ;;  %v11955_v45 = vld [vmem:[#allocation26_spill] sm:$0xff] }
 0x638   : > { %v6124_v36 = vmax.f32 %v6123_v21, %v5830_v58  ;;  %v6386_v15 = vmax.f32 %v6385_v18, %v5994_v24  ;;  %v5831_v28 = vmax.f32 %v5177_v51, 0.0  ;;  %v5846_v33 = vmax.f32 %v11271_v5, 0.0 }
 0x639   : > { %v5832_v2 = vmax.f32 %v5179_v59, 0.0  ;;  %v5182_v40 = vpop.f32.mrb[186].mxu0  ;;  %v5847_v12 = vmax.f32 %v11276_v14, 0.0  ;;  %v11288_v29 = vadd.f32 %v10636_v13, %v10689_v35  ;;  %v11293_v31 = vadd.f32 %v11951_v8, %v10686_v11 }
 0x63a   : > { %v6112_v46 = vmax.f32 %v6111_v56, %v5831_v28  ;;  %v5183_v62 = vadd.f32 %v5182_v40, %v10686_v11  ;;  %v5184_v52 = vpop.f32.mrb[187].mxu0  ;;  %v5668_v22 = vpop.f32.mrb[152].mxu1  ;;  %v11297_v43 = vadd.f32 %v11952_v49, %v10689_v35  ;;  %v11301_v0 = vadd.f32 %v11953_v48, %v10686_v11  ;;  %v11956_v49 = vld [vmem:[#allocation25_spill] sm:$0xff] }
 0x63b   : > { %v6125_v30 = vmax.f32 %v6124_v36, %v5832_v2  ;;  %v5185_v10 = vadd.f32 %v5184_v52, %v10689_v35  ;;  %v5669_v23 = vadd.f32 %v5668_v22, %v10686_v11  ;;  %v5670_v57 = vpop.f32.mrb[153].mxu1  ;;  %v11308_v37 = vadd.f32 %v11954_v16, %v10689_v35 }
 0x63c   : > { %v5833_v39 = vmax.f32 %v5183_v62, 0.0  ;;  %v5671_v53 = vadd.f32 %v5670_v57, %v10689_v35  ;;  %v5848_v51 = vmax.f32 %v11288_v29, 0.0  ;;  %v11314_v59 = vadd.f32 %v11955_v45, %v10686_v11 }
 0x63d   : > { %v5834_v54 = vmax.f32 %v5185_v10, 0.0  ;;  %v5995_v60 = vmax.f32 %v5669_v23, 0.0  ;;  %v5188_v63 = vpop.f32.mrb[188].mxu0  ;;  %v5849_v2 = vmax.f32 %v11293_v31, 0.0  ;;  %v5851_v23 = vmax.f32 %v11301_v0, 0.0 }
 0x63e   : > { %v6113_v13 = vmax.f32 %v6112_v46, %v5833_v39  ;;  %v5996_v44 = vmax.f32 %v5671_v53, 0.0  ;;  %v5189_v17 = vadd.f32 %v5188_v63, %v10686_v11  ;;  %v5190_v38 = vpop.f32.mrb[189].mxu0  ;;  %v5674_v21 = vpop.f32.mrb[154].mxu1 }
 0x63f   : > { %v6126_v18 = vmax.f32 %v6125_v30, %v5834_v54  ;;  %v6374_v50 = vmax.f32 %v6373_v20, %v5995_v60  ;;  %v5191_v47 = vadd.f32 %v5190_v38, %v10689_v35  ;;  %v5675_v9 = vadd.f32 %v5674_v21, %v10686_v11  ;;  %v5676_v6 = vpop.f32.mrb[155].mxu1 }
 0x640   : > { %v6387_v56 = vmax.f32 %v6386_v15, %v5996_v44  ;;  %v5835_v58 = vmax.f32 %v5189_v17, 0.0  ;;  %v5677_v24 = vadd.f32 %v5676_v6, %v10689_v35  ;;  %v5850_v15 = vmax.f32 %v11297_v43, 0.0 }
 0x641   : > { %v5836_v20 = vmax.f32 %v5191_v47, 0.0  ;;  %v5997_v36 = vmax.f32 %v5675_v9, 0.0  ;;  %v5194_v28 = vpop.f32.mrb[190].mxu0  ;;  %v11325_v54 = vadd.f32 %v11956_v49, %v10689_v35 }
 0x642   : > { %v6114_v40 = vmax.f32 %v6113_v13, %v5835_v58  ;;  %v5998_v46 = vmax.f32 %v5677_v24, 0.0  ;;  %v5195_v62 = vadd.f32 %v5194_v28, %v10686_v11  ;;  %v5196_v52 = vpop.f32.mrb[191].mxu0 }
 0x643   : > { %v6127_v22 = vmax.f32 %v6126_v18, %v5836_v20  ;;  %v6375_v30 = vmax.f32 %v6374_v50, %v5997_v36  ;;  %v5197_v10 = vadd.f32 %v5196_v52, %v10689_v35 }
 0x644   : > { %v6388_v39 = vmax.f32 %v6387_v56, %v5998_v46  ;;  %v5837_v53 = vmax.f32 %v5195_v62, 0.0 }
 0x645   : > { %v6376_v60 = vrot.slane %v6375_v30, 4  ;;  %v5838_v63 = vmax.f32 %v5197_v10, 0.0  ;;  %v5200_v48 = vpop.f32.mrb[192].mxu0  ;;  %v5680_v13 = vpop.f32.mrb[156].mxu1 }
 0x646   : > { %v6389_v44 = vrot.slane %v6388_v39, 4  ;;  %v6115_v17 = vmax.f32 %v6114_v40, %v5837_v53  ;;  %v5201_v38 = vadd.f32 %v5200_v48, %v10686_v11  ;;  %v5681_v21 = vadd.f32 %v5680_v13, %v10686_v11  ;;  %v5202_v18 = vpop.f32.mrb[193].mxu0  ;;  %v5682_v50 = vpop.f32.mrb[157].mxu1 }
 0x647   : > { %v6377_v47 = vmax.f32 %v6375_v30, %v6376_v60  ;;  %v6128_v9 = vmax.f32 %v6127_v22, %v5838_v63  ;;  %v5203_v6 = vadd.f32 %v5202_v18, %v10689_v35  ;;  %v5683_v16 = vadd.f32 %v5682_v50, %v10689_v35 }
 0x648   : > { %v6390_v56 = vmax.f32 %v6388_v39, %v6389_v44  ;;  %v6116_v58 = vrot.slane %v6115_v17, 4  ;;  %v5839_v24 = vmax.f32 %v5201_v38, 0.0  ;;  %v5999_v45 = vmax.f32 %v5681_v21, 0.0 }
 0x649   : > { %v6378_v20 = vrot.slane %v6377_v47, 2  ;;  %v6129_v36 = vrot.slane %v6128_v9, 4  ;;  %v5840_v28 = vmax.f32 %v5203_v6, 0.0  ;;  %v6000_v40 = vmax.f32 %v5683_v16, 0.0  ;;  %v5206_v46 = vpop.f32.mrb[194].mxu0  ;;  %v5686_v62 = vpop.f32.mrb[158].mxu1 }
 0x64a   : > { %v6391_v52 = vrot.slane %v6390_v56, 2  ;;  %v6117_v10 = vmax.f32 %v6115_v17, %v6116_v58  ;;  %v5207_v53 = vadd.f32 %v5206_v46, %v10686_v11  ;;  %v5687_v22 = vadd.f32 %v5686_v62, %v10686_v11  ;;  %v5208_v30 = vpop.f32.mrb[195].mxu0  ;;  %v5688_v49 = vpop.f32.mrb[159].mxu1 }
 0x64b   : > { %v6379_v60 = vmax.f32 %v6377_v47, %v6378_v20  ;;  %v6130_v63 = vmax.f32 %v6128_v9, %v6129_v36  ;;  %v5209_v39 = vadd.f32 %v5208_v30, %v10689_v35  ;;  %v5689_v48 = vadd.f32 %v5688_v49, %v10689_v35 }
 0x64c   : > { %v6392_v13 = vmax.f32 %v6390_v56, %v6391_v52  ;;  %v6118_v44 = vrot.slane %v6117_v10, 2  ;;  %v5841_v38 = vmax.f32 %v5207_v53, 0.0  ;;  %v6001_v21 = vmax.f32 %v5687_v22, 0.0  ;;  %v11957_v52 = vld [vmem:[#allocation27_spill] sm:$0xff] }
 0x64d   : > { %v6380_v18 = vrot.slane %v6379_v60, 1  ;;  %v6131_v50 = vrot.slane %v6130_v63, 2  ;;  %v5842_v6 = vmax.f32 %v5209_v39, 0.0  ;;  %v6002_v17 = vmax.f32 %v5689_v48, 0.0 }
 0x64e   : > { %v6393_v16 = vrot.slane %v6392_v13, 1  ;;  %v6119_v58 = vmax.f32 %v6117_v10, %v6118_v44  ;;  %v6135_v46 = vmax.f32 %v5839_v24, %v5841_v38  ;;  %v6395_v62 = vmax.f32 %v5999_v45, %v6001_v21  ;;  %v11958_v45 = vld [vmem:[#allocation30_spill] sm:$0xff] }
 0x64f   : > { %v6381_v8 = vmax.f32 %v6379_v60, %v6380_v18  ;;  %v6132_v57 = vmax.f32 %v6130_v63, %v6131_v50  ;;  %v6148_v47 = vmax.f32 %v5840_v28, %v5842_v6  ;;  %v6408_v9 = vmax.f32 %v6000_v40, %v6002_v17 }
 0x650   : > { %v5854_v20 = vmax.f32 %v11325_v54, 0.0  ;;  %v6394_v36 = vmax.f32 %v6392_v13, %v6393_v16  ;;  %v6120_v30 = vrot.slane %v6119_v58, 1  ;;  %v6136_v56 = vmax.f32 %v6135_v46, %v5843_v4 }
 0x651   : > { %v6168_v53 = vrot.slane %v11957_v52, 4  ;;  %v11341_v22 = vsel %vm6491_vm5, %v6381_v8, %v11224_v42  ;;  %v6133_v10 = vrot.slane %v6132_v57, 1  ;;  %v6149_v24 = vmax.f32 %v6148_v47, %v5844_v26 }
 0x652   : > { %v6181_v28 = vrot.slane %v11958_v45, 4  ;;  %v11348_v54 = vsel %vm6491_vm5, %v6394_v36, %v11229_v27  ;;  %v6121_v40 = vmax.f32 %v6119_v58, %v6120_v30  ;;  %v6137_v19 = vmax.f32 %v6136_v56, %v5845_v41  ;;  %v5692_v4 = vpop.f32.mrb[160].mxu1 }
 0x653   : > { %v6194_v49 = vrot.slane %v10850_v3, 4  ;;  %v6134_v60 = vmax.f32 %v6132_v57, %v6133_v10  ;;  %v6150_v42 = vmax.f32 %v6149_v24, %v5846_v33  ;;  %v5693_v61 = vadd.f32 %v5692_v4, %v10686_v11  ;;  %v5694_v26 = vpop.f32.mrb[161].mxu1 }
 0x654   : > { %v6207_v8 = vrot.slane %v10855_v25, 4  ;;  %v11359_v27 = vsel %vm6487_vm3, %v6121_v40, %v11252_v1  ;;  %v6138_v7 = vmax.f32 %v6137_v19, %v5847_v12  ;;  %v5695_v41 = vadd.f32 %v5694_v26, %v10689_v35 }
 0x655   : > { %v6220_v63 = vrot.slane %v10922_v32, 4  ;;  %v11367_v5 = vsel %vm6487_vm3, %v6134_v60, %v11266_v34  ;;  %v6151_v33 = vmax.f32 %v6150_v42, %v5848_v51  ;;  %v6003_v57 = vmax.f32 %v5693_v61, 0.0 }
 0x656   : > { %v6169_v39 = vmax.f32 %v11957_v52, %v6168_v53  ;;  %v6233_v1 = vrot.slane %v10927_v55, 4  ;;  %v6139_v14 = vmax.f32 %v6138_v7, %v5849_v2  ;;  %v6004_v12 = vmax.f32 %v5695_v41, 0.0  ;;  %v5698_v48 = vpop.f32.mrb[162].mxu1 }
 0x657   : > { %v6182_v13 = vmax.f32 %v11958_v45, %v6181_v28  ;;  %v6152_v44 = vmax.f32 %v6151_v33, %v5850_v15  ;;  %v6396_v34 = vmax.f32 %v6395_v62, %v6003_v57  ;;  %v5699_v38 = vadd.f32 %v5698_v48, %v10686_v11  ;;  %v5700_v29 = vpop.f32.mrb[163].mxu1 }
 0x658   : > { %v6195_v51 = vmax.f32 %v10850_v3, %v6194_v49  ;;  %v6140_v21 = vmax.f32 %v6139_v14, %v5851_v23  ;;  %v6409_v18 = vmax.f32 %v6408_v9, %v6004_v12  ;;  %v5701_v31 = vadd.f32 %v5700_v29, %v10689_v35 }
 0x659   : > { %v6208_v2 = vmax.f32 %v10855_v25, %v6207_v8  ;;  %v6221_v50 = vmax.f32 %v10922_v32, %v6220_v63  ;;  %v11959_v6 = vmax.f32 %v11308_v37, 0.0  ;;  %v6005_v15 = vmax.f32 %v5699_v38, 0.0 }
 0x65a   : > { %v6234_v17 = vmax.f32 %v10927_v55, %v6233_v1  ;;  %v11960_v16 = vmax.f32 %v11314_v59, 0.0  ;;  %v6006_v3 = vmax.f32 %v5701_v31, 0.0  ;;  %v6170_v46 = vrot.slane %v6169_v39, 2 }
 0x65b   : > { %v6153_v43 = vmax.f32 %v6152_v44, %v11959_v6  ;;  %v6397_v23 = vmax.f32 %v6396_v34, %v6005_v15  ;;  %v6183_v62 = vrot.slane %v6182_v13, 2  ;;  %v6196_v47 = vrot.slane %v6195_v51, 2 }
 0x65c   : > { %v6141_v58 = vmax.f32 %v6140_v21, %v11960_v16  ;;  %v6410_v36 = vmax.f32 %v6409_v18, %v6006_v3  ;;  %v6209_v25 = vrot.slane %v6208_v2, 2  ;;  %v6222_v30 = vrot.slane %v6221_v50, 2  ;;  %v6447_v3 = vld [vmem:[#allocation2] sm:$0xff] }
 0x65d   : > { %v6154_v0 = vmax.f32 %v6153_v43, %v5854_v20  ;;  %v5704_v56 = vpop.f32.mrb[164].mxu1  ;;  %v6235_v37 = vrot.slane %v6234_v17, 2  ;;  %v6171_v10 = vmax.f32 %v6169_v39, %v6170_v46  ;;  %v6184_v45 = vmax.f32 %v6182_v13, %v6183_v62 }
 0x65e   : > { %v6142_v9 = vrot.slane %v6141_v58, 4  ;;  %v5705_v53 = vadd.f32 %v5704_v56, %v10686_v11  ;;  %v5706_v55 = vpop.f32.mrb[165].mxu1  ;;  %v6197_v20 = vmax.f32 %v6195_v51, %v6196_v47  ;;  %v6210_v19 = vmax.f32 %v6208_v2, %v6209_v25  ;;  %v6448_v47 = vld [vmem:[#allocation2 + $0x8] sm:$0xff] }
 0x65f   : > { %v6155_v32 = vrot.slane %v6154_v0, 4  ;;  %v5707_v24 = vadd.f32 %v5706_v55, %v10689_v35  ;;  %v6223_v4 = vmax.f32 %v6221_v50, %v6222_v30  ;;  %v6236_v61 = vmax.f32 %v6234_v17, %v6235_v37 }
 0x660   : > { %v6143_v52 = vmax.f32 %v6141_v58, %v6142_v9  ;;  %v6007_v40 = vmax.f32 %v5705_v53, 0.0  ;;  %v6172_v63 = vrot.slane %v6171_v10, 1  ;;  %v6185_v1 = vrot.slane %v6184_v45, 1 }
 0x661   : > { %v6156_v59 = vmax.f32 %v6154_v0, %v6155_v32  ;;  %v6008_v60 = vmax.f32 %v5707_v24, 0.0  ;;  %v5710_v42 = vpop.f32.mrb[166].mxu1  ;;  %v6198_v14 = vrot.slane %v6197_v20, 1  ;;  %v6211_v13 = vrot.slane %v6210_v19, 1 }
 0x662   : > { %v6144_v28 = vrot.slane %v6143_v52, 2  ;;  %v6398_v8 = vmax.f32 %v6397_v23, %v6007_v40  ;;  %v5711_v7 = vadd.f32 %v5710_v42, %v10686_v11  ;;  %v5712_v41 = vpop.f32.mrb[167].mxu1  ;;  %v6224_v44 = vrot.slane %v6223_v4, 1 }
 0x663   : > { %v6157_v49 = vrot.slane %v6156_v59, 2  ;;  %v6411_v57 = vmax.f32 %v6410_v36, %v6008_v60  ;;  %v5713_v39 = vadd.f32 %v5712_v41, %v10689_v35  ;;  %v6237_v29 = vrot.slane %v6236_v61, 1 }
 0x664   : > { %v6145_v26 = vmax.f32 %v6143_v52, %v6144_v28  ;;  %v6009_v48 = vmax.f32 %v5711_v7, 0.0  ;;  %v6173_v18 = vmax.f32 %v6171_v10, %v6172_v63  ;;  %v6186_v50 = vmax.f32 %v6184_v45, %v6185_v1 }
 0x665   : > { %v6158_v33 = vmax.f32 %v6156_v59, %v6157_v49  ;;  %v6010_v38 = vmax.f32 %v5713_v39, 0.0  ;;  %v6199_v6 = vmax.f32 %v6197_v20, %v6198_v14  ;;  %v6212_v15 = vmax.f32 %v6210_v19, %v6211_v13 }
 0x666   : > { %v6146_v12 = vrot.slane %v6145_v26, 1  ;;  %v6399_v21 = vmax.f32 %v6398_v8, %v6009_v48  ;;  %v6225_v17 = vmax.f32 %v6223_v4, %v6224_v44  ;;  %v6238_v46 = vmax.f32 %v6236_v61, %v6237_v29 }
 0x667   : > { %v6159_v34 = vrot.slane %v6158_v33, 1  ;;  %v6412_v2 = vmax.f32 %v6411_v57, %v6010_v38 }
 0x668   : > { %v6147_v51 = vmax.f32 %v6145_v26, %v6146_v12 }
 0x669   : > { %v6160_v31 = vmax.f32 %v6158_v33, %v6159_v34 }
 0x66a   : > { %v6490_v43 = vsel %vm6489_vm4, %v6147_v51, %v11359_v27  ;;  %v5716_v0 = vpop.f32.mrb[168].mxu1 }
 0x66b   : > { %v6500_v16 = vsel %vm6489_vm4, %v6160_v31, %v11367_v5  ;;  %v6492_v58 = vsel %vm6491_vm5, %v6173_v18, %v6490_v43  ;;  %v5717_v9 = vadd.f32 %v5716_v0, %v10686_v11  ;;  %v5718_v36 = vpop.f32.mrb[169].mxu1 }
 0x66c   : > { %v6494_v23 = vsel %vm6493_vm6, %v6199_v6, %v6492_v58  ;;  %v6501_v62 = vsel %vm6491_vm5, %v6186_v50, %v6500_v16  ;;  %v5719_v30 = vadd.f32 %v5718_v36, %v10689_v35 }
 0x66d   : > { %v6502_v27 = vsel %vm6493_vm6, %v6212_v15, %v6501_v62  ;;  %v6496_v25 = vsel %vm6495_vm7, %v6225_v17, %v6494_v23  ;;  %v6011_v56 = vmax.f32 %v5717_v9, 0.0 }
 0x66e   : > { %v6503_v5 = vsel %vm6495_vm7, %v6238_v46, %v6502_v27  ;;  %v6522_v32 = vmax.f32 %v6447_v3, %v6496_v25  ;;  %v6012_v52 = vmax.f32 %v5719_v30, 0.0  ;;  %v5722_v53 = vpop.f32.mrb[170].mxu1 }
 0x66f   : > { %v6523_v37 = vmax.f32 %v6448_v47, %v6503_v5  ;;  %v6400_v55 = vmax.f32 %v6399_v21, %v6011_v56  ;;  %v5723_v10 = vadd.f32 %v5722_v53, %v10686_v11  ;;  %v5724_v59 = vpop.f32.mrb[171].mxu1 }
 0x670   : > { %6526 = vst [vmem:[#allocation2] sm:$0xff] %v6522_v32  ;;  %v6413_v24 = vmax.f32 %v6412_v2, %v6012_v52  ;;  %v5725_v45 = vadd.f32 %v5724_v59, %v10689_v35 }
 0x671   : > { %6527 = vst [vmem:[#allocation2 + $0x8] sm:$0xff] %v6523_v37  ;;  %v6013_v20 = vmax.f32 %v5723_v10, 0.0 }
 0x672   : > { %v6014_v28 = vmax.f32 %v5725_v45, 0.0 }
 0x673   : > { %v6401_v40 = vmax.f32 %v6400_v55, %v6013_v20 }
 0x674   : > { %v6414_v19 = vmax.f32 %v6413_v24, %v6014_v28 }
 0x675   : > { %v6402_v4 = vrot.slane %v6401_v40, 4  ;;  %v5728_v49 = vpop.f32.mrb[172].mxu1 }
 0x676   : > { %v6415_v60 = vrot.slane %v6414_v19, 4  ;;  %v5730_v42 = vpop.f32.mrb[173].mxu1  ;;  %v5729_v8 = vadd.f32 %v5728_v49, %v10686_v11 }
 0x677   : > { %v6403_v61 = vmax.f32 %v6401_v40, %v6402_v4  ;;  %v5731_v41 = vadd.f32 %v5730_v42, %v10689_v35 }
 0x678   : > { %v6416_v26 = vmax.f32 %v6414_v19, %v6415_v60  ;;  %v6015_v48 = vmax.f32 %v5729_v8, 0.0 }
 0x679   : > { %v6404_v7 = vrot.slane %v6403_v61, 2  ;;  %v5734_v63 = vpop.f32.mrb[174].mxu1  ;;  %v6016_v34 = vmax.f32 %v5731_v41, 0.0 }
 0x67a   : > { %v6417_v33 = vrot.slane %v6416_v26, 2  ;;  %v5735_v57 = vadd.f32 %v5734_v63, %v10686_v11  ;;  %v5736_v39 = vpop.f32.mrb[175].mxu1 }
 0x67b   : > { %v6405_v1 = vmax.f32 %v6403_v61, %v6404_v7  ;;  %v5737_v14 = vadd.f32 %v5736_v39, %v10689_v35 }
 0x67c   : > { %v6418_v12 = vmax.f32 %v6416_v26, %v6417_v33  ;;  %v6017_v13 = vmax.f32 %v5735_v57, 0.0 }
 0x67d   : > { %v6406_v44 = vrot.slane %v6405_v1, 1  ;;  %v6018_v38 = vmax.f32 %v5737_v14, 0.0 }
 0x67e   : > { %v6419_v29 = vrot.slane %v6418_v12, 1  ;;  %v6421_v51 = vmax.f32 %v6015_v48, %v6017_v13 }
 0x67f   : > { %v6407_v21 = vmax.f32 %v6405_v1, %v6406_v44  ;;  %v6434_v18 = vmax.f32 %v6016_v34, %v6018_v38 }
 0x680   : > { %v6420_v31 = vmax.f32 %v6418_v12, %v6419_v29 }
 0x681   : > { %v11414_v2 = vsel %vm6493_vm6, %v6407_v21, %v11341_v22 }
 0x682   : > { %v11418_v50 = vsel %vm6493_vm6, %v6420_v31, %v11348_v54  ;;  %v5740_v6 = vpop.f32.mrb[176].mxu1 }
 0x683   : > { %v5741_v43 = vadd.f32 %v5740_v6, %v10686_v11  ;;  %v5742_v15 = vpop.f32.mrb[177].mxu1  ;;  %v6450_v6 = vld [vmem:[#allocation2 + $0x18] sm:$0xff] }
 0x684   : > { %v5743_v17 = vadd.f32 %v5742_v15, %v10689_v35 }
 0x685   : > { %v6019_v16 = vmax.f32 %v5741_v43, 0.0 }
 0x686   : > { %v6020_v58 = vmax.f32 %v5743_v17, 0.0  ;;  %v5746_v3 = vpop.f32.mrb[178].mxu1 }
 0x687   : > { %v6422_v46 = vmax.f32 %v6421_v51, %v6019_v16  ;;  %v5747_v0 = vadd.f32 %v5746_v3, %v10686_v11  ;;  %v5748_v23 = vpop.f32.mrb[179].mxu1  ;;  %v6554_v16 = vld [vmem:[%s11665_s7 + $0x80] sm:$0xff] (!%p7018_p4) }
 0x688   : > { %v6435_v62 = vmax.f32 %v6434_v18, %v6020_v58  ;;  %v5749_v22 = vadd.f32 %v5748_v23, %v10689_v35  ;;  %v6555_v58 = vld [vmem:[%s11665_s7 + $0x88] sm:$0xff] (!%p7018_p4) }
 0x689   : > { %v6021_v47 = vmax.f32 %v5747_v0, 0.0  ;;  %v7511_v3 = vpack.c.bf16 (!%p7018_p4), %v6555_v58, %v6554_v16  ;;  %v6557_v0 = vld [vmem:[%s11665_s7 + $0x98] sm:$0xff] (!%p7018_p4)  ;;  %v6534_v16 = vld [vmem:[#allocation2] sm:$0xff] (!%p7018_p4) }
 0x68a   : > { %v6022_v9 = vmax.f32 %v5749_v22, 0.0  ;;  %v6540_v22 = vld [vmem:[%s11665_s7 + $0x10] sm:$0xff] (!%p7018_p4) }
 0x68b   : > { %v6423_v54 = vmax.f32 %v6422_v46, %v6021_v47  ;;  %v6556_v46 = vld [vmem:[%s11665_s7 + $0x90] sm:$0xff] (!%p7018_p4)  ;;  %v6541_v47 = vld [vmem:[%s11665_s7 + $0x18] sm:$0xff] (!%p7018_p4)  ;;  %7512 = vmatprep.subr.bf16.mxu0 (!%p7018_p4), %v7511_v3 }
 0x68c   : > { %v6436_v36 = vmax.f32 %v6435_v62, %v6022_v9  ;;  %v7515_v62 = vpack.c.bf16 (!%p7018_p4), %v6557_v0, %v6556_v46  ;;  %v6558_v9 = vld [vmem:[%s11665_s7 + $0xa0] sm:$0xff] (!%p7018_p4)  ;;  %v6664_v3 = vld [vmem:[%s11667_s9 + $0x50] sm:$0xff] (!%p7018_p4) }
 0x68d   : > { %v5752_v27 = vpop.f32.mrb[180].mxu1  ;;  %v6666_v0 = vld [vmem:[%s11667_s9 + $0x60] sm:$0xff] (!%p7018_p4) }
 0x68e   : > { %v5753_v25 = vadd.f32 %v5752_v27, %v10686_v11  ;;  %v5754_v30 = vpop.f32.mrb[181].mxu1 }
 0x68f   : > { %v5755_v5 = vadd.f32 %v5754_v30, %v10689_v35  ;;  %v6543_v30 = vld [vmem:[%s11665_s7 + $0x28] sm:$0xff] (!%p7018_p4) }
 0x690   : > { %v6023_v32 = vmax.f32 %v5753_v25, 0.0  ;;  %v6542_v25 = vld [vmem:[%s11665_s7 + $0x20] sm:$0xff] (!%p7018_p4) }
 0x691   : > { %v6024_v56 = vmax.f32 %v5755_v5, 0.0  ;;  %v5758_v37 = vpop.f32.mrb[182].mxu1  ;;  %v6560_v5 = vld [vmem:[%s11665_s7 + $0xb0] sm:$0xff] (!%p7018_p4) }
 0x692   : > { %v6424_v52 = vmax.f32 %v6423_v54, %v6023_v32  ;;  %v5759_v53 = vadd.f32 %v5758_v37, %v10686_v11  ;;  %v5760_v55 = vpop.f32.mrb[183].mxu1  ;;  %v6559_v54 = vld [vmem:[%s11665_s7 + $0xa8] sm:$0xff] (!%p7018_p4)  ;;  %v6561_v32 = vld [vmem:[%s11665_s7 + $0xb8] sm:$0xff] (!%p7018_p4) }
 0x693   : > { %v6437_v10 = vmax.f32 %v6436_v36, %v6024_v56  ;;  %v5761_v59 = vadd.f32 %v5760_v55, %v10689_v35  ;;  %v7517_v36 = vpack.c.bf16 (!%p7018_p4), %v6541_v47, %v6540_v22  ;;  %v7519_v27 = vpack.c.bf16 (!%p7018_p4), %v6559_v54, %v6558_v9  ;;  %v6562_v55 = vld [vmem:[%s11665_s7 + $0xc0] sm:$0xff] (!%p7018_p4)  ;;  %v6668_v22 = vld [vmem:[%s11667_s9 + $0x70] sm:$0xff] (!%p7018_p4)  ;;  %v6669_v47 = vld [vmem:[%s11667_s9 + $0x78] sm:$0xff] (!%p7018_p4) }
 0x694   : > { %v6025_v24 = vmax.f32 %v5759_v53, 0.0  ;;  %v7521_v56 = vpack.c.bf16 (!%p7018_p4), %v6543_v30, %v6542_v25  ;;  %v7523_v37 = vpack.c.bf16 (!%p7018_p4), %v6561_v32, %v6560_v5  ;;  %v6545_v53 = vld [vmem:[%s11665_s7 + $0x38] sm:$0xff] (!%p7018_p4)  ;;  %v7571_v9 = vpack.c.bf16 (!%p7018_p4), %v6669_v47, %v6668_v22 }
 0x695   : > { %v6026_v45 = vmax.f32 %v5761_v59, 0.0  ;;  %v6535_v59 = vld [vmem:[#allocation2 + $0x8] sm:$0xff] (!%p7018_p4) }
 0x696   : > { %v6425_v20 = vmax.f32 %v6424_v52, %v6025_v24  ;;  %v6544_v52 = vld [vmem:[%s11665_s7 + $0x30] sm:$0xff] (!%p7018_p4)  ;;  %v6546_v24 = vld [vmem:[%s11665_s7 + $0x40] sm:$0xff] (!%p7018_p4)  ;;  %6641 = vmatprep.mubr.f32.mxu0 (!%p7018_p4), %v6535_v59 }
 0x697   : > { %v6438_v28 = vmax.f32 %v6437_v10, %v6026_v45  ;;  %v6563_v10 = vld [vmem:[%s11665_s7 + $0xc8] sm:$0xff] (!%p7018_p4)  ;;  %v7525_v45 = vpack.c.bf16 (!%p7018_p4), %v6545_v53, %v6544_v52 }
 0x69a   : > { %v5764_v40 = vpop.f32.mrb[184].mxu1 }
 0x69b   : > { %v5765_v19 = vadd.f32 %v5764_v40, %v10686_v11  ;;  %v5766_v4 = vpop.f32.mrb[185].mxu1  ;;  %v6656_v40 = vld [vmem:[%s11667_s9 + $0x10] sm:$0xff] (!%p7018_p4) }
 0x69c   : > { %v5767_v49 = vadd.f32 %v5766_v4, %v10689_v35  ;;  %v6547_v4 = vld [vmem:[%s11665_s7 + $0x48] sm:$0xff] (!%p7018_p4) }
 0x69d   : > { %v6027_v60 = vmax.f32 %v5765_v19, 0.0  ;;  %v7527_v19 = vpack.c.bf16 (!%p7018_p4), %v6563_v10, %v6562_v55  ;;  %v7020_v55 = vld [vmem:[%s11961_s15] ss:$0 sm:$0xff] (!%p7018_p4) }
 0x69e   : > { %v6028_v42 = vmax.f32 %v5767_v49, 0.0  ;;  %v5770_v61 = vpop.f32.mrb[186].mxu1  ;;  %v6564_v49 = vld [vmem:[%s11665_s7 + $0xd0] sm:$0xff] (!%p7018_p4) }
 0x69f   : > { %v6426_v26 = vmax.f32 %v6425_v20, %v6027_v60  ;;  %v5771_v8 = vadd.f32 %v5770_v61, %v10686_v11  ;;  %v5772_v7 = vpop.f32.mrb[187].mxu1  ;;  %v6449_v11 = vld [vmem:[#allocation2 + $0x10] sm:$0xff]  ;;  %v6654_v20 = vld [vmem:[%s11667_s9] sm:$0xff] (!%p7018_p4)  ;;  %v6565_v61 = vld [vmem:[%s11665_s7 + $0xd8] sm:$0xff] (!%p7018_p4) }
 0x6a0   : > { %v6439_v41 = vmax.f32 %v6438_v28, %v6028_v42  ;;  %v5773_v63 = vadd.f32 %v5772_v7, %v10689_v35  ;;  %v6655_v28 = vld [vmem:[%s11667_s9 + $0x8] sm:$0xff] (!%p7018_p4)  ;;  %v6657_v42 = vld [vmem:[%s11667_s9 + $0x18] sm:$0xff] (!%p7018_p4) }
 0x6a1   : > { %v6029_v33 = vmax.f32 %v5771_v8, 0.0  ;;  %v7543_v60 = vpack.c.bf16 (!%p7018_p4), %v6655_v28, %v6654_v20  ;;  %v6658_v8 = vld [vmem:[%s11667_s9 + $0x20] sm:$0xff] (!%p7018_p4)  ;;  %v6659_v7 = vld [vmem:[%s11667_s9 + $0x28] sm:$0xff] (!%p7018_p4) }
 0x6a2   : > { %v6030_v57 = vmax.f32 %v5773_v63, 0.0  ;;  %v7531_v63 = vpack.c.bf16 (!%p7018_p4), %v6565_v61, %v6564_v49 }
 0x6a3   : > { %v6427_v39 = vmax.f32 %v6426_v26, %v6029_v33  ;;  %v7547_v26 = vpack.c.bf16 (!%p7018_p4), %v6657_v42, %v6656_v40  ;;  %7544 = vmatprep.subr.bf16.mxu1 (!%p7018_p4), %v7543_v60  ;;  %v6548_v33 = vld [vmem:[%s11665_s7 + $0x50] sm:$0xff] (!%p7018_p4) }
 0x6a4   : > { %v6440_v1 = vmax.f32 %v6439_v41, %v6030_v57  ;;  %v7529_v41 = vpack.c.bf16 (!%p7018_p4), %v6547_v4, %v6546_v24  ;;  %7546 = vmatpush3.bf16.msra.mxu1 (!%p7018_p4), %v7543_v60  ;;  %v6549_v57 = vld [vmem:[%s11665_s7 + $0x58] sm:$0xff] (!%p7018_p4) }
 0x6a5   : > { %v6428_v14 = vrot.slane %v6427_v39, 4  ;;  %7548 = vmatprep.subr.bf16.mxu1 (!%p7018_p4), %v7547_v26 }
 0x6a6   : > { %v6441_v12 = vrot.slane %v6440_v1, 4 }
 0x6a7   : > { %v6429_v48 = vmax.f32 %v6427_v39, %v6428_v14  ;;  %v6566_v39 = vld [vmem:[%s11665_s7 + $0xe0] sm:$0xff] (!%p7018_p4)  ;;  %v6567_v14 = vld [vmem:[%s11665_s7 + $0xe8] sm:$0xff] (!%p7018_p4) }
 0x6a8   : > { %v6442_v13 = vmax.f32 %v6440_v1, %v6441_v12  ;;  %v7551_v1 = vpack.c.bf16 (!%p7018_p4), %v6659_v7, %v6658_v8  ;;  %v6660_v12 = vld [vmem:[%s11667_s9 + $0x30] sm:$0xff] (!%p7018_p4)  ;;  %7550 = vmatpush3.bf16.msra.mxu1 (!%p7018_p4), %v7547_v26 }
 0x6a9   : > { %v6430_v44 = vrot.slane %v6429_v48, 2 }
 0x6aa   : > { %v6443_v34 = vrot.slane %v6442_v13, 2  ;;  %7552 = vmatprep.subr.bf16.mxu1 (!%p7018_p4), %v7551_v1 }
 0x6ab   : > { %v6431_v38 = vmax.f32 %v6429_v48, %v6430_v44  ;;  %v6661_v48 = vld [vmem:[%s11667_s9 + $0x38] sm:$0xff] (!%p7018_p4)  ;;  %v7535_v44 = vpack.c.bf16 (!%p7018_p4), %v6567_v14, %v6566_v39 }
 0x6ac   : > { %v6444_v29 = vmax.f32 %v6442_v13, %v6443_v34  ;;  %v7533_v13 = vpack.c.bf16 (!%p7018_p4), %v6549_v57, %v6548_v33  ;;  %v6550_v34 = vld [vmem:[%s11665_s7 + $0x60] sm:$0xff] (!%p7018_p4)  ;;  %7554 = vmatpush3.bf16.msra.mxu1 (!%p7018_p4), %v7551_v1 }
 0x6ad   : > { %v6432_v51 = vrot.slane %v6431_v38, 1 }
 0x6ae   : > { %v6445_v21 = vrot.slane %v6444_v29, 1 }
 0x6af   : > { %v6433_v18 = vmax.f32 %v6431_v38, %v6432_v51  ;;  %6533 = sbr.rel (%p7018_p4) target bundleno = 2507 (0x9cb), region = 110  ;;  %v6551_v38 = vld [vmem:[%s11665_s7 + $0x68] sm:$0xff] (!%p7018_p4)  ;;  %v7555_v51 = vpack.c.bf16 (!%p7018_p4), %v6661_v48, %v6660_v12 }
 0x6b0   : > { %v6446_v31 = vmax.f32 %v6444_v29, %v6445_v21  ;;  %v6568_v29 = vld [vmem:[%s11665_s7 + $0xf0] sm:$0xff] (!%p7018_p4)  ;;  %v6569_v21 = vld [vmem:[%s11665_s7 + $0xf8] sm:$0xff] (!%p7018_p4) }
 0x6b1   : > { %v6510_v35 = vsel %vm6495_vm7, %v6433_v18, %v11414_v2  ;;  %v6538_v2 = vld [vmem:[%s11665_s7] sm:$0xff] (!%p7018_p4)  ;;  %7556 = vmatprep.subr.bf16.mxu1 (!%p7018_p4), %v7555_v51 }
 0x6b2   : > { %v6524_v43 = vmax.f32 %v6449_v11, %v6510_v35  ;;  %v6517_v15 = vsel %vm6495_vm7, %v6446_v31, %v11418_v50  ;;  %v6539_v50 = vld [vmem:[%s11665_s7 + $0x8] sm:$0xff] (!%p7018_p4)  ;;  %v6662_v18 = vld [vmem:[%s11667_s9 + $0x40] sm:$0xff] (!%p7018_p4)  ;;  %v7537_v31 = vpack.c.bf16 (!%p7018_p4), %v6551_v38, %v6550_v34  ;;  %v6552_v35 = vld [vmem:[%s11665_s7 + $0x70] sm:$0xff] (!%p7018_p4)  ;;  %7558 = vmatpush3.bf16.msra.mxu1 (!%p7018_p4), %v7555_v51 }
 0x6b3   : > { %v6525_v17 = vmax.f32 %v6450_v6, %v6517_v15  ;;  %v7513_v23 = vpack.c.bf16 (!%p7018_p4), %v6539_v50, %v6538_v2  ;;  %v6663_v11 = vld [vmem:[%s11667_s9 + $0x48] sm:$0xff] (!%p7018_p4)  ;;  %v7539_v6 = vpack.c.bf16 (!%p7018_p4), %v6569_v21, %v6568_v29  ;;  %v6665_v50 = vld [vmem:[%s11667_s9 + $0x58] sm:$0xff] (!%p7018_p4) }
 0x6b4   : > { %6528 = vst [vmem:[#allocation2 + $0x10] sm:$0xff] %v6524_v43  ;;  %v6553_v43 = vld [vmem:[%s11665_s7 + $0x78] sm:$0xff] (!%p7018_p4)  ;;  %v7559_v15 = vpack.c.bf16 (!%p7018_p4), %v6663_v11, %v6662_v18  ;;  %v7563_v46 = vpack.c.bf16 (!%p7018_p4), %v6665_v50, %v6664_v3 }
 0x6b5   : > { %6529 = vst [vmem:[#allocation2 + $0x18] sm:$0xff] %v6525_v17  ;;  %7514 = vmatpush3.bf16.msra.mxu0 (!%p7018_p4), %v7513_v23  ;;  %v7541_v17 = vpack.c.bf16 (!%p7018_p4), %v6553_v43, %v6552_v35  ;;  %v6667_v23 = vld [vmem:[%s11667_s9 + $0x68] sm:$0xff] (!%p7018_p4) }
 0x6b6   : > { %7516 = vmatprep.subr.bf16.mxu0 %v7515_v62  ;;  %7560 = vmatprep.subr.bf16.mxu1 %v7559_v15  ;;  %v7567_v62 = vpack.c.bf16 %v6667_v23, %v6666_v0 }
 0x6b7   : > { %7562 = vmatpush3.bf16.msra.mxu1 %v7559_v15 }
 0x6b8   : > { %7564 = vmatprep.subr.bf16.mxu1 %v7563_v46 }
 0x6b9   : > { %7518 = vmatpush3.bf16.msra.mxu0 %v7517_v36 }
 0x6ba   : > { %7520 = vmatprep.subr.bf16.mxu0 %v7519_v27  ;;  %v7019_v27 = vld [vmem:[%s11666_s8] ss:$0 sm:$0xff] }
 0x6bb   : > { %v6536_v2 = vld [vmem:[#allocation2 + $0x10] sm:$0xff]  ;;  %7566 = vmatpush3.bf16.msra.mxu1 %v7563_v46 }
 0x6bc   : > { %v6537_v58 = vld [vmem:[#allocation2 + $0x18] sm:$0xff]  ;;  %7568 = vmatprep.subr.bf16.mxu1 %v7567_v62 }
 0x6bd   : > { %7522 = vmatpush3.bf16.msra.mxu0 %v7521_v56 }
 0x6be   : > { %7524 = vmatprep.subr.bf16.mxu0 %v7523_v37 }
 0x6bf   : > { %7570 = vmatpush3.bf16.msra.mxu1 %v7567_v62 }
 0x6c0   : > { %7572 = vmatprep.subr.bf16.mxu1 %v7571_v9 }
 0x6c1   : > { %7526 = vmatpush3.bf16.msra.mxu0 %v7525_v45 }
 0x6c2   : > { %7528 = vmatprep.subr.bf16.mxu0 %v7527_v19 }
 0x6c3   : > { %7574 = vmatpush3.bf16.msra.mxu1 %v7571_v9 }
 0x6c5   : > { %7530 = vmatpush3.bf16.msra.mxu0 %v7529_v41 }
 0x6c6   : > { %7532 = vmatprep.subr.bf16.mxu0 %v7531_v63 }
 0x6c9   : > { %7534 = vmatpush3.bf16.msra.mxu0 %v7533_v13 }
 0x6ca   : > { %7536 = vmatprep.subr.bf16.mxu0 %v7535_v44 }
 0x6cd   : > { %7538 = vmatpush3.bf16.msra.mxu0 %v7537_v31 }
 0x6ce   : > { %7540 = vmatprep.subr.bf16.mxu0 %v7539_v6 }
 0x6d1   : > { %7542 = vmatpush3.bf16.msra.mxu0 %v7541_v17 }
 0x6d4   : > { %6642 = vmatmul.mubr.f32.vlgmr.msra.gmra.mrb[0].mxu0 %v6534_v16 }
 0x6d5   : > { %6646 = vmatprep.mubr.f32.mxu0 %v6537_v58 }
 0x6d8   : > { %6647 = vmatmul.mubr.f32.gmra.mrb[2].mxu0 %v6536_v2 }
 0x7a7   : > { %v7196_v54 = vpop.f32.mrb[0].mxu0 }
 0x7a8   : > { %v7197_v36 = vpop.f32.mrb[1].mxu0 }
 0x7a9   : > { %v7198_v25 = vadd.f32 %v7197_v36, %v7196_v54 }
 0x7ab   : > { %v7199_v30 = vpop.f32.mrb[2].mxu0  ;;  %v6644_v5 = vadd.f32 %v7198_v25, %v7019_v27 }
 0x7ac   : > { %v7200_v32 = vpop.f32.mrb[3].mxu0 }
 0x7ad   : > { %v7201_v56 = vadd.f32 %v7200_v32, %v7199_v30  ;;  %v6652_v37 = vmax.f32 %v6644_v5, 0.0 }
 0x7af   : > { %v6649_v52 = vadd.f32 %v7201_v56, %v7019_v27  ;;  %7460 = vmatprep.mubr.f32.mxu1 %v6652_v37 }
 0x7b1   : > { %v6653_v53 = vmax.f32 %v6649_v52, 0.0 }
 0x7b3   : > { %7461 = vmatmul.mubr.f32.vlgmr.msra.gmra.mrb[0].mxu1 %v6653_v53 }
 0x886   : > { %v7462_v10 = vpop.f32.mrb[0].mxu1 }
 0x887   : > { %v6743_v59 = vpop.f32.mrb[1].mxu1  ;;  %v6749_v45 = vadd.f32 %v7462_v10, %v7020_v55 }
 0x888   : > { %v6744_v24 = vadd.f32 %v7020_v55, %v6743_v59 }
 0x88a   : > { %6752 = vmax.xlane.f32.xlu0 %v6744_v24 }
 0x88e   : > { %6754 = vmax.xlane.f32.xlu0 %v6749_v45 }
 0x917   : > { %v6753_v20 = vpop.xlane.xlu0 %6752 }
 0x918   : > { %v6756_v28 = vsub.f32 %v6744_v24, %v6753_v20 }
 0x91a   : > { %v6758_v40 = vmul.f32 1.442695, %v6756_v28 }
 0x91b   : > { %v6755_v19 = vpop.xlane.xlu0 %6754 }
 0x91c   : > { %v6757_v4 = vsub.f32 %v6749_v45, %v6755_v19  ;;  %7976 = vpow2.f32 %v6758_v40 }
 0x91e   : > { %v6760_v49 = vmul.f32 1.442695, %v6757_v4 }
 0x920   : > { %7978 = vpow2.f32 %v6760_v49 }
 0x926   : > { %v7977_v60 = vpop.eup %7976 }
 0x927   : > { %6762 = vadd.xlane.f32.xlu1 %v7977_v60 }
 0x92a   : > { %v7979_v42 = vpop.eup %7978 }
 0x92b   : > { %6764 = vadd.xlane.f32.xlu1 %v7979_v42 }
 0x9b4   : > { %v6763_v61 = vpop.xlane.xlu1 %6762 }
 0x9b5   : > { %7980 = vlog2.f32 %v6763_v61 }
 0x9b8   : > { %v6765_v26 = vpop.xlane.xlu1 %6764 }
 0x9b9   : > { %7982 = vlog2.f32 %v6765_v26 }
 0x9bf   : > { %v7981_v8 = vpop.eup %7980 }
 0x9c0   : > { %v6767_v7 = vmul.f32 0.6931472, %v7981_v8 }
 0x9c2   : > { %v6770_v41 = vadd.f32 %v6767_v7, %v6753_v20 }
 0x9c3   : > { %v7983_v63 = vpop.eup %7982 }
 0x9c4   : > { %v6772_v33 = vsub.f32 %v6744_v24, %v6770_v41  ;;  %v6769_v57 = vmul.f32 0.6931472, %v7983_v63 }
 0x9c6   : > { %6774 = vst [vmem:[%s8531_s29] sm:$0xff] %v6772_v33  ;;  %v6771_v39 = vadd.f32 %v6769_v57, %v6755_v19 }
 0x9c8   : > { %v6773_v1 = vsub.f32 %v6749_v45, %v6771_v39 }
 0x9ca   : > { %6775 = vst [vmem:[%s8531_s29 + $0x8] sm:$0xff] %v6773_v1 }
 0x9cb PF: > { %s11962_s12 = sld [smem:[#allocation8_spill]]  ;;  %s11963_s30 = sld [smem:[#allocation125_spill]] }
 0x9cc   : > { %s6790_s20 = sshll.u32 %s8531_s29, 4  ;;  %s11964_s23 = sand.u32 1, %s8062_s18   ;;  %s11596_s20 = int_to_ptr.vmem [resolvable:$true] %s6790_s20 }
 0x9cd   : > { %s11600_s22 = scalar_lea.sflag [#allocation5], %s11964_s23  ;;  %s7984_s13 = scalar_lea.vmem %s11596_s20, 256 }
 0x9ce   : > { %p7985_p5 = scmp.ne.s32.totalorder %s11596_s20, %s7984_s13  ;;  %s8101_s15 = smov [#allocation4]  }
 0x9d0   : > { %p7986_p6 = pnand %p7985_p5, %p8236_p7 }
 0x9d1   : > { %s7027_s11 = sshll.u32 %s11962_s12, 8  ;;  %s7988_s12 = sshll.u32 %s8101_s15, 4  ;;  %s7989_s12 = int_to_ptr.vmem [resolvable:$false] %s7988_s12 }
 0x9d2   : > { %s11593_s28 = scalar_lea.hbm %s11963_s30, %s7027_s11  ;;  %p7987_p8 = pneg %p7986_p6 }
 0x9d3   : > { %s7990_s14 = scalar_lea.vmem %s7989_s12, 512  ;;  %p7991_p9 = scmp.lt.s32.totalorder %s11596_s20, %s7989_s12 }
 0x9d4   : > { %p7992_p10 = scmp.lt.s32.totalorder %s7990_s14, %s7984_s13 }
 0x9d6   : > { %p7993_p11 = por %p7992_p10, %p7991_p9 }
 0x9d8   : > { %p7994_p13 = pnand %p7993_p11, %p7987_p8 }
 0x9da   : > { %7997 = shalt.err (!%p7994_p13)
}
 0x9db   : > { %s7998_s29 = scalar_lea.hbm %s11593_s28, 256  ;;  %s8002_s23 = scalar_lea.hbm %s11963_s30, 512 }
 0x9dc   : > { %p7999_p0 = scmp.ne.s32.totalorder %s11593_s28, %s7998_s29  ;;  %p8003_p3 = scmp.lt.u32.totalorder %s11593_s28, %s11963_s30 }
 0x9dd   : > { %p8004_p4 = scmp.lt.u32.totalorder %s8002_s23, %s7998_s29  ;;  %p8006_p6 = scmp.lt.u32.totalorder %s7998_s29, %s11593_s28 }
 0x9de   : > { %p8000_p1 = pnand %p7999_p0, %p8236_p7 }
 0x9df   : > { %p8005_p5 = por %p8004_p4, %p8003_p3 }
 0x9e0   : > { %p8001_p2 = pneg %p8000_p1 }
 0x9e1   : > { %p8007_p8 = por %p8006_p6, %p8005_p5 }
 0x9e3   : > { %p8008_p9 = pnand %p8007_p8, %p8001_p2 }
 0x9e5   : > { %8011 = shalt.err (!%p8008_p9)
}
 0x9e6   : > { %s8102_s13 = smov 128   ;;  %s8103_s14 = smov 8  }
 0x9e7   : > { %7591 = dma.vmem_to_hbm [thread:$0]  (%p8236_p7), %s11596_s20, 256, %s11593_s28, %s11600_s22, %s8102_s13, %s8102_s13, %s8103_s14  }
 0x9e8 PF: > { %s11965_s11 = sld [smem:[#allocation7_spill]]  ;;  %p7597_p10 = scmp.ge.s32.totalorder %s8094_s26, 2 }
 0x9ea   : > { %p7594_p11 = pnand %p7597_p10, %p8244_p12 }
 0x9ee   : > { %s6805_s15 = sand.u32 1, %s11965_s11  }
 0x9ef   : > { %s6806_s29 = scalar_lea.sflag [#allocation5], %s6805_s15 }
 0x9f0   : > { %8053 = dma.done.wait (!%p7594_p11), %s6806_s29, 256  }
 0x9f1   : > { %8055 = vsyncadd (!%p7594_p11), %s6806_s29, 4294967040  ;;  %s24_s26 = sadd.s32 1, %s8094_s26   ;;  %s11967_s16 = sld [smem:[#allocation9_spill]] }
 0x9f2   : > { %p21_p13 = scmp.ge.s32.totalorder %s24_s26, 10   ;;  %s11968_s28 = sld [smem:[#allocation10_spill]] }
 0x9f3   : > { %s11969_s17 = smov %s8062_s18  ;;  %s11970_s18 = smov %s8066_s19 }
 0x9f4   : > { %s11971_s19 = smov %s8249_s10  ;;  %s11972_s20 = smov %s8074_s21 }
 0x9f5   : > { %s11973_s21 = smov %s8252_s27  ;;  %s11974_s22 = smov %s8086_s24 }
 0x9f6   : > { %s11975_s23 = smov %s8090_s25  ;;  %23 = sbr.rel (!%p21_p13) target bundleno = 9 (0x9), region = 150 }
 0x9f7   : > { %s11976_s24 = smov %s11967_s16 }
 0x9f8   : > { %s11977_s25 = smov %s11968_s28 }
 0x9fd   :  { %6811 = vsyncpa [#allocation5], 1 }
 0x9fe   :  { %6813 = vsyncpa [#allocation5 + $0x1], 1 }

</bundles_post_ra>
